<compile_context>
chip_gen: v5e
topology: v5e:2x2
jax: 0.10.0
libtpu: 0.0.40
codegen_flags: <defaults>
</compile_context>

<pallas_src>
import functools
import math

import numpy as np
import jax
import jax.numpy as jnp
from jax.experimental import pallas as pl
from jax.experimental.pallas import tpu as pltpu


# ----------------------------------------------------------------------------
# Host-side per-axis operator matrices (separable pool / bilinear upsample).
# ----------------------------------------------------------------------------
def _adaptive_pool_matrix(in_size: int, bin_size: int) -> np.ndarray:
    """(bin, in) averaging matrix matching nn.AdaptiveAvgPool2d along one axis."""
    m = np.zeros((bin_size, in_size), dtype=np.float32)
    for i in range(bin_size):
        start = (i * in_size) // bin_size
        end = -((-(i + 1) * in_size) // bin_size)  # ceil((i+1)*in/bin)
        m[i, start:end] = 1.0 / float(end - start)
    return m


def _bilinear_matrix(out_size: int, in_size: int) -> np.ndarray:
    """(out, in) matrix for F.interpolate(mode='bilinear', align_corners=True), one axis."""
    m = np.zeros((out_size, in_size), dtype=np.float32)
    for h in range(out_size):
        if in_size == 1 or out_size == 1:
            src = 0.0
        else:
            src = h * (in_size - 1) / (out_size - 1)
        i0 = min(int(math.floor(src)), in_size - 1)
        i1 = min(i0 + 1, in_size - 1)
        w1 = src - i0
        m[h, i0] += 1.0 - w1
        m[h, i1] += w1
    return m


# ----------------------------------------------------------------------------
# Kernel A: all pyramid stages fused.  One grid step = one batch element.
#   per bin:  pool-W (batched matmul) -> pool-H (2D matmul) -> 1x1 conv (2D matmul)
#             -> folded BN + ReLU -> upsample-H (2D matmul) -> upsample-W (FMA accum)
#   output:   single concatenated (H, W, nb*Cout) block (lane-dense store).
# ----------------------------------------------------------------------------
def _stages_kernel(bins, x_ref, ph_ref, pw_ref, uh_ref, uw_ref, w_ref,
                   sc_ref, sh_ref, o_ref):
    # x_ref : (1, H, W, C)         NHWC input tile (read once, reused for all bins)
    # ph_ref: (nb, bmax, H)        per-bin H-pool operators (zero padded to bmax)
    # pw_ref: (nb, bmax, W)        per-bin W-pool operators
    # uh_ref: (nb, H, bmax)        per-bin H-upsample operators
    # uw_ref: (nb, W, bmax)        per-bin W-upsample operators
    # w_ref : (nb, C, Cout)        per-bin 1x1 conv weights
    # sc/sh : (nb, Cout)           folded BatchNorm scale / shift
    # o_ref : (1, H, W, nb*Cout)   concatenated stage outputs
    H, W, C = x_ref.shape[1], x_ref.shape[2], x_ref.shape[3]
    Cout = w_ref.shape[2]

    x = x_ref[0].astype(jnp.float32)                                    # (H, W, C)

    outs = []
    for k, b in enumerate(bins):                                        # static unroll
        ph = ph_ref[k, :b, :].astype(jnp.float32)                       # (b, H)
        pw = pw_ref[k, :b, :].astype(jnp.float32)                       # (b, W)
        uh = uh_ref[k, :, :b].astype(jnp.float32)                       # (H, b)
        w1 = w_ref[k].astype(jnp.float32)                               # (C, Cout)
        sc = sc_ref[k:k + 1, :]                                         # (1, Cout)
        sh = sh_ref[k:k + 1, :]                                         # (1, Cout)

        # Pool along W for all pooled columns at once (batched over the H rows).
        pwb = jnp.broadcast_to(pw[None, :, :], (H, b, W))
        tw = jnp.einsum('hjw,hwc->hjc', pwb, x,
                        preferred_element_type=jnp.float32)             # (H, b, C)

        up = jnp.zeros((H, W, Cout), jnp.float32)
        for j in range(b):                                              # b <= 6, static
            twj = tw[:, j, :]                                           # (H, C)
            # Pool along H  -> pooled column j of the (b, b) adaptive-pool grid.
            pj = jnp.dot(ph, twj, preferred_element_type=jnp.float32)   # (b, C)
            # 1x1 conv + folded BN + ReLU.
            zj = jnp.dot(pj, w1, preferred_element_type=jnp.float32)    # (b, Cout)
            zj = jnp.maximum(zj * sc + sh, 0.0)
            # Bilinear upsample along H (align_corners=True).
            tuj = jnp.dot(uh, zj, preferred_element_type=jnp.float32)   # (H, Cout)
            # Bilinear upsample along W: accumulate uw[:, j] (x) tuj.
            uwj = uw_ref[k, :, j:j + 1].astype(jnp.float32)             # (W, 1)
            up = up + uwj[None, :, :] * tuj[:, None, :]                 # (H, W, Cout)
        outs.append(up)

    o_ref[0] = jnp.concatenate(outs, axis=-1).astype(o_ref.dtype)       # lane-dense store


def psp_stages(x_nhwc, params, bins):
    N, H, W, C = x_nhwc.shape
    nb = len(bins)
    bmax = max(bins)
    Cout = params["w"].shape[-1]
    kernel = functools.partial(_stages_kernel, bins)
    return pl.pallas_call(
        kernel,
        out_shape=jax.ShapeDtypeStruct((N, H, W, nb * Cout), x_nhwc.dtype),
        grid_spec=pltpu.PrefetchScalarGridSpec(
            num_scalar_prefetch=0,
            grid=(N,),
            in_specs=[
                pl.BlockSpec((1, H, W, C), lambda n: (n, 0, 0, 0)),
                pl.BlockSpec((nb, bmax, H), lambda n: (0, 0, 0)),
                pl.BlockSpec((nb, bmax, W), lambda n: (0, 0, 0)),
                pl.BlockSpec((nb, H, bmax), lambda n: (0, 0, 0)),
                pl.BlockSpec((nb, W, bmax), lambda n: (0, 0, 0)),
                pl.BlockSpec((nb, C, Cout), lambda n: (0, 0, 0)),
                pl.BlockSpec((nb, Cout), lambda n: (0, 0)),
                pl.BlockSpec((nb, Cout), lambda n: (0, 0)),
            ],
            out_specs=pl.BlockSpec((1, H, W, nb * Cout), lambda n: (n, 0, 0, 0)),
        ),
        compiler_params=pltpu.CompilerParams(
            dimension_semantics=("parallel",),
            vmem_limit_bytes=64 * 1024 * 1024),
    )(x_nhwc, params["ph"], params["pw"], params["uh"], params["uw"],
      params["w"], params["scale"], params["shift"])


# ----------------------------------------------------------------------------
# Kernel B: bottleneck 3x3 conv (padding=1, no bias) + folded BN + ReLU.
# Concat and padding are fused in: the two channel groups (features, stage outputs)
# arrive separately, are zero-padded into VMEM scratch in-kernel, and each 3x3 tap
# is a flat (H*W, Cin_g) @ (Cin_g, Cout) MXU matmul accumulation per group.
# ----------------------------------------------------------------------------
def _bottleneck_kernel(x_ref, s_ref, wx_ref, ws_ref, sc_ref, sh_ref, o_ref,
                       xpad_ref, spad_ref):
    # x_ref : (1, H, W, C)        original features (channel group 0)
    # s_ref : (1, H, W, Cs)       fused stage outputs (channel group 1, Cs = nb*Cout)
    # wx_ref: (9*C,  Cout)        conv weight rows (dh, dw, c) for group 0
    # ws_ref: (9*Cs, Cout)        conv weight rows (dh, dw, c) for group 1
    # sc/sh : (1, Cout)           folded BatchNorm scale / shift
    # o_ref : (1, H*W, Cout)
    # xpad/spad: VMEM scratch (H+2, W+2, C/Cs) zero-padded copies (padding=1 in-kernel)
    H, W = x_ref.shape[1], x_ref.shape[2]
    C = x_ref.shape[3]
    Cs = s_ref.shape[3]
    Cout = o_ref.shape[2]

    xpad_ref[...] = jnp.zeros_like(xpad_ref)
    spad_ref[...] = jnp.zeros_like(spad_ref)
    xpad_ref[1:H + 1, 1:W + 1, :] = x_ref[0].astype(jnp.float32)
    spad_ref[1:H + 1, 1:W + 1, :] = s_ref[0].astype(jnp.float32)

    acc = jnp.zeros((H * W, Cout), jnp.float32)
    for dh in range(3):
        for dw in range(3):
            k = dh * 3 + dw
            px = xpad_ref[dh:dh + H, dw:dw + W, :].reshape(H * W, C)
            ps = spad_ref[dh:dh + H, dw:dw + W, :].reshape(H * W, Cs)
            acc = acc + jnp.dot(px, wx_ref[k * C:(k + 1) * C, :],
                                preferred_element_type=jnp.float32)
            acc = acc + jnp.dot(ps, ws_ref[k * Cs:(k + 1) * Cs, :],
                                preferred_element_type=jnp.float32)

    y = jnp.maximum(acc * sc_ref[...] + sh_ref[...], 0.0)
    # Dropout2d(p=0.1): identity in eval mode.
    o_ref[0] = y.astype(o_ref.dtype)


def psp_bottleneck(x_nhwc, stages_nhwc, wx, ws, scale, shift):
    N, H, W, C = x_nhwc.shape
    Cs = stages_nhwc.shape[-1]
    Cout = wx.shape[-1]
    return pl.pallas_call(
        _bottleneck_kernel,
        out_shape=jax.ShapeDtypeStruct((N, H * W, Cout), x_nhwc.dtype),
        grid_spec=pltpu.PrefetchScalarGridSpec(
            num_scalar_prefetch=0,
            grid=(N,),
            in_specs=[
                pl.BlockSpec((1, H, W, C), lambda n: (n, 0, 0, 0)),
                pl.BlockSpec((1, H, W, Cs), lambda n: (n, 0, 0, 0)),
                pl.BlockSpec((9 * C, Cout), lambda n: (0, 0)),
                pl.BlockSpec((9 * Cs, Cout), lambda n: (0, 0)),
                pl.BlockSpec((1, Cout), lambda n: (0, 0)),
                pl.BlockSpec((1, Cout), lambda n: (0, 0)),
            ],
            out_specs=pl.BlockSpec((1, H * W, Cout), lambda n: (n, 0, 0)),
            scratch_shapes=[
                pltpu.VMEM((H + 2, W + 2, C), jnp.float32),
                pltpu.VMEM((H + 2, W + 2, Cs), jnp.float32),
            ],
        ),
        compiler_params=pltpu.CompilerParams(
            dimension_semantics=("parallel",),
            vmem_limit_bytes=64 * 1024 * 1024),
    )(x_nhwc, stages_nhwc, wx, ws, scale, shift)


# ----------------------------------------------------------------------------
# Full module forward (wrapper / glue).
# ----------------------------------------------------------------------------
def psp_module_forward(features_nchw, params, *, bins):
    x = jnp.transpose(features_nchw, (0, 2, 3, 1))          # NCHW -> NHWC
    N, H, W, C = x.shape
    nb = len(bins)
    Cout = params["w"].shape[-1]

    stages = psp_stages(x, params, bins)                     # (N, H, W, nb*Cout)

    # Split the bottleneck weight by channel group (concat fused into the kernel).
    wb = params["bottleneck_w"]                              # HWIO (3,3,C+nb*Cout,Cout)
    wx = wb[:, :, :C, :].reshape(9 * C, Cout)
    ws = wb[:, :, C:, :].reshape(9 * nb * Cout, Cout)

    out = psp_bottleneck(x, stages, wx, ws,
                         params["bottleneck_scale"], params["bottleneck_shift"])
    out = out.reshape(N, H, W, Cout)
    return jnp.transpose(out, (0, 3, 1, 2))                  # back to NCHW


# ----------------------------------------------------------------------------
# Deterministic parameter construction (synthetic weights; BN folded to scale/shift).
# ----------------------------------------------------------------------------
def _folded_bn(c):
    gamma = 1.0 + 0.05 * jnp.arange(c, dtype=jnp.float32)
    beta = 0.02 * jnp.arange(c, dtype=jnp.float32) - 0.01
    mean = 0.01 * jnp.arange(c, dtype=jnp.float32)
    var = 1.0 + 0.1 * jnp.arange(c, dtype=jnp.float32)
    scale = gamma / jnp.sqrt(var + 1e-5)
    shift = beta - mean * scale
    return scale.reshape(1, c), shift.reshape(1, c)


def init_params(key, in_channels, bin_sizes, H, W):
    nb = len(bin_sizes)
    out_channels = in_channels // nb
    bmax = max(bin_sizes)
    keys = jax.random.split(key, nb + 1)

    ph_all = np.zeros((nb, bmax, H), np.float32)
    pw_all = np.zeros((nb, bmax, W), np.float32)
    uh_all = np.zeros((nb, H, bmax), np.float32)
    uw_all = np.zeros((nb, W, bmax), np.float32)
    w_list, sc_list, sh_list = [], [], []
    for i, b in enumerate(bin_sizes):
        ph_all[i, :b, :] = _adaptive_pool_matrix(H, b)
        pw_all[i, :b, :] = _adaptive_pool_matrix(W, b)
        uh_all[i, :, :b] = _bilinear_matrix(H, b)
        uw_all[i, :, :b] = _bilinear_matrix(W, b)
        w_list.append(0.1 * jax.random.normal(keys[i], (in_channels, out_channels),
                                              jnp.float32))
        sc, sh = _folded_bn(out_channels)
        sc_list.append(sc)
        sh_list.append(sh)

    cin_cat = in_channels + out_channels * nb
    wb = 0.05 * jax.random.normal(keys[-1], (3, 3, cin_cat, out_channels), jnp.float32)
    bscale, bshift = _folded_bn(out_channels)
    return dict(
        ph=jnp.asarray(ph_all), pw=jnp.asarray(pw_all),
        uh=jnp.asarray(uh_all), uw=jnp.asarray(uw_all),
        w=jnp.stack(w_list, 0),                     # (nb, C, Cout)
        scale=jnp.concatenate(sc_list, 0),          # (nb, Cout)
        shift=jnp.concatenate(sh_list, 0),          # (nb, Cout)
        bottleneck_w=wb,                            # HWIO
        bottleneck_scale=bscale, bottleneck_shift=bshift,
    )


# ----------------------------------------------------------------------------
# Pure-JAX reference (validation).
# ----------------------------------------------------------------------------
def reference_forward(features_nchw, params, bins):
    x = jnp.transpose(features_nchw, (0, 2, 3, 1)).astype(jnp.float32)
    pyr = [x]
    for k, b in enumerate(bins):
        ph = params["ph"][k, :b, :]
        pw = params["pw"][k, :b, :]
        uh = params["uh"][k, :, :b]
        uw = params["uw"][k, :, :b]
        w1 = params["w"][k]
        sc = params["scale"][k]
        sh = params["shift"][k]
        pooled = jnp.einsum('ih,jw,nhwc->nijc', ph, pw, x)
        z = jnp.maximum(jnp.einsum('nijc,co->nijo', pooled, w1) * sc + sh, 0.0)
        up = jnp.einsum('hi,wj,nijo->nhwo', uh, uw, z)
        pyr.append(up)
    cat = jnp.concatenate(pyr, axis=-1)
    out = jax.lax.conv_general_dilated(
        cat, params["bottleneck_w"], window_strides=(1, 1), padding=((1, 1), (1, 1)),
        dimension_numbers=('NHWC', 'HWIO', 'NHWC'))
    out = jnp.maximum(out * params["bottleneck_scale"] + params["bottleneck_shift"], 0.0)
    return jnp.transpose(out, (0, 3, 1, 2))


if __name__ == "__main__":
    N, C, H, W = 2, 8, 12, 12                 # in_channels = 8
    bins = (1, 2, 3, 6)                       # out_channels = 8 // 4 = 2
    key = jax.random.PRNGKey(0)
    kx, kp = jax.random.split(key)
    features = jax.random.normal(kx, (N, C, H, W), jnp.float32)   # NCHW, like PyTorch
    params = init_params(kp, C, bins, H, W)

    fwd = jax.jit(functools.partial(psp_module_forward, bins=bins))
    out = jax.block_until_ready(fwd(features, params))

    assert out.shape == (N, C // len(bins), H, W), out.shape
    ref = reference_forward(features, params, bins)
    np.testing.assert_allclose(np.asarray(out), np.asarray(ref), rtol=5e-2, atol=5e-2)
    print("KERNEL_OK")
</pallas_src>

<mosaic_0001>
module attributes {stable_mosaic.version = 11 : i64} {
  func.func @_bottleneck_kernel(%arg0: i32, %arg1: memref<1x12x12x8xf32, #tpu.memory_space<vmem>>, %arg2: memref<1x12x12x8xf32, #tpu.memory_space<vmem>>, %arg3: memref<72x2xf32, #tpu.memory_space<vmem>>, %arg4: memref<72x2xf32, #tpu.memory_space<vmem>>, %arg5: memref<1x2xf32, #tpu.memory_space<vmem>>, %arg6: memref<1x2xf32, #tpu.memory_space<vmem>>, %arg7: memref<1x144x2xf32, #tpu.memory_space<vmem>>, %arg8: memref<14x14x8xf32, #tpu.memory_space<vmem>>, %arg9: memref<14x14x8xf32, #tpu.memory_space<vmem>>) attributes {dimension_semantics = [#tpu.dimension_semantics<parallel>], iteration_bounds = array<i64: 2>, scalar_prefetch = 0 : i64, scratch_operands = 2 : i64, tpu.core_type = #tpu.core_type<tc>, window_params = [{transform_indices = @transform_0, window_bounds = array<i64: 1, 12, 12, 8>}, {transform_indices = @transform_1, window_bounds = array<i64: 1, 12, 12, 8>}, {pipeline_mode = #tpu.pipeline_mode<synchronous>, transform_indices = @transform_2, window_bounds = array<i64: 72, 2>}, {pipeline_mode = #tpu.pipeline_mode<synchronous>, transform_indices = @transform_3, window_bounds = array<i64: 72, 2>}, {pipeline_mode = #tpu.pipeline_mode<synchronous>, transform_indices = @transform_4, window_bounds = array<i64: 1, 2>}, {pipeline_mode = #tpu.pipeline_mode<synchronous>, transform_indices = @transform_5, window_bounds = array<i64: 1, 2>}, {transform_indices = @transform_6, window_bounds = array<i64: 1, 144, 2>}]} {
    %cst = arith.constant 0.000000e+00 : f32
    %0 = vector.broadcast %cst : f32 to vector<14x14x8xf32>
    %c0 = arith.constant 0 : index
    %c0_0 = arith.constant 0 : index
    %c0_1 = arith.constant 0 : index
    %1 = vector.load %arg8[%c0, %c0_0, %c0_1] : memref<14x14x8xf32, #tpu.memory_space<vmem>>, vector<14x14x8xf32>
    tpu.vector_store %arg8[%c0, %c0_0, %c0_1], %0 {strides = array<i32>} : memref<14x14x8xf32, #tpu.memory_space<vmem>>, vector<14x14x8xf32>,
    %cst_2 = arith.constant 0.000000e+00 : f32
    %2 = vector.broadcast %cst_2 : f32 to vector<14x14x8xf32>
    %c0_3 = arith.constant 0 : index
    %c0_4 = arith.constant 0 : index
    %c0_5 = arith.constant 0 : index
    %3 = vector.load %arg9[%c0_3, %c0_4, %c0_5] : memref<14x14x8xf32, #tpu.memory_space<vmem>>, vector<14x14x8xf32>
    tpu.vector_store %arg9[%c0_3, %c0_4, %c0_5], %2 {strides = array<i32>} : memref<14x14x8xf32, #tpu.memory_space<vmem>>, vector<14x14x8xf32>,
    %c0_6 = arith.constant 0 : index
    %c0_7 = arith.constant 0 : index
    %c0_8 = arith.constant 0 : index
    %c0_9 = arith.constant 0 : index
    %4 = vector.load %arg1[%c0_6, %c0_7, %c0_8, %c0_9] : memref<1x12x12x8xf32, #tpu.memory_space<vmem>>, vector<1x12x12x8xf32>
    %5 = vector.shape_cast %4 : vector<1x12x12x8xf32> to vector<12x12x8xf32>
    %c1 = arith.constant 1 : index
    %c1_10 = arith.constant 1 : index
    %c0_11 = arith.constant 0 : index
    %6 = vector.load %arg8[%c1, %c1_10, %c0_11] : memref<14x14x8xf32, #tpu.memory_space<vmem>>, vector<12x12x8xf32>
    tpu.vector_store %arg8[%c1, %c1_10, %c0_11], %5 {strides = array<i32>} : memref<14x14x8xf32, #tpu.memory_space<vmem>>, vector<12x12x8xf32>,
    %c0_12 = arith.constant 0 : index
    %c0_13 = arith.constant 0 : index
    %c0_14 = arith.constant 0 : index
    %c0_15 = arith.constant 0 : index
    %7 = vector.load %arg2[%c0_12, %c0_13, %c0_14, %c0_15] : memref<1x12x12x8xf32, #tpu.memory_space<vmem>>, vector<1x12x12x8xf32>
    %8 = vector.shape_cast %7 : vector<1x12x12x8xf32> to vector<12x12x8xf32>
    %c1_16 = arith.constant 1 : index
    %c1_17 = arith.constant 1 : index
    %c0_18 = arith.constant 0 : index
    %9 = vector.load %arg9[%c1_16, %c1_17, %c0_18] : memref<14x14x8xf32, #tpu.memory_space<vmem>>, vector<12x12x8xf32>
    tpu.vector_store %arg9[%c1_16, %c1_17, %c0_18], %8 {strides = array<i32>} : memref<14x14x8xf32, #tpu.memory_space<vmem>>, vector<12x12x8xf32>,
    %cst_19 = arith.constant 0.000000e+00 : f32
    %10 = vector.broadcast %cst_19 : f32 to vector<144x2xf32>
    %c0_20 = arith.constant 0 : index
    %c0_21 = arith.constant 0 : index
    %c0_22 = arith.constant 0 : index
    %11 = vector.load %arg8[%c0_20, %c0_21, %c0_22] : memref<14x14x8xf32, #tpu.memory_space<vmem>>, vector<12x12x8xf32>
    %12 = vector.shape_cast %11 : vector<12x12x8xf32> to vector<144x8xf32>
    %c0_23 = arith.constant 0 : index
    %c0_24 = arith.constant 0 : index
    %c0_25 = arith.constant 0 : index
    %13 = vector.load %arg9[%c0_23, %c0_24, %c0_25] : memref<14x14x8xf32, #tpu.memory_space<vmem>>, vector<12x12x8xf32>
    %14 = vector.shape_cast %13 : vector<12x12x8xf32> to vector<144x8xf32>
    %c0_26 = arith.constant 0 : index
    %c0_27 = arith.constant 0 : index
    %15 = vector.load %arg3[%c0_26, %c0_27] : memref<72x2xf32, #tpu.memory_space<vmem>>, vector<8x2xf32>
    %cst_28 = arith.constant dense<0.000000e+00> : vector<144x2xf32>
    %16 = tpu.matmul %12, %15, %cst_28 {dimension_numbers = #tpu.dot_dimension_numbers<[1], [0], [0], [1], [0, 0, 1, 1], [], []>} : vector<144x8xf32>, vector<8x2xf32>, vector<144x2xf32> -> vector<144x2xf32>
    %17 = arith.addf %10, %16 : vector<144x2xf32>
    %c0_29 = arith.constant 0 : index
    %c0_30 = arith.constant 0 : index
    %18 = vector.load %arg4[%c0_29, %c0_30] : memref<72x2xf32, #tpu.memory_space<vmem>>, vector<8x2xf32>
    %cst_31 = arith.constant dense<0.000000e+00> : vector<144x2xf32>
    %19 = tpu.matmul %14, %18, %cst_31 {dimension_numbers = #tpu.dot_dimension_numbers<[1], [0], [0], [1], [0, 0, 1, 1], [], []>} : vector<144x8xf32>, vector<8x2xf32>, vector<144x2xf32> -> vector<144x2xf32>
    %20 = arith.addf %17, %19 : vector<144x2xf32>
    %c0_32 = arith.constant 0 : index
    %c1_33 = arith.constant 1 : index
    %c0_34 = arith.constant 0 : index
    %21 = vector.load %arg8[%c0_32, %c1_33, %c0_34] : memref<14x14x8xf32, #tpu.memory_space<vmem>>, vector<12x12x8xf32>
    %22 = vector.shape_cast %21 : vector<12x12x8xf32> to vector<144x8xf32>
    %c0_35 = arith.constant 0 : index
    %c1_36 = arith.constant 1 : index
    %c0_37 = arith.constant 0 : index
    %23 = vector.load %arg9[%c0_35, %c1_36, %c0_37] : memref<14x14x8xf32, #tpu.memory_space<vmem>>, vector<12x12x8xf32>
    %24 = vector.shape_cast %23 : vector<12x12x8xf32> to vector<144x8xf32>
    %c8 = arith.constant 8 : index
    %c0_38 = arith.constant 0 : index
    %25 = vector.load %arg3[%c8, %c0_38] : memref<72x2xf32, #tpu.memory_space<vmem>>, vector<8x2xf32>
    %cst_39 = arith.constant dense<0.000000e+00> : vector<144x2xf32>
    %26 = tpu.matmul %22, %25, %cst_39 {dimension_numbers = #tpu.dot_dimension_numbers<[1], [0], [0], [1], [0, 0, 1, 1], [], []>} : vector<144x8xf32>, vector<8x2xf32>, vector<144x2xf32> -> vector<144x2xf32>
    %27 = arith.addf %20, %26 : vector<144x2xf32>
    %c8_40 = arith.constant 8 : index
    %c0_41 = arith.constant 0 : index
    %28 = vector.load %arg4[%c8_40, %c0_41] : memref<72x2xf32, #tpu.memory_space<vmem>>, vector<8x2xf32>
    %cst_42 = arith.constant dense<0.000000e+00> : vector<144x2xf32>
    %29 = tpu.matmul %24, %28, %cst_42 {dimension_numbers = #tpu.dot_dimension_numbers<[1], [0], [0], [1], [0, 0, 1, 1], [], []>} : vector<144x8xf32>, vector<8x2xf32>, vector<144x2xf32> -> vector<144x2xf32>
    %30 = arith.addf %27, %29 : vector<144x2xf32>
    %c0_43 = arith.constant 0 : index
    %c2 = arith.constant 2 : index
    %c0_44 = arith.constant 0 : index
    %31 = vector.load %arg8[%c0_43, %c2, %c0_44] : memref<14x14x8xf32, #tpu.memory_space<vmem>>, vector<12x12x8xf32>
    %32 = vector.shape_cast %31 : vector<12x12x8xf32> to vector<144x8xf32>
    %c0_45 = arith.constant 0 : index
    %c2_46 = arith.constant 2 : index
    %c0_47 = arith.constant 0 : index
    %33 = vector.load %arg9[%c0_45, %c2_46, %c0_47] : memref<14x14x8xf32, #tpu.memory_space<vmem>>, vector<12x12x8xf32>
    %34 = vector.shape_cast %33 : vector<12x12x8xf32> to vector<144x8xf32>
    %c16 = arith.constant 16 : index
    %c0_48 = arith.constant 0 : index
    %35 = vector.load %arg3[%c16, %c0_48] : memref<72x2xf32, #tpu.memory_space<vmem>>, vector<8x2xf32>
    %cst_49 = arith.constant dense<0.000000e+00> : vector<144x2xf32>
    %36 = tpu.matmul %32, %35, %cst_49 {dimension_numbers = #tpu.dot_dimension_numbers<[1], [0], [0], [1], [0, 0, 1, 1], [], []>} : vector<144x8xf32>, vector<8x2xf32>, vector<144x2xf32> -> vector<144x2xf32>
    %37 = arith.addf %30, %36 : vector<144x2xf32>
    %c16_50 = arith.constant 16 : index
    %c0_51 = arith.constant 0 : index
    %38 = vector.load %arg4[%c16_50, %c0_51] : memref<72x2xf32, #tpu.memory_space<vmem>>, vector<8x2xf32>
    %cst_52 = arith.constant dense<0.000000e+00> : vector<144x2xf32>
    %39 = tpu.matmul %34, %38, %cst_52 {dimension_numbers = #tpu.dot_dimension_numbers<[1], [0], [0], [1], [0, 0, 1, 1], [], []>} : vector<144x8xf32>, vector<8x2xf32>, vector<144x2xf32> -> vector<144x2xf32>
    %40 = arith.addf %37, %39 : vector<144x2xf32>
    %c1_53 = arith.constant 1 : index
    %c0_54 = arith.constant 0 : index
    %c0_55 = arith.constant 0 : index
    %41 = vector.load %arg8[%c1_53, %c0_54, %c0_55] : memref<14x14x8xf32, #tpu.memory_space<vmem>>, vector<12x12x8xf32>
    %42 = vector.shape_cast %41 : vector<12x12x8xf32> to vector<144x8xf32>
    %c1_56 = arith.constant 1 : index
    %c0_57 = arith.constant 0 : index
    %c0_58 = arith.constant 0 : index
    %43 = vector.load %arg9[%c1_56, %c0_57, %c0_58] : memref<14x14x8xf32, #tpu.memory_space<vmem>>, vector<12x12x8xf32>
    %44 = vector.shape_cast %43 : vector<12x12x8xf32> to vector<144x8xf32>
    %c24 = arith.constant 24 : index
    %c0_59 = arith.constant 0 : index
    %45 = vector.load %arg3[%c24, %c0_59] : memref<72x2xf32, #tpu.memory_space<vmem>>, vector<8x2xf32>
    %cst_60 = arith.constant dense<0.000000e+00> : vector<144x2xf32>
    %46 = tpu.matmul %42, %45, %cst_60 {dimension_numbers = #tpu.dot_dimension_numbers<[1], [0], [0], [1], [0, 0, 1, 1], [], []>} : vector<144x8xf32>, vector<8x2xf32>, vector<144x2xf32> -> vector<144x2xf32>
    %47 = arith.addf %40, %46 : vector<144x2xf32>
    %c24_61 = arith.constant 24 : index
    %c0_62 = arith.constant 0 : index
    %48 = vector.load %arg4[%c24_61, %c0_62] : memref<72x2xf32, #tpu.memory_space<vmem>>, vector<8x2xf32>
    %cst_63 = arith.constant dense<0.000000e+00> : vector<144x2xf32>
    %49 = tpu.matmul %44, %48, %cst_63 {dimension_numbers = #tpu.dot_dimension_numbers<[1], [0], [0], [1], [0, 0, 1, 1], [], []>} : vector<144x8xf32>, vector<8x2xf32>, vector<144x2xf32> -> vector<144x2xf32>
    %50 = arith.addf %47, %49 : vector<144x2xf32>
    %c1_64 = arith.constant 1 : index
    %c1_65 = arith.constant 1 : index
    %c0_66 = arith.constant 0 : index
    %51 = vector.load %arg8[%c1_64, %c1_65, %c0_66] : memref<14x14x8xf32, #tpu.memory_space<vmem>>, vector<12x12x8xf32>
    %52 = vector.shape_cast %51 : vector<12x12x8xf32> to vector<144x8xf32>
    %c1_67 = arith.constant 1 : index
    %c1_68 = arith.constant 1 : index
    %c0_69 = arith.constant 0 : index
    %53 = vector.load %arg9[%c1_67, %c1_68, %c0_69] : memref<14x14x8xf32, #tpu.memory_space<vmem>>, vector<12x12x8xf32>
    %54 = vector.shape_cast %53 : vector<12x12x8xf32> to vector<144x8xf32>
    %c32 = arith.constant 32 : index
    %c0_70 = arith.constant 0 : index
    %55 = vector.load %arg3[%c32, %c0_70] : memref<72x2xf32, #tpu.memory_space<vmem>>, vector<8x2xf32>
    %cst_71 = arith.constant dense<0.000000e+00> : vector<144x2xf32>
    %56 = tpu.matmul %52, %55, %cst_71 {dimension_numbers = #tpu.dot_dimension_numbers<[1], [0], [0], [1], [0, 0, 1, 1], [], []>} : vector<144x8xf32>, vector<8x2xf32>, vector<144x2xf32> -> vector<144x2xf32>
    %57 = arith.addf %50, %56 : vector<144x2xf32>
    %c32_72 = arith.constant 32 : index
    %c0_73 = arith.constant 0 : index
    %58 = vector.load %arg4[%c32_72, %c0_73] : memref<72x2xf32, #tpu.memory_space<vmem>>, vector<8x2xf32>
    %cst_74 = arith.constant dense<0.000000e+00> : vector<144x2xf32>
    %59 = tpu.matmul %54, %58, %cst_74 {dimension_numbers = #tpu.dot_dimension_numbers<[1], [0], [0], [1], [0, 0, 1, 1], [], []>} : vector<144x8xf32>, vector<8x2xf32>, vector<144x2xf32> -> vector<144x2xf32>
    %60 = arith.addf %57, %59 : vector<144x2xf32>
    %c1_75 = arith.constant 1 : index
    %c2_76 = arith.constant 2 : index
    %c0_77 = arith.constant 0 : index
    %61 = vector.load %arg8[%c1_75, %c2_76, %c0_77] : memref<14x14x8xf32, #tpu.memory_space<vmem>>, vector<12x12x8xf32>
    %62 = vector.shape_cast %61 : vector<12x12x8xf32> to vector<144x8xf32>
    %c1_78 = arith.constant 1 : index
    %c2_79 = arith.constant 2 : index
    %c0_80 = arith.constant 0 : index
    %63 = vector.load %arg9[%c1_78, %c2_79, %c0_80] : memref<14x14x8xf32, #tpu.memory_space<vmem>>, vector<12x12x8xf32>
    %64 = vector.shape_cast %63 : vector<12x12x8xf32> to vector<144x8xf32>
    %c40 = arith.constant 40 : index
    %c0_81 = arith.constant 0 : index
    %65 = vector.load %arg3[%c40, %c0_81] : memref<72x2xf32, #tpu.memory_space<vmem>>, vector<8x2xf32>
    %cst_82 = arith.constant dense<0.000000e+00> : vector<144x2xf32>
    %66 = tpu.matmul %62, %65, %cst_82 {dimension_numbers = #tpu.dot_dimension_numbers<[1], [0], [0], [1], [0, 0, 1, 1], [], []>} : vector<144x8xf32>, vector<8x2xf32>, vector<144x2xf32> -> vector<144x2xf32>
    %67 = arith.addf %60, %66 : vector<144x2xf32>
    %c40_83 = arith.constant 40 : index
    %c0_84 = arith.constant 0 : index
    %68 = vector.load %arg4[%c40_83, %c0_84] : memref<72x2xf32, #tpu.memory_space<vmem>>, vector<8x2xf32>
    %cst_85 = arith.constant dense<0.000000e+00> : vector<144x2xf32>
    %69 = tpu.matmul %64, %68, %cst_85 {dimension_numbers = #tpu.dot_dimension_numbers<[1], [0], [0], [1], [0, 0, 1, 1], [], []>} : vector<144x8xf32>, vector<8x2xf32>, vector<144x2xf32> -> vector<144x2xf32>
    %70 = arith.addf %67, %69 : vector<144x2xf32>
    %c2_86 = arith.constant 2 : index
    %c0_87 = arith.constant 0 : index
    %c0_88 = arith.constant 0 : index
    %71 = vector.load %arg8[%c2_86, %c0_87, %c0_88] : memref<14x14x8xf32, #tpu.memory_space<vmem>>, vector<12x12x8xf32>
    %72 = vector.shape_cast %71 : vector<12x12x8xf32> to vector<144x8xf32>
    %c2_89 = arith.constant 2 : index
    %c0_90 = arith.constant 0 : index
    %c0_91 = arith.constant 0 : index
    %73 = vector.load %arg9[%c2_89, %c0_90, %c0_91] : memref<14x14x8xf32, #tpu.memory_space<vmem>>, vector<12x12x8xf32>
    %74 = vector.shape_cast %73 : vector<12x12x8xf32> to vector<144x8xf32>
    %c48 = arith.constant 48 : index
    %c0_92 = arith.constant 0 : index
    %75 = vector.load %arg3[%c48, %c0_92] : memref<72x2xf32, #tpu.memory_space<vmem>>, vector<8x2xf32>
    %cst_93 = arith.constant dense<0.000000e+00> : vector<144x2xf32>
    %76 = tpu.matmul %72, %75, %cst_93 {dimension_numbers = #tpu.dot_dimension_numbers<[1], [0], [0], [1], [0, 0, 1, 1], [], []>} : vector<144x8xf32>, vector<8x2xf32>, vector<144x2xf32> -> vector<144x2xf32>
    %77 = arith.addf %70, %76 : vector<144x2xf32>
    %c48_94 = arith.constant 48 : index
    %c0_95 = arith.constant 0 : index
    %78 = vector.load %arg4[%c48_94, %c0_95] : memref<72x2xf32, #tpu.memory_space<vmem>>, vector<8x2xf32>
    %cst_96 = arith.constant dense<0.000000e+00> : vector<144x2xf32>
    %79 = tpu.matmul %74, %78, %cst_96 {dimension_numbers = #tpu.dot_dimension_numbers<[1], [0], [0], [1], [0, 0, 1, 1], [], []>} : vector<144x8xf32>, vector<8x2xf32>, vector<144x2xf32> -> vector<144x2xf32>
    %80 = arith.addf %77, %79 : vector<144x2xf32>
    %c2_97 = arith.constant 2 : index
    %c1_98 = arith.constant 1 : index
    %c0_99 = arith.constant 0 : index
    %81 = vector.load %arg8[%c2_97, %c1_98, %c0_99] : memref<14x14x8xf32, #tpu.memory_space<vmem>>, vector<12x12x8xf32>
    %82 = vector.shape_cast %81 : vector<12x12x8xf32> to vector<144x8xf32>
    %c2_100 = arith.constant 2 : index
    %c1_101 = arith.constant 1 : index
    %c0_102 = arith.constant 0 : index
    %83 = vector.load %arg9[%c2_100, %c1_101, %c0_102] : memref<14x14x8xf32, #tpu.memory_space<vmem>>, vector<12x12x8xf32>
    %84 = vector.shape_cast %83 : vector<12x12x8xf32> to vector<144x8xf32>
    %c56 = arith.constant 56 : index
    %c0_103 = arith.constant 0 : index
    %85 = vector.load %arg3[%c56, %c0_103] : memref<72x2xf32, #tpu.memory_space<vmem>>, vector<8x2xf32>
    %cst_104 = arith.constant dense<0.000000e+00> : vector<144x2xf32>
    %86 = tpu.matmul %82, %85, %cst_104 {dimension_numbers = #tpu.dot_dimension_numbers<[1], [0], [0], [1], [0, 0, 1, 1], [], []>} : vector<144x8xf32>, vector<8x2xf32>, vector<144x2xf32> -> vector<144x2xf32>
    %87 = arith.addf %80, %86 : vector<144x2xf32>
    %c56_105 = arith.constant 56 : index
    %c0_106 = arith.constant 0 : index
    %88 = vector.load %arg4[%c56_105, %c0_106] : memref<72x2xf32, #tpu.memory_space<vmem>>, vector<8x2xf32>
    %cst_107 = arith.constant dense<0.000000e+00> : vector<144x2xf32>
    %89 = tpu.matmul %84, %88, %cst_107 {dimension_numbers = #tpu.dot_dimension_numbers<[1], [0], [0], [1], [0, 0, 1, 1], [], []>} : vector<144x8xf32>, vector<8x2xf32>, vector<144x2xf32> -> vector<144x2xf32>
    %90 = arith.addf %87, %89 : vector<144x2xf32>
    %c2_108 = arith.constant 2 : index
    %c2_109 = arith.constant 2 : index
    %c0_110 = arith.constant 0 : index
    %91 = vector.load %arg8[%c2_108, %c2_109, %c0_110] : memref<14x14x8xf32, #tpu.memory_space<vmem>>, vector<12x12x8xf32>
    %92 = vector.shape_cast %91 : vector<12x12x8xf32> to vector<144x8xf32>
    %c2_111 = arith.constant 2 : index
    %c2_112 = arith.constant 2 : index
    %c0_113 = arith.constant 0 : index
    %93 = vector.load %arg9[%c2_111, %c2_112, %c0_113] : memref<14x14x8xf32, #tpu.memory_space<vmem>>, vector<12x12x8xf32>
    %94 = vector.shape_cast %93 : vector<12x12x8xf32> to vector<144x8xf32>
    %c64 = arith.constant 64 : index
    %c0_114 = arith.constant 0 : index
    %95 = vector.load %arg3[%c64, %c0_114] : memref<72x2xf32, #tpu.memory_space<vmem>>, vector<8x2xf32>
    %cst_115 = arith.constant dense<0.000000e+00> : vector<144x2xf32>
    %96 = tpu.matmul %92, %95, %cst_115 {dimension_numbers = #tpu.dot_dimension_numbers<[1], [0], [0], [1], [0, 0, 1, 1], [], []>} : vector<144x8xf32>, vector<8x2xf32>, vector<144x2xf32> -> vector<144x2xf32>
    %97 = arith.addf %90, %96 : vector<144x2xf32>
    %c64_116 = arith.constant 64 : index
    %c0_117 = arith.constant 0 : index
    %98 = vector.load %arg4[%c64_116, %c0_117] : memref<72x2xf32, #tpu.memory_space<vmem>>, vector<8x2xf32>
    %cst_118 = arith.constant dense<0.000000e+00> : vector<144x2xf32>
    %99 = tpu.matmul %94, %98, %cst_118 {dimension_numbers = #tpu.dot_dimension_numbers<[1], [0], [0], [1], [0, 0, 1, 1], [], []>} : vector<144x8xf32>, vector<8x2xf32>, vector<144x2xf32> -> vector<144x2xf32>
    %100 = arith.addf %97, %99 : vector<144x2xf32>
    %c0_119 = arith.constant 0 : index
    %c0_120 = arith.constant 0 : index
    %101 = vector.load %arg5[%c0_119, %c0_120] : memref<1x2xf32, #tpu.memory_space<vmem>>, vector<1x2xf32>
    %102 = vector.broadcast %101 : vector<1x2xf32> to vector<144x2xf32>
    %103 = arith.mulf %100, %102 : vector<144x2xf32>
    %c0_121 = arith.constant 0 : index
    %c0_122 = arith.constant 0 : index
    %104 = vector.load %arg6[%c0_121, %c0_122] : memref<1x2xf32, #tpu.memory_space<vmem>>, vector<1x2xf32>
    %105 = vector.broadcast %104 : vector<1x2xf32> to vector<144x2xf32>
    %106 = arith.addf %103, %105 : vector<144x2xf32>
    %cst_123 = arith.constant 0.000000e+00 : f32
    %107 = vector.broadcast %cst_123 : f32 to vector<144x2xf32>
    %108 = arith.maximumf %106, %107 : vector<144x2xf32>
    %c0_124 = arith.constant 0 : index
    %c0_125 = arith.constant 0 : index
    %c0_126 = arith.constant 0 : index
    %109 = vector.load %arg7[%c0_124, %c0_125, %c0_126] : memref<1x144x2xf32, #tpu.memory_space<vmem>>, vector<1x144x2xf32>
    %110 = vector.shape_cast %109 : vector<1x144x2xf32> to vector<144x2xf32>
    %111 = vector.shape_cast %108 : vector<144x2xf32> to vector<1x144x2xf32>
    tpu.vector_store %arg7[%c0_124, %c0_125, %c0_126], %111 {strides = array<i32>} : memref<1x144x2xf32, #tpu.memory_space<vmem>>, vector<1x144x2xf32>,
    return
  }
  func.func @transform_0(%arg0: i32) -> (i32, i32, i32, i32) {
    %c0_i32 = arith.constant 0 : i32
    %c0_i32_0 = arith.constant 0 : i32
    %c0_i32_1 = arith.constant 0 : i32
    %c0_i32_2 = arith.constant 0 : i32
    return %arg0, %c0_i32, %c0_i32_0, %c0_i32_1 : i32, i32, i32, i32
  }
  func.func @transform_1(%arg0: i32) -> (i32, i32, i32, i32) {
    %c0_i32 = arith.constant 0 : i32
    %c0_i32_0 = arith.constant 0 : i32
    %c0_i32_1 = arith.constant 0 : i32
    %c0_i32_2 = arith.constant 0 : i32
    return %arg0, %c0_i32, %c0_i32_0, %c0_i32_1 : i32, i32, i32, i32
  }
  func.func @transform_2(%arg0: i32) -> (i32, i32) {
    %c0_i32 = arith.constant 0 : i32
    %c0_i32_0 = arith.constant 0 : i32
    %c0_i32_1 = arith.constant 0 : i32
    return %c0_i32, %c0_i32_0 : i32, i32
  }
  func.func @transform_3(%arg0: i32) -> (i32, i32) {
    %c0_i32 = arith.constant 0 : i32
    %c0_i32_0 = arith.constant 0 : i32
    %c0_i32_1 = arith.constant 0 : i32
    return %c0_i32, %c0_i32_0 : i32, i32
  }
  func.func @transform_4(%arg0: i32) -> (i32, i32) {
    %c0_i32 = arith.constant 0 : i32
    %c0_i32_0 = arith.constant 0 : i32
    %c0_i32_1 = arith.constant 0 : i32
    return %c0_i32, %c0_i32_0 : i32, i32
  }
  func.func @transform_5(%arg0: i32) -> (i32, i32) {
    %c0_i32 = arith.constant 0 : i32
    %c0_i32_0 = arith.constant 0 : i32
    %c0_i32_1 = arith.constant 0 : i32
    return %c0_i32, %c0_i32_0 : i32, i32
  }
  func.func @transform_6(%arg0: i32) -> (i32, i32, i32) {
    %c0_i32 = arith.constant 0 : i32
    %c0_i32_0 = arith.constant 0 : i32
    %c0_i32_1 = arith.constant 0 : i32
    return %arg0, %c0_i32, %c0_i32_0 : i32, i32, i32
  }
}

module attributes {stable_mosaic.version = 11 : i64} {
  func.func @_stages_kernel(%arg0: i32, %arg1: memref<1x12x12x8xf32, #tpu.memory_space<vmem>>, %arg2: memref<4x6x12xf32, #tpu.memory_space<vmem>>, %arg3: memref<4x6x12xf32, #tpu.memory_space<vmem>>, %arg4: memref<4x12x6xf32, #tpu.memory_space<vmem>>, %arg5: memref<4x12x6xf32, #tpu.memory_space<vmem>>, %arg6: memref<4x8x2xf32, #tpu.memory_space<vmem>>, %arg7: memref<4x2xf32, #tpu.memory_space<vmem>>, %arg8: memref<4x2xf32, #tpu.memory_space<vmem>>, %arg9: memref<1x12x12x8xf32, #tpu.memory_space<vmem>>) attributes {dimension_semantics = [#tpu.dimension_semantics<parallel>], iteration_bounds = array<i64: 2>, scalar_prefetch = 0 : i64, scratch_operands = 0 : i64, tpu.core_type = #tpu.core_type<tc>, window_params = [{transform_indices = @transform_0, window_bounds = array<i64: 1, 12, 12, 8>}, {pipeline_mode = #tpu.pipeline_mode<synchronous>, transform_indices = @transform_1, window_bounds = array<i64: 4, 6, 12>}, {pipeline_mode = #tpu.pipeline_mode<synchronous>, transform_indices = @transform_2, window_bounds = array<i64: 4, 6, 12>}, {pipeline_mode = #tpu.pipeline_mode<synchronous>, transform_indices = @transform_3, window_bounds = array<i64: 4, 12, 6>}, {pipeline_mode = #tpu.pipeline_mode<synchronous>, transform_indices = @transform_4, window_bounds = array<i64: 4, 12, 6>}, {pipeline_mode = #tpu.pipeline_mode<synchronous>, transform_indices = @transform_5, window_bounds = array<i64: 4, 8, 2>}, {pipeline_mode = #tpu.pipeline_mode<synchronous>, transform_indices = @transform_6, window_bounds = array<i64: 4, 2>}, {pipeline_mode = #tpu.pipeline_mode<synchronous>, transform_indices = @transform_7, window_bounds = array<i64: 4, 2>}, {transform_indices = @transform_8, window_bounds = array<i64: 1, 12, 12, 8>}]} {
    %c0 = arith.constant 0 : index
    %c0_0 = arith.constant 0 : index
    %c0_1 = arith.constant 0 : index
    %c0_2 = arith.constant 0 : index
    %0 = vector.load %arg1[%c0, %c0_0, %c0_1, %c0_2] : memref<1x12x12x8xf32, #tpu.memory_space<vmem>>, vector<1x12x12x8xf32>
    %1 = vector.shape_cast %0 : vector<1x12x12x8xf32> to vector<12x12x8xf32>
    %c0_3 = arith.constant 0 : index
    %c0_4 = arith.constant 0 : index
    %c0_5 = arith.constant 0 : index
    %2 = vector.load %arg2[%c0_3, %c0_4, %c0_5] : memref<4x6x12xf32, #tpu.memory_space<vmem>>, vector<1x1x12xf32>
    %3 = vector.shape_cast %2 : vector<1x1x12xf32> to vector<1x12xf32>
    %c0_6 = arith.constant 0 : index
    %c0_7 = arith.constant 0 : index
    %c0_8 = arith.constant 0 : index
    %4 = vector.load %arg3[%c0_6, %c0_7, %c0_8] : memref<4x6x12xf32, #tpu.memory_space<vmem>>, vector<1x1x12xf32>
    %5 = vector.shape_cast %4 : vector<1x1x12xf32> to vector<1x12xf32>
    %c0_9 = arith.constant 0 : index
    %c0_10 = arith.constant 0 : index
    %c0_11 = arith.constant 0 : index
    %6 = vector.load %arg4[%c0_9, %c0_10, %c0_11] : memref<4x12x6xf32, #tpu.memory_space<vmem>>, vector<1x12x1xf32>
    %7 = vector.shape_cast %6 : vector<1x12x1xf32> to vector<12x1xf32>
    %c0_12 = arith.constant 0 : index
    %c0_13 = arith.constant 0 : index
    %c0_14 = arith.constant 0 : index
    %8 = vector.load %arg6[%c0_12, %c0_13, %c0_14] : memref<4x8x2xf32, #tpu.memory_space<vmem>>, vector<1x8x2xf32>
    %9 = vector.shape_cast %8 : vector<1x8x2xf32> to vector<8x2xf32>
    %c0_15 = arith.constant 0 : index
    %c0_16 = arith.constant 0 : index
    %10 = vector.load %arg7[%c0_15, %c0_16] : memref<4x2xf32, #tpu.memory_space<vmem>>, vector<1x2xf32>
    %c0_17 = arith.constant 0 : index
    %c0_18 = arith.constant 0 : index
    %11 = vector.load %arg8[%c0_17, %c0_18] : memref<4x2xf32, #tpu.memory_space<vmem>>, vector<1x2xf32>
    %12 = vector.shape_cast %5 : vector<1x12xf32> to vector<1x1x12xf32>
    %13 = vector.shape_cast %12 : vector<1x1x12xf32> to vector<1x1x12xf32>
    %14 = vector.broadcast %13 : vector<1x1x12xf32> to vector<12x1x12xf32>
    "tpu.trace_start"() <{level = 10 : i32, message = "hjw,hwc->hjc"}> : () -> ()
    %cst = arith.constant dense<0.000000e+00> : vector<12x1x8xf32>
    %15 = tpu.matmul %14, %1, %cst {dimension_numbers = #tpu.dot_dimension_numbers<[2], [1], [1], [2], [0, 0, 0, 1, 1, 2], [0], [0]>} : vector<12x1x12xf32>, vector<12x12x8xf32>, vector<12x1x8xf32> -> vector<12x1x8xf32>
    %cst_19 = arith.constant 0.000000e+00 : f32
    "tpu.trace_stop"() : () -> ()
    %16 = vector.broadcast %cst_19 : f32 to vector<12x12x2xf32>
    %17 = vector.shape_cast %15 : vector<12x1x8xf32> to vector<12x8xf32>
    %cst_20 = arith.constant dense<0.000000e+00> : vector<1x8xf32>
    %18 = tpu.matmul %3, %17, %cst_20 {dimension_numbers = #tpu.dot_dimension_numbers<[1], [0], [0], [1], [0, 0, 1, 1], [], []>} : vector<1x12xf32>, vector<12x8xf32>, vector<1x8xf32> -> vector<1x8xf32>
    %cst_21 = arith.constant dense<0.000000e+00> : vector<1x2xf32>
    %19 = tpu.matmul %18, %9, %cst_21 {dimension_numbers = #tpu.dot_dimension_numbers<[1], [0], [0], [1], [0, 0, 1, 1], [], []>} : vector<1x8xf32>, vector<8x2xf32>, vector<1x2xf32> -> vector<1x2xf32>
    %20 = arith.mulf %19, %10 : vector<1x2xf32>
    %21 = arith.addf %20, %11 : vector<1x2xf32>
    %cst_22 = arith.constant 0.000000e+00 : f32
    %22 = vector.broadcast %cst_22 : f32 to vector<1x2xf32>
    %23 = arith.maximumf %21, %22 : vector<1x2xf32>
    %cst_23 = arith.constant dense<0.000000e+00> : vector<12x2xf32>
    %24 = tpu.matmul %7, %23, %cst_23 {dimension_numbers = #tpu.dot_dimension_numbers<[1], [0], [0], [1], [0, 0, 1, 1], [], []>} : vector<12x1xf32>, vector<1x2xf32>, vector<12x2xf32> -> vector<12x2xf32>
    %c0_24 = arith.constant 0 : index
    %c0_25 = arith.constant 0 : index
    %c0_26 = arith.constant 0 : index
    %25 = vector.load %arg5[%c0_24, %c0_25, %c0_26] : memref<4x12x6xf32, #tpu.memory_space<vmem>>, vector<1x12x1xf32>
    %26 = vector.shape_cast %25 : vector<1x12x1xf32> to vector<12x1xf32>
    %27 = vector.shape_cast %26 : vector<12x1xf32> to vector<1x12x1xf32>
    %28 = vector.shape_cast %24 : vector<12x2xf32> to vector<12x1x2xf32>
    %29 = vector.broadcast %27 : vector<1x12x1xf32> to vector<12x12x2xf32>
    %30 = vector.broadcast %28 : vector<12x1x2xf32> to vector<12x12x2xf32>
    %31 = arith.mulf %29, %30 : vector<12x12x2xf32>
    %32 = arith.addf %16, %31 : vector<12x12x2xf32>
    %c1 = arith.constant 1 : index
    %c0_27 = arith.constant 0 : index
    %c0_28 = arith.constant 0 : index
    %33 = vector.load %arg2[%c1, %c0_27, %c0_28] : memref<4x6x12xf32, #tpu.memory_space<vmem>>, vector<1x2x12xf32>
    %34 = vector.shape_cast %33 : vector<1x2x12xf32> to vector<2x12xf32>
    %c1_29 = arith.constant 1 : index
    %c0_30 = arith.constant 0 : index
    %c0_31 = arith.constant 0 : index
    %35 = vector.load %arg3[%c1_29, %c0_30, %c0_31] : memref<4x6x12xf32, #tpu.memory_space<vmem>>, vector<1x2x12xf32>
    %36 = vector.shape_cast %35 : vector<1x2x12xf32> to vector<2x12xf32>
    %c1_32 = arith.constant 1 : index
    %c0_33 = arith.constant 0 : index
    %c0_34 = arith.constant 0 : index
    %37 = vector.load %arg4[%c1_32, %c0_33, %c0_34] : memref<4x12x6xf32, #tpu.memory_space<vmem>>, vector<1x12x2xf32>
    %38 = vector.shape_cast %37 : vector<1x12x2xf32> to vector<12x2xf32>
    %c1_35 = arith.constant 1 : index
    %c0_36 = arith.constant 0 : index
    %c0_37 = arith.constant 0 : index
    %39 = vector.load %arg6[%c1_35, %c0_36, %c0_37] : memref<4x8x2xf32, #tpu.memory_space<vmem>>, vector<1x8x2xf32>
    %40 = vector.shape_cast %39 : vector<1x8x2xf32> to vector<8x2xf32>
    %c1_38 = arith.constant 1 : index
    %c0_39 = arith.constant 0 : index
    %41 = vector.load %arg7[%c1_38, %c0_39] : memref<4x2xf32, #tpu.memory_space<vmem>>, vector<1x2xf32>
    %c1_40 = arith.constant 1 : index
    %c0_41 = arith.constant 0 : index
    %42 = vector.load %arg8[%c1_40, %c0_41] : memref<4x2xf32, #tpu.memory_space<vmem>>, vector<1x2xf32>
    %43 = vector.shape_cast %36 : vector<2x12xf32> to vector<1x2x12xf32>
    %44 = vector.shape_cast %43 : vector<1x2x12xf32> to vector<1x2x12xf32>
    %45 = vector.broadcast %44 : vector<1x2x12xf32> to vector<12x2x12xf32>
    "tpu.trace_start"() <{level = 10 : i32, message = "hjw,hwc->hjc"}> : () -> ()
    %cst_42 = arith.constant dense<0.000000e+00> : vector<12x2x8xf32>
    %46 = tpu.matmul %45, %1, %cst_42 {dimension_numbers = #tpu.dot_dimension_numbers<[2], [1], [1], [2], [0, 0, 0, 1, 1, 2], [0], [0]>} : vector<12x2x12xf32>, vector<12x12x8xf32>, vector<12x2x8xf32> -> vector<12x2x8xf32>
    %cst_43 = arith.constant 0.000000e+00 : f32
    "tpu.trace_stop"() : () -> ()
    %47 = vector.broadcast %cst_43 : f32 to vector<12x12x2xf32>
    %48 = vector.extract_strided_slice %46 {offsets = [0, 0, 0], sizes = [12, 1, 8], strides = [1, 1, 1]} : vector<12x2x8xf32> to vector<12x1x8xf32>
    %49 = vector.shape_cast %48 : vector<12x1x8xf32> to vector<12x8xf32>
    %cst_44 = arith.constant dense<0.000000e+00> : vector<2x8xf32>
    %50 = tpu.matmul %34, %49, %cst_44 {dimension_numbers = #tpu.dot_dimension_numbers<[1], [0], [0], [1], [0, 0, 1, 1], [], []>} : vector<2x12xf32>, vector<12x8xf32>, vector<2x8xf32> -> vector<2x8xf32>
    %cst_45 = arith.constant dense<0.000000e+00> : vector<2x2xf32>
    %51 = tpu.matmul %50, %40, %cst_45 {dimension_numbers = #tpu.dot_dimension_numbers<[1], [0], [0], [1], [0, 0, 1, 1], [], []>} : vector<2x8xf32>, vector<8x2xf32>, vector<2x2xf32> -> vector<2x2xf32>
    %52 = vector.broadcast %41 : vector<1x2xf32> to vector<2x2xf32>
    %53 = arith.mulf %51, %52 : vector<2x2xf32>
    %54 = vector.broadcast %42 : vector<1x2xf32> to vector<2x2xf32>
    %55 = arith.addf %53, %54 : vector<2x2xf32>
    %cst_46 = arith.constant 0.000000e+00 : f32
    %56 = vector.broadcast %cst_46 : f32 to vector<2x2xf32>
    %57 = arith.maximumf %55, %56 : vector<2x2xf32>
    %cst_47 = arith.constant dense<0.000000e+00> : vector<12x2xf32>
    %58 = tpu.matmul %38, %57, %cst_47 {dimension_numbers = #tpu.dot_dimension_numbers<[1], [0], [0], [1], [0, 0, 1, 1], [], []>} : vector<12x2xf32>, vector<2x2xf32>, vector<12x2xf32> -> vector<12x2xf32>
    %c1_48 = arith.constant 1 : index
    %c0_49 = arith.constant 0 : index
    %c0_50 = arith.constant 0 : index
    %59 = vector.load %arg5[%c1_48, %c0_49, %c0_50] : memref<4x12x6xf32, #tpu.memory_space<vmem>>, vector<1x12x1xf32>
    %60 = vector.shape_cast %59 : vector<1x12x1xf32> to vector<12x1xf32>
    %61 = vector.shape_cast %60 : vector<12x1xf32> to vector<1x12x1xf32>
    %62 = vector.shape_cast %58 : vector<12x2xf32> to vector<12x1x2xf32>
    %63 = vector.broadcast %61 : vector<1x12x1xf32> to vector<12x12x2xf32>
    %64 = vector.broadcast %62 : vector<12x1x2xf32> to vector<12x12x2xf32>
    %65 = arith.mulf %63, %64 : vector<12x12x2xf32>
    %66 = arith.addf %47, %65 : vector<12x12x2xf32>
    %67 = vector.extract_strided_slice %46 {offsets = [0, 1, 0], sizes = [12, 1, 8], strides = [1, 1, 1]} : vector<12x2x8xf32> to vector<12x1x8xf32>
    %68 = vector.shape_cast %67 : vector<12x1x8xf32> to vector<12x8xf32>
    %cst_51 = arith.constant dense<0.000000e+00> : vector<2x8xf32>
    %69 = tpu.matmul %34, %68, %cst_51 {dimension_numbers = #tpu.dot_dimension_numbers<[1], [0], [0], [1], [0, 0, 1, 1], [], []>} : vector<2x12xf32>, vector<12x8xf32>, vector<2x8xf32> -> vector<2x8xf32>
    %cst_52 = arith.constant dense<0.000000e+00> : vector<2x2xf32>
    %70 = tpu.matmul %69, %40, %cst_52 {dimension_numbers = #tpu.dot_dimension_numbers<[1], [0], [0], [1], [0, 0, 1, 1], [], []>} : vector<2x8xf32>, vector<8x2xf32>, vector<2x2xf32> -> vector<2x2xf32>
    %71 = vector.broadcast %41 : vector<1x2xf32> to vector<2x2xf32>
    %72 = arith.mulf %70, %71 : vector<2x2xf32>
    %73 = vector.broadcast %42 : vector<1x2xf32> to vector<2x2xf32>
    %74 = arith.addf %72, %73 : vector<2x2xf32>
    %cst_53 = arith.constant 0.000000e+00 : f32
    %75 = vector.broadcast %cst_53 : f32 to vector<2x2xf32>
    %76 = arith.maximumf %74, %75 : vector<2x2xf32>
    %cst_54 = arith.constant dense<0.000000e+00> : vector<12x2xf32>
    %77 = tpu.matmul %38, %76, %cst_54 {dimension_numbers = #tpu.dot_dimension_numbers<[1], [0], [0], [1], [0, 0, 1, 1], [], []>} : vector<12x2xf32>, vector<2x2xf32>, vector<12x2xf32> -> vector<12x2xf32>
    %c1_55 = arith.constant 1 : index
    %c0_56 = arith.constant 0 : index
    %c1_57 = arith.constant 1 : index
    %78 = vector.load %arg5[%c1_55, %c0_56, %c1_57] : memref<4x12x6xf32, #tpu.memory_space<vmem>>, vector<1x12x1xf32>
    %79 = vector.shape_cast %78 : vector<1x12x1xf32> to vector<12x1xf32>
    %80 = vector.shape_cast %79 : vector<12x1xf32> to vector<1x12x1xf32>
    %81 = vector.shape_cast %77 : vector<12x2xf32> to vector<12x1x2xf32>
    %82 = vector.broadcast %80 : vector<1x12x1xf32> to vector<12x12x2xf32>
    %83 = vector.broadcast %81 : vector<12x1x2xf32> to vector<12x12x2xf32>
    %84 = arith.mulf %82, %83 : vector<12x12x2xf32>
    %85 = arith.addf %66, %84 : vector<12x12x2xf32>
    %c2 = arith.constant 2 : index
    %c0_58 = arith.constant 0 : index
    %c0_59 = arith.constant 0 : index
    %86 = vector.load %arg2[%c2, %c0_58, %c0_59] : memref<4x6x12xf32, #tpu.memory_space<vmem>>, vector<1x3x12xf32>
    %87 = vector.shape_cast %86 : vector<1x3x12xf32> to vector<3x12xf32>
    %c2_60 = arith.constant 2 : index
    %c0_61 = arith.constant 0 : index
    %c0_62 = arith.constant 0 : index
    %88 = vector.load %arg3[%c2_60, %c0_61, %c0_62] : memref<4x6x12xf32, #tpu.memory_space<vmem>>, vector<1x3x12xf32>
    %89 = vector.shape_cast %88 : vector<1x3x12xf32> to vector<3x12xf32>
    %c2_63 = arith.constant 2 : index
    %c0_64 = arith.constant 0 : index
    %c0_65 = arith.constant 0 : index
    %90 = vector.load %arg4[%c2_63, %c0_64, %c0_65] : memref<4x12x6xf32, #tpu.memory_space<vmem>>, vector<1x12x3xf32>
    %91 = vector.shape_cast %90 : vector<1x12x3xf32> to vector<12x3xf32>
    %c2_66 = arith.constant 2 : index
    %c0_67 = arith.constant 0 : index
    %c0_68 = arith.constant 0 : index
    %92 = vector.load %arg6[%c2_66, %c0_67, %c0_68] : memref<4x8x2xf32, #tpu.memory_space<vmem>>, vector<1x8x2xf32>
    %93 = vector.shape_cast %92 : vector<1x8x2xf32> to vector<8x2xf32>
    %c2_69 = arith.constant 2 : index
    %c0_70 = arith.constant 0 : index
    %94 = vector.load %arg7[%c2_69, %c0_70] : memref<4x2xf32, #tpu.memory_space<vmem>>, vector<1x2xf32>
    %c2_71 = arith.constant 2 : index
    %c0_72 = arith.constant 0 : index
    %95 = vector.load %arg8[%c2_71, %c0_72] : memref<4x2xf32, #tpu.memory_space<vmem>>, vector<1x2xf32>
    %96 = vector.shape_cast %89 : vector<3x12xf32> to vector<1x3x12xf32>
    %97 = vector.shape_cast %96 : vector<1x3x12xf32> to vector<1x3x12xf32>
    %98 = vector.broadcast %97 : vector<1x3x12xf32> to vector<12x3x12xf32>
    "tpu.trace_start"() <{level = 10 : i32, message = "hjw,hwc->hjc"}> : () -> ()
    %cst_73 = arith.constant dense<0.000000e+00> : vector<12x3x8xf32>
    %99 = tpu.matmul %98, %1, %cst_73 {dimension_numbers = #tpu.dot_dimension_numbers<[2], [1], [1], [2], [0, 0, 0, 1, 1, 2], [0], [0]>} : vector<12x3x12xf32>, vector<12x12x8xf32>, vector<12x3x8xf32> -> vector<12x3x8xf32>
    %cst_74 = arith.constant 0.000000e+00 : f32
    "tpu.trace_stop"() : () -> ()
    %100 = vector.broadcast %cst_74 : f32 to vector<12x12x2xf32>
    %101 = vector.extract_strided_slice %99 {offsets = [0, 0, 0], sizes = [12, 1, 8], strides = [1, 1, 1]} : vector<12x3x8xf32> to vector<12x1x8xf32>
    %102 = vector.shape_cast %101 : vector<12x1x8xf32> to vector<12x8xf32>
    %cst_75 = arith.constant dense<0.000000e+00> : vector<3x8xf32>
    %103 = tpu.matmul %87, %102, %cst_75 {dimension_numbers = #tpu.dot_dimension_numbers<[1], [0], [0], [1], [0, 0, 1, 1], [], []>} : vector<3x12xf32>, vector<12x8xf32>, vector<3x8xf32> -> vector<3x8xf32>
    %cst_76 = arith.constant dense<0.000000e+00> : vector<3x2xf32>
    %104 = tpu.matmul %103, %93, %cst_76 {dimension_numbers = #tpu.dot_dimension_numbers<[1], [0], [0], [1], [0, 0, 1, 1], [], []>} : vector<3x8xf32>, vector<8x2xf32>, vector<3x2xf32> -> vector<3x2xf32>
    %105 = vector.broadcast %94 : vector<1x2xf32> to vector<3x2xf32>
    %106 = arith.mulf %104, %105 : vector<3x2xf32>
    %107 = vector.broadcast %95 : vector<1x2xf32> to vector<3x2xf32>
    %108 = arith.addf %106, %107 : vector<3x2xf32>
    %cst_77 = arith.constant 0.000000e+00 : f32
    %109 = vector.broadcast %cst_77 : f32 to vector<3x2xf32>
    %110 = arith.maximumf %108, %109 : vector<3x2xf32>
    %cst_78 = arith.constant dense<0.000000e+00> : vector<12x2xf32>
    %111 = tpu.matmul %91, %110, %cst_78 {dimension_numbers = #tpu.dot_dimension_numbers<[1], [0], [0], [1], [0, 0, 1, 1], [], []>} : vector<12x3xf32>, vector<3x2xf32>, vector<12x2xf32> -> vector<12x2xf32>
    %c2_79 = arith.constant 2 : index
    %c0_80 = arith.constant 0 : index
    %c0_81 = arith.constant 0 : index
    %112 = vector.load %arg5[%c2_79, %c0_80, %c0_81] : memref<4x12x6xf32, #tpu.memory_space<vmem>>, vector<1x12x1xf32>
    %113 = vector.shape_cast %112 : vector<1x12x1xf32> to vector<12x1xf32>
    %114 = vector.shape_cast %113 : vector<12x1xf32> to vector<1x12x1xf32>
    %115 = vector.shape_cast %111 : vector<12x2xf32> to vector<12x1x2xf32>
    %116 = vector.broadcast %114 : vector<1x12x1xf32> to vector<12x12x2xf32>
    %117 = vector.broadcast %115 : vector<12x1x2xf32> to vector<12x12x2xf32>
    %118 = arith.mulf %116, %117 : vector<12x12x2xf32>
    %119 = arith.addf %100, %118 : vector<12x12x2xf32>
    %120 = vector.extract_strided_slice %99 {offsets = [0, 1, 0], sizes = [12, 1, 8], strides = [1, 1, 1]} : vector<12x3x8xf32> to vector<12x1x8xf32>
    %121 = vector.shape_cast %120 : vector<12x1x8xf32> to vector<12x8xf32>
    %cst_82 = arith.constant dense<0.000000e+00> : vector<3x8xf32>
    %122 = tpu.matmul %87, %121, %cst_82 {dimension_numbers = #tpu.dot_dimension_numbers<[1], [0], [0], [1], [0, 0, 1, 1], [], []>} : vector<3x12xf32>, vector<12x8xf32>, vector<3x8xf32> -> vector<3x8xf32>
    %cst_83 = arith.constant dense<0.000000e+00> : vector<3x2xf32>
    %123 = tpu.matmul %122, %93, %cst_83 {dimension_numbers = #tpu.dot_dimension_numbers<[1], [0], [0], [1], [0, 0, 1, 1], [], []>} : vector<3x8xf32>, vector<8x2xf32>, vector<3x2xf32> -> vector<3x2xf32>
    %124 = vector.broadcast %94 : vector<1x2xf32> to vector<3x2xf32>
    %125 = arith.mulf %123, %124 : vector<3x2xf32>
    %126 = vector.broadcast %95 : vector<1x2xf32> to vector<3x2xf32>
    %127 = arith.addf %125, %126 : vector<3x2xf32>
    %cst_84 = arith.constant 0.000000e+00 : f32
    %128 = vector.broadcast %cst_84 : f32 to vector<3x2xf32>
    %129 = arith.maximumf %127, %128 : vector<3x2xf32>
    %cst_85 = arith.constant dense<0.000000e+00> : vector<12x2xf32>
    %130 = tpu.matmul %91, %129, %cst_85 {dimension_numbers = #tpu.dot_dimension_numbers<[1], [0], [0], [1], [0, 0, 1, 1], [], []>} : vector<12x3xf32>, vector<3x2xf32>, vector<12x2xf32> -> vector<12x2xf32>
    %c2_86 = arith.constant 2 : index
    %c0_87 = arith.constant 0 : index
    %c1_88 = arith.constant 1 : index
    %131 = vector.load %arg5[%c2_86, %c0_87, %c1_88] : memref<4x12x6xf32, #tpu.memory_space<vmem>>, vector<1x12x1xf32>
    %132 = vector.shape_cast %131 : vector<1x12x1xf32> to vector<12x1xf32>
    %133 = vector.shape_cast %132 : vector<12x1xf32> to vector<1x12x1xf32>
    %134 = vector.shape_cast %130 : vector<12x2xf32> to vector<12x1x2xf32>
    %135 = vector.broadcast %133 : vector<1x12x1xf32> to vector<12x12x2xf32>
    %136 = vector.broadcast %134 : vector<12x1x2xf32> to vector<12x12x2xf32>
    %137 = arith.mulf %135, %136 : vector<12x12x2xf32>
    %138 = arith.addf %119, %137 : vector<12x12x2xf32>
    %139 = vector.extract_strided_slice %99 {offsets = [0, 2, 0], sizes = [12, 1, 8], strides = [1, 1, 1]} : vector<12x3x8xf32> to vector<12x1x8xf32>
    %140 = vector.shape_cast %139 : vector<12x1x8xf32> to vector<12x8xf32>
    %cst_89 = arith.constant dense<0.000000e+00> : vector<3x8xf32>
    %141 = tpu.matmul %87, %140, %cst_89 {dimension_numbers = #tpu.dot_dimension_numbers<[1], [0], [0], [1], [0, 0, 1, 1], [], []>} : vector<3x12xf32>, vector<12x8xf32>, vector<3x8xf32> -> vector<3x8xf32>
    %cst_90 = arith.constant dense<0.000000e+00> : vector<3x2xf32>
    %142 = tpu.matmul %141, %93, %cst_90 {dimension_numbers = #tpu.dot_dimension_numbers<[1], [0], [0], [1], [0, 0, 1, 1], [], []>} : vector<3x8xf32>, vector<8x2xf32>, vector<3x2xf32> -> vector<3x2xf32>
    %143 = vector.broadcast %94 : vector<1x2xf32> to vector<3x2xf32>
    %144 = arith.mulf %142, %143 : vector<3x2xf32>
    %145 = vector.broadcast %95 : vector<1x2xf32> to vector<3x2xf32>
    %146 = arith.addf %144, %145 : vector<3x2xf32>
    %cst_91 = arith.constant 0.000000e+00 : f32
    %147 = vector.broadcast %cst_91 : f32 to vector<3x2xf32>
    %148 = arith.maximumf %146, %147 : vector<3x2xf32>
    %cst_92 = arith.constant dense<0.000000e+00> : vector<12x2xf32>
    %149 = tpu.matmul %91, %148, %cst_92 {dimension_numbers = #tpu.dot_dimension_numbers<[1], [0], [0], [1], [0, 0, 1, 1], [], []>} : vector<12x3xf32>, vector<3x2xf32>, vector<12x2xf32> -> vector<12x2xf32>
    %c2_93 = arith.constant 2 : index
    %c0_94 = arith.constant 0 : index
    %c2_95 = arith.constant 2 : index
    %150 = vector.load %arg5[%c2_93, %c0_94, %c2_95] : memref<4x12x6xf32, #tpu.memory_space<vmem>>, vector<1x12x1xf32>
    %151 = vector.shape_cast %150 : vector<1x12x1xf32> to vector<12x1xf32>
    %152 = vector.shape_cast %151 : vector<12x1xf32> to vector<1x12x1xf32>
    %153 = vector.shape_cast %149 : vector<12x2xf32> to vector<12x1x2xf32>
    %154 = vector.broadcast %152 : vector<1x12x1xf32> to vector<12x12x2xf32>
    %155 = vector.broadcast %153 : vector<12x1x2xf32> to vector<12x12x2xf32>
    %156 = arith.mulf %154, %155 : vector<12x12x2xf32>
    %157 = arith.addf %138, %156 : vector<12x12x2xf32>
    %c3 = arith.constant 3 : index
    %c0_96 = arith.constant 0 : index
    %c0_97 = arith.constant 0 : index
    %158 = vector.load %arg2[%c3, %c0_96, %c0_97] : memref<4x6x12xf32, #tpu.memory_space<vmem>>, vector<1x6x12xf32>
    %159 = vector.shape_cast %158 : vector<1x6x12xf32> to vector<6x12xf32>
    %c3_98 = arith.constant 3 : index
    %c0_99 = arith.constant 0 : index
    %c0_100 = arith.constant 0 : index
    %160 = vector.load %arg3[%c3_98, %c0_99, %c0_100] : memref<4x6x12xf32, #tpu.memory_space<vmem>>, vector<1x6x12xf32>
    %161 = vector.shape_cast %160 : vector<1x6x12xf32> to vector<6x12xf32>
    %c3_101 = arith.constant 3 : index
    %c0_102 = arith.constant 0 : index
    %c0_103 = arith.constant 0 : index
    %162 = vector.load %arg4[%c3_101, %c0_102, %c0_103] : memref<4x12x6xf32, #tpu.memory_space<vmem>>, vector<1x12x6xf32>
    %163 = vector.shape_cast %162 : vector<1x12x6xf32> to vector<12x6xf32>
    %c3_104 = arith.constant 3 : index
    %c0_105 = arith.constant 0 : index
    %c0_106 = arith.constant 0 : index
    %164 = vector.load %arg6[%c3_104, %c0_105, %c0_106] : memref<4x8x2xf32, #tpu.memory_space<vmem>>, vector<1x8x2xf32>
    %165 = vector.shape_cast %164 : vector<1x8x2xf32> to vector<8x2xf32>
    %c3_107 = arith.constant 3 : index
    %c0_108 = arith.constant 0 : index
    %166 = vector.load %arg7[%c3_107, %c0_108] : memref<4x2xf32, #tpu.memory_space<vmem>>, vector<1x2xf32>
    %c3_109 = arith.constant 3 : index
    %c0_110 = arith.constant 0 : index
    %167 = vector.load %arg8[%c3_109, %c0_110] : memref<4x2xf32, #tpu.memory_space<vmem>>, vector<1x2xf32>
    %168 = vector.shape_cast %161 : vector<6x12xf32> to vector<1x6x12xf32>
    %169 = vector.shape_cast %168 : vector<1x6x12xf32> to vector<1x6x12xf32>
    %170 = vector.broadcast %169 : vector<1x6x12xf32> to vector<12x6x12xf32>
    "tpu.trace_start"() <{level = 10 : i32, message = "hjw,hwc->hjc"}> : () -> ()
    %cst_111 = arith.constant dense<0.000000e+00> : vector<12x6x8xf32>
    %171 = tpu.matmul %170, %1, %cst_111 {dimension_numbers = #tpu.dot_dimension_numbers<[2], [1], [1], [2], [0, 0, 0, 1, 1, 2], [0], [0]>} : vector<12x6x12xf32>, vector<12x12x8xf32>, vector<12x6x8xf32> -> vector<12x6x8xf32>
    %cst_112 = arith.constant 0.000000e+00 : f32
    "tpu.trace_stop"() : () -> ()
    %172 = vector.broadcast %cst_112 : f32 to vector<12x12x2xf32>
    %173 = vector.extract_strided_slice %171 {offsets = [0, 0, 0], sizes = [12, 1, 8], strides = [1, 1, 1]} : vector<12x6x8xf32> to vector<12x1x8xf32>
    %174 = vector.shape_cast %173 : vector<12x1x8xf32> to vector<12x8xf32>
    %cst_113 = arith.constant dense<0.000000e+00> : vector<6x8xf32>
    %175 = tpu.matmul %159, %174, %cst_113 {dimension_numbers = #tpu.dot_dimension_numbers<[1], [0], [0], [1], [0, 0, 1, 1], [], []>} : vector<6x12xf32>, vector<12x8xf32>, vector<6x8xf32> -> vector<6x8xf32>
    %cst_114 = arith.constant dense<0.000000e+00> : vector<6x2xf32>
    %176 = tpu.matmul %175, %165, %cst_114 {dimension_numbers = #tpu.dot_dimension_numbers<[1], [0], [0], [1], [0, 0, 1, 1], [], []>} : vector<6x8xf32>, vector<8x2xf32>, vector<6x2xf32> -> vector<6x2xf32>
    %177 = vector.broadcast %166 : vector<1x2xf32> to vector<6x2xf32>
    %178 = arith.mulf %176, %177 : vector<6x2xf32>
    %179 = vector.broadcast %167 : vector<1x2xf32> to vector<6x2xf32>
    %180 = arith.addf %178, %179 : vector<6x2xf32>
    %cst_115 = arith.constant 0.000000e+00 : f32
    %181 = vector.broadcast %cst_115 : f32 to vector<6x2xf32>
    %182 = arith.maximumf %180, %181 : vector<6x2xf32>
    %cst_116 = arith.constant dense<0.000000e+00> : vector<12x2xf32>
    %183 = tpu.matmul %163, %182, %cst_116 {dimension_numbers = #tpu.dot_dimension_numbers<[1], [0], [0], [1], [0, 0, 1, 1], [], []>} : vector<12x6xf32>, vector<6x2xf32>, vector<12x2xf32> -> vector<12x2xf32>
    %c3_117 = arith.constant 3 : index
    %c0_118 = arith.constant 0 : index
    %c0_119 = arith.constant 0 : index
    %184 = vector.load %arg5[%c3_117, %c0_118, %c0_119] : memref<4x12x6xf32, #tpu.memory_space<vmem>>, vector<1x12x1xf32>
    %185 = vector.shape_cast %184 : vector<1x12x1xf32> to vector<12x1xf32>
    %186 = vector.shape_cast %185 : vector<12x1xf32> to vector<1x12x1xf32>
    %187 = vector.shape_cast %183 : vector<12x2xf32> to vector<12x1x2xf32>
    %188 = vector.broadcast %186 : vector<1x12x1xf32> to vector<12x12x2xf32>
    %189 = vector.broadcast %187 : vector<12x1x2xf32> to vector<12x12x2xf32>
    %190 = arith.mulf %188, %189 : vector<12x12x2xf32>
    %191 = arith.addf %172, %190 : vector<12x12x2xf32>
    %192 = vector.extract_strided_slice %171 {offsets = [0, 1, 0], sizes = [12, 1, 8], strides = [1, 1, 1]} : vector<12x6x8xf32> to vector<12x1x8xf32>
    %193 = vector.shape_cast %192 : vector<12x1x8xf32> to vector<12x8xf32>
    %cst_120 = arith.constant dense<0.000000e+00> : vector<6x8xf32>
    %194 = tpu.matmul %159, %193, %cst_120 {dimension_numbers = #tpu.dot_dimension_numbers<[1], [0], [0], [1], [0, 0, 1, 1], [], []>} : vector<6x12xf32>, vector<12x8xf32>, vector<6x8xf32> -> vector<6x8xf32>
    %cst_121 = arith.constant dense<0.000000e+00> : vector<6x2xf32>
    %195 = tpu.matmul %194, %165, %cst_121 {dimension_numbers = #tpu.dot_dimension_numbers<[1], [0], [0], [1], [0, 0, 1, 1], [], []>} : vector<6x8xf32>, vector<8x2xf32>, vector<6x2xf32> -> vector<6x2xf32>
    %196 = vector.broadcast %166 : vector<1x2xf32> to vector<6x2xf32>
    %197 = arith.mulf %195, %196 : vector<6x2xf32>
    %198 = vector.broadcast %167 : vector<1x2xf32> to vector<6x2xf32>
    %199 = arith.addf %197, %198 : vector<6x2xf32>
    %cst_122 = arith.constant 0.000000e+00 : f32
    %200 = vector.broadcast %cst_122 : f32 to vector<6x2xf32>
    %201 = arith.maximumf %199, %200 : vector<6x2xf32>
    %cst_123 = arith.constant dense<0.000000e+00> : vector<12x2xf32>
    %202 = tpu.matmul %163, %201, %cst_123 {dimension_numbers = #tpu.dot_dimension_numbers<[1], [0], [0], [1], [0, 0, 1, 1], [], []>} : vector<12x6xf32>, vector<6x2xf32>, vector<12x2xf32> -> vector<12x2xf32>
    %c3_124 = arith.constant 3 : index
    %c0_125 = arith.constant 0 : index
    %c1_126 = arith.constant 1 : index
    %203 = vector.load %arg5[%c3_124, %c0_125, %c1_126] : memref<4x12x6xf32, #tpu.memory_space<vmem>>, vector<1x12x1xf32>
    %204 = vector.shape_cast %203 : vector<1x12x1xf32> to vector<12x1xf32>
    %205 = vector.shape_cast %204 : vector<12x1xf32> to vector<1x12x1xf32>
    %206 = vector.shape_cast %202 : vector<12x2xf32> to vector<12x1x2xf32>
    %207 = vector.broadcast %205 : vector<1x12x1xf32> to vector<12x12x2xf32>
    %208 = vector.broadcast %206 : vector<12x1x2xf32> to vector<12x12x2xf32>
    %209 = arith.mulf %207, %208 : vector<12x12x2xf32>
    %210 = arith.addf %191, %209 : vector<12x12x2xf32>
    %211 = vector.extract_strided_slice %171 {offsets = [0, 2, 0], sizes = [12, 1, 8], strides = [1, 1, 1]} : vector<12x6x8xf32> to vector<12x1x8xf32>
    %212 = vector.shape_cast %211 : vector<12x1x8xf32> to vector<12x8xf32>
    %cst_127 = arith.constant dense<0.000000e+00> : vector<6x8xf32>
    %213 = tpu.matmul %159, %212, %cst_127 {dimension_numbers = #tpu.dot_dimension_numbers<[1], [0], [0], [1], [0, 0, 1, 1], [], []>} : vector<6x12xf32>, vector<12x8xf32>, vector<6x8xf32> -> vector<6x8xf32>
    %cst_128 = arith.constant dense<0.000000e+00> : vector<6x2xf32>
    %214 = tpu.matmul %213, %165, %cst_128 {dimension_numbers = #tpu.dot_dimension_numbers<[1], [0], [0], [1], [0, 0, 1, 1], [], []>} : vector<6x8xf32>, vector<8x2xf32>, vector<6x2xf32> -> vector<6x2xf32>
    %215 = vector.broadcast %166 : vector<1x2xf32> to vector<6x2xf32>
    %216 = arith.mulf %214, %215 : vector<6x2xf32>
    %217 = vector.broadcast %167 : vector<1x2xf32> to vector<6x2xf32>
    %218 = arith.addf %216, %217 : vector<6x2xf32>
    %cst_129 = arith.constant 0.000000e+00 : f32
    %219 = vector.broadcast %cst_129 : f32 to vector<6x2xf32>
    %220 = arith.maximumf %218, %219 : vector<6x2xf32>
    %cst_130 = arith.constant dense<0.000000e+00> : vector<12x2xf32>
    %221 = tpu.matmul %163, %220, %cst_130 {dimension_numbers = #tpu.dot_dimension_numbers<[1], [0], [0], [1], [0, 0, 1, 1], [], []>} : vector<12x6xf32>, vector<6x2xf32>, vector<12x2xf32> -> vector<12x2xf32>
    %c3_131 = arith.constant 3 : index
    %c0_132 = arith.constant 0 : index
    %c2_133 = arith.constant 2 : index
    %222 = vector.load %arg5[%c3_131, %c0_132, %c2_133] : memref<4x12x6xf32, #tpu.memory_space<vmem>>, vector<1x12x1xf32>
    %223 = vector.shape_cast %222 : vector<1x12x1xf32> to vector<12x1xf32>
    %224 = vector.shape_cast %223 : vector<12x1xf32> to vector<1x12x1xf32>
    %225 = vector.shape_cast %221 : vector<12x2xf32> to vector<12x1x2xf32>
    %226 = vector.broadcast %224 : vector<1x12x1xf32> to vector<12x12x2xf32>
    %227 = vector.broadcast %225 : vector<12x1x2xf32> to vector<12x12x2xf32>
    %228 = arith.mulf %226, %227 : vector<12x12x2xf32>
    %229 = arith.addf %210, %228 : vector<12x12x2xf32>
    %230 = vector.extract_strided_slice %171 {offsets = [0, 3, 0], sizes = [12, 1, 8], strides = [1, 1, 1]} : vector<12x6x8xf32> to vector<12x1x8xf32>
    %231 = vector.shape_cast %230 : vector<12x1x8xf32> to vector<12x8xf32>
    %cst_134 = arith.constant dense<0.000000e+00> : vector<6x8xf32>
    %232 = tpu.matmul %159, %231, %cst_134 {dimension_numbers = #tpu.dot_dimension_numbers<[1], [0], [0], [1], [0, 0, 1, 1], [], []>} : vector<6x12xf32>, vector<12x8xf32>, vector<6x8xf32> -> vector<6x8xf32>
    %cst_135 = arith.constant dense<0.000000e+00> : vector<6x2xf32>
    %233 = tpu.matmul %232, %165, %cst_135 {dimension_numbers = #tpu.dot_dimension_numbers<[1], [0], [0], [1], [0, 0, 1, 1], [], []>} : vector<6x8xf32>, vector<8x2xf32>, vector<6x2xf32> -> vector<6x2xf32>
    %234 = vector.broadcast %166 : vector<1x2xf32> to vector<6x2xf32>
    %235 = arith.mulf %233, %234 : vector<6x2xf32>
    %236 = vector.broadcast %167 : vector<1x2xf32> to vector<6x2xf32>
    %237 = arith.addf %235, %236 : vector<6x2xf32>
    %cst_136 = arith.constant 0.000000e+00 : f32
    %238 = vector.broadcast %cst_136 : f32 to vector<6x2xf32>
    %239 = arith.maximumf %237, %238 : vector<6x2xf32>
    %cst_137 = arith.constant dense<0.000000e+00> : vector<12x2xf32>
    %240 = tpu.matmul %163, %239, %cst_137 {dimension_numbers = #tpu.dot_dimension_numbers<[1], [0], [0], [1], [0, 0, 1, 1], [], []>} : vector<12x6xf32>, vector<6x2xf32>, vector<12x2xf32> -> vector<12x2xf32>
    %c3_138 = arith.constant 3 : index
    %c0_139 = arith.constant 0 : index
    %c3_140 = arith.constant 3 : index
    %241 = vector.load %arg5[%c3_138, %c0_139, %c3_140] : memref<4x12x6xf32, #tpu.memory_space<vmem>>, vector<1x12x1xf32>
    %242 = vector.shape_cast %241 : vector<1x12x1xf32> to vector<12x1xf32>
    %243 = vector.shape_cast %242 : vector<12x1xf32> to vector<1x12x1xf32>
    %244 = vector.shape_cast %240 : vector<12x2xf32> to vector<12x1x2xf32>
    %245 = vector.broadcast %243 : vector<1x12x1xf32> to vector<12x12x2xf32>
    %246 = vector.broadcast %244 : vector<12x1x2xf32> to vector<12x12x2xf32>
    %247 = arith.mulf %245, %246 : vector<12x12x2xf32>
    %248 = arith.addf %229, %247 : vector<12x12x2xf32>
    %249 = vector.extract_strided_slice %171 {offsets = [0, 4, 0], sizes = [12, 1, 8], strides = [1, 1, 1]} : vector<12x6x8xf32> to vector<12x1x8xf32>
    %250 = vector.shape_cast %249 : vector<12x1x8xf32> to vector<12x8xf32>
    %cst_141 = arith.constant dense<0.000000e+00> : vector<6x8xf32>
    %251 = tpu.matmul %159, %250, %cst_141 {dimension_numbers = #tpu.dot_dimension_numbers<[1], [0], [0], [1], [0, 0, 1, 1], [], []>} : vector<6x12xf32>, vector<12x8xf32>, vector<6x8xf32> -> vector<6x8xf32>
    %cst_142 = arith.constant dense<0.000000e+00> : vector<6x2xf32>
    %252 = tpu.matmul %251, %165, %cst_142 {dimension_numbers = #tpu.dot_dimension_numbers<[1], [0], [0], [1], [0, 0, 1, 1], [], []>} : vector<6x8xf32>, vector<8x2xf32>, vector<6x2xf32> -> vector<6x2xf32>
    %253 = vector.broadcast %166 : vector<1x2xf32> to vector<6x2xf32>
    %254 = arith.mulf %252, %253 : vector<6x2xf32>
    %255 = vector.broadcast %167 : vector<1x2xf32> to vector<6x2xf32>
    %256 = arith.addf %254, %255 : vector<6x2xf32>
    %cst_143 = arith.constant 0.000000e+00 : f32
    %257 = vector.broadcast %cst_143 : f32 to vector<6x2xf32>
    %258 = arith.maximumf %256, %257 : vector<6x2xf32>
    %cst_144 = arith.constant dense<0.000000e+00> : vector<12x2xf32>
    %259 = tpu.matmul %163, %258, %cst_144 {dimension_numbers = #tpu.dot_dimension_numbers<[1], [0], [0], [1], [0, 0, 1, 1], [], []>} : vector<12x6xf32>, vector<6x2xf32>, vector<12x2xf32> -> vector<12x2xf32>
    %c3_145 = arith.constant 3 : index
    %c0_146 = arith.constant 0 : index
    %c4 = arith.constant 4 : index
    %260 = vector.load %arg5[%c3_145, %c0_146, %c4] : memref<4x12x6xf32, #tpu.memory_space<vmem>>, vector<1x12x1xf32>
    %261 = vector.shape_cast %260 : vector<1x12x1xf32> to vector<12x1xf32>
    %262 = vector.shape_cast %261 : vector<12x1xf32> to vector<1x12x1xf32>
    %263 = vector.shape_cast %259 : vector<12x2xf32> to vector<12x1x2xf32>
    %264 = vector.broadcast %262 : vector<1x12x1xf32> to vector<12x12x2xf32>
    %265 = vector.broadcast %263 : vector<12x1x2xf32> to vector<12x12x2xf32>
    %266 = arith.mulf %264, %265 : vector<12x12x2xf32>
    %267 = arith.addf %248, %266 : vector<12x12x2xf32>
    %268 = vector.extract_strided_slice %171 {offsets = [0, 5, 0], sizes = [12, 1, 8], strides = [1, 1, 1]} : vector<12x6x8xf32> to vector<12x1x8xf32>
    %269 = vector.shape_cast %268 : vector<12x1x8xf32> to vector<12x8xf32>
    %cst_147 = arith.constant dense<0.000000e+00> : vector<6x8xf32>
    %270 = tpu.matmul %159, %269, %cst_147 {dimension_numbers = #tpu.dot_dimension_numbers<[1], [0], [0], [1], [0, 0, 1, 1], [], []>} : vector<6x12xf32>, vector<12x8xf32>, vector<6x8xf32> -> vector<6x8xf32>
    %cst_148 = arith.constant dense<0.000000e+00> : vector<6x2xf32>
    %271 = tpu.matmul %270, %165, %cst_148 {dimension_numbers = #tpu.dot_dimension_numbers<[1], [0], [0], [1], [0, 0, 1, 1], [], []>} : vector<6x8xf32>, vector<8x2xf32>, vector<6x2xf32> -> vector<6x2xf32>
    %272 = vector.broadcast %166 : vector<1x2xf32> to vector<6x2xf32>
    %273 = arith.mulf %271, %272 : vector<6x2xf32>
    %274 = vector.broadcast %167 : vector<1x2xf32> to vector<6x2xf32>
    %275 = arith.addf %273, %274 : vector<6x2xf32>
    %cst_149 = arith.constant 0.000000e+00 : f32
    %276 = vector.broadcast %cst_149 : f32 to vector<6x2xf32>
    %277 = arith.maximumf %275, %276 : vector<6x2xf32>
    %cst_150 = arith.constant dense<0.000000e+00> : vector<12x2xf32>
    %278 = tpu.matmul %163, %277, %cst_150 {dimension_numbers = #tpu.dot_dimension_numbers<[1], [0], [0], [1], [0, 0, 1, 1], [], []>} : vector<12x6xf32>, vector<6x2xf32>, vector<12x2xf32> -> vector<12x2xf32>
    %c3_151 = arith.constant 3 : index
    %c0_152 = arith.constant 0 : index
    %c5 = arith.constant 5 : index
    %279 = vector.load %arg5[%c3_151, %c0_152, %c5] : memref<4x12x6xf32, #tpu.memory_space<vmem>>, vector<1x12x1xf32>
    %280 = vector.shape_cast %279 : vector<1x12x1xf32> to vector<12x1xf32>
    %281 = vector.shape_cast %280 : vector<12x1xf32> to vector<1x12x1xf32>
    %282 = vector.shape_cast %278 : vector<12x2xf32> to vector<12x1x2xf32>
    %283 = vector.broadcast %281 : vector<1x12x1xf32> to vector<12x12x2xf32>
    %284 = vector.broadcast %282 : vector<12x1x2xf32> to vector<12x12x2xf32>
    %285 = arith.mulf %283, %284 : vector<12x12x2xf32>
    %286 = arith.addf %267, %285 : vector<12x12x2xf32>
    %287 = tpu.concatenate %32, %85, %157, %286 in 2 : vector<12x12x2xf32>, vector<12x12x2xf32>, vector<12x12x2xf32>, vector<12x12x2xf32> -> vector<12x12x8xf32>
    %c0_153 = arith.constant 0 : index
    %c0_154 = arith.constant 0 : index
    %c0_155 = arith.constant 0 : index
    %c0_156 = arith.constant 0 : index
    %288 = vector.load %arg9[%c0_153, %c0_154, %c0_155, %c0_156] : memref<1x12x12x8xf32, #tpu.memory_space<vmem>>, vector<1x12x12x8xf32>
    %289 = vector.shape_cast %288 : vector<1x12x12x8xf32> to vector<12x12x8xf32>
    %290 = vector.shape_cast %287 : vector<12x12x8xf32> to vector<1x12x12x8xf32>
    tpu.vector_store %arg9[%c0_153, %c0_154, %c0_155, %c0_156], %290 {strides = array<i32>} : memref<1x12x12x8xf32, #tpu.memory_space<vmem>>, vector<1x12x12x8xf32>,
    return
  }
  func.func @transform_0(%arg0: i32) -> (i32, i32, i32, i32) {
    %c0_i32 = arith.constant 0 : i32
    %c0_i32_0 = arith.constant 0 : i32
    %c0_i32_1 = arith.constant 0 : i32
    %c0_i32_2 = arith.constant 0 : i32
    return %arg0, %c0_i32, %c0_i32_0, %c0_i32_1 : i32, i32, i32, i32
  }
  func.func @transform_1(%arg0: i32) -> (i32, i32, i32) {
    %c0_i32 = arith.constant 0 : i32
    %c0_i32_0 = arith.constant 0 : i32
    %c0_i32_1 = arith.constant 0 : i32
    %c0_i32_2 = arith.constant 0 : i32
    return %c0_i32, %c0_i32_0, %c0_i32_1 : i32, i32, i32
  }
  func.func @transform_2(%arg0: i32) -> (i32, i32, i32) {
    %c0_i32 = arith.constant 0 : i32
    %c0_i32_0 = arith.constant 0 : i32
    %c0_i32_1 = arith.constant 0 : i32
    %c0_i32_2 = arith.constant 0 : i32
    return %c0_i32, %c0_i32_0, %c0_i32_1 : i32, i32, i32
  }
  func.func @transform_3(%arg0: i32) -> (i32, i32, i32) {
    %c0_i32 = arith.constant 0 : i32
    %c0_i32_0 = arith.constant 0 : i32
    %c0_i32_1 = arith.constant 0 : i32
    %c0_i32_2 = arith.constant 0 : i32
    return %c0_i32, %c0_i32_0, %c0_i32_1 : i32, i32, i32
  }
  func.func @transform_4(%arg0: i32) -> (i32, i32, i32) {
    %c0_i32 = arith.constant 0 : i32
    %c0_i32_0 = arith.constant 0 : i32
    %c0_i32_1 = arith.constant 0 : i32
    %c0_i32_2 = arith.constant 0 : i32
    return %c0_i32, %c0_i32_0, %c0_i32_1 : i32, i32, i32
  }
  func.func @transform_5(%arg0: i32) -> (i32, i32, i32) {
    %c0_i32 = arith.constant 0 : i32
    %c0_i32_0 = arith.constant 0 : i32
    %c0_i32_1 = arith.constant 0 : i32
    %c0_i32_2 = arith.constant 0 : i32
    return %c0_i32, %c0_i32_0, %c0_i32_1 : i32, i32, i32
  }
  func.func @transform_6(%arg0: i32) -> (i32, i32) {
    %c0_i32 = arith.constant 0 : i32
    %c0_i32_0 = arith.constant 0 : i32
    %c0_i32_1 = arith.constant 0 : i32
    return %c0_i32, %c0_i32_0 : i32, i32
  }
  func.func @transform_7(%arg0: i32) -> (i32, i32) {
    %c0_i32 = arith.constant 0 : i32
    %c0_i32_0 = arith.constant 0 : i32
    %c0_i32_1 = arith.constant 0 : i32
    return %c0_i32, %c0_i32_0 : i32, i32
  }
  func.func @transform_8(%arg0: i32) -> (i32, i32, i32, i32) {
    %c0_i32 = arith.constant 0 : i32
    %c0_i32_0 = arith.constant 0 : i32
    %c0_i32_1 = arith.constant 0 : i32
    %c0_i32_2 = arith.constant 0 : i32
    return %arg0, %c0_i32, %c0_i32_0, %c0_i32_1 : i32, i32, i32, i32
  }
}

</mosaic_0001>

<bundles_post_ra>
// kernel: psp_module_forward.2
= control target key start
LH: loop header
LB: loop body
LE: loop exit
PB: predicated region body
PF: predicated region fallthrough
CT: control target
= control target key end

     0   :  { %s4517_s27 = smov 0   ;;  %s6444_s0 = inlined_call_operand.vmem [shape: f32[2,12,12,8], index: 0, kind: input, shape index: {}]   ;;  %s6445_s1 = inlined_call_operand.vmem [shape: f32[4,6,12], index: 1, kind: input, shape index: {}]   ;;  %s6446_s2 = inlined_call_operand.vmem [shape: f32[4,6,12], index: 2, kind: input, shape index: {}]   ;;  %s6447_s3 = inlined_call_operand.vmem [shape: f32[4,12,6], index: 3, kind: input, shape index: {}]   ;;  %s6448_s4 = inlined_call_operand.vmem [shape: f32[4,12,6], index: 4, kind: input, shape index: {}]   ;;  %s6449_s5 = inlined_call_operand.vmem [shape: f32[4,8,2], index: 5, kind: input, shape index: {}]   ;;  %s6450_s6 = inlined_call_operand.vmem [shape: f32[4,2], index: 6, kind: input, shape index: {}]   ;;  %s6451_s7 = inlined_call_operand.vmem [shape: f32[4,2], index: 7, kind: input, shape index: {}]   ;;  %s6452_s8 = inlined_call_operand.vmem [shape: f32[2,12,12,8], index: 8, kind: output, shape index: {}]  }
   0x1 LB: > { %s4192_s28 = sadd.s32 4294967295, %s4461_s27   ;;  %p4196_p0 = scmp.ge.s32.totalorder %s4461_s27, 1  ;;  %s4461_s27 = sphi %s4517_s27, %s18_s27  }
   0x2   : > { %p262_p1 = scmp.lt.s32.totalorder %s4461_s27, 3 }
   0x4   : > { %p263_p2 = pnand %p4196_p0, %p262_p1 }
   0x6   : > { %266 = sbr.rel (%p263_p2) target bundleno = 2102 (0x836), region = 52 }
   0xb   : > { %p296_p3 = scmp.lt.s32.totalorder %s4192_s28, 1  ;;  %vm341_vm0 = vcmask 1043456   ;;  %v331_v3 = vld [vmem:[%s6446_s2] sm:$0x1]  ;;  %vm337_vm1 = vcmask 97280   ;;  %vm631_vm2 = vcmask 1041409  }
   0xc   : > { %vm634_vm3 = vcmask 1042434   ;;  %vm637_vm4 = vcmask 1043459   ;;  %vm640_vm5 = vcmask 1044484   ;;  %vm643_vm6 = vcmask 1045509   ;;  %v330_v56 = vld [vmem:[%s6445_s1] sm:$0x1] }
   0xd   : > { %s6689_s28 = smov (!%p296_p3, %s4192_s28), 1  ;;  %vm646_vm7 = vcmask 1046534   ;;  %vm649_vm8 = vcmask 1047559   ;;  %v334_v58 = vld [vmem:[%s6449_s5] sm:$0xff]  ;;  %vm683_vm9 = vcmask 64512   ;;  %v6454_v62 = vmov 0  }
   0xe   : > { %s4390_s29 = smul.u32 192, %s6689_s28  ;;  %v4230_v60 = vld [vmem:[%s6446_s2 + $0x8] sm:$0x3]  ;;  %v744_v61 = vld [vmem:[%s6448_s4] sm:$0xff]  ;;  %4408 = vset.pattern.permute.xlu0 %v6454_v62  ;;  %4409 = vset.pattern.permute.xlu1 %v6454_v62  ;;  %vm717_vm10 = vcmask 1040384   ;;  %vm710_vm11 = vcmask 7168  }
   0xf   : > { %760 = vperm.xlu0 %4408, %v744_v61   ;;  %v745_v63 = vld [vmem:[%s6448_s4 + $0x8] sm:$0xf]  ;;  %vm1187_vm12 = vcmask 1041408   ;;  %vm1180_vm13 = vcmask 15360   ;;  %s4469_s21 = smov 2   ;;  %vm1845_vm14 = vcmask 1042432  }
  0x10   : > { %s4533_s10 = scalar_lea.vmem %s6444_s0, %s4390_s29  ;;  %vm1838_vm15 = vcmask 23552   ;;  %s4471_s12 = smov 6  }
  0x11   : > { %v4536_v0 = vld [vmem:[%s4533_s10 + $0x18] sm:$0xf]  ;;  %v4539_v1 = vld [vmem:[%s4533_s10 + $0x28] sm:$0xf]  ;;  %v4542_v2 = vld [vmem:[%s4533_s10 + $0x10] sm:$0xff]  ;;  %s6320_s15 = scalar_lea.vmem %s6452_s8, %s4390_s29 }
  0x12   : > { %4201 = vmatpush.msk.msra.mxu3 %vm341_vm0, %v4536_v0  ;;  %4203 = vmatpush.msk.msra.mxu2 %vm341_vm0, %v4539_v1  ;;  %v4552_v4 = vld [vmem:[%s4533_s10 + $0x20] sm:$0xff]  ;;  %v4555_v5 = vld [vmem:[%s4533_s10 + $0x8] sm:$0xf]  ;;  %v4560_v6 = vld [vmem:[%s4533_s10 + $0x38] sm:$0xf] }
  0x13   : > { %4199 = vmatpush.msk.msra.mxu0 %vm341_vm0, %v4555_v5  ;;  %v4563_v7 = vld [vmem:[%s4533_s10] sm:$0xff]  ;;  %v4568_v8 = vld [vmem:[%s4533_s10 + $0x68] sm:$0xf]  ;;  %v4573_v9 = vld [vmem:[%s4533_s10 + $0x30] sm:$0xff] }
  0x14   : > { %383 = vmatpush.msra.mxu3 %v4542_v2  ;;  %406 = vmatpush.msra.mxu2 %v4552_v4  ;;  %v4576_v10 = vld [vmem:[%s4533_s10 + $0x48] sm:$0xf]  ;;  %v4582_v11 = vld [vmem:[%s4533_s10 + $0x60] sm:$0xff]  ;;  %v4585_v12 = vld [vmem:[%s4533_s10 + $0x58] sm:$0xf] }
  0x15   : > { %4202 = vmatmul.msk.f32.vlgmr.msra.gmra.mxu3 %vm337_vm1, %v331_v3  ;;  %4204 = vmatmul.msk.f32.vlgmr.msra.gmra.mxu2 %vm337_vm1, %v331_v3  ;;  %v4591_v13 = vld [vmem:[%s4533_s10 + $0x78] sm:$0xf]  ;;  %v4594_v14 = vld [vmem:[%s4533_s10 + $0x40] sm:$0xff]  ;;  %v4600_v15 = vld [vmem:[%s4533_s10 + $0x50] sm:$0xff] }
  0x16   : > { %4205 = vmatpush.msk.msrb.mxu3 %vm341_vm0, %v4560_v6  ;;  %360 = vmatpush.msra.mxu0 %v4563_v7  ;;  %v4603_v16 = vld [vmem:[%s4533_s10 + $0xa8] sm:$0xf]  ;;  %v4609_v17 = vld [vmem:[%s4533_s10 + $0x70] sm:$0xff]  ;;  %v4618_v18 = vld [vmem:[%s4533_s10 + $0xb8] sm:$0xf] }
  0x17   : > { %4200 = vmatmul.msk.f32.vlgmr.msra.gmra.mxu0 %vm337_vm1, %v331_v3  ;;  %4211 = vmatpush.msk.msrb.mxu2 %vm341_vm0, %v4568_v8  ;;  %v4621_v19 = vld [vmem:[%s4533_s10 + $0xa0] sm:$0xff]  ;;  %v4626_v20 = vld [vmem:[%s4533_s10 + $0x98] sm:$0xf]  ;;  %v4631_v21 = vld [vmem:[%s4533_s10 + $0xb0] sm:$0xff] }
  0x18   : > { %429 = vmatpush.msrb.mxu3 %v4573_v9  ;;  %4207 = vmatpush.msk.msrb.mxu0 %vm341_vm0, %v4576_v10  ;;  %v4634_v22 = vld [vmem:[%s4533_s10 + $0x88] sm:$0xf]  ;;  %v4640_v23 = vld [vmem:[%s4533_s10 + $0x90] sm:$0xff]  ;;  %v4646_v24 = vld [vmem:[%s4533_s10 + $0x80] sm:$0xff] }
  0x19   : > { %498 = vmatpush.msrb.mxu2 %v4582_v11  ;;  %4209 = vmatpush.msk.msra.mxu1 %vm341_vm0, %v4585_v12 }
  0x1a   : > { %4213 = vmatpush.msk.msra.mxu3 %vm341_vm0, %v4591_v13  ;;  %452 = vmatpush.msrb.mxu0 %v4594_v14 }
  0x1b   : > { %475 = vmatpush.msra.mxu1 %v4600_v15  ;;  %4219 = vmatpush.msk.msra.mxu2 %vm341_vm0, %v4603_v16 }
  0x1c   : > { %521 = vmatpush.msra.mxu3 %v4609_v17  ;;  %4210 = vmatmul.msk.f32.vlgmr.msra.gmra.mxu1 %vm337_vm1, %v331_v3 }
  0x1d   : > { %4206 = vmatmul.msk.f32.vlgmr.msrb.gmra.mxu3 %vm337_vm1, %v331_v3  ;;  %4212 = vmatmul.msk.f32.vlgmr.msrb.gmra.mxu2 %vm337_vm1, %v331_v3 }
  0x1e   : > { %4221 = vmatpush.msk.msrb.mxu3 %vm341_vm0, %v4618_v18  ;;  %590 = vmatpush.msra.mxu2 %v4621_v19 }
  0x1f   : > { %4208 = vmatmul.msk.f32.vlgmr.msrb.gmra.mxu0 %vm337_vm1, %v331_v3  ;;  %4217 = vmatpush.msk.msrb.mxu1 %vm341_vm0, %v4626_v20 }
  0x20   : > { %613 = vmatpush.msrb.mxu3 %v4631_v21  ;;  %4215 = vmatpush.msk.msra.mxu0 %vm341_vm0, %v4634_v22 }
  0x21   : > { %567 = vmatpush.msrb.mxu1 %v4640_v23  ;;  %765 = vperm.xlu0 %4408, %v745_v63  }
  0x22   : > { %544 = vmatpush.msra.mxu0 %v4646_v24 }
  0x23   : > { %702 = vmatpush.msra.mxu1 %v334_v58 }
  0x24   : > { %4218 = vmatmul.msk.f32.vlgmr.msrb.gmra.mxu1 %vm337_vm1, %v331_v3 }
  0x25   : > { %4214 = vmatmul.msk.f32.vlgmr.msra.gmra.mxu3 %vm337_vm1, %v331_v3  ;;  %4220 = vmatmul.msk.f32.vlgmr.msra.gmra.mxu2 %vm337_vm1, %v331_v3 }
  0x26   : > { %4234 = vmatpush.msk.msra.mxu3 %vm341_vm0, %v4555_v5  ;;  %4238 = vmatpush.msk.msrb.mxu1 %vm341_vm0, %v4539_v1 }
  0x27   : > { %4216 = vmatmul.msk.f32.vlgmr.msra.gmra.mxu0 %vm337_vm1, %v331_v3 }
  0x28   : > { %869 = vmatpush.msra.mxu3 %v4563_v7  ;;  %909 = vmatpush.msrb.mxu1 %v4552_v4 }
  0x2d   : > { %4222 = vmatmul.msk.f32.vlgmr.msrb.gmra.mxu3 %vm337_vm1, %v331_v3  ;;  %v335_v3 = vld [vmem:[%s6450_s6] sm:$0x1] }
  0x2e   : > { %4240 = vmatpush.msk.msrb.mxu3 %vm341_vm0, %v4560_v6 }
  0x30   : > { %929 = vmatpush.msrb.mxu3 %v4573_v9 }
  0x35   : > { %4235 = vmatmul.msk.f32.vlgmr.msra.gmra.mxu3 %vm337_vm1, %v4230_v60 }
  0x36   : > { %4248 = vmatpush.msk.msra.mxu3 %vm341_vm0, %v4591_v13 }
  0x38   : > { %1009 = vmatpush.msra.mxu3 %v4609_v17 }
  0x3d   : > { %4241 = vmatmul.msk.f32.vlgmr.msrb.gmra.mxu3 %vm337_vm1, %v4230_v60 }
  0x3e   : > { %4256 = vmatpush.msk.msrb.mxu3 %vm341_vm0, %v4618_v18 }
  0x40   : > { %1089 = vmatpush.msrb.mxu3 %v4631_v21 }
  0x45   : > { %4249 = vmatmul.msk.f32.vlgmr.msra.gmra.mxu3 %vm337_vm1, %v4230_v60 }
  0x4d   : > { %4257 = vmatmul.msk.f32.vlgmr.msrb.gmra.mxu3 %vm337_vm1, %v4230_v60 }
  0x94   : > { %v362_v26 = vpop.f32.mrf.mxu0 }
  0x98   : > { %v385_v25 = vpop.f32.mrf.mxu3  ;;  %v408_v27 = vpop.f32.mrf.mxu2 }
  0x99   : > { %v477_v28 = vpop.f32.mrf.mxu1  ;;  %v630_v32 = vrot.slane %v385_v25, 7  ;;  %v633_v33 = vrot.slane %v408_v27, 6  ;;  %v336_v25 = vld [vmem:[%s6451_s7] sm:$0x1] }
  0x9a   : > { %v642_v45 = vrot.slane %v477_v28, 3 }
  0x9b   : > { %v632_v35 = vsel %vm631_vm2, %v630_v32, %v362_v26 }
  0x9c   : > { %v454_v31 = vpop.f32.mrf.mxu0  ;;  %v635_v40 = vsel %vm634_vm3, %v633_v33, %v632_v35 }
  0x9d   : > { %v639_v41 = vrot.slane %v454_v31, 4  ;;  %v333_v31 = vld [vmem:[%s6447_s3 + $0x8] sm:$0xf] }
  0xa0   : > { %v431_v29 = vpop.f32.mrf.mxu3  ;;  %v500_v30 = vpop.f32.mrf.mxu2 }
  0xa1   : > { %v569_v34 = vpop.f32.mrf.mxu1  ;;  %v636_v36 = vrot.slane %v431_v29, 5  ;;  %v645_v48 = vrot.slane %v500_v30, 2  ;;  %v332_v30 = vld [vmem:[%s6447_s3] sm:$0xff] }
  0xa2   : > { %v651_v38 = vrot.slane %v569_v34, 7 }
  0xa3   : > { %v638_v43 = vsel %vm637_vm4, %v636_v36, %v635_v40  ;;  %v761_v40 = vpop.permute.xlu0 %760 }
  0xa4   : > { %v546_v42 = vpop.f32.mrf.mxu0  ;;  %v641_v47 = vsel %vm640_vm5, %v639_v41, %v638_v43 }
  0xa5   : > { %v652_v46 = vsel %vm631_vm2, %v651_v38, %v546_v42  ;;  %v644_v51 = vsel %vm643_vm6, %v642_v45, %v641_v47 }
  0xa6   : > { %v647_v55 = vsel %vm646_vm7, %v645_v48, %v644_v51 }
  0xa8   : > { %v523_v37 = vpop.f32.mrf.mxu3  ;;  %v592_v39 = vpop.f32.mrf.mxu2 }
  0xa9   : > { %v653_v44 = vrot.slane %v592_v39, 6  ;;  %v648_v52 = vrot.slane %v523_v37, 1 }
  0xab   : > { %v654_v49 = vsel %vm634_vm3, %v653_v44, %v652_v46  ;;  %v650_v57 = vsel %vm649_vm8, %v648_v52, %v647_v55 }
  0xb0   : > { %v615_v50 = vpop.f32.mrf.mxu3 }
  0xb1   : > { %v655_v53 = vrot.slane %v615_v50, 5 }
  0xb3   : > { %v656_v54 = vsel %vm637_vm4, %v655_v53, %v654_v49 }
  0xb4   : > { %4223 = vmatpush.msk.msrb.mxu0 %vm341_vm0, %v656_v54 }
  0xb6   : > { %678 = vmatpush.msrb.mxu0 %v650_v57 }
  0xb7   : > { %4224 = vmatmul.msk.f32.vlgmr.msrb.gmra.mxu0 %vm337_vm1, %v330_v56 }
  0xb8   : > { %4236 = vmatpush.msk.msra.mxu0 %vm341_vm0, %v4536_v0  ;;  %v871_v32 = vpop.f32.mrf.mxu3 }
  0xba   : > { %889 = vmatpush.msra.mxu0 %v4542_v2 }
  0xbc   : > { %4242 = vmatpush.msk.msrb.mxu0 %vm341_vm0, %v4576_v10 }
  0xbe   : > { %949 = vmatpush.msrb.mxu0 %v4594_v14 }
  0xbf   : > { %4237 = vmatmul.msk.f32.vlgmr.msra.gmra.mxu0 %vm337_vm1, %v4230_v60 }
  0xc0   : > { %4250 = vmatpush.msk.msra.mxu0 %vm341_vm0, %v4634_v22  ;;  %v931_v44 = vpop.f32.mrf.mxu3 }
  0xc2   : > { %1029 = vmatpush.msra.mxu0 %v4646_v24 }
  0xc7   : > { %4243 = vmatmul.msk.f32.vlgmr.msrb.gmra.mxu0 %vm337_vm1, %v4230_v60 }
  0xcf   : > { %4251 = vmatmul.msk.f32.vlgmr.msra.gmra.mxu0 %vm337_vm1, %v4230_v60 }
 0x134   : > { %v680_v59 = vpop.f32.mrf.mxu0 }
 0x135   : > { %4225 = vmatmul.msk.f32.vlgmr.msra.gmra.mxu1 %vm683_vm9, %v680_v59 }
 0x136   : > { %4244 = vmatpush.msk.msra.mxu1 %vm341_vm0, %v4585_v12 }
 0x138   : > { %969 = vmatpush.msra.mxu1 %v4600_v15 }
 0x13c   : > { %v891_v35 = vpop.f32.mrf.mxu0 }
 0x13d   : > { %4239 = vmatmul.msk.f32.vlgmr.msrb.gmra.mxu1 %vm337_vm1, %v4230_v60 }
 0x13e   : > { %4252 = vmatpush.msk.msrb.mxu1 %vm341_vm0, %v4626_v20 }
 0x140   : > { %1049 = vmatpush.msrb.mxu1 %v4640_v23 }
 0x145   : > { %4245 = vmatmul.msk.f32.vlgmr.msra.gmra.mxu1 %vm337_vm1, %v4230_v60 }
 0x14d   : > { %4253 = vmatmul.msk.f32.vlgmr.msrb.gmra.mxu1 %vm337_vm1, %v4230_v60 }
 0x1b2   : > { %v704_v26 = vpop.f32.mrf.mxu1 }
 0x1b3   : > { %v707_v27 = vmul.f32 %v704_v26, %v335_v3 }
 0x1b5   : > { %v708_v28 = vadd.f32 %v707_v27, %v336_v25 }
 0x1b7   : > { %v709_v29 = vmax.f32 %v708_v28, 0.0  ;;  %v1311_v28 = vrot.slane %v871_v32, 1 }
 0x1b9   : > { %4226 = vmatpush.msk.msrb.mxu2 %vm717_vm10, %v709_v29 }
 0x1ba   : > { %4227 = vmatmul.msk.f32.vlgmr.msrb.gmra.mxu2 %vm710_vm11, %v332_v30  ;;  %v911_v33 = vpop.f32.mrf.mxu1  ;;  %v951_v30 = vpop.f32.mrf.mxu0 }
 0x1bb   : > { %4246 = vmatpush.msk.msra.mxu2 %vm341_vm0, %v4568_v8 }
 0x1bd   : > { %989 = vmatpush.msra.mxu2 %v4582_v11 }
 0x1bf   : > { %4254 = vmatpush.msk.msrb.mxu2 %vm341_vm0, %v4603_v16 }
 0x1c1   : > { %1069 = vmatpush.msrb.mxu2 %v4621_v19 }
 0x1c2   : > { %4228 = vmatmul.msk.f32.gmra.mxu2 %vm710_vm11, %v333_v31  ;;  %v971_v63 = vpop.f32.mrf.mxu1 }
 0x1ca   : > { %4247 = vmatmul.msk.f32.vlgmr.msra.gmra.mxu2 %vm337_vm1, %v4230_v60 }
 0x1d2   : > { %4255 = vmatmul.msk.f32.vlgmr.msrb.gmra.mxu2 %vm337_vm1, %v4230_v60  ;;  %v1106_v60 = vrot.slane %v891_v35, 7 }
 0x23d   : > { %v4748_v34 = vpop.f32.mrf.mxu2 }
 0x23e   : > { %v6453_v36 = vperm.slane %v4748_v34, 0  ;;  %v748_v37 = vrot.slane %v4748_v34, 1  ;;  %v749_v38 = vrot.slane %v4748_v34, 2  ;;  %v751_v39 = vrot.slane %v4748_v34, 4 }
 0x23f   : > { %v752_v41 = vrot.slane %v4748_v34, 5  ;;  %v750_v42 = vrot.slane %v4748_v34, 3  ;;  %v754_v43 = vrot.slane %v4748_v34, 7  ;;  %v753_v48 = vrot.slane %v4748_v34, 6 }
 0x240   : > { %v4759_v45 = vmul.f32 %v6453_v36, %v761_v40  ;;  %v4761_v46 = vperm.slane %v748_v37, 0  ;;  %v4763_v47 = vperm.slane %v749_v38, 0  ;;  %v4766_v49 = vperm.slane %v751_v39, 0  ;;  %v1011_v39 = vpop.f32.mrf.mxu3 }
 0x241   : > { %v4768_v50 = vperm.slane %v752_v41, 0  ;;  %v4770_v51 = vperm.slane %v750_v42, 0  ;;  %v4772_v52 = vperm.slane %v754_v43, 0  ;;  %v4792_v59 = vperm.slane %v753_v48, 0 }
 0x242   : > { %v4775_v53 = vmul.f32 %v4761_v46, %v761_v40  ;;  %v4778_v54 = vmul.f32 %v4763_v47, %v761_v40  ;;  %v4781_v55 = vmul.f32 %v4766_v49, %v761_v40  ;;  %v1108_v41 = vrot.slane %v911_v33, 6 }
 0x243   : > { %6479 = vst [vmem:[#allocation2_spill] sm:$0xff] %v4772_v52  ;;  %v4784_v56 = vmul.f32 %v4770_v51, %v761_v40  ;;  %v4787_v57 = vmul.f32 %v4772_v52, %v761_v40  ;;  %v4790_v58 = vmul.f32 %v4768_v50, %v761_v40  ;;  %v4801_v29 = vmul.f32 %v4792_v59, %v761_v40 }
 0x244   : > { %6481 = vst [vmem:[#allocation4_spill] sm:$0xff] %v4792_v59  ;;  %v1107_v43 = vsel %vm631_vm2, %v1106_v60, %v871_v32  ;;  %v1313_v48 = vrot.slane %v911_v33, 7  ;;  %v1315_v59 = vrot.slane %v931_v44, 6  ;;  %v1051_v32 = vpop.f32.mrf.mxu1  ;;  %v1112_v33 = vrot.slane %v951_v30, 4 }
 0x245   : > { %6480 = vst [vmem:[#allocation3_spill] sm:$0xff] %v4790_v58  ;;  %v4794_v61 = vpop.f32.mrf.mxu2  ;;  %v1109_v52 = vsel %vm634_vm3, %v1108_v41, %v1107_v43  ;;  %v1323_v58 = vrot.slane %v1011_v39, 2 }
 0x246   : > { %6482 = vst [vmem:[#allocation5_spill] sm:$0xff] %v4794_v61  ;;  %v755_v3 = vrot.slane %v4794_v61, 1  ;;  %v756_v25 = vrot.slane %v4794_v61, 2  ;;  %v757_v26 = vrot.slane %v4794_v61, 3  ;;  %v6458_v27 = vperm.slane %v4794_v61, 0 }
 0x247   : > { %6483 = vst [vmem:[#allocation6_spill] sm:$0xff] %v4801_v29 }
 0x248   : > { %v4803_v31 = vperm.slane %v755_v3, 0  ;;  %v4805_v37 = vperm.slane %v756_v25, 0  ;;  %v4807_v38 = vperm.slane %v757_v26, 0  ;;  %v4811_v42 = vmul.f32 %v6458_v27, %v761_v40 }
 0x249   : > { %v1312_v3 = vsel %vm631_vm2, %v891_v35, %v1311_v28  ;;  %v1110_v26 = vrot.slane %v931_v44, 5  ;;  %v1114_v35 = vrot.slane %v971_v63, 3  ;;  %v1091_v28 = vpop.f32.mrf.mxu3 }
 0x24a   : > { %6484 = vst [vmem:[#allocation7_spill] sm:$0xff] %v4803_v31  ;;  %v4815_v36 = vmul.f32 %v4805_v37, %v761_v40  ;;  %v4818_v62 = vmul.f32 %v4803_v31, %v761_v40  ;;  %v4822_v25 = vmul.f32 %v4807_v38, %v761_v40  ;;  %v1124_v29 = vrot.slane %v1091_v28, 5 }
 0x24b   : > { %6485 = vst [vmem:[#allocation8_spill] sm:$0xff] %v4805_v37  ;;  %v1111_v60 = vsel %vm637_vm4, %v1110_v26, %v1109_v52  ;;  %v1317_v37 = vrot.slane %v951_v30, 5  ;;  %v1329_v52 = vrot.slane %v1091_v28, 6 }
 0x24c   : > { %6486 = vst [vmem:[#allocation9_spill] sm:$0xff] %v4807_v38  ;;  %v1113_v40 = vsel %vm640_vm5, %v1112_v33, %v1111_v60  ;;  %v4307_v60 = vld [vmem:[%s6448_s4 + $0x20] sm:$0xff] }
 0x24d   : > { %6487 = vst [vmem:[#allocation10_spill] sm:$0xff] %v4811_v42  ;;  %v991_v27 = vpop.f32.mrf.mxu2  ;;  %v1314_v42 = vsel %vm634_vm3, %v1313_v48, %v1312_v3  ;;  %1889 = vperm.xlu0 %4408, %v4307_v60  }
 0x24e   : > { %6488 = vst [vmem:[#allocation11_spill] sm:$0xff] %v4815_v36  ;;  %v1031_v36 = vpop.f32.mrf.mxu0  ;;  %v1316_v31 = vsel %vm637_vm4, %v1315_v59, %v1314_v42  ;;  %v1116_v41 = vrot.slane %v991_v27, 2  ;;  %v1321_v43 = vrot.slane %v991_v27, 3  ;;  %v1115_v59 = vsel %vm643_vm6, %v1114_v35, %v1113_v40 }
 0x24f   : > { %6489 = vst [vmem:[#allocation12_spill] sm:$0xff] %v4818_v62  ;;  %v1120_v62 = vrot.slane %v1051_v32, 7  ;;  %v1325_v38 = vrot.slane %v1031_v36, 1  ;;  %v1318_v44 = vsel %vm640_vm5, %v1317_v37, %v1316_v31  ;;  %v1118_v42 = vrot.slane %v1011_v39, 1 }
 0x250   : > { %6490 = vst [vmem:[#allocation13_spill] sm:$0xff] %v4822_v25  ;;  %v1319_v25 = vrot.slane %v971_v63, 4  ;;  %v1117_v27 = vsel %vm646_vm7, %v1116_v41, %v1115_v59 }
 0x251   : > { %v1121_v48 = vsel %vm631_vm2, %v1120_v62, %v1031_v36  ;;  %v1326_v61 = vsel %vm631_vm2, %v1051_v32, %v1325_v38  ;;  %v4229_v38 = vld [vmem:[%s6445_s1 + $0x8] sm:$0x3]  ;;  %v1119_v39 = vsel %vm649_vm8, %v1118_v42, %v1117_v27  ;;  %v4464_v32 = vmov 1  }
 0x252   : > { %v1320_v63 = vsel %vm643_vm6, %v1319_v25, %v1318_v44  ;;  %4410 = vset.pattern.permute.xlu2 %v4464_v32 }
 0x253   : > { %v1322_v62 = vsel %vm646_vm7, %v1321_v43, %v1320_v63 }
 0x255   : > { %v1071_v3 = vpop.f32.mrf.mxu2  ;;  %4411 = vset.pattern.permute.xlu0 %v4464_v32 }
 0x256   : > { %v1122_v30 = vrot.slane %v1071_v3, 6  ;;  %v1327_v26 = vrot.slane %v1071_v3, 7 }
 0x258   : > { %v1123_v33 = vsel %vm634_vm3, %v1122_v30, %v1121_v48  ;;  %v1328_v31 = vsel %vm634_vm3, %v1327_v26, %v1326_v61  ;;  %v1324_v61 = vsel %vm649_vm8, %v1323_v58, %v1322_v62  ;;  %v4233_v58 = vld [vmem:[%s6449_s5 + $0x8] sm:$0xff] }
 0x259   : > { %v1125_v36 = vsel %vm637_vm4, %v1124_v29, %v1123_v33  ;;  %v1330_v37 = vsel %vm637_vm4, %v1329_v52, %v1328_v31  ;;  %1170 = vmatpush.msra.mxu1 %v4233_v58 }
 0x25a   : > { %4258 = vmatpush.msk.msrb.mxu0 %vm341_vm0, %v1125_v36  ;;  %4266 = vmatpush.msk.msra.mxu3 %vm341_vm0, %v1330_v37 }
 0x25c   : > { %1147 = vmatpush.msrb.mxu0 %v1119_v39  ;;  %1349 = vmatpush.msra.mxu3 %v1324_v61 }
 0x25d   : > { %4259 = vmatmul.msk.f32.vlgmr.msrb.gmra.mxu0 %vm337_vm1, %v4229_v38  ;;  %4267 = vmatmul.msk.f32.vlgmr.msra.gmra.mxu3 %vm337_vm1, %v4229_v38 }
 0x25e   : > { %4277 = vmatpush.msk.msrb.mxu3 %vm341_vm0, %v4555_v5  ;;  %1372 = vmatpush.msra.mxu0 %v4233_v58 }
 0x260   : > { %1527 = vmatpush.msrb.mxu3 %v4563_v7  ;;  %4279 = vmatpush.msk.msrb.mxu0 %vm341_vm0, %v4536_v0  ;;  %v4264_v0 = vld [vmem:[%s6448_s4 + $0x10] sm:$0xff]  ;;  %v4425_v7 = vld [vmem:[%s6450_s6 + $0x1] ss:$0 sm:$0xff] }
 0x261   : > { %1231 = vperm.xlu1 %4409, %v4264_v0   ;;  %1419 = vperm.xlu2 %4410, %v4264_v0  }
 0x262   : > { %4283 = vmatpush.msk.msra.mxu3 %vm341_vm0, %v4560_v6  ;;  %1547 = vmatpush.msrb.mxu0 %v4542_v2  ;;  %v4869_v6 = vld [vmem:[%s6446_s2 + $0x10] sm:$0x7]  ;;  %v4265_v2 = vld [vmem:[%s6448_s4 + $0x18] sm:$0xf] }
 0x264   : > { %1587 = vmatpush.msra.mxu3 %v4573_v9  ;;  %v4426_v9 = vld [vmem:[%s6451_s7 + $0x1] ss:$0 sm:$0xff] }
 0x265   : > { %4278 = vmatmul.msk.f32.vlgmr.msrb.gmra.mxu3 %vm337_vm1, %v4869_v6 }
 0x266   : > { %4291 = vmatpush.msk.msrb.mxu3 %vm341_vm0, %v4591_v13 }
 0x268   : > { %1667 = vmatpush.msrb.mxu3 %v4609_v17 }
 0x269   : > { %1236 = vperm.xlu1 %4409, %v4265_v2   ;;  %1423 = vperm.xlu2 %4410, %v4265_v2  }
 0x26d   : > { %4284 = vmatmul.msk.f32.vlgmr.msra.gmra.mxu3 %vm337_vm1, %v4869_v6 }
 0x26e   : > { %4299 = vmatpush.msk.msra.mxu3 %vm341_vm0, %v4618_v18  ;;  %v4231_v18 = vld [vmem:[%s6447_s3 + $0x10] sm:$0xff] }
 0x270   : > { %1747 = vmatpush.msra.mxu3 %v4631_v21 }
 0x271   : > { %2077 = vperm.xlu2 %4410, %v4307_v60  }
 0x275   : > { %4292 = vmatmul.msk.f32.vlgmr.msrb.gmra.mxu3 %vm337_vm1, %v4869_v6 }
 0x27d   : > { %4300 = vmatmul.msk.f32.vlgmr.msra.gmra.mxu3 %vm337_vm1, %v4869_v6 }
 0x2d3   : > { %v4959_v28 = vpop.permute.xlu1 %1231 }
 0x2da   : > { %v1149_v29 = vpop.f32.mrf.mxu0 }
 0x2db   : > { %4260 = vmatmul.msk.f32.vlgmr.msra.gmra.mxu1 %vm683_vm9, %v1149_v29  ;;  %v4965_v43 = vpop.permute.xlu1 %1236 }
 0x2e0   : > { %v1351_v5 = vpop.f32.mrf.mxu3 }
 0x2e1   : > { %4268 = vmatmul.msk.f32.vlgmr.msra.gmra.mxu0 %vm683_vm9, %v1351_v5 }
 0x2e2   : > { %4285 = vmatpush.msk.msra.mxu0 %vm341_vm0, %v4576_v10 }
 0x2e4   : > { %1607 = vmatpush.msra.mxu0 %v4594_v14 }
 0x2e9   : > { %4280 = vmatmul.msk.f32.vlgmr.msrb.gmra.mxu0 %vm337_vm1, %v4869_v6 }
 0x2ea   : > { %4293 = vmatpush.msk.msrb.mxu0 %vm341_vm0, %v4634_v22 }
 0x2ec   : > { %1687 = vmatpush.msrb.mxu0 %v4646_v24  ;;  %v4308_v24 = vld [vmem:[%s6448_s4 + $0x28] sm:$0xf] }
 0x2ed   : > { %1894 = vperm.xlu1 %4409, %v4308_v24   ;;  %2081 = vperm.xlu0 %4411, %v4308_v24  }
 0x2f1   : > { %4286 = vmatmul.msk.f32.vlgmr.msra.gmra.mxu0 %vm337_vm1, %v4869_v6 }
 0x2f9   : > { %4294 = vmatmul.msk.f32.vlgmr.msrb.gmra.mxu0 %vm337_vm1, %v4869_v6 }
 0x358   : > { %v1172_v10 = vpop.f32.mrf.mxu1 }
 0x359   : > { %v1176_v13 = vmul.f32 %v4425_v7, %v1172_v10 }
 0x35b   : > { %v1178_v14 = vadd.f32 %v4426_v9, %v1176_v13 }
 0x35d   : > { %v1179_v17 = vmax.f32 %v1178_v14, 0.0 }
 0x35e   : > { %v1374_v21 = vpop.f32.mrf.mxu0 }
 0x35f   : > { %v1377_v22 = vmul.f32 %v4425_v7, %v1374_v21  ;;  %4261 = vmatpush.msk.msra.mxu2 %vm1187_vm12, %v1179_v17 }
 0x360   : > { %4262 = vmatmul.msk.f32.vlgmr.msra.gmra.mxu2 %vm1180_vm13, %v4231_v18 }
 0x361   : > { %v1378_v25 = vadd.f32 %v4426_v9, %v1377_v22  ;;  %4281 = vmatpush.msk.msrb.mxu2 %vm341_vm0, %v4539_v1  ;;  %v4232_v1 = vld [vmem:[%s6447_s3 + $0x18] sm:$0xf] }
 0x363   : > { %v1379_v35 = vmax.f32 %v1378_v25, 0.0  ;;  %1567 = vmatpush.msrb.mxu2 %v4552_v4  ;;  %v4465_v4 = vmov 2  }
 0x364   : > { %4412 = vset.pattern.permute.xlu1 %v4465_v4  ;;  %4413 = vset.pattern.permute.xlu2 %v4465_v4 }
 0x365   : > { %4289 = vmatpush.msk.msra.mxu2 %vm341_vm0, %v4568_v8  ;;  %4269 = vmatpush.msk.msrb.mxu1 %vm1187_vm12, %v1379_v35  ;;  %v4356_v8 = vld [vmem:[%s6448_s4 + $0x30] sm:$0xff] }
 0x366   : > { %4270 = vmatmul.msk.f32.vlgmr.msrb.gmra.mxu1 %vm1180_vm13, %v4231_v18  ;;  %2264 = vperm.xlu1 %4412, %v4307_v60   ;;  %v1549_v40 = vpop.f32.mrf.mxu0 }
 0x367   : > { %1647 = vmatpush.msra.mxu2 %v4582_v11  ;;  %4287 = vmatpush.msk.msra.mxu1 %vm341_vm0, %v4585_v12  ;;  %v6491_v11 = vmov 0   ;;  %v4357_v12 = vld [vmem:[%s6448_s4 + $0x38] sm:$0xf]  ;;  %v1764_v58 = vrot.slane %v1549_v40, 7  ;;  %v2157_v10 = vrot.slane %v1549_v40, 1 }
 0x368   : > { %4263 = vmatmul.msk.f32.gmra.mxu2 %vm1180_vm13, %v4232_v1  ;;  %2922 = vperm.xlu0 %4411, %v4356_v8  }
 0x369   : > { %1627 = vmatpush.msra.mxu1 %v4600_v15  ;;  %2268 = vperm.xlu2 %4413, %v4308_v24   ;;  %v4466_v15 = vmov 3  }
 0x36b   : > { %4295 = vmatpush.msk.msrb.mxu1 %vm341_vm0, %v4626_v20  ;;  %v1529_v20 = vpop.f32.mrf.mxu3 }
 0x36c   : > { %v1969_v61 = vrot.slane %v1529_v20, 1  ;;  %v2156_v9 = vrot.slane %v1529_v20, 2  ;;  %v1765_v21 = vsel %vm631_vm2, %v1764_v58, %v1529_v20 }
 0x36d   : > { %1707 = vmatpush.msrb.mxu1 %v4640_v23  ;;  %v4957_v23 = vpop.permute.xlu2 %1419 }
 0x36e   : > { %4271 = vmatmul.msk.f32.gmra.mxu1 %vm1180_vm13, %v4232_v1  ;;  %4414 = vset.pattern.permute.xlu1 %v6491_v11  ;;  %v4977_v33 = vpop.f32.mrf.mxu0  ;;  %v1970_v22 = vsel %vm631_vm2, %v1549_v40, %v1969_v61 }
 0x36f   : > { %2734 = vperm.xlu1 %4414, %v4356_v8   ;;  %v1975_v20 = vrot.slane %v4977_v33, 5 }
 0x370   : > { %4282 = vmatmul.msk.f32.vlgmr.msrb.gmra.mxu2 %vm337_vm1, %v4869_v6  ;;  %4418 = vset.pattern.permute.xlu0 %v4465_v4 }
 0x371   : > { %4297 = vmatpush.msk.msrb.mxu2 %vm341_vm0, %v4603_v16  ;;  %3113 = vperm.xlu0 %4418, %v4357_v12   ;;  %v4467_v16 = vmov 4  }
 0x372   : > { %4415 = vset.pattern.permute.xlu2 %v6491_v11 }
 0x373   : > { %1727 = vmatpush.msrb.mxu2 %v4621_v19  ;;  %2739 = vperm.xlu2 %4415, %v4357_v12   ;;  %v4468_v19 = vmov 5   ;;  %v4961_v44 = vpop.f32.mrf.mxu3 }
 0x374   : > { %v1973_v11 = vrot.slane %v4961_v44, 6 }
 0x375   : > { %v4963_v41 = vpop.permute.xlu2 %1423 }
 0x376   : > { %4288 = vmatmul.msk.f32.vlgmr.msra.gmra.mxu1 %vm337_vm1, %v4869_v6 }
 0x377   : > { %4416 = vset.pattern.permute.xlu1 %v4464_v32  ;;  %v1768_v32 = vrot.slane %v4961_v44, 5 }
 0x378   : > { %4290 = vmatmul.msk.f32.vlgmr.msra.gmra.mxu2 %vm337_vm1, %v4869_v6  ;;  %2926 = vperm.xlu1 %4416, %v4357_v12  }
 0x379   : > { %4423 = vset.pattern.permute.xlu0 %v4468_v19 }
 0x37a   : > { %3672 = vperm.xlu0 %4423, %v4356_v8  }
 0x37b   : > { %4417 = vset.pattern.permute.xlu2 %v4465_v4  ;;  %v4985_v39 = vpop.f32.mrf.mxu3 }
 0x37c   : > { %3109 = vperm.xlu2 %4417, %v4356_v8  }
 0x37e   : > { %4296 = vmatmul.msk.f32.vlgmr.msrb.gmra.mxu1 %vm337_vm1, %v4869_v6 }
 0x380   : > { %4298 = vmatmul.msk.f32.vlgmr.msrb.gmra.mxu2 %vm337_vm1, %v4869_v6  ;;  %4419 = vset.pattern.permute.xlu1 %v4466_v15 }
 0x381   : > { %3296 = vperm.xlu1 %4419, %v4356_v8  }
 0x384   : > { %4420 = vset.pattern.permute.xlu2 %v4466_v15  ;;  %v2158_v15 = vsel %vm631_vm2, %v2157_v10, %v2156_v9 }
 0x385   : > { %3300 = vperm.xlu2 %4420, %v4357_v12  }
 0x389   : > { %4421 = vset.pattern.permute.xlu1 %v4467_v16 }
 0x38a   : > { %3484 = vperm.xlu1 %4421, %v4356_v8  }
 0x38d   : > { %4422 = vset.pattern.permute.xlu2 %v4467_v16  ;;  %v1770_v16 = vrot.slane %v4977_v33, 4 }
 0x38e   : > { %3488 = vperm.xlu2 %4422, %v4357_v12  }
 0x392   : > { %4424 = vset.pattern.permute.xlu1 %v4468_v19  ;;  %v5007_v19 = vpop.f32.mrf.mxu0 }
 0x393   : > { %3676 = vperm.xlu1 %4424, %v4357_v12   ;;  %v2160_v12 = vrot.slane %v4961_v44, 7 }
 0x3e3   : > { %v4967_v48 = vpop.f32.mrf.mxu2  ;;  %v4969_v3 = vpop.f32.mrf.mxu1 }
 0x3e4   : > { %v1239_v52 = vperm.slane %v4967_v48, 0  ;;  %v1426_v30 = vperm.slane %v4969_v3, 0  ;;  %v1219_v26 = vrot.slane %v4967_v48, 1  ;;  %v1408_v59 = vrot.slane %v4969_v3, 1 }
 0x3e5   : > { %v1220_v42 = vrot.slane %v4967_v48, 2  ;;  %v1409_v63 = vrot.slane %v4969_v3, 2  ;;  %v1221_v31 = vrot.slane %v4967_v48, 3  ;;  %v1410_v27 = vrot.slane %v4969_v3, 3 }
 0x3e6   : > { %v1264_v62 = vmul.f32 %v1239_v52, %v4965_v43  ;;  %v1451_v36 = vmul.f32 %v1426_v30, %v4963_v41  ;;  %v1263_v37 = vmul.f32 %v1239_v52, %v4959_v28  ;;  %v1450_v38 = vmul.f32 %v1426_v30, %v4957_v23 }
 0x3e7   : > { %v1240_v29 = vperm.slane %v1219_v26, 0  ;;  %v1427_v5 = vperm.slane %v1408_v59, 0  ;;  %v1241_v2 = vperm.slane %v1220_v42, 0  ;;  %v1428_v7 = vperm.slane %v1409_v63, 0 }
 0x3e8   : > { %v1475_v6 = vadd.f32 %v1451_v36, %v1264_v62  ;;  %v1474_v0 = vadd.f32 %v1450_v38, %v1263_v37  ;;  %v1242_v17 = vperm.slane %v1221_v31, 0  ;;  %v1429_v18 = vperm.slane %v1410_v27, 0  ;;  %v5019_v37 = vpop.f32.mrf.mxu3 }
 0x3e9   : > { %v1266_v13 = vmul.f32 %v1240_v29, %v4965_v43  ;;  %v1453_v14 = vmul.f32 %v1427_v5, %v4963_v41  ;;  %v1267_v35 = vmul.f32 %v1241_v2, %v4959_v28  ;;  %v1454_v1 = vmul.f32 %v1428_v7, %v4957_v23 }
 0x3ea   : > { %3777 = vrot.lane.b32.xlu1 %v1475_v6, %s4469_s21  ;;  %3775 = vrot.lane.b32.xlu2 %v1474_v0, %s4469_s21  ;;  %v1265_v4 = vmul.f32 %v1240_v29, %v4959_v28  ;;  %v1452_v8 = vmul.f32 %v1427_v5, %v4957_v23  ;;  %v1269_v40 = vmul.f32 %v1242_v17, %v4959_v28  ;;  %v1222_v30 = vrot.slane %v4967_v48, 4 }
 0x3eb   : > { %v4993_v24 = vpop.f32.mrf.mxu2  ;;  %v1477_v25 = vadd.f32 %v1453_v14, %v1266_v13  ;;  %v4996_v60 = vpop.f32.mrf.mxu1  ;;  %v1456_v52 = vmul.f32 %v1429_v18, %v4957_v23  ;;  %v1478_v31 = vadd.f32 %v1454_v1, %v1267_v35  ;;  %v1270_v38 = vmul.f32 %v1242_v17, %v4965_v43 }
 0x3ec   : > { %v1476_v27 = vadd.f32 %v1452_v8, %v1265_v4  ;;  %v1411_v61 = vrot.slane %v4969_v3, 4  ;;  %v1227_v6 = vrot.slane %v4993_v24, 2  ;;  %v1243_v9 = vperm.slane %v1222_v30, 0 }
 0x3ed   : > { %3781 = vrot.lane.b32.xlu0 %v1477_v25, %s4469_s21  ;;  %v1480_v0 = vadd.f32 %v1456_v52, %v1269_v40  ;;  %v1457_v13 = vmul.f32 %v1429_v18, %v4963_v41  ;;  %v1268_v14 = vmul.f32 %v1241_v2, %v4965_v43  ;;  %v1455_v17 = vmul.f32 %v1428_v7, %v4963_v41 }
 0x3ee   : > { %v1430_v25 = vperm.slane %v1411_v61, 0  ;;  %v1223_v4 = vrot.slane %v4967_v48, 5  ;;  %v1412_v8 = vrot.slane %v4969_v3, 5  ;;  %v1416_v52 = vrot.slane %v4996_v60, 2 }
 0x3ef   : > { %v1417_v2 = vrot.slane %v4996_v60, 3  ;;  %v1272_v30 = vmul.f32 %v1243_v9, %v4965_v43  ;;  %v1224_v61 = vrot.slane %v4967_v48, 6  ;;  %v1413_v5 = vrot.slane %v4969_v3, 6 }
 0x3f0   : > { %v1459_v40 = vmul.f32 %v1430_v25, %v4963_v41  ;;  %v1481_v29 = vadd.f32 %v1457_v13, %v1270_v38  ;;  %v1244_v58 = vperm.slane %v1223_v4, 0  ;;  %v1431_v42 = vperm.slane %v1412_v8, 0 }
 0x3f1   : > { %v5049_v59 = vperm.slane %v1227_v6, 0  ;;  %v5053_v36 = vperm.slane %v1416_v52, 0  ;;  %v5056_v26 = vperm.slane %v1417_v2, 0  ;;  %v1271_v38 = vmul.f32 %v1243_v9, %v4959_v28 }
 0x3f2   : > { %3783 = vrot.lane.b32.xlu1 %v1478_v31, %s4469_s21  ;;  %3779 = vrot.lane.b32.xlu2 %v1476_v27, %s4469_s21  ;;  %v1228_v31 = vrot.slane %v4993_v24, 3  ;;  %v1274_v44 = vmul.f32 %v1244_v58, %v4965_v43  ;;  %v1414_v8 = vrot.slane %v4969_v3, 7 }
 0x3f3   : > { %v1569_v10 = vpop.f32.mrf.mxu2  ;;  %v5041_v18 = vpop.f32.mrf.mxu1 }
 0x3f4   : > { %v1766_v35 = vrot.slane %v1569_v10, 6  ;;  %v1971_v1 = vrot.slane %v1569_v10, 7  ;;  %v5051_v7 = vperm.slane %v1228_v31, 0  ;;  %v2159_v62 = vsel %vm634_vm3, %v1569_v10, %v2158_v15 }
 0x3f5   : > { %3787 = vrot.lane.b32.xlu0 %v1480_v0, %s4469_s21  ;;  %v1479_v0 = vadd.f32 %v1455_v17, %v1268_v14  ;;  %v1772_v6 = vrot.slane %v5041_v18, 3  ;;  %v1483_v14 = vadd.f32 %v1459_v40, %v1272_v30  ;;  %v1245_v15 = vperm.slane %v1224_v61, 0 }
 0x3f6   : > { %v1767_v63 = vsel %vm634_vm3, %v1766_v35, %v1765_v21  ;;  %v1972_v27 = vsel %vm634_vm3, %v1971_v1, %v1970_v22  ;;  %v1432_v10 = vperm.slane %v1413_v5, 0  ;;  %v2161_v17 = vsel %vm637_vm4, %v2160_v12, %v2159_v62 }
 0x3f7   : > { %v1769_v21 = vsel %vm637_vm4, %v1768_v32, %v1767_v63  ;;  %v1974_v22 = vsel %vm637_vm4, %v1973_v11, %v1972_v27  ;;  %v1273_v32 = vmul.f32 %v1244_v58, %v4959_v28  ;;  %v1460_v11 = vmul.f32 %v1431_v42, %v4957_v23 }
 0x3f8   : > { %v1458_v63 = vmul.f32 %v1430_v25, %v4957_v23  ;;  %v1976_v9 = vsel %vm640_vm5, %v1975_v20, %v1974_v22  ;;  %v1977_v5 = vrot.slane %v5041_v18, 4  ;;  %v1461_v25 = vmul.f32 %v1431_v42, %v4963_v41 }
 0x3f9   : > { %v1225_v1 = vrot.slane %v4967_v48, 7  ;;  %v1275_v4 = vmul.f32 %v1245_v15, %v4959_v28  ;;  %v1462_v20 = vmul.f32 %v1432_v10, %v4957_v23  ;;  %v2164_v31 = vrot.slane %v5041_v18, 5 }
 0x3fa   : > { %3789 = vrot.lane.b32.xlu1 %v1481_v29, %s4469_s21  ;;  %3785 = vrot.lane.b32.xlu2 %v1479_v0, %s4469_s21  ;;  %v1771_v29 = vsel %vm640_vm5, %v1770_v16, %v1769_v21  ;;  %v1484_v27 = vadd.f32 %v1460_v11, %v1273_v32  ;;  %v1482_v58 = vadd.f32 %v1458_v63, %v1271_v38  ;;  %v6492_v30 = vrot.slane %v4977_v33, 6 }
 0x3fb   : > { %v5066_v13 = vpop.f32.mrf.mxu2  ;;  %v1709_v35 = vpop.f32.mrf.mxu1  ;;  %v1276_v40 = vmul.f32 %v1245_v15, %v4965_v43  ;;  %v1463_v2 = vmul.f32 %v1432_v10, %v4963_v41  ;;  %v1773_v42 = vsel %vm643_vm6, %v1772_v6, %v1771_v29  ;;  %v1978_v48 = vsel %vm643_vm6, %v1977_v5, %v1976_v9 }
 0x3fc   : > { %v1774_v12 = vrot.slane %v5066_v13, 2  ;;  %v1979_v62 = vrot.slane %v5066_v13, 3  ;;  %v1778_v16 = vrot.slane %v1709_v35, 7  ;;  %v2171_v52 = vrot.slane %v1709_v35, 1 }
 0x3fd   : > { %3793 = vrot.lane.b32.xlu0 %v1483_v14, %s4469_s21  ;;  %v2163_v61 = vsel %vm640_vm5, %v6492_v30, %v2161_v17  ;;  %v1246_v0 = vperm.slane %v1225_v1, 0  ;;  %v1486_v38 = vadd.f32 %v1462_v20, %v1275_v4  ;;  %v1485_v6 = vadd.f32 %v1461_v25, %v1274_v44 }
 0x3fe   : > { %v1775_v3 = vsel %vm646_vm7, %v1774_v12, %v1773_v42  ;;  %v1980_v18 = vsel %vm646_vm7, %v1979_v62, %v1978_v48  ;;  %v1779_v21 = vsel %vm631_vm2, %v1778_v16, %v5007_v19  ;;  %v1433_v14 = vperm.slane %v1414_v8, 0 }
 0x3ff   : > { %v2166_v33 = vrot.slane %v5066_v13, 4  ;;  %v6493_v15 = vrot.slane %v5007_v19, 1  ;;  %v6494_v11 = vrot.slane %v5007_v19, 2  ;;  %v1487_v29 = vadd.f32 %v1463_v2, %v1276_v40  ;;  %v5135_v40 = vpop.permute.xlu2 %2077  ;;  %v4272_v2 = vld [vmem:[%s6445_s1 + $0x10] sm:$0x7] }
 0x400   : > { %v6495_v9 = vrot.slane %v4985_v39, 1  ;;  %v6496_v44 = vrot.slane %v4985_v39, 2  ;;  %v2165_v19 = vsel %vm643_vm6, %v2164_v31, %v2163_v61  ;;  %v6497_v25 = vrot.slane %v5019_v37, 5 }
 0x401   : > { %v1984_v10 = vsel %vm631_vm2, %v1709_v35, %v6493_v15  ;;  %v2172_v63 = vsel %vm631_vm2, %v2171_v52, %v6494_v11  ;;  %v1278_v35 = vmul.f32 %v1246_v0, %v4965_v43  ;;  %v6498_v16 = vrot.slane %v5019_v37, 6 }
 0x402   : > { %3795 = vrot.lane.b32.xlu1 %v1484_v27, %s4469_s21  ;;  %3791 = vrot.lane.b32.xlu2 %v1482_v58, %s4469_s21  ;;  %v1777_v5 = vsel %vm649_vm8, %v6495_v9, %v1775_v3  ;;  %v1982_v13 = vsel %vm649_vm8, %v6496_v44, %v1980_v18  ;;  %v1465_v20 = vmul.f32 %v1433_v14, %v4963_v41  ;;  %v2174_v27 = vrot.slane %v5019_v37, 7 }
 0x403   : > { %v1729_v22 = vpop.f32.mrf.mxu2  ;;  %v1277_v8 = vmul.f32 %v1246_v0, %v4959_v28  ;;  %v2167_v31 = vsel %vm646_vm7, %v2166_v33, %v2165_v19  ;;  %v1283_v52 = vmul.f32 %v5049_v59, %v4959_v28  ;;  %v1470_v37 = vmul.f32 %v5053_v36, %v4957_v23 }
 0x404   : > { %v1780_v17 = vrot.slane %v1729_v22, 6  ;;  %v1985_v32 = vrot.slane %v1729_v22, 7  ;;  %v2173_v58 = vsel %vm634_vm3, %v1729_v22, %v2172_v63  ;;  %v1285_v42 = vmul.f32 %v5051_v7, %v4959_v28 }
 0x405   : > { %3799 = vrot.lane.b32.xlu0 %v1486_v38, %s4469_s21  ;;  %v1472_v48 = vmul.f32 %v5056_v26, %v4957_v23  ;;  %v1286_v30 = vmul.f32 %v5051_v7, %v4965_v43  ;;  %v6499_v61 = vrot.slane %v4993_v24, 1  ;;  %v6500_v18 = vperm.slane %v4993_v24, 0 }
 0x406   : > { %v1781_v12 = vsel %vm634_vm3, %v1780_v17, %v1779_v21  ;;  %v1986_v62 = vsel %vm634_vm3, %v1985_v32, %v1984_v10  ;;  %v6501_v21 = vperm.slane %v4996_v60, 0  ;;  %v1473_v38 = vmul.f32 %v5056_v26, %v4963_v41 }
 0x407   : > { %v1783_v1 = vsel %vm637_vm4, %v6497_v25, %v1781_v12  ;;  %v1988_v4 = vsel %vm637_vm4, %v6498_v16, %v1986_v62  ;;  %v1248_v3 = vperm.slane %v6499_v61, 0  ;;  %v1279_v0 = vmul.f32 %v6500_v18, %v4959_v28  ;;  %v4432_v12 = vld [vmem:[%s4533_s10] sm:$0xff]  ;;  %v5194_v16 = vpop.permute.xlu1 %1894 }
 0x408   : > { %4301 = vmatpush.msk.msra.mxu0 %vm341_vm0, %v1783_v1  ;;  %4309 = vmatpush.msk.msrb.mxu3 %vm341_vm0, %v1988_v4  ;;  %v1466_v22 = vmul.f32 %v6501_v21, %v4957_v23  ;;  %v6502_v7 = vrot.slane %v4996_v60, 1  ;;  %v1489_v15 = vadd.f32 %v1465_v20, %v1278_v35  ;;  %v1494_v10 = vadd.f32 %v1470_v37, %v1283_v52  ;;  %v4433_v1 = vld [vmem:[%s4533_s10 + $0x38] sm:$0xf]  ;;  %v4434_v20 = vld [vmem:[%s4533_s10 + $0x30] sm:$0xff] }
 0x409   : > { %v2175_v17 = vsel %vm637_vm4, %v2174_v27, %v2173_v58  ;;  %v1464_v32 = vmul.f32 %v1433_v14, %v4957_v23  ;;  %v1497_v11 = vadd.f32 %v1473_v38, %v1286_v30  ;;  %v6503_v26 = vrot.slane %v4985_v39, 3  ;;  %v5179_v14 = vpop.permute.xlu2 %2268 }
 0x40a   : > { %3801 = vrot.lane.b32.xlu1 %v1487_v29, %s4469_s21  ;;  %3797 = vrot.lane.b32.xlu2 %v1485_v6, %s4469_s21  ;;  %v1435_v33 = vperm.slane %v6502_v7, 0  ;;  %v1496_v6 = vadd.f32 %v1472_v48, %v1285_v42  ;;  %v1281_v29 = vmul.f32 %v1248_v3, %v4959_v28  ;;  %v1490_v44 = vadd.f32 %v1466_v22, %v1279_v0 }
 0x40b   : > { %1805 = vmatpush.msra.mxu0 %v1777_v5  ;;  %2007 = vmatpush.msrb.mxu3 %v1982_v13  ;;  %v2169_v63 = vsel %vm649_vm8, %v6503_v26, %v2167_v31  ;;  %v1488_v5 = vadd.f32 %v1464_v32, %v1277_v8  ;;  %v4431_v13 = vld [vmem:[%s4533_s10 + $0x8] sm:$0xf]  ;;  %v6505_v62 = vmov %v6501_v21  ;;  %v1282_v19 = vmul.f32 %v1248_v3, %v4965_v43 }
 0x40c   : > { %4302 = vmatmul.msk.f32.vlgmr.msra.gmra.mxu0 %vm337_vm1, %v4272_v2  ;;  %4310 = vmatmul.msk.f32.vlgmr.msrb.gmra.mxu3 %vm337_vm1, %v4272_v2  ;;  %v1468_v9 = vmul.f32 %v1435_v33, %v4957_v23  ;;  %v6504_v23 = vmov %v6500_v18  ;;  %v1467_v35 = vmul.f32 %v6505_v62, %v4963_v41  ;;  %v1469_v25 = vmul.f32 %v1435_v33, %v4963_v41 }
 0x40d   : > { %4315 = vmatpush.msk.msra.mxu3 %vm341_vm0, %v2175_v17  ;;  %3805 = vrot.lane.b32.xlu0 %v1489_v15, %s4469_s21  ;;  %v1280_v28 = vmul.f32 %v6504_v23, %v4965_v43  ;;  %v1284_v4 = vmul.f32 %v5049_v59, %v4965_v43  ;;  %v1471_v24 = vmul.f32 %v5053_v36, %v4963_v41  ;;  %v5210_v41 = vpop.permute.xlu0 %765 }
 0x40e   : > { %v1492_v39 = vadd.f32 %v1468_v9, %v1281_v29  ;;  %v1493_v8 = vadd.f32 %v1469_v25, %v1282_v19  ;;  %6507 = vst [vmem:[#allocation15_spill] sm:$0xff] %v5210_v41  ;;  %v797_v7 = vmul.f32 %v4763_v47, %v5210_v41  ;;  %v795_v47 = vmul.f32 %v4761_v46, %v5210_v41 }
 0x40f   : > { %2194 = vmatpush.msra.mxu3 %v2169_v63  ;;  %v1491_v60 = vadd.f32 %v1467_v35, %v1280_v28  ;;  %v1495_v27 = vadd.f32 %v1471_v24, %v1284_v4  ;;  %v5206_v31 = vpop.permute.xlu1 %2264  ;;  %v6529_v35 = vld [vmem:[#allocation5_spill] sm:$0xff]  ;;  %v6531_v4 = vld [vmem:[#allocation3_spill] sm:$0xff] }
 0x411   : > { %4326 = vmatpush.msk.msrb.mxu3 %vm341_vm0, %v4431_v13  ;;  %v5203_v58 = vpop.permute.xlu2 %2739  ;;  %v4276_v13 = vld [vmem:[%s6449_s5 + $0x10] sm:$0xff] }
 0x412   : > { %3803 = vrot.lane.b32.xlu2 %v1488_v5, %s4469_s21  ;;  %3807 = vrot.lane.b32.xlu1 %v1490_v44, %s4469_s21  ;;  %6506 = vst [vmem:[#allocation14_spill] sm:$0xff] %v5203_v58 }
 0x413   : > { %2372 = vmatpush.msrb.mxu3 %v4432_v12  ;;  %1828 = vmatpush.msra.mxu1 %v4276_v13 }
 0x414   : > { %4316 = vmatmul.msk.f32.vlgmr.msra.gmra.mxu3 %vm337_vm1, %v4272_v2  ;;  %2030 = vmatpush.msrb.mxu0 %v4276_v13 }
 0x415   : > { %3811 = vrot.lane.b32.xlu0 %v1492_v39, %s4469_s21  ;;  %4332 = vmatpush.msk.msra.mxu3 %vm341_vm0, %v4433_v1  ;;  %v5217_v36 = vpop.permute.xlu0 %1889 }
 0x416   : > { %2217 = vmatpush.msra.mxu0 %v4276_v13 }
 0x417   : > { %2432 = vmatpush.msra.mxu3 %v4434_v20  ;;  %v5215_v59 = vpop.permute.xlu1 %2734 }
 0x418   : > { %6509 = vst [vmem:[#allocation17_spill] sm:$0xff] %v5215_v59 }
 0x419   : > { %v5212_v43 = vpop.permute.xlu2 %3109 }
 0x41a   : > { %3809 = vrot.lane.b32.xlu2 %v1491_v60, %s4469_s21  ;;  %3813 = vrot.lane.b32.xlu1 %v1493_v8, %s4469_s21  ;;  %6508 = vst [vmem:[#allocation16_spill] sm:$0xff] %v5212_v43  ;;  %v6534_v60 = vld [vmem:[#allocation6_spill] sm:$0xff]  ;;  %v6536_v8 = vld [vmem:[#allocation4_spill] sm:$0xff] }
 0x41d   : > { %3817 = vrot.lane.b32.xlu0 %v1495_v27, %s4469_s21  ;;  %v5223_v37 = vpop.permute.xlu0 %2081  ;;  %v805_v27 = vmul.f32 %v6536_v8, %v5210_v41  ;;  %v4440_v8 = vld [vmem:[%s4533_s10 + $0x88] sm:$0xf] }
 0x41f   : > { %v5221_v2 = vpop.permute.xlu1 %2926 }
 0x420   : > { %6511 = vst [vmem:[#allocation19_spill] sm:$0xff] %v5221_v2 }
 0x421   : > { %v5219_v52 = vpop.permute.xlu2 %3300 }
 0x422   : > { %3815 = vrot.lane.b32.xlu2 %v1494_v10, %s4469_s21  ;;  %3819 = vrot.lane.b32.xlu1 %v1496_v6, %s4469_s21  ;;  %6510 = vst [vmem:[#allocation18_spill] sm:$0xff] %v5219_v52  ;;  %v6521_v10 = vperm.slane %v4748_v34, 0  ;;  %v803_v34 = vmul.f32 %v4768_v50, %v5210_v41  ;;  %v799_v50 = vmul.f32 %v4770_v51, %v5210_v41  ;;  %v6530_v51 = vperm.slane %v6529_v35, 0 }
 0x424   : > { %v793_v6 = vmul.f32 %v6521_v10, %v5210_v41  ;;  %v809_v19 = vmul.f32 %v6530_v51, %v5210_v41  ;;  %v4435_v51 = vld [vmem:[%s4533_s10 + $0x18] sm:$0xf] }
 0x425   : > { %v5229_v30 = vpop.permute.xlu0 %2922 }
 0x426   : > { %6514 = vst [vmem:[#allocation22_spill] sm:$0xff] %v5229_v30 }
 0x427   : > { %v5227_v48 = vpop.permute.xlu1 %3296 }
 0x428   : > { %6513 = vst [vmem:[#allocation21_spill] sm:$0xff] %v5227_v48 }
 0x429   : > { %v5225_v42 = vpop.permute.xlu2 %3488 }
 0x42a   : > { %3821 = vrot.lane.b32.xlu2 %v1497_v11, %s4469_s21  ;;  %6512 = vst [vmem:[#allocation20_spill] sm:$0xff] %v5225_v42 }
 0x42d   : > { %v5237_v0 = vpop.permute.xlu0 %3113 }
 0x42e   : > { %6517 = vst [vmem:[#allocation25_spill] sm:$0xff] %v5237_v0 }
 0x42f   : > { %v5235_v18 = vpop.permute.xlu1 %3484 }
 0x430   : > { %6516 = vst [vmem:[#allocation24_spill] sm:$0xff] %v5235_v18 }
 0x437   : > { %v5243_v38 = vpop.permute.xlu1 %3676 }
 0x438   : > { %6519 = vst [vmem:[#allocation27_spill] sm:$0xff] %v5243_v38 }
 0x444   : > { %v3776_v61 = vpop.permute.xlu2 %3775 }
 0x445   : > { %v5233_v3 = vsel %vm1180_vm13, %v4759_v45, %v3776_v61  ;;  %v5250_v45 = vpop.permute.xlu0 %3672 }
 0x446   : > { %6515 = vst [vmem:[#allocation23_spill] sm:$0xff] %v5233_v3 }
 0x447   : > { %6520 = vst [vmem:[#allocation28_spill] sm:$0xff] %v5250_v45 }
 0x44c   : > { %v3780_v21 = vpop.permute.xlu2 %3779 }
 0x44d   : > { %v5241_v22 = vsel %vm1180_vm13, %v4775_v53, %v3780_v21 }
 0x44e   : > { %6518 = vst [vmem:[#allocation26_spill] sm:$0xff] %v5241_v22 }
 0x454   : > { %v3786_v33 = vpop.permute.xlu2 %3785 }
 0x455   : > { %v5248_v15 = vsel %vm1180_vm13, %v797_v7, %v3786_v33  ;;  %v6538_v33 = vld [vmem:[#allocation11_spill] sm:$0xff] }
 0x45c   : > { %v3778_v17 = vpop.permute.xlu1 %3777  ;;  %v3792_v32 = vpop.permute.xlu2 %3791 }
 0x45d   : > { %v5256_v53 = vsel %vm1180_vm13, %v793_v6, %v3778_v17  ;;  %v5260_v11 = vsel %vm1180_vm13, %v4781_v55, %v3792_v32  ;;  %v6540_v6 = vld [vmem:[#allocation2_spill] sm:$0xff] }
 0x45e   : > { %6522 = vst [vmem:[#allocation29_spill] sm:$0xff] %v5256_v53  ;;  %v807_v17 = vmul.f32 %v6540_v6, %v5210_v41  ;;  %v4428_v6 = vld [vmem:[%s6451_s7 + $0x2] ss:$0 sm:$0xff] }
 0x45f   : > { %v3782_v26 = vpop.permute.xlu0 %3781 }
 0x460   : > { %v5265_v63 = vsel %vm1180_vm13, %v795_v47, %v3782_v26 }
 0x461   : > { %6523 = vst [vmem:[#allocation30_spill] sm:$0xff] %v5265_v63 }
 0x464   : > { %v3784_v29 = vpop.permute.xlu1 %3783  ;;  %v3798_v9 = vpop.permute.xlu2 %3797 }
 0x465   : > { %v5271_v5 = vsel %vm1180_vm13, %v4778_v54, %v3784_v29  ;;  %v5274_v44 = vsel %vm1180_vm13, %v803_v34, %v3798_v9  ;;  %v6542_v34 = vld [vmem:[#allocation10_spill] sm:$0xff] }
 0x466   : > { %6524 = vst [vmem:[#allocation31_spill] sm:$0xff] %v5271_v5 }
 0x467   : > { %v3788_v55 = vpop.permute.xlu0 %3787 }
 0x468   : > { %v5278_v46 = vsel %vm1180_vm13, %v4784_v56, %v3788_v55  ;;  %v801_v56 = vmul.f32 %v4766_v49, %v5210_v41  ;;  %v6544_v55 = vld [vmem:[#allocation12_spill] sm:$0xff] }
 0x469   : > { %6525 = vst [vmem:[#allocation32_spill] sm:$0xff] %v5278_v46 }
 0x46c   : > { %v3790_v54 = vpop.permute.xlu1 %3789  ;;  %v3804_v39 = vpop.permute.xlu2 %3803 }
 0x46d   : > { %v5286_v12 = vsel %vm1180_vm13, %v799_v50, %v3790_v54  ;;  %v5290_v23 = vsel %vm1180_vm13, %v4787_v57, %v3804_v39  ;;  %v6546_v54 = vld [vmem:[#allocation7_spill] sm:$0xff] }
 0x46e   : > { %6526 = vst [vmem:[#allocation33_spill] sm:$0xff] %v5286_v12  ;;  %v811_v39 = vmul.f32 %v6546_v54, %v5210_v41 }
 0x46f   : > { %6527 = vst [vmem:[#allocation34_spill] sm:$0xff] %v5290_v23  ;;  %v3794_v28 = vpop.permute.xlu0 %3793 }
 0x470   : > { %v5295_v62 = vsel %vm1180_vm13, %v801_v56, %v3794_v28 }
 0x471   : > { %6528 = vst [vmem:[#allocation35_spill] sm:$0xff] %v5295_v62 }
 0x474   : > { %v3796_v25 = vpop.permute.xlu1 %3795  ;;  %v3810_v1 = vpop.permute.xlu2 %3809 }
 0x475   : > { %v5302_v24 = vsel %vm1180_vm13, %v6531_v4, %v3796_v25  ;;  %v5305_v57 = vsel %vm1180_vm13, %v809_v19, %v3810_v1  ;;  %v4436_v19 = vld [vmem:[%s4533_s10 + $0x10] sm:$0xff]  ;;  %v4437_v1 = vld [vmem:[%s4533_s10 + $0x48] sm:$0xf]  ;;  %v4438_v4 = vld [vmem:[%s4533_s10 + $0x40] sm:$0xff] }
 0x476   : > { %6532 = vst [vmem:[#allocation5_spill] sm:$0xff] %v5302_v24 }
 0x477   : > { %6533 = vst [vmem:[#allocation3_spill] sm:$0xff] %v5305_v57  ;;  %v3800_v20 = vpop.permute.xlu0 %3799 }
 0x478   : > { %v5309_v49 = vsel %vm1180_vm13, %v6534_v60, %v3800_v20  ;;  %v5350_v20 = vld [vmem:[%s6446_s2 + $0x18] sm:$0x3f] }
 0x479   : > { %6535 = vst [vmem:[#allocation6_spill] sm:$0xff] %v5309_v49  ;;  %4327 = vmatmul.msk.f32.vlgmr.msrb.gmra.mxu3 %vm337_vm1, %v5350_v20  ;;  %v4439_v60 = vld [vmem:[%s4533_s10 + $0x78] sm:$0xf] }
 0x47a   : > { %4340 = vmatpush.msk.msrb.mxu3 %vm341_vm0, %v4439_v60  ;;  %v4447_v60 = vld [vmem:[%s4533_s10 + $0x58] sm:$0xf] }
 0x47c   : > { %v3802_v61 = vpop.permute.xlu1 %3801  ;;  %v3816_v21 = vpop.permute.xlu2 %3815 }
 0x47d   : > { %v5314_v7 = vsel %vm1180_vm13, %v805_v27, %v3802_v61  ;;  %v5318_v10 = vsel %vm1180_vm13, %v6538_v33, %v3816_v21  ;;  %v4441_v27 = vld [vmem:[%s4533_s10 + $0x70] sm:$0xff]  ;;  %v4442_v61 = vld [vmem:[%s4533_s10 + $0x80] sm:$0xff]  ;;  %v4443_v33 = vld [vmem:[%s4533_s10 + $0xb8] sm:$0xf] }
 0x47e   : > { %6537 = vst [vmem:[#allocation4_spill] sm:$0xff] %v5314_v7  ;;  %2512 = vmatpush.msrb.mxu3 %v4441_v27  ;;  %v4427_v21 = vld [vmem:[%s6450_s6 + $0x2] ss:$0 sm:$0xff]  ;;  %v4448_v27 = vld [vmem:[%s4533_s10 + $0x50] sm:$0xff] }
 0x47f   : > { %6539 = vst [vmem:[#allocation11_spill] sm:$0xff] %v5318_v10  ;;  %v3806_v32 = vpop.permute.xlu0 %3805 }
 0x480   : > { %v5323_v47 = vsel %vm1180_vm13, %v807_v17, %v3806_v32  ;;  %v4444_v17 = vld [vmem:[%s4533_s10 + $0xb0] sm:$0xff] }
 0x481   : > { %6541 = vst [vmem:[#allocation2_spill] sm:$0xff] %v5323_v47  ;;  %4333 = vmatmul.msk.f32.vlgmr.msra.gmra.mxu3 %vm337_vm1, %v5350_v20 }
 0x482   : > { %4348 = vmatpush.msk.msra.mxu3 %vm341_vm0, %v4443_v33  ;;  %v4451_v33 = vld [vmem:[%s4533_s10 + $0xa8] sm:$0xf] }
 0x484   : > { %v3808_v26 = vpop.permute.xlu1 %3807  ;;  %2592 = vmatpush.msra.mxu3 %v4444_v17  ;;  %v4453_v17 = vld [vmem:[%s4533_s10 + $0x98] sm:$0xf] }
 0x485   : > { %v5327_v29 = vsel %vm1180_vm13, %v6542_v34, %v3808_v26 }
 0x486   : > { %6543 = vst [vmem:[#allocation10_spill] sm:$0xff] %v5327_v29 }
 0x487   : > { %v3812_v9 = vpop.permute.xlu0 %3811 }
 0x488   : > { %v5331_v13 = vsel %vm1180_vm13, %v6544_v55, %v3812_v9  ;;  %v4274_v55 = vld [vmem:[%s6447_s3 + $0x20] sm:$0xff] }
 0x489   : > { %6545 = vst [vmem:[#allocation12_spill] sm:$0xff] %v5331_v13  ;;  %v1807_v50 = vpop.f32.mrf.mxu0  ;;  %4341 = vmatmul.msk.f32.vlgmr.msrb.gmra.mxu3 %vm337_vm1, %v5350_v20 }
 0x48a   : > { %4303 = vmatmul.msk.f32.vlgmr.msra.gmra.mxu1 %vm683_vm9, %v1807_v50 }
 0x48c   : > { %v3814_v56 = vpop.permute.xlu1 %3813 }
 0x48d   : > { %v5337_v28 = vsel %vm1180_vm13, %v811_v39, %v3814_v56 }
 0x48e   : > { %6547 = vst [vmem:[#allocation7_spill] sm:$0xff] %v5337_v28 }
 0x48f   : > { %v2009_v35 = vpop.f32.mrf.mxu3 }
 0x490   : > { %4311 = vmatmul.msk.f32.vlgmr.msrb.gmra.mxu0 %vm683_vm9, %v2009_v35  ;;  %v4275_v35 = vld [vmem:[%s6447_s3 + $0x28] sm:$0xf] }
 0x491   : > { %4328 = vmatpush.msk.msrb.mxu0 %vm341_vm0, %v4435_v51  ;;  %4349 = vmatmul.msk.f32.vlgmr.msra.gmra.mxu3 %vm337_vm1, %v5350_v20 }
 0x493   : > { %2392 = vmatpush.msrb.mxu0 %v4436_v19 }
 0x497   : > { %v2196_v25 = vpop.f32.mrf.mxu3 }
 0x498   : > { %4317 = vmatmul.msk.f32.vlgmr.msra.gmra.mxu0 %vm683_vm9, %v2196_v25  ;;  %v4445_v25 = vld [vmem:[%s4533_s10 + $0x28] sm:$0xf] }
 0x499   : > { %4334 = vmatpush.msk.msra.mxu0 %vm341_vm0, %v4437_v1 }
 0x49b   : > { %2452 = vmatpush.msra.mxu0 %v4438_v4  ;;  %v4446_v4 = vld [vmem:[%s4533_s10 + $0x20] sm:$0xff] }
 0x4a0   : > { %4329 = vmatmul.msk.f32.vlgmr.msrb.gmra.mxu0 %vm337_vm1, %v5350_v20 }
 0x4a1   : > { %4342 = vmatpush.msk.msrb.mxu0 %vm341_vm0, %v4440_v8 }
 0x4a3   : > { %2532 = vmatpush.msrb.mxu0 %v4442_v61  ;;  %v4449_v61 = vld [vmem:[%s4533_s10 + $0x68] sm:$0xf] }
 0x4a8   : > { %4335 = vmatmul.msk.f32.vlgmr.msra.gmra.mxu0 %vm337_vm1, %v5350_v20 }
 0x4b0   : > { %4343 = vmatmul.msk.f32.vlgmr.msrb.gmra.mxu0 %vm337_vm1, %v5350_v20 }
 0x507   : > { %v1830_v32 = vpop.f32.mrf.mxu1 }
 0x508   : > { %v1834_v26 = vmul.f32 %v4427_v21, %v1830_v32  ;;  %v4454_v32 = vld [vmem:[%s4533_s10 + $0x90] sm:$0xff] }
 0x50a   : > { %v1836_v34 = vadd.f32 %v4428_v6, %v1834_v26  ;;  %v5421_v26 = vpop.f32.mrf.mxu3 }
 0x50c   : > { %v1837_v9 = vmax.f32 %v1836_v34, 0.0 }
 0x50d   : > { %v2032_v50 = vpop.f32.mrf.mxu0 }
 0x50e   : > { %v2035_v54 = vmul.f32 %v4427_v21, %v2032_v50  ;;  %4304 = vmatpush.msk.msra.mxu2 %vm1845_vm14, %v1837_v9  ;;  %v2814_v9 = vrot.slane %v5421_v26, 1  ;;  %v3001_v50 = vrot.slane %v5421_v26, 2 }
 0x50f   : > { %4305 = vmatmul.msk.f32.vlgmr.msra.gmra.mxu2 %vm1838_vm15, %v4274_v55 }
 0x510   : > { %v2036_v39 = vadd.f32 %v4428_v6, %v2035_v54 }
 0x512   : > { %v2037_v56 = vmax.f32 %v2036_v39, 0.0 }
 0x514   : > { %4312 = vmatpush.msk.msrb.mxu1 %vm1845_vm14, %v2037_v56 }
 0x515   : > { %4313 = vmatmul.msk.f32.vlgmr.msrb.gmra.mxu1 %vm1838_vm15, %v4274_v55  ;;  %v2219_v51 = vpop.f32.mrf.mxu0 }
 0x516   : > { %v2222_v19 = vmul.f32 %v4427_v21, %v2219_v51  ;;  %4330 = vmatpush.msk.msra.mxu1 %vm341_vm0, %v4445_v25  ;;  %v4450_v21 = vld [vmem:[%s4533_s10 + $0x60] sm:$0xff] }
 0x517   : > { %4306 = vmatmul.msk.f32.gmra.mxu2 %vm1838_vm15, %v4275_v35 }
 0x518   : > { %v2223_v1 = vadd.f32 %v4428_v6, %v2222_v19  ;;  %2412 = vmatpush.msra.mxu1 %v4446_v4  ;;  %v4452_v6 = vld [vmem:[%s4533_s10 + $0xa0] sm:$0xff]  ;;  %s4470_s10 = smov 4  }
 0x51a   : > { %4336 = vmatpush.msk.msrb.mxu1 %vm341_vm0, %v4447_v60  ;;  %v2224_v8 = vmax.f32 %v2223_v1, 0.0 }
 0x51c   : > { %2472 = vmatpush.msrb.mxu1 %v4448_v27  ;;  %4318 = vmatpush.msk.msrb.mxu2 %vm1845_vm14, %v2224_v8 }
 0x51d   : > { %4314 = vmatmul.msk.f32.gmra.mxu1 %vm1838_vm15, %v4275_v35  ;;  %v5423_v34 = vpop.f32.mrf.mxu0 }
 0x51e   : > { %4338 = vmatpush.msk.msra.mxu2 %vm341_vm0, %v4449_v61  ;;  %v3002_v54 = vrot.slane %v5423_v34, 1  ;;  %v5442_v1 = vsel %vm631_vm2, %v5423_v34, %v2814_v9 }
 0x51f   : > { %4319 = vmatmul.msk.f32.vlgmr.msrb.gmra.mxu2 %vm1838_vm15, %v4274_v55  ;;  %v5426_v55 = vpop.f32.mrf.mxu3 }
 0x520   : > { %2492 = vmatpush.msra.mxu2 %v4450_v21 }
 0x522   : > { %4346 = vmatpush.msk.msrb.mxu2 %vm341_vm0, %v4451_v33 }
 0x524   : > { %2572 = vmatpush.msrb.mxu2 %v4452_v6  ;;  %v5452_v6 = vsel %vm631_vm2, %v3002_v54, %v3001_v50 }
 0x525   : > { %4331 = vmatmul.msk.f32.vlgmr.msra.gmra.mxu1 %vm337_vm1, %v5350_v20  ;;  %v5430_v39 = vpop.f32.mrf.mxu0 }
 0x526   : > { %4344 = vmatpush.msk.msra.mxu1 %vm341_vm0, %v4453_v17 }
 0x527   : > { %4320 = vmatmul.msk.f32.gmra.mxu2 %vm1838_vm15, %v4275_v35  ;;  %v5465_v53 = vpop.f32.mrf.mxu3 }
 0x528   : > { %2552 = vmatpush.msra.mxu1 %v4454_v32 }
 0x52d   : > { %4337 = vmatmul.msk.f32.vlgmr.msrb.gmra.mxu1 %vm337_vm1, %v5350_v20 }
 0x52f   : > { %4339 = vmatmul.msk.f32.vlgmr.msra.gmra.mxu2 %vm337_vm1, %v5350_v20 }
 0x535   : > { %4345 = vmatmul.msk.f32.vlgmr.msra.gmra.mxu1 %vm337_vm1, %v5350_v20 }
 0x537   : > { %4347 = vmatmul.msk.f32.vlgmr.msrb.gmra.mxu2 %vm337_vm1, %v5350_v20 }
 0x592   : > { %v5436_v19 = vpop.f32.mrf.mxu2  ;;  %v5438_v25 = vpop.f32.mrf.mxu1 }
 0x593   : > { %v1897_v27 = vperm.slane %v5436_v19, 0  ;;  %v2084_v61 = vperm.slane %v5438_v25, 0  ;;  %v1877_v21 = vrot.slane %v5436_v19, 1  ;;  %v2066_v33 = vrot.slane %v5438_v25, 1 }
 0x594   : > { %v1878_v32 = vrot.slane %v5436_v19, 2  ;;  %v2067_v9 = vrot.slane %v5438_v25, 2 }
 0x595   : > { %v1922_v60 = vmul.f32 %v1897_v27, %v5194_v16  ;;  %v2109_v35 = vmul.f32 %v2084_v61, %v5223_v37  ;;  %v1898_v4 = vperm.slane %v1877_v21, 0  ;;  %v2085_v56 = vperm.slane %v2066_v33, 0  ;;  %v5471_v33 = vpop.f32.mrf.mxu0 }
 0x596   : > { %v1899_v51 = vperm.slane %v1878_v32, 0  ;;  %v2086_v41 = vperm.slane %v2067_v9, 0  ;;  %v1921_v17 = vmul.f32 %v1897_v27, %v5217_v36  ;;  %v2108_v3 = vmul.f32 %v2084_v61, %v5135_v40 }
 0x597   : > { %v5474_v9 = vadd.f32 %v2109_v35, %v1922_v60  ;;  %v1879_v27 = vrot.slane %v5436_v19, 3  ;;  %v2068_v61 = vrot.slane %v5438_v25, 3  ;;  %v1923_v8 = vmul.f32 %v1898_v4, %v5217_v36 }
 0x598   : > { %v2110_v20 = vmul.f32 %v2085_v56, %v5135_v40  ;;  %v1925_v22 = vmul.f32 %v1899_v51, %v5217_v36  ;;  %v2112_v21 = vmul.f32 %v2086_v41, %v5135_v40  ;;  %v2132_v38 = vadd.f32 %v2108_v3, %v1921_v17 }
 0x599   : > { %v1924_v42 = vmul.f32 %v1898_v4, %v5194_v16  ;;  %v2111_v48 = vmul.f32 %v2085_v56, %v5223_v37  ;;  %v1926_v2 = vmul.f32 %v1899_v51, %v5194_v16  ;;  %v2113_v3 = vmul.f32 %v2086_v41, %v5223_v37  ;;  %v5517_v4 = vpop.f32.mrf.mxu3 }
 0x59a   : > { %v1869_v54 = vpop.f32.mrf.mxu2  ;;  %v5478_v50 = vpop.f32.mrf.mxu1  ;;  %v2134_v30 = vadd.f32 %v2110_v20, %v1923_v8  ;;  %v5491_v58 = vadd.f32 %v2112_v21, %v1925_v22  ;;  %v1900_v51 = vperm.slane %v1879_v27, 0  ;;  %v2087_v20 = vperm.slane %v2068_v61, 0 }
 0x59b   : > { %v1884_v45 = vrot.slane %v1869_v54, 1  ;;  %v1885_v32 = vrot.slane %v1869_v54, 2  ;;  %v1886_v18 = vrot.slane %v1869_v54, 3  ;;  %v1905_v52 = vperm.slane %v1869_v54, 0 }
 0x59c   : > { %v2073_v0 = vrot.slane %v5478_v50, 1  ;;  %v6548_v8 = vperm.slane %v5478_v50, 0  ;;  %v2135_v27 = vadd.f32 %v2111_v48, %v1924_v42  ;;  %v2137_v61 = vadd.f32 %v2113_v3, %v1926_v2 }
 0x59d   : > { %v5495_v60 = vperm.slane %v1884_v45, 0  ;;  %v5500_v35 = vperm.slane %v1885_v32, 0  ;;  %v5502_v43 = vperm.slane %v1886_v18, 0  ;;  %v5505_v22 = vmul.f32 %v1905_v52, %v5217_v36 }
 0x59e   : > { %v5508_v41 = vmul.f32 %v1905_v52, %v5194_v16  ;;  %v5510_v45 = vperm.slane %v2073_v0, 0  ;;  %v5515_v21 = vmul.f32 %v6548_v8, %v5135_v40  ;;  %v1880_v52 = vrot.slane %v5436_v19, 4 }
 0x59f   : > { %v2069_v0 = vrot.slane %v5438_v25, 4  ;;  %v6549_v8 = vrot.slane %v5423_v34, 7  ;;  %v1928_v2 = vmul.f32 %v1900_v51, %v5194_v16  ;;  %v2115_v48 = vmul.f32 %v2087_v20, %v5223_v37 }
 0x5a0   : > { %v1927_v54 = vmul.f32 %v1900_v51, %v5217_v36  ;;  %v2114_v17 = vmul.f32 %v2087_v20, %v5135_v40  ;;  %v1901_v10 = vperm.slane %v1880_v52, 0 }
 0x5a1   : > { %v2610_v59 = vsel %vm631_vm2, %v6549_v8, %v5421_v26 }
 0x5a2   : > { %v5519_v32 = vpop.f32.mrf.mxu2  ;;  %v5521_v18 = vpop.f32.mrf.mxu1 }
 0x5a3   : > { %v2271_v13 = vperm.slane %v5519_v32, 0  ;;  %v2253_v42 = vrot.slane %v5519_v32, 1  ;;  %v2254_v3 = vrot.slane %v5519_v32, 2  ;;  %v2255_v56 = vrot.slane %v5519_v32, 3 }
 0x5a4   : > { %v2611_v28 = vrot.slane %v5521_v18, 6  ;;  %v2256_v62 = vrot.slane %v5519_v32, 4  ;;  %v2816_v20 = vrot.slane %v5521_v18, 7 }
 0x5a5   : > { %v2296_v8 = vmul.f32 %v2271_v13, %v5179_v14  ;;  %v2295_v47 = vmul.f32 %v2271_v13, %v5206_v31  ;;  %v2272_v29 = vperm.slane %v2253_v42, 0  ;;  %v2273_v49 = vperm.slane %v2254_v3, 0 }
 0x5a6   : > { %v2274_v7 = vperm.slane %v2255_v56, 0  ;;  %v5550_v13 = vperm.slane %v2069_v0, 0  ;;  %v5555_v56 = vsel %vm634_vm3, %v5521_v18, %v5452_v6  ;;  %v1929_v42 = vmul.f32 %v1901_v10, %v5217_v36 }
 0x5a7   : > { %v2320_v24 = vadd.f32 %v2296_v8, %v5474_v9  ;;  %v2319_v57 = vadd.f32 %v2295_v47, %v2132_v38  ;;  %v2297_v46 = vmul.f32 %v2272_v29, %v5206_v31  ;;  %v2298_v51 = vmul.f32 %v2272_v29, %v5179_v14 }
 0x5a8   : > { %v2299_v12 = vmul.f32 %v2273_v49, %v5206_v31  ;;  %v2300_v23 = vmul.f32 %v2273_v49, %v5179_v14  ;;  %v2302_v9 = vmul.f32 %v2274_v7, %v5179_v14  ;;  %v2275_v49 = vperm.slane %v2256_v62, 0 }
 0x5a9   : > { %3873 = vrot.lane.b32.xlu1 %v2320_v24, %s4470_s10  ;;  %3871 = vrot.lane.b32.xlu0 %v2319_v57, %s4470_s10  ;;  %v2321_v29 = vadd.f32 %v2297_v46, %v2134_v30  ;;  %v2322_v24 = vadd.f32 %v2298_v51, %v2135_v27  ;;  %v2139_v57 = vadd.f32 %v2115_v48, %v1928_v2  ;;  %v6552_v48 = vrot.slane %v5430_v39, 4 }
 0x5aa   : > { %v5559_v38 = vpop.f32.mrf.mxu2  ;;  %v5561_v47 = vpop.f32.mrf.mxu1  ;;  %v2138_v3 = vadd.f32 %v2114_v17, %v1927_v54  ;;  %v2301_v8 = vmul.f32 %v2274_v7, %v5206_v31  ;;  %v2323_v46 = vadd.f32 %v2299_v12, %v5491_v58  ;;  %v2324_v62 = vadd.f32 %v2300_v23, %v2137_v61 }
 0x5ab   : > { %3875 = vrot.lane.b32.xlu2 %v2321_v29, %s4470_s10  ;;  %v2116_v52 = vmul.f32 %v5550_v13, %v5135_v40  ;;  %v2326_v0 = vadd.f32 %v2302_v9, %v2139_v57  ;;  %v2303_v6 = vmul.f32 %v2275_v49, %v5206_v31  ;;  %v2612_v63 = vsel %vm634_vm3, %v2611_v28, %v2610_v59 }
 0x5ac   : > { %v2617_v29 = vrot.slane %v5561_v47, 3  ;;  %v6550_v17 = vrot.slane %v5426_v55, 5  ;;  %v2817_v54 = vsel %vm634_vm3, %v2816_v20, %v5442_v1  ;;  %v2822_v58 = vrot.slane %v5561_v47, 4 }
 0x5ad   : > { %v2140_v27 = vadd.f32 %v2116_v52, %v1929_v42  ;;  %v2325_v12 = vadd.f32 %v2301_v8, %v2138_v3  ;;  %v2621_v23 = vrot.slane %v5465_v53, 1  ;;  %v6551_v61 = vrot.slane %v5426_v55, 6 }
 0x5ae   : > { %v2614_v7 = vsel %vm637_vm4, %v6550_v17, %v2612_v63  ;;  %v1881_v59 = vrot.slane %v5436_v19, 5  ;;  %v2826_v63 = vrot.slane %v5465_v53, 2  ;;  %v2070_v1 = vrot.slane %v5438_v25, 5 }
 0x5af   : > { %v2819_v2 = vsel %vm637_vm4, %v6551_v61, %v2817_v54  ;;  %v2327_v28 = vadd.f32 %v2303_v6, %v2140_v27  ;;  %v2616_v51 = vsel %vm640_vm5, %v6552_v48, %v2614_v7  ;;  %v6553_v6 = vrot.slane %v5430_v39, 5 }
 0x5b0   : > { %v2618_v52 = vsel %vm643_vm6, %v2617_v29, %v2616_v51  ;;  %v1902_v57 = vperm.slane %v1881_v59, 0  ;;  %v2257_v3 = vrot.slane %v5519_v32, 5 }
 0x5b1   : > { %3879 = vrot.lane.b32.xlu1 %v2323_v46, %s4470_s10  ;;  %3877 = vrot.lane.b32.xlu0 %v2322_v24, %s4470_s10  ;;  %v2821_v42 = vsel %vm640_vm5, %v6553_v6, %v2819_v2  ;;  %v1930_v24 = vmul.f32 %v1901_v10, %v5194_v16  ;;  %v6554_v2 = vrot.slane %v5471_v33, 1  ;;  %v2117_v6 = vmul.f32 %v5550_v13, %v5223_v37 }
 0x5b2   : > { %v5595_v20 = vpop.f32.mrf.mxu2  ;;  %v5597_v9 = vpop.f32.mrf.mxu1  ;;  %v2823_v46 = vsel %vm643_vm6, %v2822_v58, %v2821_v42  ;;  %v2089_v58 = vperm.slane %v2070_v1, 0  ;;  %v2276_v48 = vperm.slane %v2257_v3, 0  ;;  %v1931_v51 = vmul.f32 %v1902_v57, %v5217_v36 }
 0x5b3   : > { %v2623_v8 = vrot.slane %v5597_v9, 7  ;;  %v3016_v27 = vrot.slane %v5597_v9, 1  ;;  %3881 = vrot.lane.b32.xlu2 %v2324_v62, %s4470_s10  ;;  %v3203_v17 = vrot.slane %v5597_v9, 2  ;;  %v2619_v7 = vrot.slane %v5595_v20, 2 }
 0x5b4   : > { %v2824_v54 = vrot.slane %v5595_v20, 3  ;;  %v2829_v59 = vsel %vm631_vm2, %v5597_v9, %v6554_v2  ;;  %v2118_v30 = vmul.f32 %v2089_v58, %v5135_v40  ;;  %v2304_v2 = vmul.f32 %v2275_v49, %v5179_v14 }
 0x5b5   : > { %v2620_v10 = vsel %vm646_vm7, %v2619_v7, %v2618_v52  ;;  %v2624_v42 = vsel %vm631_vm2, %v2623_v8, %v5471_v33  ;;  %v2305_v52 = vmul.f32 %v2276_v48, %v5206_v31  ;;  %v2141_v3 = vadd.f32 %v2117_v6, %v1930_v24 }
 0x5b6   : > { %v2825_v62 = vsel %vm646_vm7, %v2824_v54, %v2823_v46  ;;  %v2622_v61 = vsel %vm649_vm8, %v2621_v23, %v2620_v10  ;;  %v6555_v46 = vrot.slane %v5471_v33, 2  ;;  %v3019_v13 = vrot.slane %v5517_v4, 7 }
 0x5b7   : > { %v2827_v1 = vsel %vm649_vm8, %v2826_v63, %v2825_v62  ;;  %v1932_v54 = vmul.f32 %v1902_v57, %v5194_v16  ;;  %v2119_v8 = vmul.f32 %v2089_v58, %v5223_v37  ;;  %v6556_v23 = vrot.slane %v5426_v55, 7 }
 0x5b8   : > { %v3017_v7 = vsel %vm631_vm2, %v3016_v27, %v6555_v46  ;;  %v2142_v24 = vadd.f32 %v2118_v30, %v1931_v51  ;;  %v2306_v27 = vmul.f32 %v2276_v48, %v5179_v14  ;;  %v3009_v10 = vrot.slane %v5561_v47, 5 }
 0x5b9   : > { %v3006_v49 = vsel %vm637_vm4, %v6556_v23, %v5555_v56  ;;  %3885 = vrot.lane.b32.xlu1 %v2326_v0, %s4470_s10  ;;  %3883 = vrot.lane.b32.xlu0 %v2325_v12, %s4470_s10  ;;  %v3011_v57 = vrot.slane %v5595_v20, 4  ;;  %v2328_v6 = vadd.f32 %v2304_v2, %v2141_v3  ;;  %v6557_v56 = vrot.slane %v5430_v39, 6 }
 0x5ba   : > { %v5642_v63 = vpop.f32.mrf.mxu2  ;;  %v2329_v30 = vadd.f32 %v2305_v52, %v2142_v24  ;;  %v2143_v29 = vadd.f32 %v2119_v8, %v1932_v54  ;;  %v6558_v3 = vrot.slane %v5517_v4, 5  ;;  %v6561_v54 = vrot.slane %v5421_v26, 3 }
 0x5bb   : > { %v2625_v58 = vrot.slane %v5642_v63, 6  ;;  %v2830_v62 = vrot.slane %v5642_v63, 7  ;;  %v3008_v0 = vsel %vm640_vm5, %v6557_v56, %v3006_v49  ;;  %v3205_v12 = vrot.slane %v5642_v63, 1  ;;  %3887 = vrot.lane.b32.xlu2 %v2327_v28, %s4470_s10 }
 0x5bc   : > { %v3392_v46 = vrot.slane %v5642_v63, 2  ;;  %v3018_v48 = vsel %vm634_vm3, %v5642_v63, %v3017_v7  ;;  %v3010_v2 = vsel %vm643_vm6, %v3009_v10, %v3008_v0  ;;  %v6559_v56 = vrot.slane %v5517_v4, 6  ;;  %v5683_v10 = vld [vmem:[%s6445_s1 + $0x18] sm:$0x3f] }
 0x5bd   : > { %v2626_v51 = vsel %vm634_vm3, %v2625_v58, %v2624_v42  ;;  %v2831_v23 = vsel %vm634_vm3, %v2830_v62, %v2829_v59  ;;  %v3020_v28 = vsel %vm637_vm4, %v3019_v13, %v3018_v48  ;;  %v3012_v52 = vsel %vm646_vm7, %v3011_v57, %v3010_v2 }
 0x5be   : > { %v2628_v49 = vsel %vm637_vm4, %v6558_v3, %v2626_v51  ;;  %v2833_v5 = vsel %vm637_vm4, %v6559_v56, %v2831_v23  ;;  %v3013_v59 = vrot.slane %v5465_v53, 3  ;;  %v6560_v42 = vrot.slane %v5471_v33, 3 }
 0x5bf   : > { %4350 = vmatpush.msk.msra.mxu0 %vm341_vm0, %v2628_v49  ;;  %4358 = vmatpush.msk.msrb.mxu3 %vm341_vm0, %v2833_v5  ;;  %v6562_v8 = vrot.slane %v5423_v34, 2  ;;  %v3196_v13 = vrot.slane %v5561_v47, 6  ;;  %v2330_v5 = vadd.f32 %v2306_v27, %v2143_v29  ;;  %v6563_v58 = vrot.slane %v5521_v18, 1 }
 0x5c0   : > { %v3204_v7 = vsel %vm631_vm2, %v3203_v17, %v6560_v42  ;;  %v3198_v62 = vrot.slane %v5595_v20, 5  ;;  %v3014_v0 = vsel %vm649_vm8, %v3013_v59, %v3012_v52  ;;  %v3200_v51 = vrot.slane %v5465_v53, 4 }
 0x5c1   : > { %v3190_v24 = vsel %vm631_vm2, %v6562_v8, %v6561_v54  ;;  %v3206_v57 = vsel %vm634_vm3, %v3205_v12, %v3204_v7  ;;  %2650 = vmatpush.msra.mxu0 %v2622_v61  ;;  %2852 = vmatpush.msrb.mxu3 %v2827_v1  ;;  %v1882_v23 = vrot.slane %v5436_v19, 6  ;;  %v6564_v29 = vrot.slane %v5430_v39, 7 }
 0x5c2   : > { %v3192_v17 = vsel %vm634_vm3, %v6563_v58, %v3190_v24  ;;  %3891 = vrot.lane.b32.xlu1 %v2329_v30, %s4470_s10  ;;  %3889 = vrot.lane.b32.xlu0 %v2328_v6, %s4470_s10  ;;  %v2071_v61 = vrot.slane %v5438_v25, 6  ;;  %v2258_v1 = vrot.slane %v5519_v32, 6  ;;  %v6565_v12 = vrot.slane %v5471_v33, 4 }
 0x5c3   : > { %v3193_v48 = vsel %vm637_vm4, %v5426_v55, %v3192_v17  ;;  %v6566_v2 = vrot.slane %v5597_v9, 3  ;;  %4351 = vmatmul.msk.f32.vlgmr.msra.gmra.mxu0 %vm337_vm1, %v5683_v10  ;;  %4359 = vmatmul.msk.f32.vlgmr.msrb.gmra.mxu3 %vm337_vm1, %v5683_v10  ;;  %v3207_v6 = vsel %vm637_vm4, %v5517_v4, %v3206_v57  ;;  %v1903_v49 = vperm.slane %v1882_v23, 0 }
 0x5c4   : > { %v3195_v27 = vsel %vm640_vm5, %v6564_v29, %v3193_v48  ;;  %4364 = vmatpush.msk.msra.mxu3 %vm341_vm0, %v3020_v28  ;;  %3893 = vrot.lane.b32.xlu2 %v2330_v5, %s4470_s10  ;;  %v2090_v59 = vperm.slane %v2071_v61, 0  ;;  %v2277_v42 = vperm.slane %v2258_v1, 0  ;;  %v1883_v7 = vrot.slane %v5436_v19, 7 }
 0x5c5   : > { %v3391_v3 = vsel %vm631_vm2, %v6566_v2, %v6565_v12  ;;  %v3197_v30 = vsel %vm643_vm6, %v3196_v13, %v3195_v27  ;;  %v1934_v8 = vmul.f32 %v1903_v49, %v5194_v16  ;;  %v1933_v24 = vmul.f32 %v1903_v49, %v5217_v36 }
 0x5c6   : > { %v3393_v56 = vsel %vm634_vm3, %v3392_v46, %v3391_v3  ;;  %v3199_v52 = vsel %vm646_vm7, %v3198_v62, %v3197_v30  ;;  %v3394_v13 = vrot.slane %v5517_v4, 1  ;;  %3039 = vmatpush.msra.mxu3 %v3014_v0  ;;  %v2121_v46 = vmul.f32 %v2090_v59, %v5223_v37 }
 0x5c7   : > { %v3201_v54 = vsel %vm649_vm8, %v3200_v51, %v3199_v52  ;;  %v2308_v28 = vmul.f32 %v2277_v42, %v5179_v14  ;;  %v2120_v5 = vmul.f32 %v2090_v59, %v5135_v40  ;;  %v2307_v57 = vmul.f32 %v2277_v42, %v5206_v31 }
 0x5c8   : > { %4370 = vmatpush.msk.msrb.mxu3 %vm341_vm0, %v3207_v6  ;;  %v1904_v19 = vperm.slane %v1883_v7, 0  ;;  %v2072_v58 = vrot.slane %v5438_v25, 7  ;;  %v2259_v17 = vrot.slane %v5519_v32, 7  ;;  %v6567_v62 = vrot.slane %v5421_v26, 4 }
 0x5c9   : > { %v6568_v48 = vrot.slane %v5423_v34, 3  ;;  %v2145_v51 = vadd.f32 %v2121_v46, %v1934_v8  ;;  %v2144_v23 = vadd.f32 %v2120_v5, %v1933_v24  ;;  %v6569_v29 = vrot.slane %v5521_v18, 2 }
 0x5ca   : > { %v3383_v61 = vrot.slane %v5561_v47, 7  ;;  %3226 = vmatpush.msrb.mxu3 %v3201_v54  ;;  %v1935_v1 = vmul.f32 %v1904_v19, %v5217_v36  ;;  %v2091_v25 = vperm.slane %v2072_v58, 0  ;;  %v2278_v12 = vperm.slane %v2259_v17, 0 }
 0x5cb   : > { %v3377_v0 = vsel %vm631_vm2, %v6568_v48, %v6567_v62  ;;  %v6570_v32 = vrot.slane %v5426_v55, 1  ;;  %v2332_v3 = vadd.f32 %v2308_v28, %v2145_v51  ;;  %v2331_v6 = vadd.f32 %v2307_v57, %v2144_v23  ;;  %4365 = vmatmul.msk.f32.vlgmr.msra.gmra.mxu3 %vm337_vm1, %v5683_v10 }
 0x5cc   : > { %v3379_v27 = vsel %vm634_vm3, %v6569_v29, %v3377_v0  ;;  %v3385_v49 = vrot.slane %v5595_v20, 6  ;;  %v2122_v52 = vmul.f32 %v2091_v25, %v5135_v40  ;;  %v2309_v59 = vmul.f32 %v2278_v12, %v5206_v31 }
 0x5cd   : > { %v3381_v2 = vsel %vm637_vm4, %v6570_v32, %v3379_v27  ;;  %v3387_v7 = vrot.slane %v5465_v53, 5  ;;  %v2260_v54 = vrot.slane %v5559_v38, 1  ;;  %v3580_v8 = vrot.slane %v5642_v63, 3  ;;  %3897 = vrot.lane.b32.xlu1 %v2332_v3, %s4470_s10  ;;  %3895 = vrot.lane.b32.xlu0 %v2331_v6, %s4470_s10 }
 0x5ce   : > { %v3382_v30 = vsel %vm640_vm5, %v5430_v39, %v3381_v2  ;;  %v3395_v24 = vsel %vm637_vm4, %v3394_v13, %v3393_v56  ;;  %v2146_v28 = vadd.f32 %v2122_v52, %v1935_v1  ;;  %v6571_v5 = vperm.slane %v5559_v38, 0 }
 0x5cf   : > { %v3384_v42 = vsel %vm643_vm6, %v3383_v61, %v3382_v30  ;;  %4376 = vmatpush.msk.msra.mxu3 %vm341_vm0, %v3395_v24  ;;  %v1936_v58 = vmul.f32 %v1904_v19, %v5194_v16  ;;  %v2123_v17 = vmul.f32 %v2091_v25, %v5223_v37  ;;  %v6572_v63 = vrot.slane %v5478_v50, 3 }
 0x5d0   : > { %v3386_v46 = vsel %vm646_vm7, %v3385_v49, %v3384_v42  ;;  %v2311_v57 = vmul.f32 %v6571_v5, %v5206_v31  ;;  %v2310_v56 = vmul.f32 %v2278_v12, %v5179_v14  ;;  %v6573_v13 = vrot.slane %v5471_v33, 5 }
 0x5d1   : > { %v5766_v62 = vperm.slane %v6572_v63, 0  ;;  %v3388_v48 = vsel %vm649_vm8, %v3387_v7, %v3386_v46  ;;  %v6574_v0 = vrot.slane %v5597_v9, 4  ;;  %v6575_v23 = vperm.slane %v5478_v50, 0 }
 0x5d2   : > { %v2333_v29 = vadd.f32 %v2309_v59, %v2146_v28  ;;  %3414 = vmatpush.msra.mxu3 %v3388_v48  ;;  %v2148_v27 = vadd.f32 %v5515_v21, %v5505_v22  ;;  %v3582_v61 = vrot.slane %v5517_v4, 2  ;;  %v2261_v1 = vrot.slane %v5559_v38, 2 }
 0x5d3   : > { %v3579_v51 = vsel %vm631_vm2, %v6574_v0, %v6573_v13  ;;  %v2125_v19 = vmul.f32 %v6575_v23, %v5223_v37  ;;  %v2147_v25 = vadd.f32 %v2123_v17, %v1936_v58  ;;  %v6576_v9 = vrot.slane %v5421_v26, 5  ;;  %4371 = vmatmul.msk.f32.vlgmr.msrb.gmra.mxu3 %vm337_vm1, %v5683_v10 }
 0x5d4   : > { %v3581_v33 = vsel %vm634_vm3, %v3580_v8, %v3579_v51  ;;  %v6577_v12 = vrot.slane %v5423_v34, 4  ;;  %v2280_v2 = vperm.slane %v2260_v54, 0  ;;  %3899 = vrot.lane.b32.xlu2 %v2333_v29, %s4470_s10  ;;  %v2335_v3 = vadd.f32 %v2311_v57, %v2148_v27 }
 0x5d5   : > { %v6578_v6 = vrot.slane %v5521_v18, 3  ;;  %v3573_v4 = vrot.slane %v5595_v20, 7  ;;  %v2334_v21 = vadd.f32 %v2310_v56, %v2147_v25  ;;  %v6579_v30 = vmov %v6571_v5 }
 0x5d6   : > { %v3565_v32 = vsel %vm631_vm2, %v6577_v12, %v6576_v9  ;;  %v2312_v49 = vmul.f32 %v6579_v30, %v5179_v14  ;;  %v6580_v26 = vrot.slane %v5426_v55, 2  ;;  %v3575_v52 = vrot.slane %v5465_v53, 6  ;;  %3903 = vrot.lane.b32.xlu1 %v2335_v3, %s4470_s10  ;;  %v4325_v30 = vld [vmem:[%s6449_s5 + $0x18] sm:$0xff] }
 0x5d7   : > { %v3567_v22 = vsel %vm634_vm3, %v6578_v6, %v3565_v32  ;;  %v3583_v18 = vsel %vm637_vm4, %v3582_v61, %v3581_v33  ;;  %v6581_v59 = vrot.slane %v5430_v39, 1  ;;  %v1940_v42 = vmul.f32 %v5495_v60, %v5194_v16  ;;  %3901 = vrot.lane.b32.xlu0 %v2334_v21, %s4470_s10  ;;  %v5856_v32 = vpop.permute.xlu2 %3821  ;;  %2673 = vmatpush.msrb.mxu1 %v4325_v30 }
 0x5d8   : > { %v3569_v34 = vsel %vm637_vm4, %v6580_v26, %v3567_v22  ;;  %v2127_v7 = vmul.f32 %v5510_v45, %v5223_v37  ;;  %v6582_v55 = vrot.slane %v5478_v50, 2  ;;  %v1939_v39 = vmul.f32 %v5495_v60, %v5217_v36  ;;  %4382 = vmatpush.msk.msrb.mxu3 %vm341_vm0, %v3583_v18  ;;  %6583 = vst [vmem:[#allocation36_spill] sm:$0xff] %v5856_v32 }
 0x5d9   : > { %v3571_v20 = vsel %vm640_vm5, %v6581_v59, %v3569_v34  ;;  %v2126_v8 = vmul.f32 %v5510_v45, %v5135_v40  ;;  %v2262_v24 = vrot.slane %v5559_v38, 3  ;;  %v2149_v50 = vadd.f32 %v2125_v19, %v5508_v41  ;;  %2875 = vmatpush.msrb.mxu0 %v4325_v30 }
 0x5da   : > { %v2094_v54 = vperm.slane %v6582_v55, 0  ;;  %v3572_v53 = vsel %vm643_vm6, %v5561_v47, %v3571_v20  ;;  %v1943_v28 = vmul.f32 %v5502_v43, %v5217_v36  ;;  %v2314_v47 = vmul.f32 %v2280_v2, %v5179_v14  ;;  %v6600_v55 = vld [vmem:[#allocation32_spill] sm:$0xff] }
 0x5db   : > { %v3574_v46 = vsel %vm646_vm7, %v3573_v4, %v3572_v53  ;;  %v2313_v60 = vmul.f32 %v2280_v2, %v5206_v31  ;;  %v2130_v45 = vmul.f32 %v5766_v62, %v5135_v40  ;;  %v2281_v57 = vperm.slane %v2261_v1, 0  ;;  %4377 = vmatmul.msk.f32.vlgmr.msra.gmra.mxu3 %vm337_vm1, %v5683_v10  ;;  %3062 = vmatpush.msra.mxu0 %v4325_v30 }
 0x5dc   : > { %v3576_v5 = vsel %vm649_vm8, %v3575_v52, %v3574_v46  ;;  %v2336_v38 = vadd.f32 %v2312_v49, %v2149_v50  ;;  %v2151_v58 = vadd.f32 %v2127_v7, %v1940_v42  ;;  %v2150_v17 = vadd.f32 %v2126_v8, %v1939_v39  ;;  %v6592_v49 = vld [vmem:[#allocation31_spill] sm:$0xff]  ;;  %v6598_v42 = vld [vmem:[#allocation33_spill] sm:$0xff] }
 0x5dd   : > { %3602 = vmatpush.msrb.mxu3 %v3576_v5  ;;  %v2154_v41 = vadd.f32 %v2130_v45, %v1943_v28  ;;  %v1941_v63 = vmul.f32 %v5500_v35, %v5217_v36  ;;  %v2128_v48 = vmul.f32 %v2094_v54, %v5135_v40  ;;  %v2282_v56 = vperm.slane %v2262_v24, 0  ;;  %v6602_v39 = vld [vmem:[#allocation3_spill] sm:$0xff]  ;;  %v6604_v46 = vld [vmem:[#allocation5_spill] sm:$0xff] }
 0x5de   : > { %3905 = vrot.lane.b32.xlu2 %v2336_v38, %s4470_s10  ;;  %v2338_v13 = vadd.f32 %v2314_v47, %v2151_v58  ;;  %v2337_v0 = vadd.f32 %v2313_v60, %v2150_v17  ;;  %v2315_v51 = vmul.f32 %v2281_v57, %v5206_v31  ;;  %v1942_v23 = vmul.f32 %v5500_v35, %v5194_v16  ;;  %v6606_v5 = vld [vmem:[#allocation35_spill] sm:$0xff]  ;;  %v6610_v17 = vld [vmem:[#allocation4_spill] sm:$0xff] }
 0x5df   : > { %v2129_v19 = vmul.f32 %v2094_v54, %v5223_v37  ;;  %v2152_v36 = vadd.f32 %v2128_v48, %v1941_v63  ;;  %v2317_v40 = vmul.f32 %v2282_v56, %v5206_v31  ;;  %v2316_v29 = vmul.f32 %v2281_v57, %v5179_v14  ;;  %v6608_v45 = vld [vmem:[#allocation11_spill] sm:$0xff]  ;;  %v6612_v63 = vld [vmem:[#allocation6_spill] sm:$0xff] }
 0x5e0   : > { %3909 = vrot.lane.b32.xlu1 %v2338_v13, %s4470_s10  ;;  %3907 = vrot.lane.b32.xlu0 %v2337_v0, %s4470_s10  ;;  %v1944_v1 = vmul.f32 %v5502_v43, %v5194_v16  ;;  %v2131_v25 = vmul.f32 %v5766_v62, %v5223_v37  ;;  %v2318_v35 = vmul.f32 %v2282_v56, %v5179_v14  ;;  %vm4063_vm0 = vcmask 31744   ;;  %v5866_v14 = vpop.permute.xlu1 %3819 }
 0x5e1   : > { %v2339_v27 = vadd.f32 %v2315_v51, %v2152_v36  ;;  %v2153_v61 = vadd.f32 %v2129_v19, %v1942_v23  ;;  %v2341_v33 = vadd.f32 %v2317_v40, %v2154_v41  ;;  %6587 = vst [vmem:[#allocation40_spill] sm:$0xff] %v5866_v14  ;;  %v6614_v51 = vld [vmem:[#allocation10_spill] sm:$0xff]  ;;  %vm2683_vm2 = vcmask 48128  }
 0x5e2   : > { %v2155_v31 = vadd.f32 %v2131_v25, %v1944_v1  ;;  %v6616_v19 = vld [vmem:[#allocation2_spill] sm:$0xff]  ;;  %v6620_v25 = vld [vmem:[#allocation12_spill] sm:$0xff]  ;;  %vm4113_vm3 = vcmask 60416  }
 0x5e3   : > { %v2340_v9 = vadd.f32 %v2316_v29, %v2153_v61  ;;  %4383 = vmatmul.msk.f32.vlgmr.msrb.gmra.mxu3 %vm337_vm1, %v5683_v10  ;;  %v5864_v10 = vpop.permute.xlu0 %3817  ;;  %v6618_v61 = vld [vmem:[#allocation7_spill] sm:$0xff]  ;;  %vm2690_vm1 = vcmask 1045504  }
 0x5e4   : > { %v2342_v12 = vadd.f32 %v2318_v35, %v2155_v31  ;;  %6586 = vst [vmem:[#allocation39_spill] sm:$0xff] %v5864_v10 }
 0x5e6   : > { %3911 = vrot.lane.b32.xlu2 %v2339_v27, %s4470_s10 }
 0x5e8   : > { %3915 = vrot.lane.b32.xlu1 %v2341_v33, %s4470_s10  ;;  %3913 = vrot.lane.b32.xlu0 %v2340_v9, %s4470_s10 }
 0x5ee   : > { %3917 = vrot.lane.b32.xlu2 %v2342_v12, %s4470_s10 }
 0x605   : > { %v5858_v16 = vpop.permute.xlu2 %3875 }
 0x606   : > { %6584 = vst [vmem:[#allocation37_spill] sm:$0xff] %v5858_v16 }
 0x60d   : > { %v3882_v43 = vpop.permute.xlu2 %3881 }
 0x60e   : > { %v5862_v37 = vsel %vm4063_vm0, %v5248_v15, %v3882_v43  ;;  %v4429_v43 = vld [vmem:[%s6450_s6 + $0x3] ss:$0 sm:$0xff] }
 0x60f   : > { %6585 = vst [vmem:[#allocation38_spill] sm:$0xff] %v5862_v37 }
 0x615   : > { %v3888_v62 = vpop.permute.xlu2 %3887 }
 0x616   : > { %v5870_v2 = vsel %vm4063_vm0, %v5260_v11, %v3888_v62  ;;  %v6594_v11 = vld [vmem:[#allocation30_spill] sm:$0xff] }
 0x617   : > { %6588 = vst [vmem:[#allocation41_spill] sm:$0xff] %v5870_v2  ;;  %v4430_v62 = vld [vmem:[%s6451_s7 + $0x3] ss:$0 sm:$0xff] }
 0x61b   : > { %v5872_v3 = vpop.permute.xlu1 %3873  ;;  %v5874_v6 = vpop.permute.xlu0 %3871 }
 0x61c   : > { %6589 = vst [vmem:[#allocation42_spill] sm:$0xff] %v5872_v3 }
 0x61d   : > { %6590 = vst [vmem:[#allocation43_spill] sm:$0xff] %v5874_v6 }
 0x61e   : > { %v3894_v22 = vpop.permute.xlu2 %3893 }
 0x61f   : > { %v5878_v4 = vsel %vm4063_vm0, %v5274_v44, %v3894_v22  ;;  %v6596_v44 = vld [vmem:[#allocation34_spill] sm:$0xff] }
 0x620   : > { %6591 = vst [vmem:[#allocation44_spill] sm:$0xff] %v5878_v4 }
 0x623   : > { %v3880_v15 = vpop.permute.xlu1 %3879  ;;  %v3878_v21 = vpop.permute.xlu0 %3877 }
 0x624   : > { %v5885_v26 = vsel %vm4063_vm0, %v6592_v49, %v3880_v15  ;;  %v5889_v34 = vsel %vm4063_vm0, %v6594_v11, %v3878_v21 }
 0x625   : > { %6593 = vst [vmem:[#allocation31_spill] sm:$0xff] %v5885_v26 }
 0x626   : > { %6595 = vst [vmem:[#allocation30_spill] sm:$0xff] %v5889_v34 }
 0x62b   : > { %v3886_v59 = vpop.permute.xlu1 %3885  ;;  %v3884_v20 = vpop.permute.xlu0 %3883 }
 0x62c   : > { %v5897_v7 = vsel %vm4063_vm0, %v6598_v42, %v3886_v59  ;;  %v5901_v54 = vsel %vm4063_vm0, %v6600_v55, %v3884_v20  ;;  %v4324_v20 = vld [vmem:[%s6447_s3 + $0x38] sm:$0xf] }
 0x62d   : > { %6599 = vst [vmem:[#allocation33_spill] sm:$0xff] %v5897_v7 }
 0x62e   : > { %v3900_v52 = vpop.permute.xlu2 %3899  ;;  %6601 = vst [vmem:[#allocation32_spill] sm:$0xff] %v5901_v54 }
 0x62f   : > { %v5893_v18 = vsel %vm4063_vm0, %v6596_v44, %v3900_v52 }
 0x630   : > { %6597 = vst [vmem:[#allocation34_spill] sm:$0xff] %v5893_v18 }
 0x634   : > { %v3892_v24 = vpop.permute.xlu1 %3891  ;;  %v3890_v50 = vpop.permute.xlu0 %3889 }
 0x635   : > { %v5909_v28 = vsel %vm4063_vm0, %v6604_v46, %v3892_v24  ;;  %v5913_v47 = vsel %vm4063_vm0, %v6606_v5, %v3890_v50 }
 0x636   : > { %6605 = vst [vmem:[#allocation5_spill] sm:$0xff] %v5909_v28 }
 0x637   : > { %6607 = vst [vmem:[#allocation35_spill] sm:$0xff] %v5913_v47  ;;  %v6634_v47 = vld [vmem:[#allocation24_spill] sm:$0xff] }
 0x638   : > { %v3906_v53 = vpop.permute.xlu2 %3905 }
 0x639   : > { %v5905_v8 = vsel %vm4063_vm0, %v6602_v39, %v3906_v53 }
 0x63a   : > { %6603 = vst [vmem:[#allocation3_spill] sm:$0xff] %v5905_v8 }
 0x63f   : > { %v3898_v38 = vpop.permute.xlu1 %3897  ;;  %v3896_v58 = vpop.permute.xlu0 %3895 }
 0x640   : > { %v3912_v60 = vpop.permute.xlu2 %3911  ;;  %v5921_v41 = vsel %vm4063_vm0, %v6610_v17, %v3898_v38  ;;  %v5925_v48 = vsel %vm4063_vm0, %v6612_v63, %v3896_v58  ;;  %v2652_v56 = vpop.f32.mrf.mxu0 }
 0x641   : > { %v5917_v57 = vsel %vm4063_vm0, %v6608_v45, %v3912_v60  ;;  %6611 = vst [vmem:[#allocation4_spill] sm:$0xff] %v5921_v41  ;;  %4352 = vmatmul.msk.f32.vlgmr.msrb.gmra.mxu1 %vm683_vm9, %v2652_v56  ;;  %v6633_v41 = vld [vmem:[#allocation20_spill] sm:$0xff] }
 0x642   : > { %6609 = vst [vmem:[#allocation11_spill] sm:$0xff] %v5917_v57 }
 0x643   : > { %6613 = vst [vmem:[#allocation6_spill] sm:$0xff] %v5925_v48 }
 0x646   : > { %v2854_v40 = vpop.f32.mrf.mxu3 }
 0x647   : > { %4360 = vmatmul.msk.f32.vlgmr.msrb.gmra.mxu0 %vm683_vm9, %v2854_v40 }
 0x648   : > { %v3904_v13 = vpop.permute.xlu1 %3903  ;;  %3249 = vmatpush.msrb.mxu0 %v4325_v30 }
 0x649   : > { %v3902_v0 = vpop.permute.xlu0 %3901  ;;  %v5930_v23 = vsel %vm4063_vm0, %v6614_v51, %v3904_v13 }
 0x64a   : > { %6615 = vst [vmem:[#allocation10_spill] sm:$0xff] %v5930_v23  ;;  %v5934_v36 = vsel %vm4063_vm0, %v6616_v19, %v3902_v0 }
 0x64b   : > { %6617 = vst [vmem:[#allocation2_spill] sm:$0xff] %v5934_v36 }
 0x64e   : > { %v3041_v9 = vpop.f32.mrf.mxu3 }
 0x64f   : > { %4366 = vmatmul.msk.f32.vlgmr.msra.gmra.mxu0 %vm683_vm9, %v3041_v9 }
 0x650   : > { %3437 = vmatpush.msra.mxu0 %v4325_v30 }
 0x652   : > { %v3910_v29 = vpop.permute.xlu1 %3909  ;;  %v3908_v27 = vpop.permute.xlu0 %3907 }
 0x653   : > { %v5939_v1 = vsel %vm4063_vm0, %v6618_v61, %v3910_v29  ;;  %v5943_v33 = vsel %vm4063_vm0, %v6620_v25, %v3908_v27 }
 0x654   : > { %6619 = vst [vmem:[#allocation7_spill] sm:$0xff] %v5939_v1 }
 0x655   : > { %6621 = vst [vmem:[#allocation12_spill] sm:$0xff] %v5943_v33 }
 0x656   : > { %v3228_v35 = vpop.f32.mrf.mxu3 }
 0x657   : > { %4372 = vmatmul.msk.f32.vlgmr.msrb.gmra.mxu0 %vm683_vm9, %v3228_v35 }
 0x658   : > { %3625 = vmatpush.msrb.mxu0 %v4325_v30  ;;  %v4323_v30 = vld [vmem:[%s6447_s3 + $0x30] sm:$0xff] }
 0x65e   : > { %v3416_v31 = vpop.f32.mrf.mxu3 }
 0x65f   : > { %4378 = vmatmul.msk.f32.vlgmr.msra.gmra.mxu0 %vm683_vm9, %v3416_v31 }
 0x666   : > { %v3604_v12 = vpop.f32.mrf.mxu3 }
 0x667   : > { %4384 = vmatmul.msk.f32.vlgmr.msrb.gmra.mxu0 %vm683_vm9, %v3604_v12 }
 0x6be   : > { %v2675_v22 = vpop.f32.mrf.mxu1 }
 0x6bf   : > { %v2679_v15 = vmul.f32 %v4429_v43, %v2675_v22 }
 0x6c1   : > { %v2681_v21 = vadd.f32 %v4430_v62, %v2679_v15  ;;  %v6622_v15 = vld [vmem:[#allocation17_spill] sm:$0xff] }
 0x6c3   : > { %v2682_v49 = vmax.f32 %v2681_v21, 0.0 }
 0x6c4   : > { %v2877_v11 = vpop.f32.mrf.mxu0 }
 0x6c5   : > { %4353 = vmatpush.msk.msra.mxu2 %vm2690_vm1, %v2682_v49  ;;  %v2880_v52 = vmul.f32 %v4429_v43, %v2877_v11  ;;  %v6623_v49 = vld [vmem:[#allocation14_spill] sm:$0xff] }
 0x6c6   : > { %4354 = vmatmul.msk.f32.vlgmr.msra.gmra.mxu2 %vm2683_vm2, %v4323_v30 }
 0x6c7   : > { %v2881_v44 = vadd.f32 %v4430_v62, %v2880_v52 }
 0x6c9   : > { %v2882_v59 = vmax.f32 %v2881_v44, 0.0 }
 0x6cb   : > { %4361 = vmatpush.msk.msra.mxu1 %vm2690_vm1, %v2882_v59 }
 0x6cc   : > { %4362 = vmatmul.msk.f32.vlgmr.msra.gmra.mxu1 %vm2683_vm2, %v4323_v30  ;;  %v3064_v42 = vpop.f32.mrf.mxu0 }
 0x6cd   : > { %v3067_v55 = vmul.f32 %v4429_v43, %v3064_v42 }
 0x6ce   : > { %4355 = vmatmul.msk.f32.gmra.mxu2 %vm2683_vm2, %v4324_v20 }
 0x6cf   : > { %v3068_v53 = vadd.f32 %v4430_v62, %v3067_v55 }
 0x6d1   : > { %v3069_v39 = vmax.f32 %v3068_v53, 0.0 }
 0x6d3   : > { %4367 = vmatpush.msk.msrb.mxu2 %vm2690_vm1, %v3069_v39 }
 0x6d4   : > { %4363 = vmatmul.msk.f32.gmra.mxu1 %vm2683_vm2, %v4324_v20  ;;  %v3251_v24 = vpop.f32.mrf.mxu0 }
 0x6d5   : > { %v3254_v50 = vmul.f32 %v4429_v43, %v3251_v24  ;;  %v6624_v24 = vld [vmem:[#allocation22_spill] sm:$0xff] }
 0x6d6   : > { %4368 = vmatmul.msk.f32.vlgmr.msrb.gmra.mxu2 %vm2683_vm2, %v4323_v30 }
 0x6d7   : > { %v3255_v46 = vadd.f32 %v4430_v62, %v3254_v50 }
 0x6d9   : > { %v3256_v5 = vmax.f32 %v3255_v46, 0.0  ;;  %v6625_v46 = vld [vmem:[#allocation19_spill] sm:$0xff] }
 0x6db   : > { %4373 = vmatpush.msk.msrb.mxu1 %vm2690_vm1, %v3256_v5 }
 0x6dc   : > { %4374 = vmatmul.msk.f32.vlgmr.msrb.gmra.mxu1 %vm2683_vm2, %v4323_v30  ;;  %v3439_v60 = vpop.f32.mrf.mxu0 }
 0x6dd   : > { %v3442_v45 = vmul.f32 %v4429_v43, %v3439_v60 }
 0x6de   : > { %4369 = vmatmul.msk.f32.gmra.mxu2 %vm2683_vm2, %v4324_v20 }
 0x6df   : > { %v3443_v38 = vadd.f32 %v4430_v62, %v3442_v45 }
 0x6e1   : > { %v3444_v58 = vmax.f32 %v3443_v38, 0.0 }
 0x6e3   : > { %4379 = vmatpush.msk.msra.mxu2 %vm2690_vm1, %v3444_v58 }
 0x6e4   : > { %4375 = vmatmul.msk.f32.gmra.mxu1 %vm2683_vm2, %v4324_v20  ;;  %v3627_v17 = vpop.f32.mrf.mxu0 }
 0x6e5   : > { %v3630_v63 = vmul.f32 %v4429_v43, %v3627_v17 }
 0x6e6   : > { %4380 = vmatmul.msk.f32.vlgmr.msra.gmra.mxu2 %vm2683_vm2, %v4323_v30 }
 0x6e7   : > { %v3631_v56 = vadd.f32 %v4430_v62, %v3630_v63 }
 0x6e9   : > { %v3632_v13 = vmax.f32 %v3631_v56, 0.0 }
 0x6eb   : > { %4385 = vmatpush.msk.msra.mxu1 %vm2690_vm1, %v3632_v13 }
 0x6ec   : > { %4386 = vmatmul.msk.f32.vlgmr.msra.gmra.mxu1 %vm2683_vm2, %v4323_v30 }
 0x6ee   : > { %4381 = vmatmul.msk.f32.gmra.mxu2 %vm2683_vm2, %v4324_v20 }
 0x6f4   : > { %4387 = vmatmul.msk.f32.gmra.mxu1 %vm2683_vm2, %v4324_v20 }
 0x749   : > { %v5979_v0 = vpop.f32.mrf.mxu2  ;;  %v5981_v51 = vpop.f32.mrf.mxu1 }
 0x751   : > { %v2714_v19 = vpop.f32.mrf.mxu2  ;;  %v2906_v25 = vpop.f32.mrf.mxu1 }
 0x752   : > { %v2729_v40 = vrot.slane %v2714_v19, 1  ;;  %v2730_v29 = vrot.slane %v2714_v19, 2  ;;  %v2731_v27 = vrot.slane %v2714_v19, 3  ;;  %v2750_v61 = vperm.slane %v2714_v19, 0 }
 0x753   : > { %v2918_v9 = vrot.slane %v2906_v25, 1  ;;  %v2919_v35 = vrot.slane %v2906_v25, 2  ;;  %v2920_v31 = vrot.slane %v2906_v25, 3  ;;  %v2937_v12 = vperm.slane %v2906_v25, 0 }
 0x754   : > { %v2751_v43 = vperm.slane %v2729_v40, 0  ;;  %v2752_v62 = vperm.slane %v2730_v29, 0  ;;  %v2753_v22 = vperm.slane %v2731_v27, 0  ;;  %v2782_v21 = vmul.f32 %v2750_v61, %v6622_v15 }
 0x755   : > { %v2783_v30 = vmul.f32 %v2750_v61, %v6623_v49  ;;  %v2938_v11 = vperm.slane %v2918_v9, 0  ;;  %v2939_v52 = vperm.slane %v2919_v35, 0  ;;  %v2940_v44 = vperm.slane %v2920_v31, 0 }
 0x756   : > { %v2784_v59 = vmul.f32 %v2751_v43, %v6622_v15  ;;  %v2785_v20 = vmul.f32 %v2751_v43, %v6623_v49  ;;  %v2786_v42 = vmul.f32 %v2752_v62, %v6622_v15  ;;  %v2787_v55 = vmul.f32 %v2752_v62, %v6623_v49 }
 0x757   : > { %v2788_v53 = vmul.f32 %v2753_v22, %v6622_v15  ;;  %v2789_v39 = vmul.f32 %v2753_v22, %v6623_v49  ;;  %v2969_v50 = vmul.f32 %v2937_v12, %v6624_v24  ;;  %v2970_v5 = vmul.f32 %v2937_v12, %v6625_v46 }
 0x758   : > { %v2971_v60 = vmul.f32 %v2938_v11, %v6624_v24  ;;  %v2972_v45 = vmul.f32 %v2938_v11, %v6625_v46  ;;  %v2973_v38 = vmul.f32 %v2939_v52, %v6624_v24  ;;  %v2974_v58 = vmul.f32 %v2939_v52, %v6625_v46 }
 0x759   : > { %v2975_v17 = vmul.f32 %v2940_v44, %v6624_v24  ;;  %v2976_v63 = vmul.f32 %v2940_v44, %v6625_v46  ;;  %v2993_v56 = vadd.f32 %v2969_v50, %v2782_v21  ;;  %v2994_v13 = vadd.f32 %v2970_v5, %v2783_v30  ;;  %v5999_v19 = vpop.f32.mrf.mxu2  ;;  %v6009_v25 = vpop.f32.mrf.mxu1 }
 0x75a   : > { %v6001_v40 = vadd.f32 %v2971_v60, %v2784_v59  ;;  %v6003_v29 = vadd.f32 %v2972_v45, %v2785_v20  ;;  %v6005_v27 = vadd.f32 %v2973_v38, %v2786_v42  ;;  %v6007_v61 = vadd.f32 %v2974_v58, %v2787_v55  ;;  %v6629_v55 = vld [vmem:[#allocation16_spill] sm:$0xff]  ;;  %v6631_v38 = vld [vmem:[#allocation18_spill] sm:$0xff] }
 0x75b   : > { %v6011_v9 = vadd.f32 %v2975_v17, %v2788_v53  ;;  %v6013_v35 = vadd.f32 %v2976_v63, %v2789_v39  ;;  %v2742_v31 = vperm.slane %v5979_v0, 0  ;;  %v2929_v12 = vperm.slane %v5981_v51, 0  ;;  %v6630_v39 = vld [vmem:[#allocation25_spill] sm:$0xff] }
 0x75c   : > { %6626 = vst [vmem:[#allocation17_spill] sm:$0xff] %v6007_v61  ;;  %v3116_v43 = vperm.slane %v5999_v19, 0  ;;  %v2722_v62 = vrot.slane %v5979_v0, 1  ;;  %v3303_v30 = vperm.slane %v6009_v25, 0  ;;  %v2911_v11 = vrot.slane %v5981_v51, 1  ;;  %v6632_v17 = vld [vmem:[#allocation21_spill] sm:$0xff] }
 0x75d   : > { %6627 = vst [vmem:[#allocation14_spill] sm:$0xff] %v6011_v9  ;;  %v2767_v21 = vmul.f32 %v2742_v31, %v6623_v49  ;;  %v2954_v59 = vmul.f32 %v2929_v12, %v6625_v46  ;;  %v2766_v20 = vmul.f32 %v2742_v31, %v6622_v15  ;;  %v2953_v42 = vmul.f32 %v2929_v12, %v6624_v24 }
 0x75e   : > { %6628 = vst [vmem:[#allocation22_spill] sm:$0xff] %v6013_v35  ;;  %v3141_v50 = vmul.f32 %v3116_v43, %v6630_v39  ;;  %v3140_v5 = vmul.f32 %v3116_v43, %v6629_v55  ;;  %v6030_v60 = vperm.slane %v2722_v62, 0  ;;  %v3328_v58 = vmul.f32 %v3303_v30, %v6631_v38 }
 0x75f   : > { %v3327_v63 = vmul.f32 %v3303_v30, %v6632_v17  ;;  %v6035_v10 = vperm.slane %v2911_v11, 0  ;;  %v2978_v14 = vadd.f32 %v2954_v59, %v2767_v21  ;;  %v2977_v31 = vadd.f32 %v2953_v42, %v2766_v20 }
 0x760   : > { %v3098_v12 = vrot.slane %v5999_v19, 1  ;;  %v3285_v33 = vrot.slane %v6009_v25, 1  ;;  %v2723_v62 = vrot.slane %v5979_v0, 2  ;;  %v2768_v30 = vmul.f32 %v6030_v60, %v6622_v15 }
 0x761   : > { %v3093_v22 = vpop.f32.mrf.mxu2  ;;  %v6022_v44 = vpop.f32.mrf.mxu1  ;;  %v3164_v23 = vadd.f32 %v3140_v5, %v2977_v31  ;;  %v2912_v11 = vrot.slane %v5981_v51, 2 }
 0x762   : > { %v3124_v52 = vperm.slane %v3093_v22, 0  ;;  %v3105_v1 = vrot.slane %v3093_v22, 1  ;;  %v3106_v21 = vrot.slane %v3093_v22, 2  ;;  %v3107_v59 = vrot.slane %v3093_v22, 3 }
 0x763   : > { %v3292_v20 = vrot.slane %v6022_v44, 1  ;;  %v6059_v31 = vperm.slane %v3098_v12, 0  ;;  %v3351_v8 = vadd.f32 %v3327_v63, %v3164_v23  ;;  %v3304_v37 = vperm.slane %v3285_v33, 0 }
 0x764   : > { %v3156_v53 = vmul.f32 %v3124_v52, %v6629_v55  ;;  %v3157_v45 = vmul.f32 %v3124_v52, %v6630_v39  ;;  %v3165_v52 = vadd.f32 %v3141_v50, %v2978_v14  ;;  %v3311_v14 = vperm.slane %v6022_v44, 0 }
 0x765   : > { %v3126_v18 = vperm.slane %v3106_v21, 0  ;;  %v3127_v54 = vperm.slane %v3107_v59, 0  ;;  %v3142_v12 = vmul.f32 %v6059_v31, %v6629_v55  ;;  %v3099_v21 = vrot.slane %v5999_v19, 2 }
 0x766   : > { %v6039_v36 = vadd.f32 %v3156_v53, %v2993_v56  ;;  %v6041_v43 = vadd.f32 %v3157_v45, %v2994_v13  ;;  %v2955_v56 = vmul.f32 %v6035_v10, %v6624_v24  ;;  %v3293_v13 = vrot.slane %v6022_v44, 2 }
 0x767   : > { %v3294_v53 = vrot.slane %v6022_v44, 3  ;;  %v3125_v45 = vperm.slane %v3105_v1, 0  ;;  %v3352_v48 = vadd.f32 %v3328_v58, %v3165_v52  ;;  %v6635_v44 = vld [vmem:[#allocation27_spill] sm:$0xff]  ;;  %v6636_v1 = vld [vmem:[#allocation28_spill] sm:$0xff]  ;;  %v2744_v52 = vperm.slane %v2723_v62, 0 }
 0x768   : > { %v2979_v4 = vadd.f32 %v2955_v56, %v2768_v30  ;;  %v3286_v56 = vrot.slane %v6009_v25, 2 }
 0x769   : > { %v6048_v42 = vpop.f32.mrf.mxu2  ;;  %v6055_v50 = vpop.f32.mrf.mxu1  ;;  %v6071_v59 = vmul.f32 %v3125_v45, %v6629_v55  ;;  %v2770_v62 = vmul.f32 %v2744_v52, %v6622_v15 }
 0x76a   : > { %v3491_v5 = vperm.slane %v6048_v42, 0  ;;  %v3679_v22 = vperm.slane %v6055_v50, 0  ;;  %v3473_v32 = vrot.slane %v6048_v42, 1  ;;  %v3661_v58 = vrot.slane %v6055_v50, 1 }
 0x76b   : > { %v3474_v35 = vrot.slane %v6048_v42, 2 }
 0x76c   : > { %v3516_v57 = vmul.f32 %v3491_v5, %v6633_v41  ;;  %v3515_v28 = vmul.f32 %v3491_v5, %v6634_v47  ;;  %v3704_v7 = vmul.f32 %v3679_v22, %v6635_v44  ;;  %v3703_v2 = vmul.f32 %v3679_v22, %v6636_v1 }
 0x76d   : > { %v3492_v6 = vperm.slane %v3473_v32, 0  ;;  %v2931_v5 = vperm.slane %v2912_v11, 0  ;;  %v6082_v32 = vmul.f32 %v3126_v18, %v6630_v39  ;;  %v3680_v33 = vperm.slane %v3661_v58, 0 }
 0x76e   : > { %v3540_v34 = vadd.f32 %v3516_v57, %v3352_v48  ;;  %v3539_v26 = vadd.f32 %v3515_v28, %v3351_v8  ;;  %v6074_v8 = vmul.f32 %v3125_v45, %v6630_v39  ;;  %v3312_v28 = vperm.slane %v3292_v20, 0 }
 0x76f   : > { %v6076_v57 = vperm.slane %v3293_v13, 0  ;;  %v6079_v48 = vmul.f32 %v3126_v18, %v6629_v55  ;;  %6638 = vst [vmem:[#allocation16_spill] sm:$0xff] %v6082_v32  ;;  %v3517_v18 = vmul.f32 %v3492_v6, %v6634_v47  ;;  %v2957_v11 = vmul.f32 %v2931_v5, %v6624_v24 }
 0x770   : > { %v3728_v23 = vadd.f32 %v3704_v7, %v3540_v34  ;;  %v3727_v63 = vadd.f32 %v3703_v2, %v3539_v26  ;;  %v6084_v34 = vperm.slane %v3294_v53, 0  ;;  %v3166_v2 = vadd.f32 %v3142_v12, %v2979_v4 }
 0x771   : > { %6637 = vst [vmem:[#allocation19_spill] sm:$0xff] %v6076_v57  ;;  %v6089_v26 = vmul.f32 %v3127_v54, %v6629_v55  ;;  %v3329_v7 = vmul.f32 %v3304_v37, %v6632_v17  ;;  %v6093_v30 = vpop.f32.mrf.mxu2  ;;  %v3118_v20 = vperm.slane %v3099_v21, 0  ;;  %v6099_v13 = vmul.f32 %v3127_v54, %v6630_v39 }
 0x772   : > { %6639 = vst [vmem:[#allocation25_spill] sm:$0xff] %v6084_v34  ;;  %3969 = vrot.lane.b32.xlu1 %v3728_v23, %s4471_s12  ;;  %3967 = vrot.lane.b32.xlu0 %v3727_v63, %s4471_s12  ;;  %v6102_v4 = vmul.f32 %v3311_v14, %v6632_v17  ;;  %v6105_v53 = vmul.f32 %v3311_v14, %v6631_v38  ;;  %v3662_v32 = vrot.slane %v6055_v50, 2 }
 0x773   : > { %6640 = vst [vmem:[#allocation18_spill] sm:$0xff] %v6089_v26  ;;  %v6108_v45 = vmul.f32 %v3312_v28, %v6632_v17  ;;  %v6111_v22 = vmul.f32 %v3312_v28, %v6631_v38  ;;  %v6115_v12 = vmul.f32 %v6076_v57, %v6632_v17  ;;  %v6119_v54 = vmul.f32 %v6084_v34, %v6632_v17 }
 0x774   : > { %6641 = vst [vmem:[#allocation21_spill] sm:$0xff] %v6099_v13  ;;  %v3353_v58 = vadd.f32 %v3329_v7, %v3166_v2  ;;  %v3705_v21 = vmul.f32 %v3680_v33, %v6636_v1  ;;  %v2981_v28 = vadd.f32 %v2957_v11, %v2770_v62  ;;  %v3144_v16 = vmul.f32 %v3118_v20, %v6629_v55 }
 0x775   : > { %6642 = vst [vmem:[#allocation20_spill] sm:$0xff] %v6119_v54  ;;  %v3305_v13 = vperm.slane %v3286_v56, 0  ;;  %v2769_v2 = vmul.f32 %v6030_v60, %v6623_v49  ;;  %v2956_v7 = vmul.f32 %v6035_v10, %v6625_v46  ;;  %v3143_v62 = vmul.f32 %v6059_v31, %v6630_v39 }
 0x776   : > { %v3541_v3 = vadd.f32 %v3517_v18, %v3353_v58  ;;  %v3168_v23 = vadd.f32 %v3144_v16, %v2981_v28  ;;  %v3493_v11 = vperm.slane %v3474_v35, 0  ;;  %v3681_v56 = vperm.slane %v3662_v32, 0 }
 0x777   : > { %v3331_v63 = vmul.f32 %v3305_v13, %v6632_v17  ;;  %v2980_v58 = vadd.f32 %v2956_v7, %v2769_v2  ;;  %v3330_v60 = vmul.f32 %v3304_v37, %v6631_v38  ;;  %v3518_v34 = vmul.f32 %v3492_v6, %v6633_v41 }
 0x778   : > { %v3729_v14 = vadd.f32 %v3705_v21, %v3541_v3  ;;  %v2771_v10 = vmul.f32 %v2744_v52, %v6623_v49  ;;  %v3519_v16 = vmul.f32 %v3493_v11, %v6634_v47  ;;  %v3706_v21 = vmul.f32 %v3680_v33, %v6635_v44 }
 0x779   : > { %v3355_v61 = vadd.f32 %v3331_v63, %v3168_v23  ;;  %v3167_v3 = vadd.f32 %v3143_v62, %v2980_v58  ;;  %v2958_v31 = vmul.f32 %v2931_v5, %v6625_v46  ;;  %v3707_v35 = vmul.f32 %v3681_v56, %v6636_v1 }
 0x77a   : > { %3971 = vrot.lane.b32.xlu2 %v3729_v14, %s4471_s12  ;;  %v3145_v32 = vmul.f32 %v3118_v20, %v6630_v39  ;;  %v3332_v14 = vmul.f32 %v3305_v13, %v6631_v38  ;;  %v3520_v23 = vmul.f32 %v3493_v11, %v6633_v41  ;;  %v2724_v52 = vrot.slane %v5979_v0, 3 }
 0x77b   : > { %v3543_v37 = vadd.f32 %v3519_v16, %v3355_v61  ;;  %v3354_v63 = vadd.f32 %v3330_v60, %v3167_v3  ;;  %v2982_v6 = vadd.f32 %v2958_v31, %v2771_v10  ;;  %v2913_v28 = vrot.slane %v5981_v51, 3 }
 0x77c   : > { %v3100_v2 = vrot.slane %v5999_v19, 3  ;;  %v3287_v33 = vrot.slane %v6009_v25, 3  ;;  %v3475_v5 = vrot.slane %v6048_v42, 3  ;;  %v2745_v58 = vperm.slane %v2724_v52, 0 }
 0x77d   : > { %v3731_v7 = vadd.f32 %v3707_v35, %v3543_v37  ;;  %v3542_v62 = vadd.f32 %v3518_v34, %v3354_v63  ;;  %v3169_v20 = vadd.f32 %v3145_v32, %v2982_v6  ;;  %v2932_v13 = vperm.slane %v2913_v28, 0 }
 0x77e   : > { %v3119_v18 = vperm.slane %v3100_v2, 0  ;;  %v3306_v11 = vperm.slane %v3287_v33, 0  ;;  %v3494_v61 = vperm.slane %v3475_v5, 0  ;;  %v2773_v16 = vmul.f32 %v2745_v58, %v6623_v49 }
 0x77f   : > { %3975 = vrot.lane.b32.xlu1 %v3731_v7, %s4471_s12  ;;  %v3730_v60 = vadd.f32 %v3706_v21, %v3542_v62  ;;  %v3356_v10 = vadd.f32 %v3332_v14, %v3169_v20  ;;  %v3663_v3 = vrot.slane %v6055_v50, 3  ;;  %v3708_v31 = vmul.f32 %v3681_v56, %v6635_v44 }
 0x780   : > { %v2960_v57 = vmul.f32 %v2932_v13, %v6625_v46  ;;  %v3147_v34 = vmul.f32 %v3119_v18, %v6630_v39  ;;  %v3334_v35 = vmul.f32 %v3306_v11, %v6631_v38  ;;  %v2772_v63 = vmul.f32 %v2745_v58, %v6622_v15 }
 0x781   : > { %3973 = vrot.lane.b32.xlu0 %v3730_v60, %s4471_s12  ;;  %v3544_v32 = vadd.f32 %v3520_v23, %v3356_v10  ;;  %v3682_v37 = vperm.slane %v3663_v3, 0  ;;  %v2959_v21 = vmul.f32 %v2932_v13, %v6624_v24  ;;  %v3522_v6 = vmul.f32 %v3494_v61, %v6633_v41 }
 0x782   : > { %v2984_v14 = vadd.f32 %v2960_v57, %v2773_v16  ;;  %v3146_v52 = vmul.f32 %v3119_v18, %v6629_v55  ;;  %v3333_v56 = vmul.f32 %v3306_v11, %v6632_v17  ;;  %v3521_v5 = vmul.f32 %v3494_v61, %v6634_v47 }
 0x783   : > { %v3732_v28 = vadd.f32 %v3708_v31, %v3544_v32  ;;  %v3710_v2 = vmul.f32 %v3682_v37, %v6635_v44  ;;  %v2983_v33 = vadd.f32 %v2959_v21, %v2772_v63  ;;  %v2725_v23 = vrot.slane %v5979_v0, 4 }
 0x784   : > { %v3171_v7 = vadd.f32 %v3147_v34, %v2984_v14  ;;  %v2914_v62 = vrot.slane %v5981_v51, 4  ;;  %v3101_v20 = vrot.slane %v5999_v19, 4  ;;  %v3288_v18 = vrot.slane %v6009_v25, 4 }
 0x785   : > { %3977 = vrot.lane.b32.xlu2 %v3732_v28, %s4471_s12  ;;  %v3170_v57 = vadd.f32 %v3146_v52, %v2983_v33  ;;  %v3476_v58 = vrot.slane %v6048_v42, 4  ;;  %v3664_v13 = vrot.slane %v6055_v50, 4  ;;  %v2746_v60 = vperm.slane %v2725_v23, 0 }
 0x786   : > { %v3358_v11 = vadd.f32 %v3334_v35, %v3171_v7  ;;  %v2933_v10 = vperm.slane %v2914_v62, 0  ;;  %v3120_v61 = vperm.slane %v3101_v20, 0  ;;  %v3709_v3 = vmul.f32 %v3682_v37, %v6636_v1 }
 0x787   : > { %v3357_v16 = vadd.f32 %v3333_v56, %v3170_v57  ;;  %v3307_v31 = vperm.slane %v3288_v18, 0  ;;  %v3495_v34 = vperm.slane %v3476_v58, 0  ;;  %v2774_v63 = vmul.f32 %v2746_v60, %v6622_v15 }
 0x788   : > { %v3546_v32 = vadd.f32 %v3522_v6, %v3358_v11  ;;  %v2961_v21 = vmul.f32 %v2933_v10, %v6624_v24  ;;  %v3148_v14 = vmul.f32 %v3120_v61, %v6629_v55  ;;  %v3683_v33 = vperm.slane %v3664_v13, 0 }
 0x789   : > { %v3545_v52 = vadd.f32 %v3521_v5, %v3357_v16  ;;  %v3335_v28 = vmul.f32 %v3307_v31, %v6632_v17  ;;  %v3523_v35 = vmul.f32 %v3495_v34, %v6634_v47  ;;  %v2726_v56 = vrot.slane %v5979_v0, 5 }
 0x78a   : > { %v3734_v7 = vadd.f32 %v3710_v2, %v3546_v32  ;;  %v2985_v23 = vadd.f32 %v2961_v21, %v2774_v63  ;;  %v2915_v37 = vrot.slane %v5981_v51, 5  ;;  %v3102_v6 = vrot.slane %v5999_v19, 5 }
 0x78b   : > { %v3733_v62 = vadd.f32 %v3709_v3, %v3545_v52  ;;  %v3289_v20 = vrot.slane %v6009_v25, 5  ;;  %v3477_v57 = vrot.slane %v6048_v42, 5  ;;  %v2747_v18 = vperm.slane %v2726_v56, 0 }
 0x78c   : > { %3981 = vrot.lane.b32.xlu1 %v3734_v7, %s4471_s12  ;;  %v3172_v5 = vadd.f32 %v3148_v14, %v2985_v23  ;;  %v2934_v58 = vperm.slane %v2915_v37, 0  ;;  %v3665_v13 = vrot.slane %v6055_v50, 5  ;;  %v3121_v2 = vperm.slane %v3102_v6, 0 }
 0x78d   : > { %3979 = vrot.lane.b32.xlu0 %v3733_v62, %s4471_s12  ;;  %v3308_v11 = vperm.slane %v3289_v20, 0  ;;  %v3496_v16 = vperm.slane %v3477_v57, 0  ;;  %v2775_v3 = vmul.f32 %v2746_v60, %v6623_v49  ;;  %v2776_v63 = vmul.f32 %v2747_v18, %v6622_v15 }
 0x78e   : > { %v3359_v32 = vadd.f32 %v3335_v28, %v3172_v5  ;;  %v2963_v21 = vmul.f32 %v2934_v58, %v6624_v24  ;;  %v3684_v52 = vperm.slane %v3665_v13, 0  ;;  %v3711_v7 = vmul.f32 %v3683_v33, %v6636_v1 }
 0x78f   : > { %v3150_v14 = vmul.f32 %v3121_v2, %v6629_v55  ;;  %v3337_v23 = vmul.f32 %v3308_v11, %v6632_v17  ;;  %v2962_v56 = vmul.f32 %v2933_v10, %v6625_v46  ;;  %v3525_v6 = vmul.f32 %v3496_v16, %v6634_v47 }
 0x790   : > { %v3547_v37 = vadd.f32 %v3523_v35, %v3359_v32  ;;  %v2987_v62 = vadd.f32 %v2963_v21, %v2776_v63  ;;  %v3149_v60 = vmul.f32 %v3120_v61, %v6630_v39  ;;  %v3713_v28 = vmul.f32 %v3684_v52, %v6636_v1 }
 0x791   : > { %v2986_v20 = vadd.f32 %v2962_v56, %v2775_v3  ;;  %v3336_v57 = vmul.f32 %v3307_v31, %v6631_v38  ;;  %v3524_v5 = vmul.f32 %v3495_v34, %v6633_v41  ;;  %v2777_v26 = vmul.f32 %v2747_v18, %v6623_v49 }
 0x792   : > { %v3735_v13 = vadd.f32 %v3711_v7, %v3547_v37  ;;  %v3174_v54 = vadd.f32 %v3150_v14, %v2987_v62  ;;  %v2964_v9 = vmul.f32 %v2934_v58, %v6625_v46  ;;  %v3712_v35 = vmul.f32 %v3683_v33, %v6635_v44 }
 0x793   : > { %v3173_v10 = vadd.f32 %v3149_v60, %v2986_v20  ;;  %v3151_v32 = vmul.f32 %v3121_v2, %v6630_v39  ;;  %v3338_v61 = vmul.f32 %v3308_v11, %v6631_v38  ;;  %v3526_v31 = vmul.f32 %v3496_v16, %v6633_v41 }
 0x794   : > { %3983 = vrot.lane.b32.xlu2 %v3735_v13, %s4471_s12  ;;  %v3361_v3 = vadd.f32 %v3337_v23, %v3174_v54  ;;  %v2988_v63 = vadd.f32 %v2964_v9, %v2777_v26  ;;  %v2727_v34 = vrot.slane %v5979_v0, 6  ;;  %v2916_v18 = vrot.slane %v5981_v51, 6 }
 0x795   : > { %v3360_v21 = vadd.f32 %v3336_v57, %v3173_v10  ;;  %v3103_v58 = vrot.slane %v5999_v19, 6  ;;  %v3290_v7 = vrot.slane %v6009_v25, 6  ;;  %v3478_v11 = vrot.slane %v6048_v42, 6 }
 0x796   : > { %v3549_v33 = vadd.f32 %v3525_v6, %v3361_v3  ;;  %v3175_v14 = vadd.f32 %v3151_v32, %v2988_v63  ;;  %v2748_v2 = vperm.slane %v2727_v34, 0  ;;  %v2935_v37 = vperm.slane %v2916_v18, 0 }
 0x797   : > { %v3548_v56 = vadd.f32 %v3524_v5, %v3360_v21  ;;  %v3122_v54 = vperm.slane %v3103_v58, 0  ;;  %v3309_v9 = vperm.slane %v3290_v7, 0  ;;  %v3497_v62 = vperm.slane %v3478_v11, 0 }
 0x798   : > { %v3737_v26 = vadd.f32 %v3713_v28, %v3549_v33  ;;  %v3362_v16 = vadd.f32 %v3338_v61, %v3175_v14  ;;  %v2779_v23 = vmul.f32 %v2748_v2, %v6623_v49  ;;  %v3714_v20 = vmul.f32 %v3684_v52, %v6635_v44 }
 0x799   : > { %v3736_v60 = vadd.f32 %v3712_v35, %v3548_v56  ;;  %v2966_v57 = vmul.f32 %v2935_v37, %v6625_v46  ;;  %v3153_v6 = vmul.f32 %v3122_v54, %v6630_v39  ;;  %v3340_v5 = vmul.f32 %v3309_v9, %v6631_v38 }
 0x79a   : > { %3987 = vrot.lane.b32.xlu1 %v3737_v26, %s4471_s12  ;;  %v3550_v13 = vadd.f32 %v3526_v31, %v3362_v16  ;;  %v3666_v10 = vrot.slane %v6055_v50, 6  ;;  %v2778_v28 = vmul.f32 %v2748_v2, %v6622_v15  ;;  %v3528_v35 = vmul.f32 %v3497_v62, %v6633_v41  ;;  %v6235_v16 = vpop.f32.mrf.mxu1 }
 0x79b   : > { %3985 = vrot.lane.b32.xlu0 %v3736_v60, %s4471_s12  ;;  %v2990_v32 = vadd.f32 %v2966_v57, %v2779_v23  ;;  %v2965_v52 = vmul.f32 %v2935_v37, %v6624_v24  ;;  %v3152_v61 = vmul.f32 %v3122_v54, %v6629_v55  ;;  %v3339_v34 = vmul.f32 %v3309_v9, %v6632_v17 }
 0x79c   : > { %v3738_v3 = vadd.f32 %v3714_v20, %v3550_v13  ;;  %v3685_v63 = vperm.slane %v3666_v10, 0  ;;  %v2728_v31 = vrot.slane %v5979_v0, 7  ;;  %v2917_v58 = vrot.slane %v5981_v51, 7 }
 0x79d   : > { %v3177_v21 = vadd.f32 %v3153_v6, %v2990_v32  ;;  %v2989_v18 = vadd.f32 %v2965_v52, %v2778_v28  ;;  %v3104_v7 = vrot.slane %v5999_v19, 7  ;;  %v3527_v14 = vmul.f32 %v3497_v62, %v6634_v47 }
 0x79e   : > { %3989 = vrot.lane.b32.xlu2 %v3738_v3, %s4471_s12  ;;  %v3716_v33 = vmul.f32 %v3685_v63, %v6635_v44  ;;  %v2749_v2 = vperm.slane %v2728_v31, 0  ;;  %v3291_v11 = vrot.slane %v6009_v25, 7  ;;  %v2936_v54 = vperm.slane %v2917_v58, 0 }
 0x79f   : > { %v3364_v56 = vadd.f32 %v3340_v5, %v3177_v21  ;;  %v3176_v37 = vadd.f32 %v3152_v61, %v2989_v18  ;;  %v3123_v9 = vperm.slane %v3104_v7, 0  ;;  %v3479_v51 = vrot.slane %v6048_v42, 7 }
 0x7a0   : > { %v2780_v0 = vmul.f32 %v2749_v2, %v6622_v15  ;;  %v3310_v26 = vperm.slane %v3291_v11, 0  ;;  %v3667_v19 = vrot.slane %v6055_v50, 7  ;;  %v2967_v62 = vmul.f32 %v2936_v54, %v6624_v24 }
 0x7a1   : > { %v3552_v23 = vadd.f32 %v3528_v35, %v3364_v56  ;;  %v3363_v60 = vadd.f32 %v3339_v34, %v3176_v37  ;;  %v3154_v20 = vmul.f32 %v3123_v9, %v6629_v55  ;;  %v6643_v25 = vperm.slane %v6093_v30, 0  ;;  %v6646_v56 = vld [vmem:[#allocation18_spill] sm:$0xff] }
 0x7a2   : > { %v3715_v6 = vmul.f32 %v3685_v63, %v6636_v1  ;;  %v3498_v15 = vperm.slane %v3479_v51, 0  ;;  %v3367_v42 = vadd.f32 %v6102_v4, %v6039_v36  ;;  %v2991_v5 = vadd.f32 %v2967_v62, %v2780_v0  ;;  %v6652_v62 = vld [vmem:[#allocation16_spill] sm:$0xff] }
 0x7a3   : > { %v3531_v57 = vmul.f32 %v6643_v25, %v6634_v47  ;;  %v3740_v13 = vadd.f32 %v3716_v33, %v3552_v23  ;;  %v3551_v50 = vadd.f32 %v3527_v14, %v3363_v60  ;;  %v2781_v10 = vmul.f32 %v2749_v2, %v6623_v49  ;;  %v6651_v60 = vld [vmem:[#allocation17_spill] sm:$0xff] }
 0x7a4   : > { %v3687_v28 = vperm.slane %v6235_v16, 0  ;;  %v3341_v24 = vmul.f32 %v3310_v26, %v6632_v17  ;;  %v3686_v55 = vperm.slane %v3667_v19, 0  ;;  %v2968_v32 = vmul.f32 %v2936_v54, %v6625_v46 }
 0x7a5   : > { %3993 = vrot.lane.b32.xlu1 %v3740_v13, %s4471_s12  ;;  %v3739_v35 = vadd.f32 %v3715_v6, %v3551_v50  ;;  %v3178_v52 = vadd.f32 %v3154_v20, %v2991_v5  ;;  %v3529_v61 = vmul.f32 %v3498_v15, %v6634_v47  ;;  %v3155_v36 = vmul.f32 %v3123_v9, %v6630_v39 }
 0x7a6   : > { %v6644_v4 = vrot.slane %v6093_v30, 1  ;;  %v3668_v49 = vrot.slane %v6235_v16, 1  ;;  %v3555_v63 = vadd.f32 %v3531_v57, %v3367_v42  ;;  %v2992_v34 = vadd.f32 %v2968_v32, %v2781_v10  ;;  %v6655_v10 = vld [vmem:[#allocation22_spill] sm:$0xff] }
 0x7a7   : > { %3991 = vrot.lane.b32.xlu0 %v3739_v35, %s4471_s12  ;;  %v3365_v17 = vadd.f32 %v3341_v24, %v3178_v52  ;;  %v3342_v46 = vmul.f32 %v3310_v26, %v6631_v38  ;;  %v3368_v31 = vadd.f32 %v6105_v53, %v6041_v43  ;;  %v3183_v21 = vadd.f32 %v6074_v8, %v6003_v29  ;;  %v6645_v8 = vld [vmem:[#allocation14_spill] sm:$0xff]  ;;  %v6656_v24 = vld [vmem:[#allocation21_spill] sm:$0xff] }
 0x7a8   : > { %v3500_v3 = vperm.slane %v6644_v4, 0  ;;  %v3179_v18 = vadd.f32 %v3155_v36, %v2992_v34  ;;  %v3530_v39 = vmul.f32 %v3498_v15, %v6633_v41  ;;  %v3182_v58 = vadd.f32 %v6071_v59, %v6001_v40 }
 0x7a9   : > { %v3184_v7 = vadd.f32 %v6079_v48, %v6005_v27  ;;  %v3719_v33 = vmul.f32 %v3687_v28, %v6636_v1  ;;  %v3553_v14 = vadd.f32 %v3529_v61, %v3365_v17  ;;  %v3717_v2 = vmul.f32 %v3686_v55, %v6636_v1 }
 0x7aa   : > { %v3370_v11 = vadd.f32 %v6111_v22, %v3183_v21  ;;  %v3366_v43 = vadd.f32 %v3342_v46, %v3179_v18  ;;  %v3369_v53 = vadd.f32 %v6108_v45, %v3182_v58  ;;  %v3186_v37 = vadd.f32 %v6646_v56, %v6645_v8  ;;  %v6648_v22 = vld [vmem:[#allocation20_spill] sm:$0xff]  ;;  %v6649_v45 = vld [vmem:[#allocation19_spill] sm:$0xff] }
 0x7ab   : > { %v3371_v29 = vadd.f32 %v6115_v12, %v3184_v7  ;;  %v6647_v40 = vmov %v6643_v25  ;;  %v3534_v27 = vmul.f32 %v3500_v3, %v6633_v41  ;;  %v3741_v48 = vadd.f32 %v3717_v2, %v3553_v14  ;;  %v6650_v12 = vld [vmem:[#allocation25_spill] sm:$0xff] }
 0x7ac   : > { %v3532_v59 = vmul.f32 %v6647_v40, %v6633_v41  ;;  %v3743_v54 = vadd.f32 %v3719_v33, %v3555_v63  ;;  %v3554_v9 = vadd.f32 %v3530_v39, %v3366_v43  ;;  %v3718_v0 = vmul.f32 %v3686_v55, %v6635_v44  ;;  %v6330_v40 = vpop.permute.xlu0 %3913 }
 0x7ad   : > { %v3373_v26 = vadd.f32 %v6648_v22, %v3186_v37  ;;  %v3348_v51 = vmul.f32 %v6649_v45, %v6631_v38  ;;  %v3350_v19 = vmul.f32 %v6650_v12, %v6631_v38  ;;  %v3688_v23 = vperm.slane %v3668_v49, 0  ;;  %3995 = vrot.lane.b32.xlu2 %v3741_v48, %s4471_s12  ;;  %v6328_v37 = vpop.permute.xlu1 %3915  ;;  %v6660_v48 = vld [vmem:[#allocation29_spill] sm:$0xff] }
 0x7ae   : > { %3999 = vrot.lane.b32.xlu1 %v3743_v54, %s4471_s12  ;;  %v3185_v20 = vadd.f32 %v6652_v62, %v6651_v60  ;;  %v6653_v25 = vrot.slane %v6093_v30, 2  ;;  %v6654_v6 = vrot.slane %v6093_v30, 3  ;;  %v3533_v42 = vmul.f32 %v3500_v3, %v6634_v47  ;;  %v6664_v62 = vld [vmem:[#allocation41_spill] sm:$0xff] }
 0x7af   : > { %v3742_v13 = vadd.f32 %v3718_v0, %v3554_v9  ;;  %v3556_v50 = vadd.f32 %v3532_v59, %v3368_v31  ;;  %v3558_v5 = vadd.f32 %v3534_v27, %v3370_v11  ;;  %v3187_v55 = vadd.f32 %v6656_v24, %v6655_v10  ;;  %v6659_v27 = vld [vmem:[#allocation42_spill] sm:$0xff]  ;;  %v6661_v9 = vld [vmem:[#allocation43_spill] sm:$0xff]  ;;  %v6668_v24 = vld [vmem:[#allocation33_spill] sm:$0xff] }
 0x7b0   : > { %v3501_v57 = vperm.slane %v6653_v25, 0  ;;  %v3502_v15 = vperm.slane %v6654_v6, 0  ;;  %v3372_v38 = vadd.f32 %v3348_v51, %v3185_v20  ;;  %v3669_v32 = vrot.slane %v6235_v16, 2  ;;  %v6662_v0 = vld [vmem:[#allocation23_spill] sm:$0xff] }
 0x7b1   : > { %3997 = vrot.lane.b32.xlu0 %v3742_v13, %s4471_s12  ;;  %v3670_v35 = vrot.slane %v6235_v16, 3  ;;  %v3720_v52 = vmul.f32 %v3687_v28, %v6635_v44  ;;  %v3722_v30 = vmul.f32 %v3688_v23, %v6635_v44  ;;  %v3374_v61 = vadd.f32 %v3350_v19, %v3187_v55 }
 0x7b2   : > { %v3557_v36 = vadd.f32 %v3533_v42, %v3369_v53  ;;  %v3535_v4 = vmul.f32 %v3501_v57, %v6634_v47  ;;  %v3537_v3 = vmul.f32 %v3502_v15, %v6634_v47  ;;  %v3721_v34 = vmul.f32 %v3688_v23, %v6636_v1  ;;  %v6666_v42 = vld [vmem:[#allocation30_spill] sm:$0xff] }
 0x7b3   : > { %v3744_v49 = vadd.f32 %v3720_v52, %v3556_v50  ;;  %v3746_v63 = vadd.f32 %v3722_v30, %v3558_v5  ;;  %v3689_v17 = vperm.slane %v3669_v32, 0  ;;  %v3690_v46 = vperm.slane %v3670_v35, 0  ;;  %v6667_v5 = vld [vmem:[#allocation44_spill] sm:$0xff] }
 0x7b4   : > { %v3536_v16 = vmul.f32 %v3501_v57, %v6633_v41  ;;  %v3745_v28 = vadd.f32 %v3721_v34, %v3557_v36  ;;  %v3559_v31 = vadd.f32 %v3535_v4, %v3371_v29  ;;  %v3561_v21 = vadd.f32 %v3537_v3, %v3373_v26  ;;  %v6658_v29 = vld [vmem:[#allocation26_spill] sm:$0xff]  ;;  %v6665_v57 = vld [vmem:[#allocation31_spill] sm:$0xff]  ;;  %v6669_v35 = vld [vmem:[#allocation32_spill] sm:$0xff] }
 0x7b5   : > { %4001 = vrot.lane.b32.xlu2 %v3744_v49, %s4471_s12  ;;  %v3723_v18 = vmul.f32 %v3689_v17, %v6636_v1  ;;  %v3725_v47 = vmul.f32 %v3690_v46, %v6636_v1  ;;  %v3538_v58 = vmul.f32 %v3502_v15, %v6633_v41  ;;  %v3724_v14 = vmul.f32 %v3689_v17, %v6635_v44  ;;  %v3918_v1 = vpop.permute.xlu2 %3917  ;;  %v6657_v41 = vld [vmem:[#allocation37_spill] sm:$0xff]  ;;  %v6663_v26 = vld [vmem:[#allocation38_spill] sm:$0xff]  ;;  %v6672_v34 = vld [vmem:[#allocation35_spill] sm:$0xff] }
 0x7b6   : > { %4005 = vrot.lane.b32.xlu1 %v3746_v63, %s4471_s12  ;;  %v3560_v39 = vadd.f32 %v3536_v16, %v3372_v38  ;;  %v3726_v43 = vmul.f32 %v3690_v46, %v6635_v44  ;;  %v4066_v8 = vsel %vm4063_vm0, %v6658_v29, %v6657_v41  ;;  %v4065_v54 = vsel %vm4063_vm0, %v6660_v48, %v6659_v27  ;;  %v6671_v3 = vld [vmem:[#allocation5_spill] sm:$0xff]  ;;  %v6673_v16 = vld [vmem:[#allocation3_spill] sm:$0xff] }
 0x7b7   : > { %v3747_v7 = vadd.f32 %v3723_v18, %v3559_v31  ;;  %v3749_v33 = vadd.f32 %v3725_v47, %v3561_v21  ;;  %v3562_v11 = vadd.f32 %v3538_v58, %v3374_v61  ;;  %v4064_v22 = vsel %vm4063_vm0, %v6662_v0, %v6661_v9  ;;  %v6670_v61 = vld [vmem:[#allocation34_spill] sm:$0xff]  ;;  %v6674_v18 = vld [vmem:[#allocation11_spill] sm:$0xff] }
 0x7b8   : > { %v3748_v2 = vadd.f32 %v3724_v14, %v3560_v39  ;;  %v6675_v39 = vld [vmem:[#allocation4_spill] sm:$0xff] }
 0x7b9   : > { %4003 = vrot.lane.b32.xlu0 %v3745_v28, %s4471_s12  ;;  %v3750_v53 = vadd.f32 %v3726_v43, %v3562_v11  ;;  %v6678_v11 = vld [vmem:[#allocation9_spill] sm:$0xff] }
 0x7bd   : > { %4007 = vrot.lane.b32.xlu2 %v3747_v7, %s4471_s12 }
 0x7be   : > { %4011 = vrot.lane.b32.xlu1 %v3749_v33, %s4471_s12  ;;  %v6676_v33 = vld [vmem:[#allocation6_spill] sm:$0xff] }
 0x7c1   : > { %4009 = vrot.lane.b32.xlu0 %v3748_v2, %s4471_s12  ;;  %v6677_v2 = vld [vmem:[#allocation15_spill] sm:$0xff] }
 0x7c2   : > { %v815_v43 = vmul.f32 %v6678_v11, %v6677_v2 }
 0x7c5   : > { %4013 = vrot.lane.b32.xlu2 %v3750_v53, %s4471_s12  ;;  %v6679_v53 = vld [vmem:[#allocation36_spill] sm:$0xff] }
 0x7c6   : > { %v4062_v41 = vsel %vm1180_vm13, %v815_v43, %v6679_v53 }
 0x7c7   : > { %v4087_v29 = vsel %vm4063_vm0, %v4062_v41, %v3918_v1  ;;  %v6682_v1 = vld [vmem:[#allocation7_spill] sm:$0xff] }
 0x7d4   : > { %v3972_v56 = vpop.permute.xlu2 %3971 }
 0x7d5   : > { %v4090_v44 = vsel %vm2683_vm2, %v4066_v8, %v3972_v56 }
 0x7d6   : > { %4115 = vst.msk [vmem:[%s6320_s15 + $0x10] sm:$0xff] %vm683_vm9, %v4090_v44 }
 0x7df   : > { %v3978_v59 = vpop.permute.xlu2 %3977 }
 0x7e0   : > { %v4093_v45 = vsel %vm2683_vm2, %v6663_v26, %v3978_v59  ;;  %v6680_v59 = vld [vmem:[#allocation10_spill] sm:$0xff] }
 0x7e1   : > { %4118 = vst.msk [vmem:[%s6320_s15 + $0x28] sm:$0xf] %vm4113_vm3, %v4093_v45  ;;  %v6683_v45 = vld [vmem:[#allocation12_spill] sm:$0xff] }
 0x7e4   : > { %v3970_v51 = vpop.permute.xlu1 %3969  ;;  %v3968_v12 = vpop.permute.xlu0 %3967 }
 0x7e5   : > { %v4089_v19 = vsel %vm2683_vm2, %v4065_v54, %v3970_v51  ;;  %v4088_v23 = vsel %vm2683_vm2, %v4064_v22, %v3968_v12  ;;  %v6681_v54 = vld [vmem:[#allocation2_spill] sm:$0xff]  ;;  %v6684_v12 = vld [vmem:[#allocation40_spill] sm:$0xff] }
 0x7e6   : > { %4114 = vst.msk [vmem:[%s6320_s15 + $0x8] sm:$0xf] %vm4113_vm3, %v4089_v19  ;;  %v6685_v19 = vld [vmem:[#allocation13_spill] sm:$0xff] }
 0x7e7   : > { %4112 = vst.msk [vmem:[%s6320_s15] sm:$0xff] %vm683_vm9, %v4088_v23  ;;  %v4061_v23 = vsel %vm1180_vm13, %v6685_v19, %v6684_v12 }
 0x7ee   : > { %v3984_v60 = vpop.permute.xlu2 %3983 }
 0x7ef   : > { %v4096_v20 = vsel %vm2683_vm2, %v6664_v62, %v3984_v60  ;;  %v6686_v60 = vld [vmem:[#allocation8_spill] sm:$0xff] }
 0x7f0   : > { %4121 = vst.msk [vmem:[%s6320_s15 + $0x40] sm:$0xff] %vm683_vm9, %v4096_v20  ;;  %v813_v62 = vmul.f32 %v6686_v60, %v6677_v2  ;;  %v4086_v20 = vsel %vm4063_vm0, %v4061_v23, %v6328_v37 }
 0x7f1   : > { %v3976_v25 = vpop.permute.xlu1 %3975 }
 0x7f2   : > { %v4092_v6 = vsel %vm2683_vm2, %v6665_v57, %v3976_v25 }
 0x7f3   : > { %4117 = vst.msk [vmem:[%s6320_s15 + $0x20] sm:$0xff] %vm683_vm9, %v4092_v6  ;;  %v3974_v15 = vpop.permute.xlu0 %3973  ;;  %v6687_v6 = vld [vmem:[#allocation39_spill] sm:$0xff] }
 0x7f4   : > { %v4091_v13 = vsel %vm2683_vm2, %v6666_v42, %v3974_v15  ;;  %v4060_v15 = vsel %vm1180_vm13, %v813_v62, %v6687_v6 }
 0x7f5   : > { %4116 = vst.msk [vmem:[%s6320_s15 + $0x18] sm:$0xf] %vm4113_vm3, %v4091_v13  ;;  %v4085_v42 = vsel %vm4063_vm0, %v4060_v15, %v6330_v40 }
 0x7f8   : > { %v3990_v50 = vpop.permute.xlu2 %3989 }
 0x7f9   : > { %v4099_v38 = vsel %vm2683_vm2, %v6667_v5, %v3990_v50 }
 0x7fa   : > { %4124 = vst.msk [vmem:[%s6320_s15 + $0x58] sm:$0xf] %vm4113_vm3, %v4099_v38 }
 0x7fe   : > { %v3982_v10 = vpop.permute.xlu1 %3981 }
 0x7ff   : > { %v4095_v55 = vsel %vm2683_vm2, %v6668_v24, %v3982_v10  ;;  %v3980_v32 = vpop.permute.xlu0 %3979 }
 0x800   : > { %4120 = vst.msk [vmem:[%s6320_s15 + $0x38] sm:$0xf] %vm4113_vm3, %v4095_v55  ;;  %v4094_v52 = vsel %vm2683_vm2, %v6669_v35, %v3980_v32 }
 0x801   : > { %4119 = vst.msk [vmem:[%s6320_s15 + $0x30] sm:$0xff] %vm683_vm9, %v4094_v52 }
 0x807   : > { %v3996_v30 = vpop.permute.xlu2 %3995 }
 0x808   : > { %v4102_v36 = vsel %vm2683_vm2, %v6670_v61, %v3996_v30 }
 0x809   : > { %4127 = vst.msk [vmem:[%s6320_s15 + $0x70] sm:$0xff] %vm683_vm9, %v4102_v36 }
 0x80c   : > { %v3988_v4 = vpop.permute.xlu1 %3987 }
 0x80d   : > { %v4098_v49 = vsel %vm2683_vm2, %v6671_v3, %v3988_v4  ;;  %v3986_v63 = vpop.permute.xlu0 %3985 }
 0x80e   : > { %4123 = vst.msk [vmem:[%s6320_s15 + $0x50] sm:$0xff] %vm683_vm9, %v4098_v49  ;;  %v4097_v17 = vsel %vm2683_vm2, %v6672_v34, %v3986_v63 }
 0x80f   : > { %v4002_v46 = vpop.permute.xlu2 %4001  ;;  %4122 = vst.msk [vmem:[%s6320_s15 + $0x48] sm:$0xf] %vm4113_vm3, %v4097_v17 }
 0x810   : > { %v4105_v28 = vsel %vm2683_vm2, %v6673_v16, %v4002_v46 }
 0x811   : > { %4130 = vst.msk [vmem:[%s6320_s15 + $0x88] sm:$0xf] %vm4113_vm3, %v4105_v28 }
 0x817   : > { %v4008_v31 = vpop.permute.xlu2 %4007  ;;  %v3994_v21 = vpop.permute.xlu1 %3993 }
 0x818   : > { %v4108_v47 = vsel %vm2683_vm2, %v6674_v18, %v4008_v31  ;;  %v4101_v58 = vsel %vm2683_vm2, %v6675_v39, %v3994_v21 }
 0x819   : > { %4133 = vst.msk [vmem:[%s6320_s15 + $0xa0] sm:$0xff] %vm683_vm9, %v4108_v47  ;;  %v3992_v7 = vpop.permute.xlu0 %3991 }
 0x81a   : > { %4126 = vst.msk [vmem:[%s6320_s15 + $0x68] sm:$0xf] %vm4113_vm3, %v4101_v58  ;;  %v4100_v14 = vsel %vm2683_vm2, %v6676_v33, %v3992_v7 }
 0x81b   : > { %4125 = vst.msk [vmem:[%s6320_s15 + $0x60] sm:$0xff] %vm683_vm9, %v4100_v14 }
 0x81f   : > { %v4014_v8 = vpop.permute.xlu2 %4013 }
 0x820   : > { %v4000_v56 = vpop.permute.xlu1 %3999  ;;  %v4111_v44 = vsel %vm2683_vm2, %v4087_v29, %v4014_v8 }
 0x821   : > { %v4104_v27 = vsel %vm2683_vm2, %v6680_v59, %v4000_v56  ;;  %4136 = vst.msk [vmem:[%s6320_s15 + $0xb8] sm:$0xf] %vm4113_vm3, %v4111_v44 }
 0x822   : > { %4129 = vst.msk [vmem:[%s6320_s15 + $0x80] sm:$0xff] %vm683_vm9, %v4104_v27 }
 0x823   : > { %v3998_v48 = vpop.permute.xlu0 %3997 }
 0x824   : > { %v4103_v9 = vsel %vm2683_vm2, %v6681_v54, %v3998_v48 }
 0x825   : > { %4128 = vst.msk [vmem:[%s6320_s15 + $0x78] sm:$0xf] %vm4113_vm3, %v4103_v9 }
 0x828   : > { %v4006_v0 = vpop.permute.xlu1 %4005 }
 0x829   : > { %v4107_v22 = vsel %vm2683_vm2, %v6682_v1, %v4006_v0 }
 0x82a   : > { %4132 = vst.msk [vmem:[%s6320_s15 + $0x98] sm:$0xf] %vm4113_vm3, %v4107_v22 }
 0x82b   : > { %v4004_v26 = vpop.permute.xlu0 %4003 }
 0x82c   : > { %v4106_v51 = vsel %vm2683_vm2, %v6683_v45, %v4004_v26 }
 0x82d   : > { %4131 = vst.msk [vmem:[%s6320_s15 + $0x90] sm:$0xff] %vm683_vm9, %v4106_v51 }
 0x830   : > { %v4012_v25 = vpop.permute.xlu1 %4011 }
 0x831   : > { %v4110_v57 = vsel %vm2683_vm2, %v4086_v20, %v4012_v25 }
 0x832   : > { %4135 = vst.msk [vmem:[%s6320_s15 + $0xb0] sm:$0xff] %vm683_vm9, %v4110_v57 }
 0x833   : > { %v4010_v13 = vpop.permute.xlu0 %4009 }
 0x834   : > { %v4109_v50 = vsel %vm2683_vm2, %v4085_v42, %v4010_v13 }
 0x835   : > { %4134 = vst.msk [vmem:[%s6320_s15 + $0xa8] sm:$0xf] %vm4113_vm3, %v4109_v50 }
 0x836 PF: > { %s18_s27 = sadd.s32 1, %s4461_s27  }
 0x837   : > { %p15_p4 = scmp.ge.s32.totalorder %s18_s27, 4  }
 0x839   :  { %17 = sbr.rel (!%p15_p4) target bundleno = 1 (0x1), region = 97 }

// kernel: psp_module_forward.3
= control target key start
LH: loop header
LB: loop body
LE: loop exit
PB: predicated region body
PF: predicated region fallthrough
CT: control target
= control target key end

     0   :  { %s5382_s21 = smov 0   ;;  %s7739_s0 = inlined_call_operand.vmem [shape: f32[2,12,12,8], index: 0, kind: input, shape index: {}]   ;;  %s7740_s1 = inlined_call_operand.vmem [shape: f32[2,12,12,8], index: 1, kind: input, shape index: {}]   ;;  %s7741_s2 = inlined_call_operand.vmem [shape: f32[72,2], index: 2, kind: input, shape index: {}]   ;;  %s7742_s3 = inlined_call_operand.vmem [shape: f32[72,2], index: 3, kind: input, shape index: {}]   ;;  %s7743_s4 = inlined_call_operand.vmem [shape: f32[1,2], index: 4, kind: input, shape index: {}]   ;;  %s7744_s5 = inlined_call_operand.vmem [shape: f32[1,2], index: 5, kind: input, shape index: {}]   ;;  %s7745_s6 = inlined_call_operand.vmem [shape: f32[2,144,2], index: 6, kind: output, shape index: {}]  }
   0x1 LB: > { %s4989_s22 = sadd.s32 4294967295, %s5344_s21   ;;  %p4993_p0 = scmp.ge.s32.totalorder %s5344_s21, 1  ;;  %s5344_s21 = sphi %s5382_s21, %s16_s21  }
   0x2   : > { %p222_p1 = scmp.lt.s32.totalorder %s5344_s21, 3 }
   0x4   : > { %p223_p2 = pnand %p4993_p0, %p222_p1 }
   0x6   : > { %226 = sbr.rel (%p223_p2) target bundleno = 1238 (0x4d6), region = 44 }
   0xb   : > { %v550_v0 = vld [vmem:[%s7742_s3] sm:$0xff]  ;;  %p257_p3 = scmp.lt.s32.totalorder %s4989_s22, 1  ;;  %vm272_vm0 = vcmask 64512   ;;  %vm274_vm1 = vcmask 62464   ;;  %v5346_v1 = vmov 0.0   ;;  %vm356_vm2 = vcmask 60416  }
   0xc   : > { %5323 = vmatpush.msra.mxu2 %v550_v0  ;;  %303 = vst.msk [vmem:[#allocation3 + $0x8] sm:$0x3f] %vm274_vm1, %v5346_v1  ;;  %663 = vmatpush.msra.mxu0 %v550_v0  ;;  %vm4903_vm3 = vcmask 15360  }
   0xd   : > { %s8109_s22 = smov (!%p257_p3, %s4989_s22), 1  ;;  %304 = vst.msk [vmem:[#allocation3 + $0x10] sm:$0xff] %vm272_vm0, %v5346_v1 }
   0xe   : > { %305 = vst.msk [vmem:[#allocation3 + $0x18] sm:$0x3f] %vm274_vm1, %v5346_v1  ;;  %s5325_s25 = smul.u32 192, %s8109_s22 }
   0xf   : > { %308 = vst.msk [vmem:[#allocation3 + $0x30] sm:$0xff] %vm272_vm0, %v5346_v1  ;;  %s5326_s26 = smul.u32 144, %s8109_s22 }
  0x10   : > { %309 = vst.msk [vmem:[#allocation3 + $0x38] sm:$0x3f] %vm274_vm1, %v5346_v1  ;;  %s5411_s28 = scalar_lea.vmem %s7740_s1, %s5325_s25  ;;  %s5542_s7 = scalar_lea.vmem %s7739_s0, %s5325_s25 }
  0x11   : > { %314 = vst.msk [vmem:[#allocation3 + $0x60] sm:$0xff] %vm272_vm0, %v5346_v1  ;;  %v380_v2 = vld [vmem:[%s5411_s28] sm:$0xff]  ;;  %v385_v4 = vld [vmem:[%s5411_s28 + $0x28] sm:$0xf]  ;;  %v390_v5 = vld [vmem:[%s5411_s28 + $0x50] sm:$0xff] }
  0x12   : > { %315 = vst.msk [vmem:[#allocation3 + $0x68] sm:$0x3f] %vm274_vm1, %v5346_v1  ;;  %v384_v3 = vld [vmem:[%s5411_s28 + $0x20] sm:$0xff]  ;;  %v381_v16 = vld [vmem:[%s5411_s28 + $0x8] sm:$0xf]  ;;  %v386_v17 = vld [vmem:[%s5411_s28 + $0x30] sm:$0xff] }
  0x13   : > { %405 = vst.msk [vmem:[#allocation3 + $0x11] sm:$0xff] %vm272_vm0, %v380_v2  ;;  %v490_v6 = vld [vmem:[#allocation3 + $0x8] sm:$0xf]  ;;  %v391_v18 = vld [vmem:[%s5411_s28 + $0x58] sm:$0xf]  ;;  %v392_v19 = vld [vmem:[%s5411_s28 + $0x60] sm:$0xff] }
  0x14   : > { %409 = vst.msk [vmem:[#allocation3 + $0x31] sm:$0xff] %vm272_vm0, %v384_v3  ;;  %v330_v21 = vld [vmem:[%s5542_s7] sm:$0xff]  ;;  %v335_v23 = vld [vmem:[%s5542_s7 + $0x28] sm:$0xf]  ;;  %v340_v24 = vld [vmem:[%s5542_s7 + $0x50] sm:$0xff] }
  0x15   : > { %410 = vst.msk [vmem:[#allocation3 + $0x39] sm:$0xf] %vm356_vm2, %v385_v4  ;;  %v334_v22 = vld [vmem:[%s5542_s7 + $0x20] sm:$0xff]  ;;  %v382_v27 = vld [vmem:[%s5411_s28 + $0x10] sm:$0xff]  ;;  %v383_v28 = vld [vmem:[%s5411_s28 + $0x18] sm:$0xf] }
  0x16   : > { %415 = vst.msk [vmem:[#allocation3 + $0x61] sm:$0xff] %vm272_vm0, %v390_v5  ;;  %v346_v26 = vld [vmem:[%s5542_s7 + $0x80] sm:$0xff]  ;;  %v387_v30 = vld [vmem:[%s5411_s28 + $0x38] sm:$0xf]  ;;  %v389_v32 = vld [vmem:[%s5411_s28 + $0x48] sm:$0xf] }
  0x17   : > { %555 = vst [vmem:[#allocation1 + $0x10] ss:$2 sm:$0xff] %v490_v6  ;;  %v388_v31 = vld [vmem:[%s5411_s28 + $0x40] sm:$0xff]  ;;  %v393_v34 = vld [vmem:[%s5411_s28 + $0x68] sm:$0xf]  ;;  %v394_v36 = vld [vmem:[%s5411_s28 + $0x70] sm:$0xff] }
  0x18   : > { %273 = vst.msk [vmem:[#allocation2] sm:$0xff] %vm272_vm0, %v5346_v1  ;;  %v395_v37 = vld [vmem:[%s5411_s28 + $0x78] sm:$0xf]  ;;  %v396_v38 = vld [vmem:[%s5411_s28 + $0x80] sm:$0xff]  ;;  %v401_v40 = vld [vmem:[%s5411_s28 + $0xa8] sm:$0xf] }
  0x19   : > { %275 = vst.msk [vmem:[#allocation2 + $0x8] sm:$0x3f] %vm274_vm1, %v5346_v1  ;;  %v400_v39 = vld [vmem:[%s5411_s28 + $0xa0] sm:$0xff]  ;;  %v398_v50 = vld [vmem:[%s5411_s28 + $0x90] sm:$0xff]  ;;  %v399_v51 = vld [vmem:[%s5411_s28 + $0x98] sm:$0xf] }
  0x1a   : > { %v5429_v7 = vld [vmem:[#allocation3 + $0x10] sm:$0xff]  ;;  %276 = vst.msk [vmem:[#allocation2 + $0x10] sm:$0xff] %vm272_vm0, %v5346_v1  ;;  %v397_v61 = vld [vmem:[%s5411_s28 + $0x88] sm:$0xf]  ;;  %v332_v63 = vld [vmem:[%s5542_s7 + $0x10] sm:$0xff] }
  0x1b   : > { %557 = vst [vmem:[#allocation1 + $0x11] ss:$2 sm:$0xff] %v5429_v7  ;;  %v5438_v8 = vld [vmem:[#allocation3 + $0x30] sm:$0xff]  ;;  %v538_v20 = vrot.slane %v5429_v7, 4 }
  0x1c   : > { %277 = vst.msk [vmem:[#allocation2 + $0x18] sm:$0x3f] %vm274_vm1, %v5346_v1  ;;  %v540_v9 = vrot.slane %v5438_v8, 4  ;;  %v496_v10 = vld [vmem:[#allocation3 + $0x38] sm:$0xf] }
  0x1d   : > { %278 = vst.msk [vmem:[#allocation2 + $0x20] sm:$0xff] %vm272_vm0, %v5346_v1  ;;  %v501_v12 = vld [vmem:[#allocation3 + $0x60] sm:$0xff] }
  0x1e   : > { %279 = vst.msk [vmem:[#allocation2 + $0x28] sm:$0x3f] %vm274_vm1, %v5346_v1  ;;  %v543_v13 = vrot.slane %v501_v12, 4 }
  0x1f   : > { %280 = vst.msk [vmem:[#allocation2 + $0x30] sm:$0xff] %vm272_vm0, %v5346_v1 }
  0x20   : > { %281 = vst.msk [vmem:[#allocation2 + $0x38] sm:$0x3f] %vm274_vm1, %v5346_v1  ;;  %v430_v4 = vld [vmem:[#allocation2 + $0x8] sm:$0xf] }
  0x21   : > { %282 = vst.msk [vmem:[#allocation2 + $0x40] sm:$0xff] %vm272_vm0, %v5346_v1 }
  0x22   : > { %v5449_v11 = vld.sshfl [vmem:[#allocation1 + $0x10] sm:$0xff pattern:$0x75316420]  ;;  %283 = vst.msk [vmem:[#allocation2 + $0x48] sm:$0x3f] %vm274_vm1, %v5346_v1 }
  0x23   : > { %572 = vst [vmem:[#allocation1 + $0x10] ss:$2 sm:$0xff] %v540_v9 }
  0x24   : > { %573 = vst [vmem:[#allocation1 + $0x11] ss:$2 sm:$0xff] %v496_v10 }
  0x25   : > { %284 = vst.msk [vmem:[#allocation2 + $0x50] sm:$0xff] %vm272_vm0, %v5346_v1 }
  0x26   : > { %285 = vst.msk [vmem:[#allocation2 + $0x58] sm:$0x3f] %vm274_vm1, %v5346_v1 }
  0x27   : > { %286 = vst.msk [vmem:[#allocation2 + $0x60] sm:$0xff] %vm272_vm0, %v5346_v1 }
  0x28   : > { %287 = vst.msk [vmem:[#allocation2 + $0x68] sm:$0x3f] %vm274_vm1, %v5346_v1 }
  0x29   : > { %288 = vst.msk [vmem:[#allocation2 + $0x70] sm:$0xff] %vm272_vm0, %v5346_v1 }
  0x2a   : > { %289 = vst.msk [vmem:[#allocation2 + $0x78] sm:$0x3f] %vm274_vm1, %v5346_v1 }
  0x2b   : > { %v5465_v14 = vld.sshfl [vmem:[#allocation1 + $0x10] sm:$0xff pattern:$0x75316420]  ;;  %290 = vst.msk [vmem:[#allocation2 + $0x80] sm:$0xff] %vm272_vm0, %v5346_v1 }
  0x2c   : > { %584 = vst [vmem:[#allocation1 + $0x10] ss:$2 sm:$0xff] %v501_v12 }
  0x2d   : > { %585 = vst [vmem:[#allocation1 + $0x11] ss:$2 sm:$0xff] %v543_v13  ;;  %v331_v13 = vld [vmem:[%s5542_s7 + $0x8] sm:$0xf] }
  0x2e   : > { %291 = vst.msk [vmem:[#allocation2 + $0x88] sm:$0x3f] %vm274_vm1, %v5346_v1 }
  0x2f   : > { %292 = vst.msk [vmem:[#allocation2 + $0x90] sm:$0xff] %vm272_vm0, %v5346_v1 }
  0x30   : > { %293 = vst.msk [vmem:[#allocation2 + $0x98] sm:$0x3f] %vm274_vm1, %v5346_v1 }
  0x31   : > { %294 = vst.msk [vmem:[#allocation2 + $0xa0] sm:$0xff] %vm272_vm0, %v5346_v1 }
  0x32   : > { %295 = vst.msk [vmem:[#allocation2 + $0xa8] sm:$0x3f] %vm274_vm1, %v5346_v1 }
  0x33   : > { %296 = vst.msk [vmem:[#allocation2 + $0xb0] sm:$0xff] %vm272_vm0, %v5346_v1 }
  0x34   : > { %v591_v15 = vld.sshfl [vmem:[#allocation1 + $0x10] sm:$0xff pattern:$0x75316420]  ;;  %297 = vst.msk [vmem:[#allocation2 + $0xb8] sm:$0x3f] %vm274_vm1, %v5346_v1 }
  0x35   : > { %5006 = vmatmul.msk.f32.vlgmr.msra.gmra.mxu2 %vm272_vm0, %v591_v15  ;;  %298 = vst.msk [vmem:[#allocation2 + $0xc0] sm:$0xff] %vm272_vm0, %v5346_v1 }
  0x36   : > { %299 = vst.msk [vmem:[#allocation2 + $0xc8] sm:$0x3f] %vm274_vm1, %v5346_v1 }
  0x37   : > { %300 = vst.msk [vmem:[#allocation2 + $0xd0] sm:$0xff] %vm272_vm0, %v5346_v1 }
  0x38   : > { %301 = vst.msk [vmem:[#allocation2 + $0xd8] sm:$0x3f] %vm274_vm1, %v5346_v1 }
  0x39   : > { %302 = vst.msk [vmem:[#allocation3] sm:$0xff] %vm272_vm0, %v5346_v1 }
  0x3a   : > { %306 = vst.msk [vmem:[#allocation3 + $0x20] sm:$0xff] %vm272_vm0, %v5346_v1 }
  0x3b   : > { %307 = vst.msk [vmem:[#allocation3 + $0x28] sm:$0x3f] %vm274_vm1, %v5346_v1 }
  0x3c   : > { %310 = vst.msk [vmem:[#allocation3 + $0x40] sm:$0xff] %vm272_vm0, %v5346_v1 }
  0x3d   : > { %311 = vst.msk [vmem:[#allocation3 + $0x48] sm:$0x3f] %vm274_vm1, %v5346_v1 }
  0x3e   : > { %312 = vst.msk [vmem:[#allocation3 + $0x50] sm:$0xff] %vm272_vm0, %v5346_v1 }
  0x3f   : > { %313 = vst.msk [vmem:[#allocation3 + $0x58] sm:$0x3f] %vm274_vm1, %v5346_v1 }
  0x40   : > { %316 = vst.msk [vmem:[#allocation3 + $0x70] sm:$0xff] %vm272_vm0, %v5346_v1  ;;  %v489_v41 = vld [vmem:[#allocation3] sm:$0xff] }
  0x41   : > { %317 = vst.msk [vmem:[#allocation3 + $0x78] sm:$0x3f] %vm274_vm1, %v5346_v1  ;;  %v537_v45 = vrot.slane %v489_v41, 4 }
  0x42   : > { %318 = vst.msk [vmem:[#allocation3 + $0x80] sm:$0xff] %vm272_vm0, %v5346_v1 }
  0x43   : > { %319 = vst.msk [vmem:[#allocation3 + $0x88] sm:$0x3f] %vm274_vm1, %v5346_v1 }
  0x44   : > { %320 = vst.msk [vmem:[#allocation3 + $0x90] sm:$0xff] %vm272_vm0, %v5346_v1 }
  0x45   : > { %321 = vst.msk [vmem:[#allocation3 + $0x98] sm:$0x3f] %vm274_vm1, %v5346_v1 }
  0x46   : > { %322 = vst.msk [vmem:[#allocation3 + $0xa0] sm:$0xff] %vm272_vm0, %v5346_v1 }
  0x47   : > { %323 = vst.msk [vmem:[#allocation3 + $0xa8] sm:$0x3f] %vm274_vm1, %v5346_v1 }
  0x48   : > { %324 = vst.msk [vmem:[#allocation3 + $0xb0] sm:$0xff] %vm272_vm0, %v5346_v1 }
  0x49   : > { %325 = vst.msk [vmem:[#allocation3 + $0xb8] sm:$0x3f] %vm274_vm1, %v5346_v1 }
  0x4a   : > { %326 = vst.msk [vmem:[#allocation3 + $0xc0] sm:$0xff] %vm272_vm0, %v5346_v1 }
  0x4b   : > { %327 = vst.msk [vmem:[#allocation3 + $0xc8] sm:$0x3f] %vm274_vm1, %v5346_v1 }
  0x4c   : > { %328 = vst.msk [vmem:[#allocation3 + $0xd0] sm:$0xff] %vm272_vm0, %v5346_v1 }
  0x4d   : > { %329 = vst.msk [vmem:[#allocation3 + $0xd8] sm:$0x3f] %vm274_vm1, %v5346_v1 }
  0x4e   : > { %406 = vst.msk [vmem:[#allocation3 + $0x19] sm:$0xf] %vm356_vm2, %v381_v16 }
  0x4f   : > { %411 = vst.msk [vmem:[#allocation3 + $0x41] sm:$0xff] %vm272_vm0, %v386_v17 }
  0x50   : > { %416 = vst.msk [vmem:[#allocation3 + $0x69] sm:$0xf] %vm356_vm2, %v391_v18  ;;  %v336_v18 = vld [vmem:[%s5542_s7 + $0x30] sm:$0xff] }
  0x51   : > { %417 = vst.msk [vmem:[#allocation3 + $0x71] sm:$0xff] %vm272_vm0, %v392_v19 }
  0x52   : > { %559 = vst [vmem:[#allocation1 + $0x20] ss:$2 sm:$0xff] %v538_v20  ;;  %v341_v20 = vld [vmem:[%s5542_s7 + $0x58] sm:$0xf] }
  0x53   : > { %355 = vst.msk [vmem:[#allocation2 + $0x11] sm:$0xff] %vm272_vm0, %v330_v21 }
  0x54   : > { %360 = vst.msk [vmem:[#allocation2 + $0x31] sm:$0xff] %vm272_vm0, %v334_v22 }
  0x55   : > { %v492_v25 = vld [vmem:[#allocation3 + $0x18] sm:$0xf]  ;;  %361 = vst.msk [vmem:[#allocation2 + $0x39] sm:$0xf] %vm356_vm2, %v335_v23 }
  0x56   : > { %561 = vst [vmem:[#allocation1 + $0x21] ss:$2 sm:$0xff] %v492_v25  ;;  %v497_v29 = vld [vmem:[#allocation3 + $0x40] sm:$0xff]  ;;  %v344_v25 = vld [vmem:[%s5542_s7 + $0x70] sm:$0xff] }
  0x57   : > { %366 = vst.msk [vmem:[#allocation2 + $0x61] sm:$0xff] %vm272_vm0, %v340_v24  ;;  %v541_v33 = vrot.slane %v497_v29, 4  ;;  %v502_v42 = vld [vmem:[#allocation3 + $0x68] sm:$0xf]  ;;  %v342_v24 = vld [vmem:[%s5542_s7 + $0x60] sm:$0xff] }
  0x58   : > { %372 = vst.msk [vmem:[#allocation2 + $0x91] sm:$0xff] %vm272_vm0, %v346_v26  ;;  %v503_v44 = vld [vmem:[#allocation3 + $0x70] sm:$0xff] }
  0x59   : > { %407 = vst.msk [vmem:[#allocation3 + $0x21] sm:$0xff] %vm272_vm0, %v382_v27  ;;  %v544_v1 = vrot.slane %v503_v44, 4  ;;  %v345_v26 = vld [vmem:[%s5542_s7 + $0x78] sm:$0xf] }
  0x5a   : > { %408 = vst.msk [vmem:[#allocation3 + $0x29] sm:$0xf] %vm356_vm2, %v383_v28  ;;  %v431_v7 = vld [vmem:[#allocation2 + $0x10] sm:$0xff]  ;;  %v350_v28 = vld [vmem:[%s5542_s7 + $0xa0] sm:$0xff] }
  0x5b   : > { %412 = vst.msk [vmem:[#allocation3 + $0x49] sm:$0xf] %vm356_vm2, %v387_v30  ;;  %v5614_v16 = vld [vmem:[#allocation2 + $0x30] sm:$0xff] }
  0x5c   : > { %413 = vst.msk [vmem:[#allocation3 + $0x51] sm:$0xff] %vm272_vm0, %v388_v31  ;;  %v480_v19 = vrot.slane %v5614_v16, 4  ;;  %v436_v22 = vld [vmem:[#allocation2 + $0x38] sm:$0xf]  ;;  %v478_v31 = vrot.slane %v431_v7, 4 }
  0x5d   : > { %v5570_v35 = vld.sshfl [vmem:[#allocation1 + $0x20] sm:$0xff pattern:$0x75316420]  ;;  %414 = vst.msk [vmem:[#allocation3 + $0x59] sm:$0xf] %vm356_vm2, %v389_v32 }
  0x5e   : > { %574 = vst [vmem:[#allocation1 + $0x20] ss:$2 sm:$0xff] %v497_v29  ;;  %v441_v27 = vld [vmem:[#allocation2 + $0x60] sm:$0xff] }
  0x5f   : > { %575 = vst [vmem:[#allocation1 + $0x21] ss:$2 sm:$0xff] %v541_v33  ;;  %v351_v29 = vld [vmem:[%s5542_s7 + $0xa8] sm:$0xf]  ;;  %v483_v33 = vrot.slane %v441_v27, 4 }
  0x60   : > { %418 = vst.msk [vmem:[#allocation3 + $0x79] sm:$0xf] %vm356_vm2, %v393_v34  ;;  %v493_v43 = vld [vmem:[#allocation3 + $0x20] sm:$0xff] }
  0x61   : > { %419 = vst.msk [vmem:[#allocation3 + $0x81] sm:$0xff] %vm272_vm0, %v394_v36  ;;  %v539_v47 = vrot.slane %v493_v43, 4  ;;  %v494_v52 = vld [vmem:[#allocation3 + $0x28] sm:$0xf] }
  0x62   : > { %420 = vst.msk [vmem:[#allocation3 + $0x89] sm:$0xf] %vm356_vm2, %v395_v37  ;;  %v498_v54 = vld [vmem:[#allocation3 + $0x48] sm:$0xf]  ;;  %v338_v37 = vld [vmem:[%s5542_s7 + $0x40] sm:$0xff] }
  0x63   : > { %421 = vst.msk [vmem:[#allocation3 + $0x91] sm:$0xff] %vm272_vm0, %v396_v38  ;;  %v499_v58 = vld [vmem:[#allocation3 + $0x50] sm:$0xff] }
  0x64   : > { %425 = vst.msk [vmem:[#allocation3 + $0xb1] sm:$0xff] %vm272_vm0, %v400_v39  ;;  %v542_v0 = vrot.slane %v499_v58, 4  ;;  %v500_v2 = vld [vmem:[#allocation3 + $0x58] sm:$0xf] }
  0x65   : > { %426 = vst.msk [vmem:[#allocation3 + $0xb9] sm:$0xf] %vm356_vm2, %v401_v40  ;;  %v333_v40 = vld [vmem:[%s5542_s7 + $0x18] sm:$0xf] }
  0x66   : > { %v5584_v46 = vld.sshfl [vmem:[#allocation1 + $0x20] sm:$0xff pattern:$0x75316420]  ;;  %551 = vst [vmem:[#allocation1] ss:$2 sm:$0xff] %v489_v41 }
  0x67   : > { %586 = vst [vmem:[#allocation1 + $0x20] ss:$2 sm:$0xff] %v502_v42  ;;  %v504_v5 = vld [vmem:[#allocation3 + $0x78] sm:$0xf]  ;;  %v337_v41 = vld [vmem:[%s5542_s7 + $0x38] sm:$0xf] }
  0x68   : > { %587 = vst [vmem:[#allocation1 + $0x21] ss:$2 sm:$0xff] %v503_v44  ;;  %v505_v10 = vld [vmem:[#allocation3 + $0x80] sm:$0xff]  ;;  %v5652_v42 = vld [vmem:[#allocation2 + $0x90] sm:$0xff] }
  0x69   : > { %v506_v48 = vld [vmem:[#allocation3 + $0x88] sm:$0xf]  ;;  %553 = vst [vmem:[#allocation1 + $0x1] ss:$2 sm:$0xff] %v537_v45  ;;  %v545_v15 = vrot.slane %v505_v10, 4 }
  0x6a   : > { %v507_v49 = vld [vmem:[#allocation3 + $0x90] sm:$0xff]  ;;  %563 = vst [vmem:[#allocation1 + $0x30] ss:$2 sm:$0xff] %v493_v43 }
  0x6b   : > { %565 = vst [vmem:[#allocation1 + $0x31] ss:$2 sm:$0xff] %v539_v47  ;;  %v5591_v55 = vld [vmem:[#allocation3 + $0xb0] sm:$0xff]  ;;  %v546_v9 = vrot.slane %v507_v49, 4 }
  0x6c   : > { %596 = vst [vmem:[#allocation1 + $0x10] ss:$2 sm:$0xff] %v506_v48  ;;  %v548_v57 = vrot.slane %v5591_v55, 4  ;;  %v512_v60 = vld [vmem:[#allocation3 + $0xb8] sm:$0xf] }
  0x6d   : > { %597 = vst [vmem:[#allocation1 + $0x11] ss:$2 sm:$0xff] %v507_v49  ;;  %v339_v48 = vld [vmem:[%s5542_s7 + $0x48] sm:$0xf] }
  0x6e   : > { %423 = vst.msk [vmem:[#allocation3 + $0xa1] sm:$0xff] %vm272_vm0, %v398_v50  ;;  %v343_v49 = vld [vmem:[%s5542_s7 + $0x68] sm:$0xf]  ;;  %v348_v50 = vld [vmem:[%s5542_s7 + $0x90] sm:$0xff] }
  0x6f   : > { %v592_v53 = vld.sshfl [vmem:[#allocation1 + $0x20] sm:$0xff pattern:$0x75316420]  ;;  %424 = vst.msk [vmem:[#allocation3 + $0xa9] sm:$0xf] %vm356_vm2, %v399_v51 }
  0x70   : > { %5007 = vmatmul.msk.f32.gmra.mxu2 %vm272_vm0, %v592_v53  ;;  %v566_v56 = vld.sshfl [vmem:[#allocation1] sm:$0xff pattern:$0x75316420]  ;;  %422 = vst.msk [vmem:[#allocation3 + $0x99] sm:$0xf] %vm356_vm2, %v397_v61 }
  0x71   : > { %570 = vst [vmem:[#allocation1] ss:$2 sm:$0xff] %v494_v52  ;;  %4997 = vmatmul.msk.f32.vlgmr.msra.gmra.mxu0 %vm272_vm0, %v566_v56  ;;  %v349_v51 = vld [vmem:[%s5542_s7 + $0x98] sm:$0xf] }
  0x72   : > { %v569_v59 = vld.sshfl [vmem:[#allocation1 + $0x30] sm:$0xff pattern:$0x75316420]  ;;  %571 = vst [vmem:[#allocation1 + $0x1] ss:$2 sm:$0xff] %v5438_v8  ;;  %v549_v8 = vld [vmem:[%s7741_s2] sm:$0xff] }
  0x73   : > { %576 = vst [vmem:[#allocation1 + $0x30] ss:$2 sm:$0xff] %v498_v54  ;;  %5324 = vmatpush.msra.mxu3 %v549_v8  ;;  %831 = vmatpush.msra.mxu1 %v549_v8 }
  0x74   : > { %577 = vst [vmem:[#allocation1 + $0x31] ss:$2 sm:$0xff] %v499_v58  ;;  %v5597_v62 = vld.sshfl [vmem:[#allocation1 + $0x10] sm:$0xff pattern:$0x75316420] }
  0x75   : > { %608 = vst [vmem:[#allocation1 + $0x10] ss:$2 sm:$0xff] %v548_v57  ;;  %v509_v36 = vld [vmem:[#allocation3 + $0xa0] sm:$0xff] }
  0x76   : > { %609 = vst [vmem:[#allocation1 + $0x11] ss:$2 sm:$0xff] %v512_v60  ;;  %v547_v38 = vrot.slane %v509_v36, 4  ;;  %v510_v52 = vld [vmem:[#allocation3 + $0xa8] sm:$0xf]  ;;  %v429_v60 = vld [vmem:[#allocation2] sm:$0xff] }
  0x77   : > { %358 = vst.msk [vmem:[#allocation2 + $0x21] sm:$0xff] %vm272_vm0, %v332_v63  ;;  %v477_v63 = vrot.slane %v429_v60, 4 }
  0x78   : > { %598 = vst [vmem:[#allocation1 + $0x20] ss:$2 sm:$0xff] %v546_v9  ;;  %v5698_v9 = vld [vmem:[#allocation2 + $0x31] sm:$0xff] }
  0x79   : > { %v5602_v3 = vld.sshfl [vmem:[#allocation1] sm:$0xff pattern:$0x75316420]  ;;  %4998 = vmatmul.msk.f32.gmra.mxu0 %vm272_vm0, %v5449_v11  ;;  %357 = vst.msk [vmem:[#allocation2 + $0x19] sm:$0xf] %vm356_vm2, %v331_v13 }
  0x7a   : > { %582 = vst [vmem:[#allocation1] ss:$2 sm:$0xff] %v542_v0  ;;  %v508_v11 = vld [vmem:[#allocation3 + $0x98] sm:$0xf] }
  0x7b   : > { %v5606_v6 = vld.sshfl [vmem:[#allocation1 + $0x30] sm:$0xff pattern:$0x75316420]  ;;  %583 = vst [vmem:[#allocation1 + $0x1] ss:$2 sm:$0xff] %v500_v2  ;;  %v5689_v2 = vld [vmem:[#allocation2 + $0x11] sm:$0xff] }
  0x7c   : > { %588 = vst [vmem:[#allocation1 + $0x30] ss:$2 sm:$0xff] %v544_v1  ;;  %v888_v1 = vld [vmem:[#allocation2 + $0x9] sm:$0xf] }
  0x7d   : > { %589 = vst [vmem:[#allocation1 + $0x31] ss:$2 sm:$0xff] %v504_v5  ;;  %v5611_v12 = vld.sshfl [vmem:[#allocation1 + $0x10] sm:$0xff pattern:$0x75316420] }
  0x7e   : > { %723 = vst [vmem:[#allocation1 + $0x10] ss:$2 sm:$0xff] %v430_v4 }
  0x7f   : > { %725 = vst [vmem:[#allocation1 + $0x11] ss:$2 sm:$0xff] %v431_v7 }
  0x80   : > { %599 = vst [vmem:[#allocation1 + $0x21] ss:$2 sm:$0xff] %v508_v11  ;;  %v432_v34 = vld [vmem:[#allocation2 + $0x18] sm:$0xf] }
  0x81   : > { %4999 = vmatmul.msk.f32.gmra.mxu0 %vm272_vm0, %v5570_v35  ;;  %362 = vst.msk [vmem:[#allocation2 + $0x41] sm:$0xff] %vm272_vm0, %v336_v18  ;;  %v894_v11 = vld [vmem:[#allocation2 + $0x39] sm:$0xf] }
  0x82   : > { %v5618_v17 = vld.sshfl [vmem:[#allocation1] sm:$0xff pattern:$0x75316420]  ;;  %367 = vst.msk [vmem:[#allocation2 + $0x69] sm:$0xf] %vm356_vm2, %v341_v20 }
  0x83   : > { %594 = vst [vmem:[#allocation1] ss:$2 sm:$0xff] %v505_v10  ;;  %v938_v10 = vrot.slane %v5698_v9, 4 }
  0x84   : > { %v593_v21 = vld.sshfl [vmem:[#allocation1 + $0x30] sm:$0xff pattern:$0x75316420]  ;;  %595 = vst [vmem:[#allocation1 + $0x1] ss:$2 sm:$0xff] %v545_v15 }
  0x85   : > { %5008 = vmatmul.msk.f32.gmra.mxu2 %vm272_vm0, %v593_v21  ;;  %368 = vst.msk [vmem:[#allocation2 + $0x71] sm:$0xff] %vm272_vm0, %v342_v24  ;;  %v899_v21 = vld [vmem:[#allocation2 + $0x61] sm:$0xff] }
  0x86   : > { %v5626_v23 = vld.sshfl [vmem:[#allocation1 + $0x10] sm:$0xff pattern:$0x75316420]  ;;  %370 = vst.msk [vmem:[#allocation2 + $0x81] sm:$0xff] %vm272_vm0, %v344_v25 }
  0x87   : > { %740 = vst [vmem:[#allocation1 + $0x10] ss:$2 sm:$0xff] %v480_v19  ;;  %v604_v32 = vld.sshfl [vmem:[#allocation1 + $0x20] sm:$0xff pattern:$0x75316420] }
  0x88   : > { %741 = vst [vmem:[#allocation1 + $0x11] ss:$2 sm:$0xff] %v436_v22  ;;  %v437_v39 = vld [vmem:[#allocation2 + $0x40] sm:$0xff] }
  0x89   : > { %5000 = vmatmul.msk.f32.gmra.mxu0 %vm272_vm0, %v569_v59  ;;  %371 = vst.msk [vmem:[#allocation2 + $0x89] sm:$0xf] %vm356_vm2, %v345_v26  ;;  %v481_v44 = vrot.slane %v437_v39, 4  ;;  %v442_v54 = vld [vmem:[#allocation2 + $0x68] sm:$0xf] }
  0x8a   : > { %376 = vst.msk [vmem:[#allocation2 + $0xb1] sm:$0xff] %vm272_vm0, %v350_v28  ;;  %v5718_v28 = vld [vmem:[#allocation2 + $0x91] sm:$0xff] }
  0x8b   : > { %v602_v30 = vld.sshfl [vmem:[#allocation1] sm:$0xff pattern:$0x75316420]  ;;  %377 = vst.msk [vmem:[#allocation2 + $0xb9] sm:$0xf] %vm356_vm2, %v351_v29 }
  0x8c   : > { %607 = vst [vmem:[#allocation1 + $0x1] ss:$2 sm:$0xff] %v5591_v55  ;;  %v443_v56 = vld [vmem:[#allocation2 + $0x70] sm:$0xff] }
  0x8d   : > { %5009 = vmatmul.msk.f32.gmra.mxu2 %vm272_vm0, %v602_v30  ;;  %727 = vst [vmem:[#allocation1 + $0x20] ss:$2 sm:$0xff] %v478_v31  ;;  %v484_v13 = vrot.slane %v443_v56, 4 }
  0x8e   : > { %729 = vst [vmem:[#allocation1 + $0x21] ss:$2 sm:$0xff] %v432_v34 }
  0x8f   : > { %v5642_v35 = vld.sshfl [vmem:[#allocation1 + $0x10] sm:$0xff pattern:$0x75316420]  ;;  %364 = vst.msk [vmem:[#allocation2 + $0x51] sm:$0xff] %vm272_vm0, %v338_v37 }
  0x90   : > { %752 = vst [vmem:[#allocation1 + $0x10] ss:$2 sm:$0xff] %v441_v27  ;;  %v446_v43 = vld [vmem:[#allocation2 + $0x88] sm:$0xf] }
  0x91   : > { %753 = vst [vmem:[#allocation1 + $0x11] ss:$2 sm:$0xff] %v483_v33  ;;  %5001 = vmatmul.msk.f32.gmra.mxu0 %vm272_vm0, %v5602_v3  ;;  %v5670_v55 = vld [vmem:[#allocation2 + $0xb0] sm:$0xff] }
  0x92   : > { %600 = vst [vmem:[#allocation1 + $0x30] ss:$2 sm:$0xff] %v509_v36  ;;  %v452_v57 = vld [vmem:[#allocation2 + $0xb8] sm:$0xf]  ;;  %v488_v58 = vrot.slane %v5670_v55, 4  ;;  %v887_v36 = vld [vmem:[#allocation2 + $0x1] sm:$0xff] }
  0x93   : > { %601 = vst [vmem:[#allocation1 + $0x31] ss:$2 sm:$0xff] %v547_v38  ;;  %v910_v34 = vld [vmem:[#allocation2 + $0xb9] sm:$0xf]  ;;  %v347_v38 = vld [vmem:[%s5542_s7 + $0x88] sm:$0xf] }
  0x94   : > { %359 = vst.msk [vmem:[#allocation2 + $0x29] sm:$0xf] %vm356_vm2, %v333_v40 }
  0x95   : > { %5010 = vmatmul.msk.f32.gmra.mxu2 %vm272_vm0, %v5597_v62  ;;  %363 = vst.msk [vmem:[#allocation2 + $0x49] sm:$0xf] %vm356_vm2, %v337_v41  ;;  %v5658_v47 = vld.sshfl [vmem:[#allocation1 + $0x20] sm:$0xff pattern:$0x75316420] }
  0x96   : > { %742 = vst [vmem:[#allocation1 + $0x20] ss:$2 sm:$0xff] %v437_v39  ;;  %v439_v8 = vld [vmem:[#allocation2 + $0x50] sm:$0xff]  ;;  %v935_v39 = vrot.slane %v887_v36, 4  ;;  %v948_v41 = vld [vmem:[#allocation3 + $0x9] sm:$0xf] }
  0x97   : > { %743 = vst [vmem:[#allocation1 + $0x21] ss:$2 sm:$0xff] %v481_v44  ;;  %v482_v19 = vrot.slane %v439_v8, 4  ;;  %v5739_v44 = vld [vmem:[#allocation3 + $0x11] sm:$0xff] }
  0x98   : > { %v759_v45 = vld.sshfl [vmem:[#allocation1 + $0x10] sm:$0xff pattern:$0x75316420]  ;;  %365 = vst.msk [vmem:[#allocation2 + $0x59] sm:$0xf] %vm356_vm2, %v339_v48 }
  0x99   : > { %765 = vst [vmem:[#allocation1 + $0x11] ss:$2 sm:$0xff] %v5652_v42  ;;  %5024 = vmatmul.msk.f32.vlgmr.msra.gmra.mxu3 %vm272_vm0, %v759_v45  ;;  %5002 = vmatmul.msk.f32.gmra.mxu0 %vm272_vm0, %v5465_v14  ;;  %v5673_v14 = vld [vmem:[#allocation2 + $0x20] sm:$0xff] }
  0x9a   : > { %764 = vst [vmem:[#allocation1 + $0x10] ss:$2 sm:$0xff] %v446_v43  ;;  %v605_v53 = vld.sshfl [vmem:[#allocation1 + $0x30] sm:$0xff pattern:$0x75316420]  ;;  %v479_v62 = vrot.slane %v5673_v14, 4 }
  0x9b   : > { %369 = vst.msk [vmem:[#allocation2 + $0x79] sm:$0xf] %vm356_vm2, %v343_v49  ;;  %v434_v7 = vld [vmem:[#allocation2 + $0x28] sm:$0xf]  ;;  %v486_v43 = vrot.slane %v5652_v42, 4  ;;  %v1007_v45 = vld [vmem:[%s7741_s2 + $0x8] sm:$0xff] }
  0x9c   : > { %374 = vst.msk [vmem:[#allocation2 + $0xa1] sm:$0xff] %vm272_vm0, %v348_v50  ;;  %v438_v4 = vld [vmem:[#allocation2 + $0x48] sm:$0xf]  ;;  %1120 = vmatpush.msrb.mxu2 %v1007_v45  ;;  %v5749_v50 = vld [vmem:[#allocation3 + $0x31] sm:$0xff] }
  0x9d   : > { %5011 = vmatmul.msk.f32.gmra.mxu2 %vm272_vm0, %v604_v32  ;;  %375 = vst.msk [vmem:[#allocation2 + $0xa9] sm:$0xf] %vm356_vm2, %v349_v51  ;;  %v5724_v32 = vld [vmem:[#allocation2 + $0xb1] sm:$0xff]  ;;  %v892_v49 = vld [vmem:[#allocation2 + $0x29] sm:$0xf] }
  0x9e   : > { %606 = vst [vmem:[#allocation1] ss:$2 sm:$0xff] %v510_v52  ;;  %v5678_v59 = vld.sshfl [vmem:[#allocation1 + $0x20] sm:$0xff pattern:$0x75316420]  ;;  %v946_v33 = vrot.slane %v5724_v32, 4 }
  0x9f   : > { %731 = vst [vmem:[#allocation1 + $0x30] ss:$2 sm:$0xff] %v5673_v14  ;;  %v440_v20 = vld [vmem:[#allocation2 + $0x58] sm:$0xf]  ;;  %v998_v52 = vrot.slane %v5749_v50, 4 }
  0xa0   : > { %754 = vst [vmem:[#allocation1 + $0x20] ss:$2 sm:$0xff] %v442_v54  ;;  %v897_v54 = vld [vmem:[#allocation2 + $0x51] sm:$0xff] }
  0xa1   : > { %5003 = vmatmul.msk.f32.gmra.mxu0 %vm272_vm0, %v5584_v46  ;;  %v5681_v61 = vld.sshfl [vmem:[#allocation1 + $0x10] sm:$0xff pattern:$0x75316420]  ;;  %755 = vst [vmem:[#allocation1 + $0x21] ss:$2 sm:$0xff] %v443_v56 }
  0xa2   : > { %776 = vst [vmem:[#allocation1 + $0x10] ss:$2 sm:$0xff] %v488_v58  ;;  %v444_v18 = vld [vmem:[#allocation2 + $0x78] sm:$0xf]  ;;  %v940_v58 = vrot.slane %v897_v54, 4 }
  0xa3   : > { %777 = vst [vmem:[#allocation1 + $0x11] ss:$2 sm:$0xff] %v452_v57  ;;  %v5752_v51 = vld [vmem:[#allocation2 + $0xa0] sm:$0xff] }
  0xa4   : > { %733 = vst [vmem:[#allocation1 + $0x31] ss:$2 sm:$0xff] %v479_v62  ;;  %v450_v30 = vld [vmem:[#allocation2 + $0xa8] sm:$0xf] }
  0xa5   : > { %5012 = vmatmul.msk.f32.gmra.mxu2 %vm272_vm0, %v605_v53  ;;  %v610_v46 = vld.sshfl [vmem:[#allocation1] sm:$0xff pattern:$0x75316420]  ;;  %373 = vst.msk [vmem:[#allocation2 + $0x99] sm:$0xf] %vm356_vm2, %v347_v38 }
  0xa6   : > { %719 = vst [vmem:[#allocation1] ss:$2 sm:$0xff] %v429_v60  ;;  %v954_v53 = vld [vmem:[#allocation3 + $0x39] sm:$0xf] }
  0xa7   : > { %721 = vst [vmem:[#allocation1 + $0x1] ss:$2 sm:$0xff] %v477_v63  ;;  %v890_v60 = vld [vmem:[#allocation2 + $0x19] sm:$0xf] }
  0xa8   : > { %v760_v0 = vld.sshfl [vmem:[#allocation1 + $0x20] sm:$0xff pattern:$0x75316420] }
  0xa9   : > { %5004 = vmatmul.msk.f32.gmra.mxu0 %vm272_vm0, %v5606_v6  ;;  %5025 = vmatmul.msk.f32.gmra.mxu3 %vm272_vm0, %v760_v0  ;;  %766 = vst [vmem:[#allocation1 + $0x20] ss:$2 sm:$0xff] %v486_v43  ;;  %v898_v63 = vld [vmem:[#allocation2 + $0x59] sm:$0xf] }
  0xaa   : > { %v5692_v3 = vld.sshfl [vmem:[#allocation1 + $0x10] sm:$0xff pattern:$0x75316420]  ;;  %v5811_v43 = vld [vmem:[#allocation2 + $0x12] sm:$0xff] }
  0xab   : > { %1012 = vst [vmem:[#allocation1 + $0x10] ss:$2 sm:$0xff] %v888_v1  ;;  %v737_v5 = vld.sshfl [vmem:[#allocation1 + $0x30] sm:$0xff pattern:$0x75316420] }
  0xac   : > { %1014 = vst [vmem:[#allocation1 + $0x11] ss:$2 sm:$0xff] %v5689_v2  ;;  %v448_v48 = vld [vmem:[#allocation2 + $0x98] sm:$0xf]  ;;  %v891_v1 = vld [vmem:[#allocation2 + $0x21] sm:$0xff] }
  0xad   : > { %5013 = vmatmul.msk.f32.gmra.mxu2 %vm272_vm0, %v610_v46  ;;  %744 = vst [vmem:[#allocation1 + $0x30] ss:$2 sm:$0xff] %v438_v4 }
  0xae   : > { %v734_v6 = vld.sshfl [vmem:[#allocation1] sm:$0xff pattern:$0x75316420]  ;;  %745 = vst [vmem:[#allocation1 + $0x31] ss:$2 sm:$0xff] %v439_v8 }
  0xaf   : > { %738 = vst [vmem:[#allocation1] ss:$2 sm:$0xff] %v434_v7  ;;  %5015 = vmatmul.msk.f32.vlgmr.msra.gmra.mxu1 %vm272_vm0, %v734_v6  ;;  %v895_v7 = vld [vmem:[#allocation2 + $0x41] sm:$0xff] }
  0xb0   : > { %739 = vst [vmem:[#allocation1 + $0x1] ss:$2 sm:$0xff] %v5614_v16  ;;  %v941_v16 = vrot.slane %v899_v21, 4 }
  0xb1   : > { %5005 = vmatmul.msk.f32.gmra.mxu0 %vm272_vm0, %v5618_v17  ;;  %767 = vst [vmem:[#allocation1 + $0x21] ss:$2 sm:$0xff] %v448_v48 }
  0xb3   : > { %v5705_v15 = vld.sshfl [vmem:[#allocation1 + $0x10] sm:$0xff pattern:$0x75316420] }
  0xb4   : > { %1029 = vst [vmem:[#allocation1 + $0x10] ss:$2 sm:$0xff] %v938_v10 }
  0xb5   : > { %5014 = vmatmul.msk.f32.gmra.mxu2 %vm272_vm0, %v5611_v12  ;;  %1030 = vst [vmem:[#allocation1 + $0x11] ss:$2 sm:$0xff] %v894_v11  ;;  %v5707_v17 = vld.sshfl [vmem:[#allocation1 + $0x30] sm:$0xff pattern:$0x75316420]  ;;  %v445_v12 = vld [vmem:[#allocation2 + $0x80] sm:$0xff] }
  0xb6   : > { %756 = vst [vmem:[#allocation1 + $0x30] ss:$2 sm:$0xff] %v484_v13  ;;  %v485_v25 = vrot.slane %v445_v12, 4  ;;  %v964_v11 = vld [vmem:[#allocation3 + $0x89] sm:$0xf]  ;;  %v5778_v13 = vld [vmem:[#allocation3 + $0x91] sm:$0xff] }
  0xb7   : > { %v746_v22 = vld.sshfl [vmem:[#allocation1] sm:$0xff pattern:$0x75316420]  ;;  %757 = vst [vmem:[#allocation1 + $0x31] ss:$2 sm:$0xff] %v444_v18  ;;  %5016 = vmatmul.msk.f32.gmra.mxu1 %vm272_vm0, %v5626_v23 }
  0xb8   : > { %750 = vst [vmem:[#allocation1] ss:$2 sm:$0xff] %v482_v19  ;;  %v904_v23 = vld [vmem:[#allocation2 + $0x89] sm:$0xf] }
  0xb9   : > { %751 = vst [vmem:[#allocation1 + $0x1] ss:$2 sm:$0xff] %v440_v20  ;;  %v772_v57 = vld.sshfl [vmem:[#allocation1 + $0x20] sm:$0xff pattern:$0x75316420] }
  0xba   : > { %1018 = vst [vmem:[#allocation1 + $0x21] ss:$2 sm:$0xff] %v890_v60  ;;  %v896_v18 = vld [vmem:[#allocation2 + $0x49] sm:$0xf]  ;;  %v5786_v20 = vld [vmem:[#allocation3 + $0xb1] sm:$0xff] }
  0xbc   : > { %v5711_v24 = vld.sshfl [vmem:[#allocation1 + $0x10] sm:$0xff pattern:$0x75316420] }
  0xbd   : > { %1041 = vst [vmem:[#allocation1 + $0x10] ss:$2 sm:$0xff] %v899_v21  ;;  %v1006_v21 = vrot.slane %v5786_v20, 4 }
  0xbe   : > { %1042 = vst [vmem:[#allocation1 + $0x11] ss:$2 sm:$0xff] %v941_v16  ;;  %v761_v26 = vld.sshfl [vmem:[#allocation1 + $0x30] sm:$0xff pattern:$0x75316420] }
  0xbf   : > { %5026 = vmatmul.msk.f32.gmra.mxu3 %vm272_vm0, %v761_v26  ;;  %5017 = vmatmul.msk.f32.gmra.mxu1 %vm272_vm0, %v5658_v47  ;;  %768 = vst [vmem:[#allocation1 + $0x30] ss:$2 sm:$0xff] %v5752_v51  ;;  %v900_v16 = vld [vmem:[#allocation2 + $0x69] sm:$0xf]  ;;  %v970_v26 = vld [vmem:[#allocation3 + $0xb9] sm:$0xf] }
  0xc0   : > { %v5716_v27 = vld.sshfl [vmem:[#allocation1] sm:$0xff pattern:$0x75316420] }
  0xc1   : > { %762 = vst [vmem:[#allocation1] ss:$2 sm:$0xff] %v445_v12  ;;  %v5791_v12 = vld [vmem:[#allocation2 + $0x71] sm:$0xff] }
  0xc2   : > { %763 = vst [vmem:[#allocation1 + $0x1] ss:$2 sm:$0xff] %v485_v25 }
  0xc5   : > { %v5720_v29 = vld.sshfl [vmem:[#allocation1 + $0x10] sm:$0xff pattern:$0x75316420] }
  0xc6   : > { %1053 = vst [vmem:[#allocation1 + $0x10] ss:$2 sm:$0xff] %v904_v23 }
  0xc7   : > { %1054 = vst [vmem:[#allocation1 + $0x11] ss:$2 sm:$0xff] %v5718_v28  ;;  %5018 = vmatmul.msk.f32.gmra.mxu1 %vm272_vm0, %v737_v5  ;;  %v903_v5 = vld [vmem:[#allocation2 + $0x81] sm:$0xff] }
  0xc8   : > { %v943_v8 = vrot.slane %v903_v5, 4 }
  0xc9   : > { %v770_v31 = vld.sshfl [vmem:[#allocation1] sm:$0xff pattern:$0x75316420] }
  0xca   : > { %774 = vst [vmem:[#allocation1] ss:$2 sm:$0xff] %v450_v30  ;;  %5027 = vmatmul.msk.f32.gmra.mxu3 %vm272_vm0, %v770_v31  ;;  %v947_v30 = vld [vmem:[#allocation3 + $0x1] sm:$0xff]  ;;  %v902_v31 = vld [vmem:[#allocation2 + $0x79] sm:$0xf] }
  0xcb   : > { %775 = vst [vmem:[#allocation1 + $0x1] ss:$2 sm:$0xff] %v5670_v55  ;;  %v936_v55 = vrot.slane %v5689_v2, 4  ;;  %v937_v2 = vrot.slane %v891_v1, 4 }
  0xcd   : > { %1016 = vst [vmem:[#allocation1 + $0x20] ss:$2 sm:$0xff] %v936_v55  ;;  %v957_v55 = vld [vmem:[#allocation3 + $0x51] sm:$0xff] }
  0xce   : > { %v5729_v37 = vld.sshfl [vmem:[#allocation1 + $0x10] sm:$0xff pattern:$0x75316420]  ;;  %v1000_v60 = vrot.slane %v957_v55, 4 }
  0xcf   : > { %1065 = vst [vmem:[#allocation1 + $0x10] ss:$2 sm:$0xff] %v946_v33  ;;  %5019 = vmatmul.msk.f32.gmra.mxu1 %vm272_vm0, %v746_v22 }
  0xd0   : > { %1066 = vst [vmem:[#allocation1 + $0x11] ss:$2 sm:$0xff] %v910_v34  ;;  %v995_v34 = vrot.slane %v947_v30, 4 }
  0xd2   : > { %v5734_v40 = vld.sshfl [vmem:[#allocation1] sm:$0xff pattern:$0x75316420]  ;;  %5028 = vmatmul.msk.f32.gmra.mxu3 %vm272_vm0, %v5681_v61  ;;  %v959_v61 = vld [vmem:[#allocation3 + $0x61] sm:$0xff] }
  0xd3   : > { %1008 = vst [vmem:[#allocation1] ss:$2 sm:$0xff] %v887_v36  ;;  %v1382_v36 = vld [vmem:[#allocation2 + $0xa] sm:$0xf] }
  0xd4   : > { %1010 = vst [vmem:[#allocation1 + $0x1] ss:$2 sm:$0xff] %v935_v39  ;;  %v1025_v6 = vld.sshfl [vmem:[#allocation1 + $0x20] sm:$0xff pattern:$0x75316420] }
  0xd5   : > { %1031 = vst [vmem:[#allocation1 + $0x20] ss:$2 sm:$0xff] %v895_v7  ;;  %v906_v39 = vld [vmem:[#allocation2 + $0x99] sm:$0xf] }
  0xd7   : > { %v5744_v47 = vld.sshfl [vmem:[#allocation1 + $0x10] sm:$0xff pattern:$0x75316420]  ;;  %5020 = vmatmul.msk.f32.gmra.mxu1 %vm272_vm0, %v5642_v35  ;;  %v7748_v35 = vrot.slane %v5752_v51, 4 }
  0xd8   : > { %1199 = vst [vmem:[#allocation1 + $0x10] ss:$2 sm:$0xff] %v948_v41 }
  0xd9   : > { %1201 = vst [vmem:[#allocation1 + $0x11] ss:$2 sm:$0xff] %v5739_v44 }
  0xda   : > { %769 = vst [vmem:[#allocation1 + $0x31] ss:$2 sm:$0xff] %v7748_v35  ;;  %5029 = vmatmul.msk.f32.gmra.mxu3 %vm272_vm0, %v772_v57  ;;  %v950_v57 = vld [vmem:[#allocation3 + $0x19] sm:$0xf]  ;;  %v353_v35 = vld [vmem:[%s5542_s7 + $0xb8] sm:$0xf] }
  0xdb   : > { %v1023_v42 = vld.sshfl [vmem:[#allocation1] sm:$0xff pattern:$0x75316420]  ;;  %379 = vst.msk [vmem:[#allocation2 + $0xc9] sm:$0xf] %vm356_vm2, %v353_v35 }
  0xdc   : > { %1027 = vst [vmem:[#allocation1] ss:$2 sm:$0xff] %v892_v49  ;;  %5033 = vmatmul.msk.f32.vlgmr.msrb.gmra.mxu2 %vm272_vm0, %v1023_v42  ;;  %v952_v49 = vld [vmem:[#allocation3 + $0x29] sm:$0xf]  ;;  %v996_v42 = vrot.slane %v5739_v44, 4  ;;  %v951_v44 = vld [vmem:[#allocation3 + $0x21] sm:$0xff] }
  0xdd   : > { %1028 = vst [vmem:[#allocation1 + $0x1] ss:$2 sm:$0xff] %v5698_v9  ;;  %v939_v9 = vrot.slane %v895_v7, 4 }
  0xdf   : > { %5021 = vmatmul.msk.f32.gmra.mxu1 %vm272_vm0, %v5678_v59  ;;  %v1001_v59 = vrot.slane %v959_v61, 4  ;;  %1032 = vst [vmem:[#allocation1 + $0x21] ss:$2 sm:$0xff] %v939_v9 }
  0xe0   : > { %v5763_v56 = vld.sshfl [vmem:[#allocation1 + $0x10] sm:$0xff pattern:$0x75316420] }
  0xe1   : > { %1216 = vst [vmem:[#allocation1 + $0x10] ss:$2 sm:$0xff] %v998_v52  ;;  %v773_v0 = vld.sshfl [vmem:[#allocation1 + $0x30] sm:$0xff pattern:$0x75316420] }
  0xe2   : > { %1217 = vst [vmem:[#allocation1 + $0x11] ss:$2 sm:$0xff] %v954_v53  ;;  %5030 = vmatmul.msk.f32.gmra.mxu3 %vm272_vm0, %v773_v0  ;;  %v1388_v53 = vld [vmem:[#allocation2 + $0x3a] sm:$0xf] }
  0xe3   : > { %1020 = vst [vmem:[#allocation1 + $0x30] ss:$2 sm:$0xff] %v891_v1  ;;  %v5835_v1 = vpop.f32.mrf.mxu2 }
  0xe4   : > { %5034 = vmatmul.msk.f32.gmra.mxu2 %vm272_vm0, %v5705_v15  ;;  %v1035_v46 = vld.sshfl [vmem:[#allocation1] sm:$0xff pattern:$0x75316420]  ;;  %1022 = vst [vmem:[#allocation1 + $0x31] ss:$2 sm:$0xff] %v937_v2 }
  0xe5   : > { %1039 = vst [vmem:[#allocation1] ss:$2 sm:$0xff] %v940_v58  ;;  %v5828_v58 = vld [vmem:[#allocation2 + $0x32] sm:$0xff] }
  0xe6   : > { %1040 = vst [vmem:[#allocation1 + $0x1] ss:$2 sm:$0xff] %v898_v63  ;;  %v1037_v25 = vld.sshfl [vmem:[#allocation1 + $0x20] sm:$0xff pattern:$0x75316420] }
  0xe7   : > { %5022 = vmatmul.msk.f32.gmra.mxu1 %vm272_vm0, %v5707_v17  ;;  %v908_v17 = vld [vmem:[#allocation2 + $0xa9] sm:$0xf]  ;;  %1043 = vst [vmem:[#allocation1 + $0x20] ss:$2 sm:$0xff] %v900_v16 }
  0xe8   : > { %1044 = vst [vmem:[#allocation1 + $0x21] ss:$2 sm:$0xff] %v5791_v12 }
  0xe9   : > { %v5770_v4 = vld.sshfl [vmem:[#allocation1 + $0x10] sm:$0xff pattern:$0x75316420]  ;;  %7749 = vst [vmem:[#allocation4_spill] sm:$0xff] %v5835_v1  ;;  %v1891_v1 = vld [vmem:[#allocation2 + $0x90] sm:$0xff] }
  0xea   : > { %1228 = vst [vmem:[#allocation1 + $0x10] ss:$2 sm:$0xff] %v959_v61  ;;  %5031 = vmatmul.msk.f32.gmra.mxu3 %vm272_vm0, %v5734_v40  ;;  %v907_v40 = vld [vmem:[#allocation2 + $0xa1] sm:$0xff]  ;;  %v1432_v61 = vrot.slane %v5828_v58, 4 }
  0xeb   : > { %1229 = vst [vmem:[#allocation1 + $0x11] ss:$2 sm:$0xff] %v1001_v59  ;;  %v1026_v19 = vld.sshfl [vmem:[#allocation1 + $0x30] sm:$0xff pattern:$0x75316420]  ;;  %v945_v48 = vrot.slane %v907_v40, 4 }
  0xec   : > { %5035 = vmatmul.msk.f32.gmra.mxu2 %vm272_vm0, %v1025_v6  ;;  %1034 = vst [vmem:[#allocation1 + $0x31] ss:$2 sm:$0xff] %v897_v54  ;;  %v955_v59 = vld [vmem:[#allocation3 + $0x41] sm:$0xff] }
  0xed   : > { %v5774_v10 = vld.sshfl [vmem:[#allocation1] sm:$0xff pattern:$0x75316420]  ;;  %1033 = vst [vmem:[#allocation1 + $0x30] ss:$2 sm:$0xff] %v896_v18  ;;  %v999_v2 = vrot.slane %v955_v59, 4 }
  0xee   : > { %1051 = vst [vmem:[#allocation1] ss:$2 sm:$0xff] %v903_v5  ;;  %v963_v5 = vld [vmem:[#allocation3 + $0x81] sm:$0xff]  ;;  %v956_v18 = vld [vmem:[#allocation3 + $0x49] sm:$0xf] }
  0xef   : > { %5023 = vmatmul.msk.f32.gmra.mxu1 %vm272_vm0, %v5716_v27  ;;  %1052 = vst [vmem:[#allocation1 + $0x1] ss:$2 sm:$0xff] %v943_v8  ;;  %v7747_v27 = vrot.slane %v5791_v12, 4  ;;  %v5809_v41 = vld.sshfl [vmem:[#allocation1 + $0x20] sm:$0xff pattern:$0x75316420] }
  0xf0   : > { %1056 = vst [vmem:[#allocation1 + $0x21] ss:$2 sm:$0xff] %v906_v39  ;;  %v1501_v8 = vld [vmem:[%s7741_s2 + $0x10] sm:$0xff]  ;;  %v1003_v6 = vrot.slane %v963_v5, 4  ;;  %v1004_v39 = vrot.slane %v5778_v13, 4 }
  0xf1   : > { %1614 = vmatpush.msrb.mxu0 %v1501_v8  ;;  %v1404_v8 = vld [vmem:[#allocation2 + $0xba] sm:$0xf] }
  0xf2   : > { %v5780_v15 = vld.sshfl [vmem:[#allocation1 + $0x10] sm:$0xff pattern:$0x75316420]  ;;  %5032 = vmatmul.msk.f32.gmra.mxu3 %vm272_vm0, %v5692_v3  ;;  %v944_v3 = vrot.slane %v5718_v28, 4 }
  0xf3   : > { %1240 = vst [vmem:[#allocation1 + $0x10] ss:$2 sm:$0xff] %v964_v11  ;;  %v5844_v11 = vpop.f32.mrf.mxu2 }
  0xf4   : > { %1241 = vst [vmem:[#allocation1 + $0x11] ss:$2 sm:$0xff] %v5778_v13  ;;  %5036 = vmatmul.msk.f32.gmra.mxu2 %vm272_vm0, %v1026_v19  ;;  %v1038_v33 = vld.sshfl [vmem:[#allocation1 + $0x30] sm:$0xff pattern:$0x75316420] }
  0xf5   : > { %1045 = vst [vmem:[#allocation1 + $0x30] ss:$2 sm:$0xff] %v7747_v27 }
  0xf6   : > { %v5789_v22 = vld.sshfl [vmem:[#allocation1] sm:$0xff pattern:$0x75316420]  ;;  %1046 = vst [vmem:[#allocation1 + $0x31] ss:$2 sm:$0xff] %v902_v31 }
  0xf7   : > { %1063 = vst [vmem:[#allocation1] ss:$2 sm:$0xff] %v908_v17 }
  0xf8   : > { %1064 = vst [vmem:[#allocation1 + $0x1] ss:$2 sm:$0xff] %v5724_v32  ;;  %v1194_v32 = vld [vmem:[%s7742_s3 + $0x8] sm:$0xff] }
  0xf9   : > { %1307 = vmatpush.msrb.mxu3 %v1194_v32  ;;  %1055 = vst [vmem:[#allocation1 + $0x20] ss:$2 sm:$0xff] %v944_v3  ;;  %v1381_v3 = vld [vmem:[#allocation2 + $0x2] sm:$0xff] }
  0xfa   : > { %7750 = vst [vmem:[#allocation5_spill] sm:$0xff] %v5844_v11 }
  0xfb   : > { %v5797_v23 = vld.sshfl [vmem:[#allocation1 + $0x10] sm:$0xff pattern:$0x75316420] }
  0xfc   : > { %1252 = vst [vmem:[#allocation1 + $0x10] ss:$2 sm:$0xff] %v1006_v21  ;;  %5037 = vmatmul.msk.f32.gmra.mxu2 %vm272_vm0, %v1035_v46  ;;  %v997_v46 = vrot.slane %v951_v44, 4  ;;  %v960_v21 = vld [vmem:[#allocation3 + $0x69] sm:$0xf] }
  0xfd   : > { %1253 = vst [vmem:[#allocation1 + $0x11] ss:$2 sm:$0xff] %v970_v26  ;;  %v5818_v28 = vld.sshfl [vmem:[#allocation1 + $0x30] sm:$0xff pattern:$0x75316420] }
  0xfe   : > { %1057 = vst [vmem:[#allocation1 + $0x30] ss:$2 sm:$0xff] %v907_v40  ;;  %v1429_v40 = vrot.slane %v1381_v3, 4 }
  0xff   : > { %v5807_v38 = vld.sshfl [vmem:[#allocation1] sm:$0xff pattern:$0x75316420]  ;;  %1058 = vst [vmem:[#allocation1 + $0x31] ss:$2 sm:$0xff] %v945_v48 }
 0x100   : > { %1195 = vst [vmem:[#allocation1] ss:$2 sm:$0xff] %v947_v30  ;;  %v5823_v54 = vld.sshfl [vmem:[#allocation1 + $0x20] sm:$0xff pattern:$0x75316420] }
 0x101   : > { %1197 = vst [vmem:[#allocation1 + $0x1] ss:$2 sm:$0xff] %v995_v34  ;;  %v968_v30 = vld [vmem:[#allocation3 + $0xa9] sm:$0xf]  ;;  %v5861_v48 = vld [vmem:[#allocation2 + $0x92] sm:$0xff] }
 0x102   : > { %1203 = vst [vmem:[#allocation1 + $0x20] ss:$2 sm:$0xff] %v996_v42  ;;  %v967_v42 = vld [vmem:[#allocation3 + $0xa1] sm:$0xff] }
 0x103   : > { %1205 = vst [vmem:[#allocation1 + $0x21] ss:$2 sm:$0xff] %v950_v57 }
 0x104   : > { %v5813_v45 = vld.sshfl [vmem:[#allocation1 + $0x10] sm:$0xff pattern:$0x75316420]  ;;  %5038 = vmatmul.msk.f32.gmra.mxu2 %vm272_vm0, %v5711_v24 }
 0x105   : > { %1506 = vst [vmem:[#allocation1 + $0x10] ss:$2 sm:$0xff] %v1382_v36  ;;  %v1398_v36 = vld [vmem:[#allocation2 + $0x8a] sm:$0xf] }
 0x106   : > { %1508 = vst [vmem:[#allocation1 + $0x11] ss:$2 sm:$0xff] %v5811_v43  ;;  %v5831_v63 = vld.sshfl [vmem:[#allocation1 + $0x30] sm:$0xff pattern:$0x75316420] }
 0x107   : > { %1207 = vst [vmem:[#allocation1 + $0x30] ss:$2 sm:$0xff] %v951_v44  ;;  %v1386_v44 = vld [vmem:[#allocation2 + $0x2a] sm:$0xf] }
 0x108   : > { %v1210_v52 = vld.sshfl [vmem:[#allocation1] sm:$0xff pattern:$0x75316420]  ;;  %1209 = vst [vmem:[#allocation1 + $0x31] ss:$2 sm:$0xff] %v997_v46 }
 0x109   : > { %1214 = vst [vmem:[#allocation1] ss:$2 sm:$0xff] %v952_v49  ;;  %5051 = vmatmul.msk.f32.vlgmr.msrb.gmra.mxu3 %vm272_vm0, %v1210_v52  ;;  %v966_v52 = vld [vmem:[#allocation3 + $0x99] sm:$0xf] }
 0x10a   : > { %1215 = vst [vmem:[#allocation1 + $0x1] ss:$2 sm:$0xff] %v5749_v50  ;;  %v958_v50 = vld [vmem:[#allocation3 + $0x59] sm:$0xf] }
 0x10b   : > { %v1212_v7 = vld.sshfl [vmem:[#allocation1 + $0x20] sm:$0xff pattern:$0x75316420] }
 0x10c   : > { %5039 = vmatmul.msk.f32.gmra.mxu2 %vm272_vm0, %v1037_v25  ;;  %1218 = vst [vmem:[#allocation1 + $0x20] ss:$2 sm:$0xff] %v955_v59  ;;  %v961_v25 = vld [vmem:[#allocation3 + $0x71] sm:$0xff] }
 0x10d   : > { %v5825_v24 = vld.sshfl [vmem:[#allocation1 + $0x10] sm:$0xff pattern:$0x75316420]  ;;  %1219 = vst [vmem:[#allocation1 + $0x21] ss:$2 sm:$0xff] %v999_v2  ;;  %v1002_v31 = vrot.slane %v961_v25, 4 }
 0x10e   : > { %1524 = vst [vmem:[#allocation1 + $0x11] ss:$2 sm:$0xff] %v1388_v53  ;;  %v1005_v53 = vrot.slane %v967_v42, 4  ;;  %v1391_v59 = vld [vmem:[#allocation2 + $0x52] sm:$0xff] }
 0x10f   : > { %1523 = vst [vmem:[#allocation1 + $0x10] ss:$2 sm:$0xff] %v1432_v61  ;;  %v1213_v19 = vld.sshfl [vmem:[#allocation1 + $0x30] sm:$0xff pattern:$0x75316420]  ;;  %v5891_v2 = vld [vmem:[#allocation2 + $0xb2] sm:$0xff] }
 0x110   : > { %1221 = vst [vmem:[#allocation1 + $0x31] ss:$2 sm:$0xff] %v957_v55 }
 0x111   : > { %v1222_v0 = vld.sshfl [vmem:[#allocation1] sm:$0xff pattern:$0x75316420]  ;;  %5052 = vmatmul.msk.f32.gmra.mxu3 %vm272_vm0, %v5763_v56  ;;  %v1393_v56 = vld [vmem:[#allocation2 + $0x62] sm:$0xff]  ;;  %1220 = vst [vmem:[#allocation1 + $0x30] ss:$2 sm:$0xff] %v956_v18 }
 0x112   : > { %1226 = vst [vmem:[#allocation1] ss:$2 sm:$0xff] %v1000_v60  ;;  %v1435_v17 = vrot.slane %v1393_v56, 4  ;;  %v1430_v60 = vrot.slane %v5811_v43, 4 }
 0x113   : > { %1227 = vst [vmem:[#allocation1 + $0x1] ss:$2 sm:$0xff] %v958_v50  ;;  %v1384_v50 = vld [vmem:[#allocation2 + $0x1a] sm:$0xf] }
 0x114   : > { %5040 = vmatmul.msk.f32.gmra.mxu2 %vm272_vm0, %v1038_v33  ;;  %v1224_v26 = vld.sshfl [vmem:[#allocation1 + $0x20] sm:$0xff pattern:$0x75316420] }
 0x115   : > { %1230 = vst [vmem:[#allocation1 + $0x20] ss:$2 sm:$0xff] %v960_v21  ;;  %v962_v33 = vld [vmem:[#allocation3 + $0x79] sm:$0xf] }
 0x116   : > { %v5848_v16 = vld.sshfl [vmem:[#allocation1 + $0x10] sm:$0xff pattern:$0x75316420]  ;;  %1231 = vst [vmem:[#allocation1 + $0x21] ss:$2 sm:$0xff] %v961_v25 }
 0x117   : > { %1535 = vst [vmem:[#allocation1 + $0x10] ss:$2 sm:$0xff] %v1393_v56  ;;  %v1392_v56 = vld [vmem:[#allocation2 + $0x5a] sm:$0xf]  ;;  %v1390_v25 = vld [vmem:[#allocation2 + $0x4a] sm:$0xf] }
 0x118   : > { %1536 = vst [vmem:[#allocation1 + $0x11] ss:$2 sm:$0xff] %v1435_v17  ;;  %v5858_v34 = vld.sshfl [vmem:[#allocation1 + $0x30] sm:$0xff pattern:$0x75316420] }
 0x119   : > { %5053 = vmatmul.msk.f32.gmra.mxu3 %vm272_vm0, %v1212_v7  ;;  %1232 = vst [vmem:[#allocation1 + $0x30] ss:$2 sm:$0xff] %v1002_v31  ;;  %v1442_v31 = vld [vmem:[#allocation3 + $0xa] sm:$0xf] }
 0x11a   : > { %v5842_v9 = vld.sshfl [vmem:[#allocation1] sm:$0xff pattern:$0x75316420]  ;;  %1233 = vst [vmem:[#allocation1 + $0x31] ss:$2 sm:$0xff] %v962_v33 }
 0x11b   : > { %1238 = vst [vmem:[#allocation1] ss:$2 sm:$0xff] %v963_v5  ;;  %v1440_v5 = vrot.slane %v5891_v2, 4  ;;  %v5913_v33 = vld [vmem:[#allocation3 + $0x12] sm:$0xff] }
 0x11c   : > { %1239 = vst [vmem:[#allocation1 + $0x1] ss:$2 sm:$0xff] %v1003_v6  ;;  %5041 = vmatmul.msk.f32.gmra.mxu2 %vm272_vm0, %v5774_v10  ;;  %v5855_v10 = vpop.f32.mrf.mxu2  ;;  %v1434_v6 = vrot.slane %v1391_v59, 4 }
 0x11d   : > { %7751 = vst [vmem:[#allocation6_spill] sm:$0xff] %v5855_v10 }
 0x11f   : > { %v5863_v49 = vld.sshfl [vmem:[#allocation1 + $0x10] sm:$0xff pattern:$0x75316420] }
 0x120   : > { %1547 = vst [vmem:[#allocation1 + $0x10] ss:$2 sm:$0xff] %v1398_v36  ;;  %v5923_v36 = vld [vmem:[#allocation2 + $0x72] sm:$0xff] }
 0x121   : > { %5054 = vmatmul.msk.f32.gmra.mxu3 %vm272_vm0, %v1213_v19  ;;  %1548 = vst [vmem:[#allocation1 + $0x11] ss:$2 sm:$0xff] %v5861_v48  ;;  %v5878_v57 = vld.sshfl [vmem:[#allocation1 + $0x30] sm:$0xff pattern:$0x75316420] }
 0x122   : > { %1244 = vst [vmem:[#allocation1 + $0x30] ss:$2 sm:$0xff] %v967_v42 }
 0x123   : > { %v5851_v32 = vld.sshfl [vmem:[#allocation1] sm:$0xff pattern:$0x75316420]  ;;  %1245 = vst [vmem:[#allocation1 + $0x31] ss:$2 sm:$0xff] %v1005_v53 }
 0x124   : > { %1250 = vst [vmem:[#allocation1] ss:$2 sm:$0xff] %v968_v30  ;;  %5042 = vmatmul.msk.f32.gmra.mxu2 %vm272_vm0, %v5720_v29  ;;  %v1688_v29 = vld [vmem:[%s7742_s3 + $0x10] sm:$0xff]  ;;  %v5876_v55 = vpop.f32.mrf.mxu2 }
 0x125   : > { %1251 = vst [vmem:[#allocation1 + $0x1] ss:$2 sm:$0xff] %v5786_v20  ;;  %v5869_v20 = vld.sshfl [vmem:[#allocation1 + $0x20] sm:$0xff pattern:$0x75316420]  ;;  %1801 = vmatpush.msrb.mxu1 %v1688_v29 }
 0x126   : > { %1242 = vst [vmem:[#allocation1 + $0x20] ss:$2 sm:$0xff] %v1004_v39  ;;  %v1394_v39 = vld [vmem:[#allocation2 + $0x6a] sm:$0xf]  ;;  %v5930_v29 = vld [vmem:[#allocation3 + $0x32] sm:$0xff] }
 0x127   : > { %1243 = vst [vmem:[#allocation1 + $0x21] ss:$2 sm:$0xff] %v966_v52  ;;  %v1396_v52 = vld [vmem:[#allocation2 + $0x7a] sm:$0xf]  ;;  %v1492_v53 = vrot.slane %v5930_v29, 4 }
 0x128   : > { %v5898_v7 = vld.sshfl [vmem:[#allocation1 + $0x10] sm:$0xff pattern:$0x75316420] }
 0x129   : > { %5055 = vmatmul.msk.f32.gmra.mxu3 %vm272_vm0, %v1222_v0  ;;  %v5888_v0 = vpop.f32.mrf.mxu3  ;;  %1559 = vst [vmem:[#allocation1 + $0x10] ss:$2 sm:$0xff] %v1440_v5 }
 0x12a   : > { %7752 = vst [vmem:[#allocation7_spill] sm:$0xff] %v5888_v0  ;;  %v5893_v43 = vld.sshfl [vmem:[#allocation1 + $0x30] sm:$0xff pattern:$0x75316420] }
 0x12b   : > { %1560 = vst [vmem:[#allocation1 + $0x11] ss:$2 sm:$0xff] %v1404_v8 }
 0x12c   : > { %v5872_v13 = vld.sshfl [vmem:[#allocation1] sm:$0xff pattern:$0x75316420]  ;;  %5043 = vmatmul.msk.f32.gmra.mxu2 %vm272_vm0, %v5809_v41  ;;  %v1385_v41 = vld [vmem:[#allocation2 + $0x22] sm:$0xff] }
 0x12d   : > { %1502 = vst [vmem:[#allocation1] ss:$2 sm:$0xff] %v1381_v3 }
 0x12e   : > { %1504 = vst [vmem:[#allocation1 + $0x1] ss:$2 sm:$0xff] %v1429_v40  ;;  %v5886_v46 = vld.sshfl [vmem:[#allocation1 + $0x20] sm:$0xff pattern:$0x75316420]  ;;  %v7746_v40 = vrot.slane %v5923_v36, 4 }
 0x12f   : > { %1510 = vst [vmem:[#allocation1 + $0x20] ss:$2 sm:$0xff] %v1430_v60 }
 0x130   : > { %1512 = vst [vmem:[#allocation1 + $0x21] ss:$2 sm:$0xff] %v1384_v50  ;;  %v1401_v50 = vld [vmem:[#allocation2 + $0xa2] sm:$0xff] }
 0x131   : > { %5056 = vmatmul.msk.f32.gmra.mxu3 %vm272_vm0, %v5770_v4  ;;  %v1431_v4 = vrot.slane %v1385_v41, 4  ;;  %1514 = vst [vmem:[#allocation1 + $0x30] ss:$2 sm:$0xff] %v1385_v41  ;;  %v5907_v21 = vpop.f32.mrf.mxu3  ;;  %v1439_v5 = vrot.slane %v1401_v50, 4 }
 0x132   : > { %7753 = vst [vmem:[#allocation8_spill] sm:$0xff] %v5907_v21 }
 0x133   : > { %1516 = vst [vmem:[#allocation1 + $0x31] ss:$2 sm:$0xff] %v1431_v4 }
 0x134   : > { %5044 = vmatmul.msk.f32.gmra.mxu2 %vm272_vm0, %v5818_v28  ;;  %v5895_v28 = vpop.f32.mrf.mxu2 }
 0x135   : > { %v1517_v61 = vld.sshfl [vmem:[#allocation1] sm:$0xff pattern:$0x75316420] }
 0x136   : > { %1521 = vst [vmem:[#allocation1] ss:$2 sm:$0xff] %v1386_v44  ;;  %5069 = vmatmul.msk.f32.vlgmr.msrb.gmra.mxu0 %vm272_vm0, %v1517_v61  ;;  %v1402_v61 = vld [vmem:[#allocation2 + $0xaa] sm:$0xf] }
 0x137   : > { %1522 = vst [vmem:[#allocation1 + $0x1] ss:$2 sm:$0xff] %v5828_v58  ;;  %v1389_v58 = vld [vmem:[#allocation2 + $0x42] sm:$0xff]  ;;  %v1519_v17 = vld.sshfl [vmem:[#allocation1 + $0x20] sm:$0xff pattern:$0x75316420] }
 0x138   : > { %v1433_v19 = vrot.slane %v1389_v58, 4  ;;  %1525 = vst [vmem:[#allocation1 + $0x20] ss:$2 sm:$0xff] %v1389_v58  ;;  %v1441_v58 = vld [vmem:[#allocation3 + $0x2] sm:$0xff] }
 0x139   : > { %5057 = vmatmul.msk.f32.gmra.mxu3 %vm272_vm0, %v1224_v26 }
 0x13a   : > { %v1520_v26 = vld.sshfl [vmem:[#allocation1 + $0x30] sm:$0xff pattern:$0x75316420]  ;;  %1526 = vst [vmem:[#allocation1 + $0x21] ss:$2 sm:$0xff] %v1433_v19 }
 0x13b   : > { %1528 = vst [vmem:[#allocation1 + $0x31] ss:$2 sm:$0xff] %v1391_v59  ;;  %v1438_v59 = vrot.slane %v5861_v48, 4 }
 0x13c   : > { %5045 = vmatmul.msk.f32.gmra.mxu2 %vm272_vm0, %v5789_v22  ;;  %v1397_v22 = vld [vmem:[#allocation2 + $0x82] sm:$0xff]  ;;  %v5911_v30 = vpop.f32.mrf.mxu2  ;;  %1527 = vst [vmem:[#allocation1 + $0x30] ss:$2 sm:$0xff] %v1390_v25  ;;  %v1490_v25 = vrot.slane %v5913_v33, 4 }
 0x13d   : > { %v1437_v3 = vrot.slane %v1397_v22, 4 }
 0x13e   : > { %v5903_v18 = vld.sshfl [vmem:[#allocation1] sm:$0xff pattern:$0x75316420]  ;;  %5070 = vmatmul.msk.f32.gmra.mxu0 %vm272_vm0, %v5825_v24  ;;  %v5917_v24 = vld.sshfl [vmem:[#allocation1 + $0x10] sm:$0xff pattern:$0x75316420] }
 0x13f   : > { %1533 = vst [vmem:[#allocation1] ss:$2 sm:$0xff] %v1434_v6  ;;  %v1453_v6 = vld [vmem:[#allocation3 + $0x62] sm:$0xff] }
 0x140   : > { %1534 = vst [vmem:[#allocation1 + $0x1] ss:$2 sm:$0xff] %v1392_v56  ;;  %v1495_v19 = vrot.slane %v1453_v6, 4 }
 0x141   : > { %5058 = vmatmul.msk.f32.gmra.mxu3 %vm272_vm0, %v5858_v34  ;;  %1693 = vst [vmem:[#allocation1 + $0x10] ss:$2 sm:$0xff] %v1442_v31 }
 0x142   : > { %1695 = vst [vmem:[#allocation1 + $0x11] ss:$2 sm:$0xff] %v5913_v33  ;;  %v5932_v42 = vpop.f32.mrf.mxu3 }
 0x143   : > { %7754 = vst [vmem:[#allocation9_spill] sm:$0xff] %v5932_v42  ;;  %v5935_v44 = vld.sshfl [vmem:[#allocation1 + $0x30] sm:$0xff pattern:$0x75316420]  ;;  %v1885_v42 = vld [vmem:[#allocation2 + $0x60] sm:$0xff] }
 0x144   : > { %5046 = vmatmul.msk.f32.gmra.mxu2 %vm272_vm0, %v5729_v37  ;;  %v5928_v37 = vld.sshfl [vmem:[#allocation1 + $0x20] sm:$0xff pattern:$0x75316420]  ;;  %v5938_v60 = vpop.f32.mrf.mxu2  ;;  %1539 = vst [vmem:[#allocation1 + $0x30] ss:$2 sm:$0xff] %v7746_v40 }
 0x145   : > { %1537 = vst [vmem:[#allocation1 + $0x20] ss:$2 sm:$0xff] %v1394_v39 }
 0x146   : > { %5071 = vmatmul.msk.f32.gmra.mxu0 %vm272_vm0, %v1519_v17  ;;  %1538 = vst [vmem:[#allocation1 + $0x21] ss:$2 sm:$0xff] %v5923_v36  ;;  %v1489_v17 = vrot.slane %v1441_v58, 4 }
 0x147   : > { %v5921_v34 = vld.sshfl [vmem:[#allocation1] sm:$0xff pattern:$0x75316420]  ;;  %1540 = vst [vmem:[#allocation1 + $0x31] ss:$2 sm:$0xff] %v1396_v52 }
 0x148   : > { %1545 = vst [vmem:[#allocation1] ss:$2 sm:$0xff] %v1397_v22 }
 0x149   : > { %1546 = vst [vmem:[#allocation1 + $0x1] ss:$2 sm:$0xff] %v1437_v3  ;;  %5059 = vmatmul.msk.f32.gmra.mxu3 %vm272_vm0, %v5842_v9  ;;  %v1448_v9 = vld [vmem:[#allocation3 + $0x3a] sm:$0xf]  ;;  %v5976_v3 = vpop.f32.mrf.mxu0 }
 0x14a   : > { %v5944_v41 = vld.sshfl [vmem:[#allocation1 + $0x10] sm:$0xff pattern:$0x75316420]  ;;  %7756 = vst [vmem:[#allocation11_spill] sm:$0xff] %v5976_v3 }
 0x14b   : > { %1710 = vst [vmem:[#allocation1 + $0x10] ss:$2 sm:$0xff] %v1492_v53  ;;  %v5986_v53 = vld [vmem:[#allocation3 + $0x92] sm:$0xff] }
 0x14c   : > { %5047 = vmatmul.msk.f32.gmra.mxu2 %vm272_vm0, %v5823_v54  ;;  %1711 = vst [vmem:[#allocation1 + $0x11] ss:$2 sm:$0xff] %v1448_v9  ;;  %v1400_v54 = vld [vmem:[#allocation2 + $0x9a] sm:$0xf] }
 0x14d   : > { %v5953_v8 = vld.sshfl [vmem:[#allocation1 + $0x20] sm:$0xff pattern:$0x75316420]  ;;  %v5957_v48 = vpop.f32.mrf.mxu3 }
 0x14e   : > { %5072 = vmatmul.msk.f32.gmra.mxu0 %vm272_vm0, %v1520_v26  ;;  %1549 = vst [vmem:[#allocation1 + $0x20] ss:$2 sm:$0xff] %v1438_v59  ;;  %v5959_v56 = vld.sshfl [vmem:[#allocation1 + $0x30] sm:$0xff pattern:$0x75316420]  ;;  %v1995_v59 = vld [vmem:[%s7741_s2 + $0x18] sm:$0xff] }
 0x14f   : > { %1550 = vst [vmem:[#allocation1 + $0x21] ss:$2 sm:$0xff] %v1400_v54  ;;  %v1444_v26 = vld [vmem:[#allocation3 + $0x1a] sm:$0xf]  ;;  %v2182_v54 = vld [vmem:[%s7742_s3 + $0x18] sm:$0xff]  ;;  %2108 = vmatpush.msra.mxu2 %v1995_v59 }
 0x150   : > { %v5948_v4 = vld.sshfl [vmem:[#allocation1] sm:$0xff pattern:$0x75316420]  ;;  %1551 = vst [vmem:[#allocation1 + $0x30] ss:$2 sm:$0xff] %v1401_v50  ;;  %2295 = vmatpush.msra.mxu3 %v2182_v54 }
 0x151   : > { %1557 = vst [vmem:[#allocation1] ss:$2 sm:$0xff] %v1402_v61  ;;  %5060 = vmatmul.msk.f32.gmra.mxu3 %vm272_vm0, %v5780_v15  ;;  %v5963_v15 = vpop.f32.mrf.mxu2  ;;  %v1458_v61 = vld [vmem:[#allocation3 + $0x8a] sm:$0xf]  ;;  %v1876_v59 = vld [vmem:[#allocation2 + $0x18] sm:$0xf] }
 0x152   : > { %1558 = vst [vmem:[#allocation1 + $0x1] ss:$2 sm:$0xff] %v5891_v2 }
 0x153   : > { %7755 = vst [vmem:[#allocation10_spill] sm:$0xff] %v5963_v15  ;;  %v5965_v2 = vld.sshfl [vmem:[#allocation1 + $0x10] sm:$0xff pattern:$0x75316420] }
 0x154   : > { %5048 = vmatmul.msk.f32.gmra.mxu2 %vm272_vm0, %v5831_v63  ;;  %1552 = vst [vmem:[#allocation1 + $0x31] ss:$2 sm:$0xff] %v1439_v5  ;;  %v1445_v63 = vld [vmem:[#allocation3 + $0x22] sm:$0xff] }
 0x155   : > { %1722 = vst [vmem:[#allocation1 + $0x10] ss:$2 sm:$0xff] %v1453_v6  ;;  %v1491_v31 = vrot.slane %v1445_v63, 4  ;;  %v5982_v39 = vpop.f32.mrf.mxu3  ;;  %v1451_v6 = vld [vmem:[#allocation3 + $0x52] sm:$0xff] }
 0x156   : > { %5073 = vmatmul.msk.f32.gmra.mxu0 %vm272_vm0, %v5903_v18  ;;  %1723 = vst [vmem:[#allocation1 + $0x11] ss:$2 sm:$0xff] %v1495_v19  ;;  %v5972_v18 = vld.sshfl [vmem:[#allocation1 + $0x20] sm:$0xff pattern:$0x75316420] }
 0x157   : > { %1697 = vst [vmem:[#allocation1 + $0x20] ss:$2 sm:$0xff] %v1490_v25  ;;  %v1464_v25 = vld [vmem:[#allocation3 + $0xba] sm:$0xf] }
 0x158   : > { %1699 = vst [vmem:[#allocation1 + $0x21] ss:$2 sm:$0xff] %v1444_v26 }
 0x159   : > { %v5968_v22 = vld.sshfl [vmem:[#allocation1] sm:$0xff pattern:$0x75316420]  ;;  %5061 = vmatmul.msk.f32.gmra.mxu3 %vm272_vm0, %v5869_v20  ;;  %v1449_v20 = vld [vmem:[#allocation3 + $0x42] sm:$0xff]  ;;  %v5988_v9 = vpop.f32.mrf.mxu2 }
 0x15a   : > { %1689 = vst [vmem:[#allocation1] ss:$2 sm:$0xff] %v1441_v58  ;;  %v1493_v50 = vrot.slane %v1449_v20, 4 }
 0x15b   : > { %1691 = vst [vmem:[#allocation1 + $0x1] ss:$2 sm:$0xff] %v1489_v17  ;;  %v5978_v33 = vld.sshfl [vmem:[#allocation1 + $0x30] sm:$0xff pattern:$0x75316420]  ;;  %v6008_v17 = vpop.f32.mrf.mxu0 }
 0x15c   : > { %5049 = vmatmul.msk.f32.gmra.mxu2 %vm272_vm0, %v5807_v38  ;;  %1701 = vst [vmem:[#allocation1 + $0x30] ss:$2 sm:$0xff] %v1445_v63  ;;  %v1446_v38 = vld [vmem:[#allocation3 + $0x2a] sm:$0xf] }
 0x15d   : > { %1703 = vst [vmem:[#allocation1 + $0x31] ss:$2 sm:$0xff] %v1491_v31  ;;  %v5984_v52 = vld.sshfl [vmem:[#allocation1 + $0x10] sm:$0xff pattern:$0x75316420]  ;;  %v6010_v63 = vpop.f32.mrf.mxu3 }
 0x15e   : > { %5074 = vmatmul.msk.f32.gmra.mxu0 %vm272_vm0, %v5848_v16  ;;  %7757 = vst [vmem:[#allocation12_spill] sm:$0xff] %v5988_v9  ;;  %v2942_v9 = vld [vmem:[#allocation3 + $0xaa] sm:$0xf] }
 0x15f   : > { %1735 = vst [vmem:[#allocation1 + $0x11] ss:$2 sm:$0xff] %v5986_v53  ;;  %v1706_v5 = vld.sshfl [vmem:[#allocation1 + $0x20] sm:$0xff pattern:$0x75316420] }
 0x160   : > { %1734 = vst [vmem:[#allocation1 + $0x10] ss:$2 sm:$0xff] %v1458_v61 }
 0x161   : > { %5062 = vmatmul.msk.f32.gmra.mxu3 %vm272_vm0, %v5878_v57  ;;  %v6003_v57 = vld [vmem:[#allocation3 + $0xb2] sm:$0xff]  ;;  %1712 = vst [vmem:[#allocation1 + $0x20] ss:$2 sm:$0xff] %v1449_v20  ;;  %v6016_v31 = vpop.f32.mrf.mxu2 }
 0x162   : > { %v1704_v16 = vld.sshfl [vmem:[#allocation1] sm:$0xff pattern:$0x75316420]  ;;  %v1500_v58 = vrot.slane %v6003_v57, 4  ;;  %1713 = vst [vmem:[#allocation1 + $0x21] ss:$2 sm:$0xff] %v1493_v50 }
 0x163   : > { %5087 = vmatmul.msk.f32.vlgmr.msrb.gmra.mxu1 %vm272_vm0, %v1704_v16  ;;  %1708 = vst [vmem:[#allocation1] ss:$2 sm:$0xff] %v1446_v38  ;;  %v1454_v38 = vld [vmem:[#allocation3 + $0x6a] sm:$0xf]  ;;  %v1455_v16 = vld [vmem:[#allocation3 + $0x72] sm:$0xff]  ;;  %v1457_v50 = vld [vmem:[#allocation3 + $0x82] sm:$0xff] }
 0x164   : > { %5050 = vmatmul.msk.f32.gmra.mxu2 %vm272_vm0, %v5744_v47  ;;  %1709 = vst [vmem:[#allocation1 + $0x1] ss:$2 sm:$0xff] %v5930_v29  ;;  %v1707_v19 = vld.sshfl [vmem:[#allocation1 + $0x30] sm:$0xff pattern:$0x75316420]  ;;  %v1494_v29 = vrot.slane %v1451_v6, 4 }
 0x165   : > { %7758 = vst [vmem:[#allocation13_spill] sm:$0xff] %v6008_v17  ;;  %v1450_v47 = vld [vmem:[#allocation3 + $0x4a] sm:$0xf] }
 0x166   : > { %5075 = vmatmul.msk.f32.gmra.mxu0 %vm272_vm0, %v5928_v37  ;;  %1715 = vst [vmem:[#allocation1 + $0x31] ss:$2 sm:$0xff] %v1451_v6  ;;  %v1452_v37 = vld [vmem:[#allocation3 + $0x5a] sm:$0xf]  ;;  %v6031_v6 = vpop.f32.mrf.mxu0 }
 0x167   : > { %v6012_v26 = vld.sshfl [vmem:[#allocation1 + $0x10] sm:$0xff pattern:$0x75316420]  ;;  %1714 = vst [vmem:[#allocation1 + $0x30] ss:$2 sm:$0xff] %v1450_v47 }
 0x168   : > { %1746 = vst [vmem:[#allocation1 + $0x10] ss:$2 sm:$0xff] %v1500_v58  ;;  %v1456_v47 = vld [vmem:[#allocation3 + $0x7a] sm:$0xf] }
 0x169   : > { %5063 = vmatmul.msk.f32.gmra.mxu3 %vm272_vm0, %v5851_v32  ;;  %7759 = vst [vmem:[#allocation14_spill] sm:$0xff] %v6016_v31  ;;  %v6022_v61 = vld.sshfl [vmem:[#allocation1 + $0x20] sm:$0xff pattern:$0x75316420]  ;;  %v1496_v32 = vrot.slane %v1455_v16, 4 }
 0x16a   : > { %1747 = vst [vmem:[#allocation1 + $0x11] ss:$2 sm:$0xff] %v1464_v25  ;;  %v1497_v25 = vrot.slane %v1457_v50, 4  ;;  %v2868_v31 = vld [vmem:[#allocation2 + $0x3a] sm:$0xf] }
 0x16b   : > { %5088 = vmatmul.msk.f32.gmra.mxu1 %vm272_vm0, %v5944_v41  ;;  %v6020_v20 = vld.sshfl [vmem:[#allocation1] sm:$0xff pattern:$0x75316420]  ;;  %1724 = vst [vmem:[#allocation1 + $0x20] ss:$2 sm:$0xff] %v1454_v38  ;;  %v1498_v38 = vrot.slane %v5986_v53, 4 }
 0x16c   : > { %1720 = vst [vmem:[#allocation1] ss:$2 sm:$0xff] %v1494_v29  ;;  %v2489_v41 = vld [vmem:[%s7741_s2 + $0x20] sm:$0xff]  ;;  %v1462_v53 = vld [vmem:[#allocation3 + $0xaa] sm:$0xf] }
 0x16d   : > { %1721 = vst [vmem:[#allocation1 + $0x1] ss:$2 sm:$0xff] %v1452_v37  ;;  %2602 = vmatpush.msra.mxu0 %v2489_v41  ;;  %v6043_v37 = vpop.f32.mrf.mxu2  ;;  %v2676_v41 = vld [vmem:[%s7742_s3 + $0x20] sm:$0xff] }
 0x16e   : > { %5076 = vmatmul.msk.f32.gmra.mxu0 %vm272_vm0, %v5935_v44  ;;  %v6026_v54 = vld.sshfl [vmem:[#allocation1 + $0x30] sm:$0xff pattern:$0x75316420]  ;;  %1725 = vst [vmem:[#allocation1 + $0x21] ss:$2 sm:$0xff] %v1455_v16  ;;  %v6037_v44 = vpop.f32.mrf.mxu3  ;;  %2789 = vmatpush.msra.mxu1 %v2676_v41 }
 0x16f   : > { %7760 = vst [vmem:[#allocation15_spill] sm:$0xff] %v6031_v6  ;;  %v1461_v16 = vld [vmem:[#allocation3 + $0xa2] sm:$0xff] }
 0x170   : > { %1726 = vst [vmem:[#allocation1 + $0x30] ss:$2 sm:$0xff] %v1496_v32  ;;  %v6048_v32 = vld [vmem:[#allocation2 + $0x40] sm:$0xff] }
 0x171   : > { %5064 = vmatmul.msk.f32.gmra.mxu3 %vm272_vm0, %v5797_v23  ;;  %v6035_v58 = vld.sshfl [vmem:[#allocation1 + $0x10] sm:$0xff pattern:$0x75316420]  ;;  %7761 = vst [vmem:[#allocation16_spill] sm:$0xff] %v6043_v37  ;;  %v1460_v23 = vld [vmem:[#allocation3 + $0x9a] sm:$0xf] }
 0x172   : > { %2000 = vst [vmem:[#allocation1 + $0x10] ss:$2 sm:$0xff] %v1876_v59 }
 0x173   : > { %5089 = vmatmul.msk.f32.gmra.mxu1 %vm272_vm0, %v1706_v5  ;;  %2002 = vst [vmem:[#allocation1 + $0x11] ss:$2 sm:$0xff] %v5673_v14  ;;  %v1926_v5 = vrot.slane %v6048_v32, 4 }
 0x174   : > { %v6041_v29 = vld.sshfl [vmem:[#allocation1] sm:$0xff pattern:$0x75316420]  ;;  %1727 = vst [vmem:[#allocation1 + $0x31] ss:$2 sm:$0xff] %v1456_v47 }
 0x175   : > { %1732 = vst [vmem:[#allocation1] ss:$2 sm:$0xff] %v1457_v50  ;;  %v6050_v59 = vld.sshfl [vmem:[#allocation1 + $0x20] sm:$0xff pattern:$0x75316420] }
 0x176   : > { %5077 = vmatmul.msk.f32.gmra.mxu0 %vm272_vm0, %v5921_v34  ;;  %1733 = vst [vmem:[#allocation1 + $0x1] ss:$2 sm:$0xff] %v1497_v25  ;;  %v1499_v34 = vrot.slane %v1461_v16, 4  ;;  %v6061_v25 = vpop.f32.mrf.mxu0  ;;  %v6065_v40 = vpop.f32.mrf.mxu3 }
 0x177   : > { %1736 = vst [vmem:[#allocation1 + $0x20] ss:$2 sm:$0xff] %v1498_v38  ;;  %v1882_v38 = vld [vmem:[#allocation2 + $0x48] sm:$0xf] }
 0x178   : > { %1737 = vst [vmem:[#allocation1 + $0x21] ss:$2 sm:$0xff] %v1460_v23  ;;  %v1879_v23 = vld [vmem:[#allocation2 + $0x30] sm:$0xff] }
 0x179   : > { %5065 = vmatmul.msk.f32.gmra.mxu3 %vm272_vm0, %v5886_v46  ;;  %7762 = vst [vmem:[#allocation17_spill] sm:$0xff] %v6061_v25  ;;  %v6071_v46 = vpop.f32.mrf.mxu2 }
 0x17a   : > { %v6058_v50 = vld.sshfl [vmem:[#allocation1 + $0x10] sm:$0xff pattern:$0x75316420]  ;;  %7763 = vst [vmem:[#allocation18_spill] sm:$0xff] %v6065_v40 }
 0x17b   : > { %5090 = vmatmul.msk.f32.gmra.mxu1 %vm272_vm0, %v1707_v19  ;;  %v6063_v47 = vld.sshfl [vmem:[#allocation1 + $0x30] sm:$0xff pattern:$0x75316420]  ;;  %2017 = vst [vmem:[#allocation1 + $0x10] ss:$2 sm:$0xff] %v1926_v5  ;;  %v1875_v5 = vld [vmem:[#allocation2 + $0x10] sm:$0xff] }
 0x17c   : > { %1738 = vst [vmem:[#allocation1 + $0x30] ss:$2 sm:$0xff] %v1461_v16  ;;  %v1878_v19 = vld [vmem:[#allocation2 + $0x28] sm:$0xf] }
 0x17d   : > { %v6067_v27 = vld.sshfl [vmem:[#allocation1] sm:$0xff pattern:$0x75316420]  ;;  %1739 = vst [vmem:[#allocation1 + $0x31] ss:$2 sm:$0xff] %v1499_v34  ;;  %v352_v16 = vld [vmem:[%s5542_s7 + $0xb0] sm:$0xff] }
 0x17e   : > { %5078 = vmatmul.msk.f32.gmra.mxu0 %vm272_vm0, %v5863_v49  ;;  %1744 = vst [vmem:[#allocation1] ss:$2 sm:$0xff] %v1462_v53  ;;  %v1925_v49 = vrot.slane %v1879_v23, 4  ;;  %v1887_v34 = vld [vmem:[#allocation2 + $0x70] sm:$0xff]  ;;  %v3424_v40 = vld [vmem:[#allocation3 + $0x48] sm:$0xf] }
 0x17f   : > { %7764 = vst [vmem:[#allocation19_spill] sm:$0xff] %v6071_v46  ;;  %v6074_v41 = vld.sshfl [vmem:[#allocation1 + $0x20] sm:$0xff pattern:$0x75316420] }
 0x180   : > { %1745 = vst [vmem:[#allocation1 + $0x1] ss:$2 sm:$0xff] %v6003_v57  ;;  %v1923_v57 = vrot.slane %v1875_v5, 4 }
 0x181   : > { %2018 = vst [vmem:[#allocation1 + $0x11] ss:$2 sm:$0xff] %v1882_v38  ;;  %5066 = vmatmul.msk.f32.gmra.mxu3 %vm272_vm0, %v5893_v43  ;;  %v6086_v38 = vpop.f32.mrf.mxu0  ;;  %v1929_v43 = vrot.slane %v1887_v34, 4 }
 0x182   : > { %2004 = vst [vmem:[#allocation1 + $0x20] ss:$2 sm:$0xff] %v479_v62  ;;  %v6092_v62 = vpop.f32.mrf.mxu3 }
 0x183   : > { %2006 = vst [vmem:[#allocation1 + $0x21] ss:$2 sm:$0xff] %v1878_v19  ;;  %5091 = vmatmul.msk.f32.gmra.mxu1 %vm272_vm0, %v6020_v20  ;;  %v6096_v19 = vpop.f32.mrf.mxu2 }
 0x184   : > { %378 = vst.msk [vmem:[#allocation2 + $0xc1] sm:$0xff] %vm272_vm0, %v352_v16  ;;  %v6084_v53 = vld.sshfl [vmem:[#allocation1 + $0x30] sm:$0xff pattern:$0x75316420]  ;;  %v1883_v16 = vld [vmem:[#allocation2 + $0x50] sm:$0xff] }
 0x185   : > { %7765 = vst [vmem:[#allocation20_spill] sm:$0xff] %v6086_v38 }
 0x186   : > { %2008 = vst [vmem:[#allocation1 + $0x30] ss:$2 sm:$0xff] %v1879_v23  ;;  %5079 = vmatmul.msk.f32.gmra.mxu0 %vm272_vm0, %v5953_v8  ;;  %v6100_v23 = vpop.f32.mrf.mxu1 }
 0x187   : > { %v6090_v14 = vld.sshfl [vmem:[#allocation1] sm:$0xff pattern:$0x75316420]  ;;  %7766 = vst [vmem:[#allocation21_spill] sm:$0xff] %v6092_v62 }
 0x188   : > { %2010 = vst [vmem:[#allocation1 + $0x31] ss:$2 sm:$0xff] %v1925_v49  ;;  %v6094_v20 = vld.sshfl [vmem:[#allocation1 + $0x10] sm:$0xff pattern:$0x75316420]  ;;  %v1927_v49 = vrot.slane %v1883_v16, 4 }
 0x189   : > { %1996 = vst [vmem:[#allocation1] ss:$2 sm:$0xff] %v1875_v5  ;;  %5067 = vmatmul.msk.f32.gmra.mxu3 %vm272_vm0, %v5872_v13  ;;  %v1880_v5 = vld [vmem:[#allocation2 + $0x38] sm:$0xf]  ;;  %v6111_v10 = vpop.f32.mrf.mxu0 }
 0x18a   : > { %1998 = vst [vmem:[#allocation1 + $0x1] ss:$2 sm:$0xff] %v1923_v57  ;;  %v6102_v8 = vld.sshfl [vmem:[#allocation1 + $0x20] sm:$0xff pattern:$0x75316420] }
 0x18b   : > { %7767 = vst [vmem:[#allocation22_spill] sm:$0xff] %v6096_v19  ;;  %5092 = vmatmul.msk.f32.gmra.mxu1 %vm272_vm0, %v5965_v2  ;;  %v1892_v13 = vld [vmem:[#allocation2 + $0x98] sm:$0xf]  ;;  %v1898_v0 = vld [vmem:[#allocation2 + $0xc8] sm:$0xf] }
 0x18c   : > { %2029 = vst [vmem:[#allocation1 + $0x10] ss:$2 sm:$0xff] %v1887_v34  ;;  %v6115_v2 = vpop.f32.mrf.mxu3  ;;  %v2932_v62 = vld [vmem:[#allocation3 + $0x5a] sm:$0xf] }
 0x18d   : > { %7768 = vst [vmem:[#allocation23_spill] sm:$0xff] %v6100_v23 }
 0x18e   : > { %2030 = vst [vmem:[#allocation1 + $0x11] ss:$2 sm:$0xff] %v1929_v43  ;;  %5080 = vmatmul.msk.f32.gmra.mxu0 %vm272_vm0, %v5959_v56  ;;  %v6122_v56 = vpop.f32.mrf.mxu2  ;;  %v6127_v35 = vpop.f32.mrf.mxu1 }
 0x18f   : > { %2019 = vst [vmem:[#allocation1 + $0x20] ss:$2 sm:$0xff] %v1883_v16  ;;  %v6107_v57 = vld.sshfl [vmem:[#allocation1 + $0x30] sm:$0xff pattern:$0x75316420] }
 0x190   : > { %2020 = vst [vmem:[#allocation1 + $0x21] ss:$2 sm:$0xff] %v1927_v49  ;;  %v1884_v49 = vld [vmem:[#allocation2 + $0x58] sm:$0xf] }
 0x191   : > { %2022 = vst [vmem:[#allocation1 + $0x31] ss:$2 sm:$0xff] %v1885_v42  ;;  %v2011_v34 = vld.sshfl [vmem:[#allocation1] sm:$0xff pattern:$0x75316420]  ;;  %5068 = vmatmul.msk.f32.gmra.mxu3 %vm272_vm0, %v5813_v45  ;;  %v6137_v11 = vpop.f32.mrf.mxu0 }
 0x192   : > { %7769 = vst [vmem:[#allocation24_spill] sm:$0xff] %v6111_v10  ;;  %5105 = vmatmul.msk.f32.vlgmr.msra.gmra.mxu2 %vm272_vm0, %v2011_v34  ;;  %v1928_v34 = vrot.slane %v1885_v42, 4  ;;  %v1888_v45 = vld [vmem:[#allocation2 + $0x78] sm:$0xf]  ;;  %v1894_v10 = vld [vmem:[#allocation2 + $0xa8] sm:$0xf] }
 0x193   : > { %7770 = vst [vmem:[#allocation25_spill] sm:$0xff] %v6115_v2  ;;  %5093 = vmatmul.msk.f32.gmra.mxu1 %vm272_vm0, %v6022_v61  ;;  %v2444_v2 = vld [vmem:[#allocation3 + $0x89] sm:$0xf] }
 0x194   : > { %2015 = vst [vmem:[#allocation1] ss:$2 sm:$0xff] %v1880_v5  ;;  %v1889_v5 = vld [vmem:[#allocation2 + $0x80] sm:$0xff]  ;;  %v6139_v42 = vpop.f32.mrf.mxu3 }
 0x195   : > { %2016 = vst [vmem:[#allocation1 + $0x1] ss:$2 sm:$0xff] %v6048_v32  ;;  %v6120_v43 = vld.sshfl [vmem:[#allocation1 + $0x10] sm:$0xff pattern:$0x75316420]  ;;  %v1897_v32 = vld [vmem:[#allocation2 + $0xc0] sm:$0xff] }
 0x196   : > { %7771 = vst [vmem:[#allocation26_spill] sm:$0xff] %v6122_v56  ;;  %5081 = vmatmul.msk.f32.gmra.mxu0 %vm272_vm0, %v5948_v4  ;;  %v1934_v21 = vrot.slane %v1897_v32, 4  ;;  %v1930_v4 = vrot.slane %v1889_v5, 4 }
 0x197   : > { %2041 = vst [vmem:[#allocation1 + $0x10] ss:$2 sm:$0xff] %v1892_v13  ;;  %v6129_v16 = vld.sshfl [vmem:[#allocation1 + $0x20] sm:$0xff pattern:$0x75316420] }
 0x198   : > { %2042 = vst [vmem:[#allocation1 + $0x11] ss:$2 sm:$0xff] %v5752_v51  ;;  %v1886_v13 = vld [vmem:[#allocation2 + $0x68] sm:$0xf] }
 0x199   : > { %7772 = vst [vmem:[#allocation27_spill] sm:$0xff] %v6127_v35 }
 0x19a   : > { %2021 = vst [vmem:[#allocation1 + $0x30] ss:$2 sm:$0xff] %v1884_v49  ;;  %5106 = vmatmul.msk.f32.gmra.mxu2 %vm272_vm0, %v6058_v50 }
 0x19b   : > { %2031 = vst [vmem:[#allocation1 + $0x20] ss:$2 sm:$0xff] %v1888_v45  ;;  %5094 = vmatmul.msk.f32.gmra.mxu1 %vm272_vm0, %v6026_v54  ;;  %v6145_v45 = vpop.f32.mrf.mxu2  ;;  %v7777_v54 = vrot.slane %v5752_v51, 4 }
 0x19c   : > { %2032 = vst [vmem:[#allocation1 + $0x21] ss:$2 sm:$0xff] %v1889_v5  ;;  %v6135_v61 = vld.sshfl [vmem:[#allocation1] sm:$0xff pattern:$0x75316420]  ;;  %v6167_v51 = vpop.f32.mrf.mxu3 }
 0x19d   : > { %7773 = vst [vmem:[#allocation28_spill] sm:$0xff] %v6137_v11  ;;  %v1931_v11 = vrot.slane %v1891_v1, 4 }
 0x19e   : > { %2027 = vst [vmem:[#allocation1] ss:$2 sm:$0xff] %v1928_v34  ;;  %5082 = vmatmul.msk.f32.gmra.mxu0 %vm272_vm0, %v5898_v7  ;;  %v6151_v34 = vpop.f32.mrf.mxu1  ;;  %v1937_v7 = vld [vmem:[#allocation3 + $0x20] sm:$0xff] }
 0x19f   : > { %7774 = vst [vmem:[#allocation29_spill] sm:$0xff] %v6139_v42  ;;  %v6141_v49 = vld.sshfl [vmem:[#allocation1 + $0x10] sm:$0xff pattern:$0x75316420] }
 0x1a0   : > { %2028 = vst [vmem:[#allocation1 + $0x1] ss:$2 sm:$0xff] %v1886_v13 }
 0x1a1   : > { %2053 = vst [vmem:[#allocation1 + $0x10] ss:$2 sm:$0xff] %v1934_v21  ;;  %v6147_v50 = vld.sshfl [vmem:[#allocation1 + $0x30] sm:$0xff pattern:$0x75316420] }
 0x1a2   : > { %7775 = vst [vmem:[#allocation30_spill] sm:$0xff] %v6145_v45  ;;  %v1890_v21 = vld [vmem:[#allocation2 + $0x88] sm:$0xf]  ;;  %5107 = vmatmul.msk.f32.gmra.mxu2 %vm272_vm0, %v6102_v8  ;;  %v6163_v45 = vpop.f32.mrf.mxu0  ;;  %v1895_v8 = vld [vmem:[#allocation2 + $0xb0] sm:$0xff] }
 0x1a3   : > { %2054 = vst [vmem:[#allocation1 + $0x11] ss:$2 sm:$0xff] %v1898_v0  ;;  %v6153_v13 = vld.sshfl [vmem:[#allocation1 + $0x20] sm:$0xff pattern:$0x75316420]  ;;  %5095 = vmatmul.msk.f32.gmra.mxu1 %vm272_vm0, %v6041_v29 }
 0x1a4   : > { %7776 = vst [vmem:[#allocation31_spill] sm:$0xff] %v6151_v34  ;;  %v1936_v0 = vld [vmem:[#allocation3 + $0x18] sm:$0xf] }
 0x1a5   : > { %2033 = vst [vmem:[#allocation1 + $0x30] ss:$2 sm:$0xff] %v1930_v4 }
 0x1a6   : > { %2043 = vst [vmem:[#allocation1 + $0x20] ss:$2 sm:$0xff] %v7777_v54  ;;  %v1984_v54 = vrot.slane %v1937_v7, 4  ;;  %5083 = vmatmul.msk.f32.gmra.mxu0 %vm272_vm0, %v5972_v18 }
 0x1a7   : > { %2044 = vst [vmem:[#allocation1 + $0x21] ss:$2 sm:$0xff] %v1894_v10  ;;  %v6159_v5 = vld.sshfl [vmem:[#allocation1] sm:$0xff pattern:$0x75316420]  ;;  %v6171_v10 = vpop.f32.mrf.mxu2 }
 0x1a8   : > { %2034 = vst [vmem:[#allocation1 + $0x31] ss:$2 sm:$0xff] %v1890_v21  ;;  %v1896_v21 = vld [vmem:[#allocation2 + $0xb8] sm:$0xf] }
 0x1a9   : > { %2039 = vst [vmem:[#allocation1] ss:$2 sm:$0xff] %v1891_v1  ;;  %v1938_v1 = vld [vmem:[#allocation3 + $0x28] sm:$0xf] }
 0x1aa   : > { %7778 = vst [vmem:[#allocation32_spill] sm:$0xff] %v6163_v45  ;;  %v6165_v4 = vld.sshfl [vmem:[#allocation1 + $0x10] sm:$0xff pattern:$0x75316420]  ;;  %5108 = vmatmul.msk.f32.gmra.mxu2 %vm272_vm0, %v6107_v57  ;;  %v6187_v38 = vpop.f32.mrf.mxu0 }
 0x1ab   : > { %2040 = vst [vmem:[#allocation1 + $0x1] ss:$2 sm:$0xff] %v1931_v11  ;;  %v6177_v11 = vpop.f32.mrf.mxu1  ;;  %5096 = vmatmul.msk.f32.gmra.mxu1 %vm272_vm0, %v5984_v52 }
 0x1ac   : > { %7779 = vst [vmem:[#allocation33_spill] sm:$0xff] %v6167_v51 }
 0x1ad   : > { %2187 = vst [vmem:[#allocation1 + $0x10] ss:$2 sm:$0xff] %v1936_v0  ;;  %v1933_v0 = vrot.slane %v1895_v8, 4 }
 0x1ae   : > { %2189 = vst [vmem:[#allocation1 + $0x11] ss:$2 sm:$0xff] %v1937_v7  ;;  %v6173_v56 = vld.sshfl [vmem:[#allocation1 + $0x20] sm:$0xff pattern:$0x75316420]  ;;  %v1941_v7 = vld [vmem:[#allocation3 + $0x40] sm:$0xff]  ;;  %5084 = vmatmul.msk.f32.gmra.mxu0 %vm272_vm0, %v5978_v33 }
 0x1af   : > { %7780 = vst [vmem:[#allocation34_spill] sm:$0xff] %v6171_v10  ;;  %v6179_v29 = vld.sshfl [vmem:[#allocation1 + $0x30] sm:$0xff pattern:$0x75316420]  ;;  %v1986_v45 = vrot.slane %v1941_v7, 4  ;;  %v6196_v52 = vpop.f32.mrf.mxu2 }
 0x1b0   : > { %7781 = vst [vmem:[#allocation35_spill] sm:$0xff] %v6177_v11  ;;  %v1942_v10 = vld [vmem:[#allocation3 + $0x48] sm:$0xf] }
 0x1b1   : > { %2191 = vst [vmem:[#allocation1 + $0x20] ss:$2 sm:$0xff] %v1984_v54  ;;  %v1935_v54 = vld [vmem:[#allocation3 + $0x10] sm:$0xff] }
 0x1b2   : > { %2193 = vst [vmem:[#allocation1 + $0x21] ss:$2 sm:$0xff] %v1938_v1  ;;  %v6181_v18 = vld.sshfl [vmem:[#allocation1] sm:$0xff pattern:$0x75316420]  ;;  %v6191_v1 = vpop.f32.mrf.mxu3  ;;  %5109 = vmatmul.msk.f32.gmra.mxu2 %vm272_vm0, %v6135_v61 }
 0x1b3   : > { %2045 = vst [vmem:[#allocation1 + $0x30] ss:$2 sm:$0xff] %v1895_v8  ;;  %v402_v8 = vld [vmem:[%s5411_s28 + $0xb0] sm:$0xff]  ;;  %5097 = vmatmul.msk.f32.gmra.mxu1 %vm272_vm0, %v6050_v59 }
 0x1b4   : > { %2051 = vst [vmem:[#allocation1] ss:$2 sm:$0xff] %v1896_v21  ;;  %v1983_v21 = vrot.slane %v1935_v54, 4 }
 0x1b5   : > { %2052 = vst [vmem:[#allocation1 + $0x1] ss:$2 sm:$0xff] %v1897_v32  ;;  %v6185_v57 = vld.sshfl [vmem:[#allocation1 + $0x10] sm:$0xff pattern:$0x75316420]  ;;  %v1939_v32 = vld [vmem:[#allocation3 + $0x30] sm:$0xff] }
 0x1b6   : > { %7782 = vst [vmem:[#allocation36_spill] sm:$0xff] %v6187_v38  ;;  %v6199_v38 = vpop.f32.mrf.mxu1  ;;  %5085 = vmatmul.msk.f32.gmra.mxu0 %vm272_vm0, %v5968_v22  ;;  %v1940_v22 = vld [vmem:[#allocation3 + $0x38] sm:$0xf] }
 0x1b7   : > { %2046 = vst [vmem:[#allocation1 + $0x31] ss:$2 sm:$0xff] %v1933_v0  ;;  %v1947_v0 = vld [vmem:[#allocation3 + $0x70] sm:$0xff]  ;;  %v6218_v19 = vpop.f32.mrf.mxu2 }
 0x1b8   : > { %7783 = vst [vmem:[#allocation37_spill] sm:$0xff] %v6191_v1  ;;  %v1989_v61 = vrot.slane %v1947_v0, 4  ;;  %v1943_v1 = vld [vmem:[#allocation3 + $0x50] sm:$0xff] }
 0x1b9   : > { %2204 = vst [vmem:[#allocation1 + $0x10] ss:$2 sm:$0xff] %v1986_v45  ;;  %v1985_v45 = vrot.slane %v1939_v32, 4 }
 0x1ba   : > { %2205 = vst [vmem:[#allocation1 + $0x11] ss:$2 sm:$0xff] %v1942_v10  ;;  %5110 = vmatmul.msk.f32.gmra.mxu2 %vm272_vm0, %v6094_v20  ;;  %v6215_v59 = vpop.f32.mrf.mxu3  ;;  %v1952_v20 = vld [vmem:[#allocation3 + $0x98] sm:$0xf] }
 0x1bb   : > { %7784 = vst [vmem:[#allocation38_spill] sm:$0xff] %v6196_v52  ;;  %v6211_v52 = vpop.f32.mrf.mxu0  ;;  %5098 = vmatmul.msk.f32.gmra.mxu1 %vm272_vm0, %v6063_v47 }
 0x1bc   : > { %427 = vst.msk [vmem:[#allocation3 + $0xc1] sm:$0xff] %vm272_vm0, %v402_v8  ;;  %v6203_v33 = vld.sshfl [vmem:[#allocation1] sm:$0xff pattern:$0x75316420] }
 0x1bd   : > { %7785 = vst [vmem:[#allocation39_spill] sm:$0xff] %v6199_v38  ;;  %v1987_v38 = vrot.slane %v1943_v1, 4 }
 0x1be   : > { %2183 = vst [vmem:[#allocation1] ss:$2 sm:$0xff] %v1935_v54  ;;  %v6205_v10 = vld.sshfl [vmem:[#allocation1 + $0x30] sm:$0xff pattern:$0x75316420]  ;;  %5086 = vmatmul.msk.f32.gmra.mxu0 %vm272_vm0, %v5917_v24 }
 0x1bf   : > { %2185 = vst [vmem:[#allocation1 + $0x1] ss:$2 sm:$0xff] %v1983_v21  ;;  %v2200_v54 = vld.sshfl [vmem:[#allocation1 + $0x20] sm:$0xff pattern:$0x75316420] }
 0x1c0   : > { %2195 = vst [vmem:[#allocation1 + $0x30] ss:$2 sm:$0xff] %v1939_v32  ;;  %v403_v21 = vld [vmem:[%s5411_s28 + $0xb8] sm:$0xf]  ;;  %s7499_s28 = scalar_lea.vmem %s7745_s6, %s5326_s26 }
 0x1c1   : > { %v6209_v8 = vld.sshfl [vmem:[#allocation1 + $0x10] sm:$0xff pattern:$0x75316420]  ;;  %7786 = vst [vmem:[#allocation40_spill] sm:$0xff] %v6211_v52 }
 0x1c2   : > { %2197 = vst [vmem:[#allocation1 + $0x31] ss:$2 sm:$0xff] %v1985_v45  ;;  %v6222_v45 = vpop.f32.mrf.mxu1  ;;  %5111 = vmatmul.msk.f32.gmra.mxu2 %vm272_vm0, %v6129_v16  ;;  %v1946_v16 = vld [vmem:[#allocation3 + $0x68] sm:$0xf] }
 0x1c3   : > { %7787 = vst [vmem:[#allocation41_spill] sm:$0xff] %v6215_v59  ;;  %5099 = vmatmul.msk.f32.gmra.mxu1 %vm272_vm0, %v6067_v27  ;;  %v6242_v59 = vpop.f32.mrf.mxu2 }
 0x1c4   : > { %2216 = vst [vmem:[#allocation1 + $0x10] ss:$2 sm:$0xff] %v1947_v0 }
 0x1c5   : > { %2217 = vst [vmem:[#allocation1 + $0x11] ss:$2 sm:$0xff] %v1989_v61  ;;  %v1945_v61 = vld [vmem:[#allocation3 + $0x60] sm:$0xff] }
 0x1c6   : > { %7788 = vst [vmem:[#allocation42_spill] sm:$0xff] %v6218_v19  ;;  %v2198_v32 = vld.sshfl [vmem:[#allocation1] sm:$0xff pattern:$0x75316420]  ;;  %v1988_v19 = vrot.slane %v1945_v61, 4 }
 0x1c7   : > { %2206 = vst [vmem:[#allocation1 + $0x20] ss:$2 sm:$0xff] %v1943_v1  ;;  %5123 = vmatmul.msk.f32.vlgmr.msra.gmra.mxu3 %vm272_vm0, %v2198_v32  ;;  %v1953_v1 = vld [vmem:[#allocation3 + $0xa0] sm:$0xff] }
 0x1c8   : > { %2207 = vst [vmem:[#allocation1 + $0x21] ss:$2 sm:$0xff] %v1987_v38  ;;  %v6234_v38 = vpop.f32.mrf.mxu0  ;;  %v1949_v32 = vld [vmem:[#allocation3 + $0x80] sm:$0xff] }
 0x1c9   : > { %7789 = vst [vmem:[#allocation43_spill] sm:$0xff] %v6222_v45  ;;  %v6228_v0 = vld.sshfl [vmem:[#allocation1 + $0x30] sm:$0xff pattern:$0x75316420]  ;;  %v1990_v51 = vrot.slane %v1949_v32, 4 }
 0x1ca   : > { %428 = vst.msk [vmem:[#allocation3 + $0xc9] sm:$0xf] %vm356_vm2, %v403_v21  ;;  %v1948_v21 = vld [vmem:[#allocation3 + $0x78] sm:$0xf]  ;;  %5112 = vmatmul.msk.f32.gmra.mxu2 %vm272_vm0, %v6147_v50 }
 0x1cb   : > { %2202 = vst [vmem:[#allocation1] ss:$2 sm:$0xff] %v1940_v22  ;;  %v6236_v22 = vpop.f32.mrf.mxu3  ;;  %5100 = vmatmul.msk.f32.gmra.mxu1 %vm272_vm0, %v6012_v26 }
 0x1cc   : > { %2203 = vst [vmem:[#allocation1 + $0x1] ss:$2 sm:$0xff] %v1941_v7  ;;  %v6232_v47 = vld.sshfl [vmem:[#allocation1 + $0x10] sm:$0xff pattern:$0x75316420] }
 0x1cd   : > { %2209 = vst [vmem:[#allocation1 + $0x31] ss:$2 sm:$0xff] %v1945_v61  ;;  %v1944_v7 = vld [vmem:[#allocation3 + $0x58] sm:$0xf]  ;;  %v6248_v61 = vpop.f32.mrf.mxu1 }
 0x1ce   : > { %7790 = vst [vmem:[#allocation44_spill] sm:$0xff] %v6234_v38  ;;  %v2392_v38 = vld [vmem:[#allocation2 + $0xc9] sm:$0xf] }
 0x1cf   : > { %2228 = vst [vmem:[#allocation1 + $0x10] ss:$2 sm:$0xff] %v1952_v20  ;;  %v6238_v24 = vld.sshfl [vmem:[#allocation1 + $0x20] sm:$0xff pattern:$0x75316420]  ;;  %5124 = vmatmul.msk.f32.gmra.mxu3 %vm272_vm0, %v6185_v57  ;;  %v1957_v20 = vld [vmem:[#allocation3 + $0xc0] sm:$0xff] }
 0x1d0   : > { %7791 = vst [vmem:[#allocation45_spill] sm:$0xff] %v6236_v22  ;;  %v1994_v22 = vrot.slane %v1957_v20, 4  ;;  %v1950_v57 = vld [vmem:[#allocation3 + $0x88] sm:$0xf]  ;;  %v6254_v25 = vpop.f32.mrf.mxu0 }
 0x1d1   : > { %2229 = vst [vmem:[#allocation1 + $0x11] ss:$2 sm:$0xff] %v1953_v1  ;;  %v1958_v27 = vld [vmem:[#allocation3 + $0xc8] sm:$0xf] }
 0x1d2   : > { %2218 = vst [vmem:[#allocation1 + $0x20] ss:$2 sm:$0xff] %v1948_v21  ;;  %v1992_v21 = vrot.slane %v1953_v1, 4  ;;  %v1954_v1 = vld [vmem:[#allocation3 + $0xa8] sm:$0xf]  ;;  %5113 = vmatmul.msk.f32.gmra.mxu2 %vm272_vm0, %v6159_v5 }
 0x1d3   : > { %7792 = vst [vmem:[#allocation46_spill] sm:$0xff] %v6242_v59  ;;  %v6246_v45 = vld.sshfl [vmem:[#allocation1] sm:$0xff pattern:$0x75316420]  ;;  %v1951_v59 = vld [vmem:[#allocation3 + $0x90] sm:$0xff]  ;;  %5101 = vmatmul.msk.f32.gmra.mxu1 %vm272_vm0, %v6074_v41  ;;  %v2375_v41 = vld [vmem:[#allocation2 + $0x41] sm:$0xff] }
 0x1d4   : > { %2219 = vst [vmem:[#allocation1 + $0x21] ss:$2 sm:$0xff] %v1949_v32  ;;  %v6265_v32 = vpop.f32.mrf.mxu2  ;;  %v1956_v5 = vld [vmem:[#allocation3 + $0xb8] sm:$0xf] }
 0x1d5   : > { %2208 = vst [vmem:[#allocation1 + $0x30] ss:$2 sm:$0xff] %v1944_v7  ;;  %v6271_v26 = vpop.f32.mrf.mxu1 }
 0x1d6   : > { %7793 = vst [vmem:[#allocation47_spill] sm:$0xff] %v6248_v61  ;;  %v2371_v61 = vld [vmem:[#allocation2 + $0x21] sm:$0xff] }
 0x1d7   : > { %2214 = vst [vmem:[#allocation1] ss:$2 sm:$0xff] %v1988_v19  ;;  %v6260_v19 = vpop.f32.mrf.mxu3  ;;  %5125 = vmatmul.msk.f32.gmra.mxu3 %vm272_vm0, %v2200_v54 }
 0x1d8   : > { %2215 = vst [vmem:[#allocation1 + $0x1] ss:$2 sm:$0xff] %v1946_v16  ;;  %v6252_v11 = vld.sshfl [vmem:[#allocation1 + $0x10] sm:$0xff pattern:$0x75316420]  ;;  %v1991_v16 = vrot.slane %v1951_v59, 4 }
 0x1d9   : > { %2240 = vst [vmem:[#allocation1 + $0x10] ss:$2 sm:$0xff] %v1994_v22 }
 0x1da   : > { %7794 = vst [vmem:[#allocation48_spill] sm:$0xff] %v6254_v25  ;;  %5114 = vmatmul.msk.f32.gmra.mxu2 %vm272_vm0, %v6120_v43 }
 0x1db   : > { %v6258_v7 = vld.sshfl [vmem:[#allocation1 + $0x20] sm:$0xff pattern:$0x75316420]  ;;  %2241 = vst [vmem:[#allocation1 + $0x11] ss:$2 sm:$0xff] %v1958_v27  ;;  %5102 = vmatmul.msk.f32.gmra.mxu1 %vm272_vm0, %v6084_v53 }
 0x1dc   : > { %7795 = vst [vmem:[#allocation49_spill] sm:$0xff] %v6260_v19  ;;  %v6262_v50 = vld.sshfl [vmem:[#allocation1 + $0x30] sm:$0xff pattern:$0x75316420]  ;;  %v2370_v27 = vld [vmem:[#allocation2 + $0x19] sm:$0xf] }
 0x1dd   : > { %2230 = vst [vmem:[#allocation1 + $0x20] ss:$2 sm:$0xff] %v1992_v21  ;;  %v1955_v19 = vld [vmem:[#allocation3 + $0xb0] sm:$0xff]  ;;  %v6293_v25 = vpop.f32.mrf.mxu1 }
 0x1de   : > { %2220 = vst [vmem:[#allocation1 + $0x30] ss:$2 sm:$0xff] %v1990_v51  ;;  %v1993_v51 = vrot.slane %v1955_v19, 4 }
 0x1df   : > { %7796 = vst [vmem:[#allocation50_spill] sm:$0xff] %v6265_v32  ;;  %v6267_v22 = vld.sshfl [vmem:[#allocation1] sm:$0xff pattern:$0x75316420]  ;;  %5126 = vmatmul.msk.f32.gmra.mxu3 %vm272_vm0, %v6228_v0 }
 0x1e0   : > { %2221 = vst [vmem:[#allocation1 + $0x31] ss:$2 sm:$0xff] %v1950_v57  ;;  %v6283_v57 = vpop.f32.mrf.mxu3 }
 0x1e1   : > { %2226 = vst [vmem:[#allocation1] ss:$2 sm:$0xff] %v1951_v59  ;;  %v6279_v59 = vpop.f32.mrf.mxu0 }
 0x1e2   : > { %7797 = vst [vmem:[#allocation51_spill] sm:$0xff] %v6271_v26  ;;  %v6273_v21 = vld.sshfl [vmem:[#allocation1 + $0x10] sm:$0xff pattern:$0x75316420]  ;;  %v2420_v26 = vrot.slane %v2375_v41, 4  ;;  %5115 = vmatmul.msk.f32.gmra.mxu2 %vm272_vm0, %v6153_v13 }
 0x1e3   : > { %2227 = vst [vmem:[#allocation1 + $0x1] ss:$2 sm:$0xff] %v1991_v16  ;;  %v2372_v16 = vld [vmem:[#allocation2 + $0x29] sm:$0xf]  ;;  %5103 = vmatmul.msk.f32.gmra.mxu1 %vm272_vm0, %v6090_v14  ;;  %v2374_v13 = vld [vmem:[#allocation2 + $0x39] sm:$0xf] }
 0x1e4   : > { %2231 = vst [vmem:[#allocation1 + $0x21] ss:$2 sm:$0xff] %v1954_v1  ;;  %v2418_v1 = vrot.slane %v2371_v61, 4 }
 0x1e5   : > { %2494 = vst [vmem:[#allocation1 + $0x10] ss:$2 sm:$0xff] %v2370_v27  ;;  %v6289_v27 = vpop.f32.mrf.mxu2 }
 0x1e6   : > { %2496 = vst [vmem:[#allocation1 + $0x11] ss:$2 sm:$0xff] %v2371_v61  ;;  %v2376_v61 = vld [vmem:[#allocation2 + $0x49] sm:$0xf] }
 0x1e7   : > { %7798 = vst [vmem:[#allocation52_spill] sm:$0xff] %v6279_v59  ;;  %v6281_v54 = vld.sshfl [vmem:[#allocation1 + $0x30] sm:$0xff pattern:$0x75316420]  ;;  %v2373_v59 = vld [vmem:[#allocation2 + $0x31] sm:$0xff]  ;;  %5127 = vmatmul.msk.f32.gmra.mxu3 %vm272_vm0, %v6246_v45 }
 0x1e8   : > { %7799 = vst [vmem:[#allocation53_spill] sm:$0xff] %v6283_v57  ;;  %v2419_v57 = vrot.slane %v2373_v59, 4 }
 0x1e9   : > { %2232 = vst [vmem:[#allocation1 + $0x30] ss:$2 sm:$0xff] %v1955_v19  ;;  %v2369_v19 = vld [vmem:[#allocation2 + $0x11] sm:$0xff] }
 0x1ea   : > { %v6285_v32 = vld.sshfl [vmem:[#allocation1] sm:$0xff pattern:$0x75316420]  ;;  %2233 = vst [vmem:[#allocation1 + $0x31] ss:$2 sm:$0xff] %v1993_v51  ;;  %v2417_v43 = vrot.slane %v2369_v19, 4  ;;  %5116 = vmatmul.msk.f32.gmra.mxu2 %vm272_vm0, %v6179_v29 }
 0x1eb   : > { %7800 = vst [vmem:[#allocation54_spill] sm:$0xff] %v6289_v27  ;;  %v6291_v0 = vld.sshfl [vmem:[#allocation1 + $0x20] sm:$0xff pattern:$0x75316420]  ;;  %v6307_v27 = vpop.f32.mrf.mxu3  ;;  %5104 = vmatmul.msk.f32.gmra.mxu1 %vm272_vm0, %v6035_v58 }
 0x1ec   : > { %2238 = vst [vmem:[#allocation1] ss:$2 sm:$0xff] %v1956_v5 }
 0x1ed   : > { %2239 = vst [vmem:[#allocation1 + $0x1] ss:$2 sm:$0xff] %v1957_v20  ;;  %v2506_v51 = vld.sshfl [vmem:[#allocation1 + $0x10] sm:$0xff pattern:$0x75316420]  ;;  %v6301_v20 = vpop.f32.mrf.mxu0 }
 0x1ee   : > { %7801 = vst [vmem:[#allocation55_spill] sm:$0xff] %v6293_v25 }
 0x1ef   : > { %2498 = vst [vmem:[#allocation1 + $0x20] ss:$2 sm:$0xff] %v2418_v1  ;;  %v2381_v1 = vld [vmem:[#allocation2 + $0x71] sm:$0xff]  ;;  %5128 = vmatmul.msk.f32.gmra.mxu3 %vm272_vm0, %v6209_v8 }
 0x1f0   : > { %2500 = vst [vmem:[#allocation1 + $0x21] ss:$2 sm:$0xff] %v2372_v16  ;;  %v2423_v45 = vrot.slane %v2381_v1, 4  ;;  %v6313_v16 = vpop.f32.mrf.mxu1 }
 0x1f1   : > { %2511 = vst [vmem:[#allocation1 + $0x10] ss:$2 sm:$0xff] %v2420_v26  ;;  %v6299_v5 = vld.sshfl [vmem:[#allocation1 + $0x30] sm:$0xff pattern:$0x75316420]  ;;  %v6309_v26 = vpop.f32.mrf.mxu2 }
 0x1f2   : > { %2512 = vst [vmem:[#allocation1 + $0x11] ss:$2 sm:$0xff] %v2376_v61  ;;  %v2377_v61 = vld [vmem:[#allocation2 + $0x51] sm:$0xff]  ;;  %5117 = vmatmul.msk.f32.gmra.mxu2 %vm272_vm0, %v6181_v18 }
 0x1f3   : > { %7802 = vst [vmem:[#allocation56_spill] sm:$0xff] %v6301_v20  ;;  %v6326_v8 = vpop.f32.mrf.mxu3  ;;  %v2383_v20 = vld [vmem:[#allocation2 + $0x81] sm:$0xff] }
 0x1f4   : > { %2502 = vst [vmem:[#allocation1 + $0x30] ss:$2 sm:$0xff] %v2373_v59  ;;  %v6305_v53 = vld.sshfl [vmem:[#allocation1] sm:$0xff pattern:$0x75316420] }
 0x1f5   : > { %7803 = vst [vmem:[#allocation57_spill] sm:$0xff] %v6307_v27  ;;  %v2421_v27 = vrot.slane %v2377_v61, 4  ;;  %v6323_v25 = vpop.f32.mrf.mxu0 }
 0x1f6   : > { %2504 = vst [vmem:[#allocation1 + $0x31] ss:$2 sm:$0xff] %v2419_v57 }
 0x1f7   : > { %2490 = vst [vmem:[#allocation1] ss:$2 sm:$0xff] %v2369_v19  ;;  %v2507_v57 = vld.sshfl [vmem:[#allocation1 + $0x20] sm:$0xff pattern:$0x75316420]  ;;  %5129 = vmatmul.msk.f32.gmra.mxu3 %vm272_vm0, %v6238_v24 }
 0x1f8   : > { %2492 = vst [vmem:[#allocation1 + $0x1] ss:$2 sm:$0xff] %v2417_v43  ;;  %v2379_v43 = vld [vmem:[#allocation2 + $0x61] sm:$0xff] }
 0x1f9   : > { %7804 = vst [vmem:[#allocation58_spill] sm:$0xff] %v6313_v16  ;;  %v6315_v59 = vld.sshfl [vmem:[#allocation1 + $0x10] sm:$0xff pattern:$0x75316420] }
 0x1fa   : > { %2523 = vst [vmem:[#allocation1 + $0x10] ss:$2 sm:$0xff] %v2381_v1  ;;  %v6330_v1 = vpop.f32.mrf.mxu2  ;;  %5118 = vmatmul.msk.f32.gmra.mxu2 %vm272_vm0, %v6141_v49 }
 0x1fb   : > { %2524 = vst [vmem:[#allocation1 + $0x11] ss:$2 sm:$0xff] %v2423_v45  ;;  %v2386_v45 = vld [vmem:[#allocation2 + $0x99] sm:$0xf] }
 0x1fc   : > { %2513 = vst [vmem:[#allocation1 + $0x20] ss:$2 sm:$0xff] %v2377_v61  ;;  %v2387_v61 = vld [vmem:[#allocation2 + $0xa1] sm:$0xff] }
 0x1fd   : > { %v6319_v19 = vld.sshfl [vmem:[#allocation1 + $0x30] sm:$0xff pattern:$0x75316420]  ;;  %7805 = vst [vmem:[#allocation59_spill] sm:$0xff] %v6323_v25  ;;  %v6336_v25 = vpop.f32.mrf.mxu1 }
 0x1fe   : > { %2516 = vst [vmem:[#allocation1 + $0x31] ss:$2 sm:$0xff] %v2379_v43 }
 0x1ff   : > { %v2505_v14 = vld.sshfl [vmem:[#allocation1] sm:$0xff pattern:$0x75316420]  ;;  %2514 = vst [vmem:[#allocation1 + $0x21] ss:$2 sm:$0xff] %v2421_v27  ;;  %5130 = vmatmul.msk.f32.gmra.mxu3 %vm272_vm0, %v6262_v50  ;;  %v2424_v50 = vrot.slane %v2383_v20, 4 }
 0x200   : > { %5141 = vmatmul.msk.f32.vlgmr.msra.gmra.mxu0 %vm272_vm0, %v2505_v14  ;;  %7806 = vst [vmem:[#allocation60_spill] sm:$0xff] %v6326_v8  ;;  %v2382_v27 = vld [vmem:[#allocation2 + $0x79] sm:$0xf]  ;;  %v2422_v14 = vrot.slane %v2379_v43, 4  ;;  %v6345_v8 = vpop.f32.mrf.mxu0  ;;  %v2391_v43 = vld [vmem:[#allocation2 + $0xc1] sm:$0xff] }
 0x201   : > { %2509 = vst [vmem:[#allocation1] ss:$2 sm:$0xff] %v2374_v13  ;;  %v2378_v13 = vld [vmem:[#allocation2 + $0x59] sm:$0xf] }
 0x202   : > { %2510 = vst [vmem:[#allocation1 + $0x1] ss:$2 sm:$0xff] %v2375_v41  ;;  %v6334_v29 = vld.sshfl [vmem:[#allocation1 + $0x10] sm:$0xff pattern:$0x75316420]  ;;  %v6351_v18 = vpop.f32.mrf.mxu2  ;;  %5119 = vmatmul.msk.f32.gmra.mxu2 %vm272_vm0, %v6173_v56 }
 0x203   : > { %7807 = vst [vmem:[#allocation61_spill] sm:$0xff] %v6336_v25  ;;  %v2380_v41 = vld [vmem:[#allocation2 + $0x69] sm:$0xf]  ;;  %v6347_v25 = vpop.f32.mrf.mxu3  ;;  %v2435_v56 = vld [vmem:[#allocation3 + $0x41] sm:$0xff] }
 0x204   : > { %2535 = vst [vmem:[#allocation1 + $0x10] ss:$2 sm:$0xff] %v2386_v45  ;;  %v2428_v45 = vrot.slane %v2391_v43, 4 }
 0x205   : > { %2536 = vst [vmem:[#allocation1 + $0x11] ss:$2 sm:$0xff] %v2387_v61  ;;  %v6355_v42 = vpop.f32.mrf.mxu1 }
 0x206   : > { %v6340_v58 = vld.sshfl [vmem:[#allocation1 + $0x20] sm:$0xff pattern:$0x75316420]  ;;  %7808 = vst [vmem:[#allocation62_spill] sm:$0xff] %v6345_v8 }
 0x207   : > { %2525 = vst [vmem:[#allocation1 + $0x20] ss:$2 sm:$0xff] %v2382_v27  ;;  %v2385_v27 = vld [vmem:[#allocation2 + $0x91] sm:$0xff]  ;;  %5131 = vmatmul.msk.f32.gmra.mxu3 %vm272_vm0, %v6267_v22 }
 0x208   : > { %5142 = vmatmul.msk.f32.gmra.mxu0 %vm272_vm0, %v2506_v51  ;;  %2526 = vst [vmem:[#allocation1 + $0x21] ss:$2 sm:$0xff] %v2383_v20  ;;  %v2426_v51 = vrot.slane %v2387_v61, 4 }
 0x209   : > { %v6343_v24 = vld.sshfl [vmem:[#allocation1] sm:$0xff pattern:$0x75316420]  ;;  %7809 = vst [vmem:[#allocation63_spill] sm:$0xff] %v6347_v25 }
 0x20a   : > { %2521 = vst [vmem:[#allocation1] ss:$2 sm:$0xff] %v2422_v14  ;;  %v2388_v14 = vld [vmem:[#allocation2 + $0xa9] sm:$0xf]  ;;  %5120 = vmatmul.msk.f32.gmra.mxu2 %vm272_vm0, %v6205_v10 }
 0x20b   : > { %2522 = vst [vmem:[#allocation1 + $0x1] ss:$2 sm:$0xff] %v2380_v41  ;;  %v2425_v41 = vrot.slane %v2385_v27, 4  ;;  %v6370_v49 = vpop.f32.mrf.mxu3 }
 0x20c   : > { %2515 = vst [vmem:[#allocation1 + $0x30] ss:$2 sm:$0xff] %v2378_v13  ;;  %v6353_v46 = vld.sshfl [vmem:[#allocation1 + $0x10] sm:$0xff pattern:$0x75316420] }
 0x20d   : > { %7810 = vst [vmem:[#allocation64_spill] sm:$0xff] %v6355_v42  ;;  %v2384_v13 = vld [vmem:[#allocation2 + $0x89] sm:$0xf]  ;;  %v6366_v42 = vpop.f32.mrf.mxu0  ;;  %v6380_v22 = vpop.f32.mrf.mxu1 }
 0x20e   : > { %2547 = vst [vmem:[#allocation1 + $0x10] ss:$2 sm:$0xff] %v2428_v45  ;;  %v2431_v45 = vld [vmem:[#allocation3 + $0x21] sm:$0xff] }
 0x20f   : > { %v6359_v25 = vld.sshfl [vmem:[#allocation1 + $0x20] sm:$0xff pattern:$0x75316420]  ;;  %2548 = vst [vmem:[#allocation1 + $0x11] ss:$2 sm:$0xff] %v2392_v38  ;;  %v2478_v20 = vrot.slane %v2431_v45, 4  ;;  %5132 = vmatmul.msk.f32.gmra.mxu3 %vm272_vm0, %v6232_v47 }
 0x210   : > { %5143 = vmatmul.msk.f32.gmra.mxu0 %vm272_vm0, %v2507_v57  ;;  %2537 = vst [vmem:[#allocation1 + $0x20] ss:$2 sm:$0xff] %v2426_v51  ;;  %v2430_v38 = vld [vmem:[#allocation3 + $0x19] sm:$0xf]  ;;  %v6372_v57 = vpop.f32.mrf.mxu2  ;;  %v2429_v47 = vld [vmem:[#allocation3 + $0x11] sm:$0xff] }
 0x211   : > { %2538 = vst [vmem:[#allocation1 + $0x21] ss:$2 sm:$0xff] %v2388_v14  ;;  %v2432_v14 = vld [vmem:[#allocation3 + $0x29] sm:$0xf]  ;;  %v2477_v34 = vrot.slane %v2429_v47, 4 }
 0x212   : > { %v6362_v8 = vld.sshfl [vmem:[#allocation1] sm:$0xff pattern:$0x75316420]  ;;  %7811 = vst [vmem:[#allocation65_spill] sm:$0xff] %v6366_v42  ;;  %5121 = vmatmul.msk.f32.gmra.mxu2 %vm272_vm0, %v6203_v33 }
 0x213   : > { %2533 = vst [vmem:[#allocation1] ss:$2 sm:$0xff] %v2385_v27  ;;  %v6364_v61 = vld.sshfl [vmem:[#allocation1 + $0x30] sm:$0xff pattern:$0x75316420]  ;;  %v2389_v42 = vld [vmem:[#allocation2 + $0xb1] sm:$0xff] }
 0x214   : > { %2534 = vst [vmem:[#allocation1 + $0x1] ss:$2 sm:$0xff] %v2425_v41  ;;  %v2390_v27 = vld [vmem:[#allocation2 + $0xb9] sm:$0xf] }
 0x215   : > { %7812 = vst [vmem:[#allocation66_spill] sm:$0xff] %v6370_v49  ;;  %v2480_v49 = vrot.slane %v2435_v56, 4  ;;  %v2434_v33 = vld [vmem:[#allocation3 + $0x39] sm:$0xf] }
 0x216   : > { %2527 = vst [vmem:[#allocation1 + $0x30] ss:$2 sm:$0xff] %v2424_v50  ;;  %v6376_v51 = vld.sshfl [vmem:[#allocation1 + $0x10] sm:$0xff pattern:$0x75316420] }
 0x217   : > { %2528 = vst [vmem:[#allocation1 + $0x31] ss:$2 sm:$0xff] %v2384_v13  ;;  %v2427_v13 = vrot.slane %v2389_v42, 4  ;;  %5133 = vmatmul.msk.f32.gmra.mxu3 %vm272_vm0, %v6258_v7 }
 0x218   : > { %2681 = vst [vmem:[#allocation1 + $0x10] ss:$2 sm:$0xff] %v2430_v38  ;;  %5144 = vmatmul.msk.f32.gmra.mxu0 %vm272_vm0, %v6319_v19  ;;  %v6382_v41 = vld.sshfl [vmem:[#allocation1 + $0x20] sm:$0xff pattern:$0x75316420]  ;;  %v6390_v19 = vpop.f32.mrf.mxu0 }
 0x219   : > { %7813 = vst [vmem:[#allocation67_spill] sm:$0xff] %v6380_v22  ;;  %v2433_v22 = vld [vmem:[#allocation3 + $0x31] sm:$0xff] }
 0x21a   : > { %2683 = vst [vmem:[#allocation1 + $0x11] ss:$2 sm:$0xff] %v2431_v45  ;;  %v2983_v45 = vld [vmem:[%s7741_s2 + $0x28] sm:$0xff]  ;;  %5122 = vmatmul.msk.f32.gmra.mxu2 %vm272_vm0, %v6165_v4 }
 0x21b   : > { %2685 = vst [vmem:[#allocation1 + $0x20] ss:$2 sm:$0xff] %v2478_v20  ;;  %v6384_v50 = vld.sshfl [vmem:[#allocation1] sm:$0xff pattern:$0x75316420]  ;;  %v3170_v20 = vld [vmem:[%s7742_s3 + $0x28] sm:$0xff]  ;;  %3096 = vmatpush.msrb.mxu2 %v2983_v45 }
 0x21c   : > { %2687 = vst [vmem:[#allocation1 + $0x21] ss:$2 sm:$0xff] %v2432_v14  ;;  %v6398_v14 = vpop.f32.mrf.mxu3  ;;  %3283 = vmatpush.msrb.mxu3 %v3170_v20  ;;  %v2441_v20 = vld [vmem:[#allocation3 + $0x71] sm:$0xff] }
 0x21d   : > { %2545 = vst [vmem:[#allocation1] ss:$2 sm:$0xff] %v2390_v27 }
 0x21e   : > { %2546 = vst [vmem:[#allocation1 + $0x1] ss:$2 sm:$0xff] %v2391_v43  ;;  %v6388_v38 = vld.sshfl [vmem:[#allocation1 + $0x30] sm:$0xff pattern:$0x75316420] }
 0x21f   : > { %7814 = vst [vmem:[#allocation68_spill] sm:$0xff] %v6390_v19  ;;  %v2436_v43 = vld [vmem:[#allocation3 + $0x49] sm:$0xf]  ;;  %v6404_v19 = vpop.f32.mrf.mxu2  ;;  %5134 = vmatmul.msk.f32.gmra.mxu3 %vm272_vm0, %v6281_v54 }
 0x220   : > { %2539 = vst [vmem:[#allocation1 + $0x30] ss:$2 sm:$0xff] %v2389_v42  ;;  %5145 = vmatmul.msk.f32.gmra.mxu0 %vm272_vm0, %v6343_v24  ;;  %v6406_v42 = vpop.f32.mrf.mxu1  ;;  %v3479_v24 = vld [vmem:[%s7741_s2 + $0x30] sm:$0xff] }
 0x221   : > { %2540 = vst [vmem:[#allocation1 + $0x31] ss:$2 sm:$0xff] %v2427_v13  ;;  %v2693_v27 = vld.sshfl [vmem:[#allocation1 + $0x10] sm:$0xff pattern:$0x75316420]  ;;  %v2479_v13 = vrot.slane %v2433_v22, 4  ;;  %3592 = vmatpush.msrb.mxu0 %v3479_v24 }
 0x222   : > { %7815 = vst [vmem:[#allocation69_spill] sm:$0xff] %v6404_v19  ;;  %v2442_v24 = vld [vmem:[#allocation3 + $0x79] sm:$0xf] }
 0x223   : > { %2698 = vst [vmem:[#allocation1 + $0x10] ss:$2 sm:$0xff] %v2480_v49  ;;  %v2483_v49 = vrot.slane %v2441_v20, 4  ;;  %v2694_v7 = vld.sshfl [vmem:[#allocation1 + $0x20] sm:$0xff pattern:$0x75316420] }
 0x224   : > { %2699 = vst [vmem:[#allocation1 + $0x11] ss:$2 sm:$0xff] %v2436_v43  ;;  %v6419_v43 = vpop.f32.mrf.mxu0  ;;  %v3373_v19 = vld [vmem:[#allocation2 + $0x98] sm:$0xf] }
 0x225   : > { %7816 = vst [vmem:[#allocation70_spill] sm:$0xff] %v6406_v42  ;;  %v6410_v10 = vld.sshfl [vmem:[#allocation1] sm:$0xff pattern:$0x75316420] }
 0x226   : > { %2677 = vst [vmem:[#allocation1] ss:$2 sm:$0xff] %v2429_v47  ;;  %v2437_v42 = vld [vmem:[#allocation3 + $0x51] sm:$0xff] }
 0x227   : > { %2679 = vst [vmem:[#allocation1 + $0x1] ss:$2 sm:$0xff] %v2477_v34  ;;  %v6423_v34 = vpop.f32.mrf.mxu3  ;;  %v2481_v6 = vrot.slane %v2437_v42, 4  ;;  %v6427_v16 = vpop.f32.mrf.mxu2  ;;  %5135 = vmatmul.msk.f32.gmra.mxu3 %vm272_vm0, %v6285_v32  ;;  %v2445_v32 = vld [vmem:[#allocation3 + $0x91] sm:$0xff] }
 0x228   : > { %v6412_v45 = vld.sshfl [vmem:[#allocation1 + $0x30] sm:$0xff pattern:$0x75316420]  ;;  %7817 = vst [vmem:[#allocation71_spill] sm:$0xff] %v6419_v43  ;;  %5146 = vmatmul.msk.f32.gmra.mxu0 %vm272_vm0, %v6315_v59 }
 0x229   : > { %2689 = vst [vmem:[#allocation1 + $0x30] ss:$2 sm:$0xff] %v2433_v22  ;;  %v3666_v59 = vld [vmem:[%s7742_s3 + $0x30] sm:$0xff] }
 0x22a   : > { %2691 = vst [vmem:[#allocation1 + $0x31] ss:$2 sm:$0xff] %v2479_v13  ;;  %v6431_v13 = vpop.f32.mrf.mxu1  ;;  %3779 = vmatpush.msrb.mxu1 %v3666_v59  ;;  %v2447_v59 = vld [vmem:[#allocation3 + $0xa1] sm:$0xff] }
 0x22b   : > { %v6425_v47 = vld.sshfl [vmem:[#allocation1 + $0x10] sm:$0xff pattern:$0x75316420]  ;;  %2700 = vst [vmem:[#allocation1 + $0x20] ss:$2 sm:$0xff] %v2437_v42 }
 0x22c   : > { %2710 = vst [vmem:[#allocation1 + $0x10] ss:$2 sm:$0xff] %v2441_v20  ;;  %v2439_v20 = vld [vmem:[#allocation3 + $0x61] sm:$0xff] }
 0x22d   : > { %7818 = vst [vmem:[#allocation72_spill] sm:$0xff] %v6427_v16  ;;  %v2482_v54 = vrot.slane %v2439_v20, 4  ;;  %v2925_v16 = vld [vmem:[#allocation3 + $0x22] sm:$0xff] }
 0x22e   : > { %2711 = vst [vmem:[#allocation1 + $0x11] ss:$2 sm:$0xff] %v2483_v49  ;;  %v2692_v22 = vld.sshfl [vmem:[#allocation1] sm:$0xff pattern:$0x75316420]  ;;  %v2443_v49 = vld [vmem:[#allocation3 + $0x81] sm:$0xff] }
 0x22f   : > { %2701 = vst [vmem:[#allocation1 + $0x21] ss:$2 sm:$0xff] %v2481_v6  ;;  %5159 = vmatmul.msk.f32.vlgmr.msra.gmra.mxu1 %vm272_vm0, %v2692_v22  ;;  %v6443_v6 = vpop.f32.mrf.mxu0  ;;  %v6445_v22 = vpop.f32.mrf.mxu2  ;;  %5136 = vmatmul.msk.f32.gmra.mxu3 %vm272_vm0, %v6252_v11 }
 0x230   : > { %7819 = vst [vmem:[#allocation73_spill] sm:$0xff] %v6431_v13  ;;  %5147 = vmatmul.msk.f32.gmra.mxu0 %vm272_vm0, %v6340_v58  ;;  %v6447_v43 = vpop.f32.mrf.mxu3 }
 0x231   : > { %2696 = vst [vmem:[#allocation1] ss:$2 sm:$0xff] %v2434_v33  ;;  %v6439_v42 = vld.sshfl [vmem:[#allocation1 + $0x30] sm:$0xff pattern:$0x75316420] }
 0x232   : > { %2697 = vst [vmem:[#allocation1 + $0x1] ss:$2 sm:$0xff] %v2435_v56  ;;  %v2446_v33 = vld [vmem:[#allocation3 + $0x99] sm:$0xf]  ;;  %v2440_v56 = vld [vmem:[#allocation3 + $0x69] sm:$0xf] }
 0x233   : > { %2703 = vst [vmem:[#allocation1 + $0x31] ss:$2 sm:$0xff] %v2439_v20  ;;  %v6458_v20 = vpop.f32.mrf.mxu1 }
 0x234   : > { %7820 = vst [vmem:[#allocation74_spill] sm:$0xff] %v6443_v6  ;;  %v2438_v6 = vld [vmem:[#allocation3 + $0x59] sm:$0xf] }
 0x235   : > { %7821 = vst [vmem:[#allocation75_spill] sm:$0xff] %v6445_v22  ;;  %v6449_v4 = vld.sshfl [vmem:[#allocation1 + $0x10] sm:$0xff pattern:$0x75316420]  ;;  %v2486_v22 = vrot.slane %v2447_v59, 4 }
 0x236   : > { %v6451_v13 = vld.sshfl [vmem:[#allocation1 + $0x20] sm:$0xff pattern:$0x75316420]  ;;  %2722 = vst [vmem:[#allocation1 + $0x10] ss:$2 sm:$0xff] %v2446_v33 }
 0x237   : > { %2712 = vst [vmem:[#allocation1 + $0x20] ss:$2 sm:$0xff] %v2442_v24  ;;  %5160 = vmatmul.msk.f32.gmra.mxu1 %vm272_vm0, %v2693_v27  ;;  %v2448_v24 = vld [vmem:[#allocation3 + $0xa9] sm:$0xf]  ;;  %v6462_v52 = vpop.f32.mrf.mxu0  ;;  %v6468_v33 = vpop.f32.mrf.mxu2  ;;  %5137 = vmatmul.msk.f32.gmra.mxu3 %vm272_vm0, %v6291_v0 }
 0x238   : > { %2713 = vst [vmem:[#allocation1 + $0x21] ss:$2 sm:$0xff] %v2443_v49  ;;  %5148 = vmatmul.msk.f32.gmra.mxu0 %vm272_vm0, %v6364_v61 }
 0x239   : > { %v6456_v58 = vld.sshfl [vmem:[#allocation1] sm:$0xff pattern:$0x75316420]  ;;  %7822 = vst [vmem:[#allocation76_spill] sm:$0xff] %v6458_v20  ;;  %v2485_v20 = vrot.slane %v2445_v32, 4 }
 0x23a   : > { %2708 = vst [vmem:[#allocation1] ss:$2 sm:$0xff] %v2482_v54  ;;  %v6470_v54 = vpop.f32.mrf.mxu3 }
 0x23b   : > { %2709 = vst [vmem:[#allocation1 + $0x1] ss:$2 sm:$0xff] %v2440_v56  ;;  %v2451_v56 = vld [vmem:[#allocation3 + $0xc1] sm:$0xff]  ;;  %v6477_v11 = vpop.f32.mrf.mxu1 }
 0x23c   : > { %2723 = vst [vmem:[#allocation1 + $0x11] ss:$2 sm:$0xff] %v2447_v59  ;;  %v2488_v61 = vrot.slane %v2451_v56, 4  ;;  %v2452_v59 = vld [vmem:[#allocation3 + $0xc9] sm:$0xf] }
 0x23d   : > { %2702 = vst [vmem:[#allocation1 + $0x30] ss:$2 sm:$0xff] %v2438_v6 }
 0x23e   : > { %7823 = vst [vmem:[#allocation77_spill] sm:$0xff] %v6462_v52  ;;  %v2484_v52 = vrot.slane %v2443_v49, 4  ;;  %v2866_v49 = vld [vmem:[#allocation2 + $0x2a] sm:$0xf] }
 0x23f   : > { %v6466_v27 = vld.sshfl [vmem:[#allocation1 + $0x20] sm:$0xff pattern:$0x75316420]  ;;  %7824 = vst [vmem:[#allocation78_spill] sm:$0xff] %v6468_v33  ;;  %5161 = vmatmul.msk.f32.gmra.mxu1 %vm272_vm0, %v2694_v7  ;;  %v2865_v33 = vld [vmem:[#allocation2 + $0x22] sm:$0xff]  ;;  %5138 = vmatmul.msk.f32.gmra.mxu3 %vm272_vm0, %v6299_v5 }
 0x240   : > { %7825 = vst [vmem:[#allocation79_spill] sm:$0xff] %v6470_v54  ;;  %5149 = vmatmul.msk.f32.gmra.mxu0 %vm272_vm0, %v6362_v8  ;;  %v2912_v7 = vrot.slane %v2865_v33, 4  ;;  %v2450_v8 = vld [vmem:[#allocation3 + $0xb9] sm:$0xf] }
 0x241   : > { %2724 = vst [vmem:[#allocation1 + $0x20] ss:$2 sm:$0xff] %v2486_v22 }
 0x242   : > { %2725 = vst [vmem:[#allocation1 + $0x21] ss:$2 sm:$0xff] %v2448_v24  ;;  %v6473_v6 = vld.sshfl [vmem:[#allocation1] sm:$0xff pattern:$0x75316420]  ;;  %v6487_v24 = vpop.f32.mrf.mxu0 }
 0x243   : > { %2720 = vst [vmem:[#allocation1] ss:$2 sm:$0xff] %v2445_v32  ;;  %v6475_v37 = vld.sshfl [vmem:[#allocation1 + $0x10] sm:$0xff pattern:$0x75316420] }
 0x244   : > { %7826 = vst [vmem:[#allocation80_spill] sm:$0xff] %v6477_v11  ;;  %v6481_v22 = vld.sshfl [vmem:[#allocation1 + $0x30] sm:$0xff pattern:$0x75316420] }
 0x245   : > { %2721 = vst [vmem:[#allocation1 + $0x1] ss:$2 sm:$0xff] %v2485_v20  ;;  %v6491_v20 = vpop.f32.mrf.mxu2 }
 0x246   : > { %2734 = vst [vmem:[#allocation1 + $0x10] ss:$2 sm:$0xff] %v2488_v61  ;;  %v6493_v61 = vpop.f32.mrf.mxu3 }
 0x247   : > { %2735 = vst [vmem:[#allocation1 + $0x11] ss:$2 sm:$0xff] %v2452_v59  ;;  %5162 = vmatmul.msk.f32.gmra.mxu1 %vm272_vm0, %v6439_v42  ;;  %v2449_v59 = vld [vmem:[#allocation3 + $0xb1] sm:$0xff]  ;;  %v6501_v42 = vpop.f32.mrf.mxu1  ;;  %5139 = vmatmul.msk.f32.gmra.mxu3 %vm272_vm0, %v6305_v53 }
 0x248   : > { %2714 = vst [vmem:[#allocation1 + $0x30] ss:$2 sm:$0xff] %v2484_v52  ;;  %v2864_v52 = vld [vmem:[#allocation2 + $0x1a] sm:$0xf]  ;;  %5150 = vmatmul.msk.f32.gmra.mxu0 %vm272_vm0, %v6334_v29  ;;  %v2487_v0 = vrot.slane %v2449_v59, 4 }
 0x249   : > { %2715 = vst [vmem:[#allocation1 + $0x31] ss:$2 sm:$0xff] %v2444_v2  ;;  %v6485_v32 = vld.sshfl [vmem:[#allocation1 + $0x20] sm:$0xff pattern:$0x75316420] }
 0x24a   : > { %2992 = vst [vmem:[#allocation1 + $0x20] ss:$2 sm:$0xff] %v2912_v7  ;;  %v2863_v7 = vld [vmem:[#allocation2 + $0x12] sm:$0xff] }
 0x24b   : > { %7827 = vst [vmem:[#allocation81_spill] sm:$0xff] %v6491_v20  ;;  %v2911_v29 = vrot.slane %v2863_v7, 4  ;;  %v2867_v20 = vld [vmem:[#allocation2 + $0x32] sm:$0xff] }
 0x24c   : > { %7828 = vst [vmem:[#allocation82_spill] sm:$0xff] %v6493_v61  ;;  %v6495_v11 = vld.sshfl [vmem:[#allocation1] sm:$0xff pattern:$0x75316420] }
 0x24d   : > { %2994 = vst [vmem:[#allocation1 + $0x21] ss:$2 sm:$0xff] %v2866_v49 }
 0x24e   : > { %2732 = vst [vmem:[#allocation1] ss:$2 sm:$0xff] %v2450_v8  ;;  %v6499_v2 = vld.sshfl [vmem:[#allocation1 + $0x10] sm:$0xff pattern:$0x75316420]  ;;  %v6509_v8 = vpop.f32.mrf.mxu0 }
 0x24f   : > { %2733 = vst [vmem:[#allocation1 + $0x1] ss:$2 sm:$0xff] %v2451_v56  ;;  %5163 = vmatmul.msk.f32.gmra.mxu1 %vm272_vm0, %v6456_v58  ;;  %v2869_v56 = vld [vmem:[#allocation2 + $0x42] sm:$0xff]  ;;  %5140 = vmatmul.msk.f32.gmra.mxu3 %vm272_vm0, %v6273_v21  ;;  %v2872_v21 = vld [vmem:[#allocation2 + $0x5a] sm:$0xf] }
 0x250   : > { %7829 = vst [vmem:[#allocation83_spill] sm:$0xff] %v6501_v42  ;;  %v6505_v49 = vld.sshfl [vmem:[#allocation1 + $0x30] sm:$0xff pattern:$0x75316420]  ;;  %v2914_v35 = vrot.slane %v2869_v56, 4  ;;  %v6511_v42 = vpop.f32.mrf.mxu2  ;;  %5151 = vmatmul.msk.f32.gmra.mxu0 %vm272_vm0, %v6359_v25 }
 0x251   : > { %2988 = vst [vmem:[#allocation1 + $0x10] ss:$2 sm:$0xff] %v2864_v52  ;;  %v6513_v52 = vpop.f32.mrf.mxu3 }
 0x252   : > { %2990 = vst [vmem:[#allocation1 + $0x11] ss:$2 sm:$0xff] %v2865_v33  ;;  %v2870_v33 = vld [vmem:[#allocation2 + $0x4a] sm:$0xf] }
 0x253   : > { %2726 = vst [vmem:[#allocation1 + $0x30] ss:$2 sm:$0xff] %v2449_v59  ;;  %v2913_v59 = vrot.slane %v2867_v20, 4 }
 0x254   : > { %2727 = vst [vmem:[#allocation1 + $0x31] ss:$2 sm:$0xff] %v2487_v0  ;;  %v6521_v0 = vpop.f32.mrf.mxu1 }
 0x255   : > { %7830 = vst [vmem:[#allocation84_spill] sm:$0xff] %v6511_v42  ;;  %v2871_v42 = vld [vmem:[#allocation2 + $0x52] sm:$0xff] }
 0x256   : > { %7831 = vst [vmem:[#allocation85_spill] sm:$0xff] %v6513_v52  ;;  %v6517_v5 = vld.sshfl [vmem:[#allocation1] sm:$0xff pattern:$0x75316420]  ;;  %v2915_v25 = vrot.slane %v2871_v42, 4  ;;  %v6531_v53 = vpop.f32.mrf.mxu0 }
 0x257   : > { %2984 = vst [vmem:[#allocation1] ss:$2 sm:$0xff] %v2863_v7  ;;  %5164 = vmatmul.msk.f32.gmra.mxu1 %vm272_vm0, %v6425_v47  ;;  %v3001_v7 = vld.sshfl [vmem:[#allocation1 + $0x20] sm:$0xff pattern:$0x75316420] }
 0x258   : > { %2986 = vst [vmem:[#allocation1 + $0x1] ss:$2 sm:$0xff] %v2911_v29  ;;  %v2875_v29 = vld [vmem:[#allocation2 + $0x72] sm:$0xff]  ;;  %5152 = vmatmul.msk.f32.gmra.mxu0 %vm272_vm0, %v6388_v38  ;;  %v6534_v47 = vpop.f32.mrf.mxu2 }
 0x259   : > { %v3000_v58 = vld.sshfl [vmem:[#allocation1 + $0x10] sm:$0xff pattern:$0x75316420]  ;;  %7832 = vst [vmem:[#allocation86_spill] sm:$0xff] %v6521_v0  ;;  %v2917_v0 = vrot.slane %v2875_v29, 4 }
 0x25a   : > { %3005 = vst [vmem:[#allocation1 + $0x10] ss:$2 sm:$0xff] %v2914_v35  ;;  %v6529_v35 = vpop.f32.mrf.mxu3 }
 0x25b   : > { %v6523_v17 = vld.sshfl [vmem:[#allocation1 + $0x30] sm:$0xff pattern:$0x75316420]  ;;  %3006 = vst [vmem:[#allocation1 + $0x11] ss:$2 sm:$0xff] %v2870_v33 }
 0x25c   : > { %2996 = vst [vmem:[#allocation1 + $0x30] ss:$2 sm:$0xff] %v2867_v20 }
 0x25d   : > { %2998 = vst [vmem:[#allocation1 + $0x31] ss:$2 sm:$0xff] %v2913_v59  ;;  %v6542_v59 = vpop.f32.mrf.mxu1 }
 0x25e   : > { %3007 = vst [vmem:[#allocation1 + $0x20] ss:$2 sm:$0xff] %v2871_v42  ;;  %v2873_v42 = vld [vmem:[#allocation2 + $0x62] sm:$0xff] }
 0x25f   : > { %7833 = vst [vmem:[#allocation87_spill] sm:$0xff] %v6529_v35  ;;  %v2999_v33 = vld.sshfl [vmem:[#allocation1] sm:$0xff pattern:$0x75316420]  ;;  %5165 = vmatmul.msk.f32.gmra.mxu1 %vm272_vm0, %v6451_v13 }
 0x260   : > { %3008 = vst [vmem:[#allocation1 + $0x21] ss:$2 sm:$0xff] %v2915_v25  ;;  %5177 = vmatmul.msk.f32.vlgmr.msrb.gmra.mxu2 %vm272_vm0, %v2999_v33  ;;  %v2876_v25 = vld [vmem:[#allocation2 + $0x7a] sm:$0xf]  ;;  %v2877_v33 = vld [vmem:[#allocation2 + $0x82] sm:$0xff]  ;;  %5153 = vmatmul.msk.f32.gmra.mxu0 %vm272_vm0, %v6384_v50  ;;  %v6555_v35 = vpop.f32.mrf.mxu2 }
 0x261   : > { %7834 = vst [vmem:[#allocation88_spill] sm:$0xff] %v6534_v47  ;;  %v2916_v47 = vrot.slane %v2873_v42, 4  ;;  %v2918_v23 = vrot.slane %v2877_v33, 4 }
 0x262   : > { %3003 = vst [vmem:[#allocation1] ss:$2 sm:$0xff] %v2868_v31  ;;  %v6538_v20 = vld.sshfl [vmem:[#allocation1 + $0x10] sm:$0xff pattern:$0x75316420]  ;;  %v6549_v13 = vpop.f32.mrf.mxu3 }
 0x263   : > { %3004 = vst [vmem:[#allocation1 + $0x1] ss:$2 sm:$0xff] %v2869_v56  ;;  %v2874_v56 = vld [vmem:[#allocation2 + $0x6a] sm:$0xf] }
 0x264   : > { %3017 = vst [vmem:[#allocation1 + $0x10] ss:$2 sm:$0xff] %v2875_v29  ;;  %v3002_v38 = vld.sshfl [vmem:[#allocation1 + $0x30] sm:$0xff pattern:$0x75316420] }
 0x265   : > { %3018 = vst [vmem:[#allocation1 + $0x11] ss:$2 sm:$0xff] %v2917_v0  ;;  %v2880_v29 = vld [vmem:[#allocation2 + $0x9a] sm:$0xf] }
 0x266   : > { %7835 = vst [vmem:[#allocation89_spill] sm:$0xff] %v6542_v59  ;;  %v6553_v59 = vpop.f32.mrf.mxu0 }
 0x267   : > { %3010 = vst [vmem:[#allocation1 + $0x31] ss:$2 sm:$0xff] %v2873_v42  ;;  %v6544_v31 = vld.sshfl [vmem:[#allocation1 + $0x20] sm:$0xff pattern:$0x75316420]  ;;  %v2881_v42 = vld [vmem:[#allocation2 + $0xa2] sm:$0xff]  ;;  %5166 = vmatmul.msk.f32.gmra.mxu1 %vm272_vm0, %v6481_v22 }
 0x268   : > { %3019 = vst [vmem:[#allocation1 + $0x20] ss:$2 sm:$0xff] %v2876_v25  ;;  %5178 = vmatmul.msk.f32.gmra.mxu2 %vm272_vm0, %v3000_v58  ;;  %v2879_v25 = vld [vmem:[#allocation2 + $0x92] sm:$0xff]  ;;  %v2920_v58 = vrot.slane %v2881_v42, 4  ;;  %5154 = vmatmul.msk.f32.gmra.mxu0 %vm272_vm0, %v6353_v46  ;;  %v2882_v46 = vld [vmem:[#allocation2 + $0xaa] sm:$0xf] }
 0x269   : > { %3020 = vst [vmem:[#allocation1 + $0x21] ss:$2 sm:$0xff] %v2877_v33 }
 0x26a   : > { %7836 = vst [vmem:[#allocation90_spill] sm:$0xff] %v6549_v13  ;;  %v6551_v0 = vld.sshfl [vmem:[#allocation1] sm:$0xff pattern:$0x75316420]  ;;  %v6561_v13 = vpop.f32.mrf.mxu1  ;;  %v6572_v33 = vpop.f32.mrf.mxu3 }
 0x26b   : > { %3009 = vst [vmem:[#allocation1 + $0x30] ss:$2 sm:$0xff] %v2872_v21 }
 0x26c   : > { %7837 = vst [vmem:[#allocation91_spill] sm:$0xff] %v6553_v59  ;;  %v6557_v50 = vld.sshfl [vmem:[#allocation1 + $0x10] sm:$0xff pattern:$0x75316420] }
 0x26d   : > { %3015 = vst [vmem:[#allocation1] ss:$2 sm:$0xff] %v2916_v47  ;;  %v2919_v47 = vrot.slane %v2879_v25, 4 }
 0x26e   : > { %7838 = vst [vmem:[#allocation92_spill] sm:$0xff] %v6555_v35  ;;  %v2878_v35 = vld [vmem:[#allocation2 + $0x8a] sm:$0xf] }
 0x26f   : > { %3016 = vst [vmem:[#allocation1 + $0x1] ss:$2 sm:$0xff] %v2874_v56  ;;  %v2885_v56 = vld [vmem:[#allocation2 + $0xc2] sm:$0xff]  ;;  %5167 = vmatmul.msk.f32.gmra.mxu1 %vm272_vm0, %v6473_v6  ;;  %v2924_v6 = vld [vmem:[#allocation3 + $0x1a] sm:$0xf] }
 0x270   : > { %3029 = vst [vmem:[#allocation1 + $0x10] ss:$2 sm:$0xff] %v2880_v29  ;;  %v6565_v21 = vld.sshfl [vmem:[#allocation1 + $0x20] sm:$0xff pattern:$0x75316420]  ;;  %5179 = vmatmul.msk.f32.gmra.mxu2 %vm272_vm0, %v3001_v7  ;;  %v2922_v22 = vrot.slane %v2885_v56, 4  ;;  %v6580_v7 = vpop.f32.mrf.mxu2  ;;  %5155 = vmatmul.msk.f32.gmra.mxu0 %vm272_vm0, %v6382_v41 }
 0x271   : > { %3030 = vst [vmem:[#allocation1 + $0x11] ss:$2 sm:$0xff] %v2881_v42  ;;  %v2886_v42 = vld [vmem:[#allocation2 + $0xca] sm:$0xf] }
 0x272   : > { %7839 = vst [vmem:[#allocation93_spill] sm:$0xff] %v6561_v13  ;;  %v6567_v3 = vld.sshfl [vmem:[#allocation1 + $0x30] sm:$0xff pattern:$0x75316420]  ;;  %v6574_v13 = vpop.f32.mrf.mxu0 }
 0x273   : > { %3031 = vst [vmem:[#allocation1 + $0x20] ss:$2 sm:$0xff] %v2920_v58  ;;  %v2883_v58 = vld [vmem:[#allocation2 + $0xb2] sm:$0xff]  ;;  %v2926_v41 = vld [vmem:[#allocation3 + $0x2a] sm:$0xf] }
 0x274   : > { %3021 = vst [vmem:[#allocation1 + $0x30] ss:$2 sm:$0xff] %v2918_v23  ;;  %v2921_v23 = vrot.slane %v2883_v58, 4 }
 0x275   : > { %3022 = vst [vmem:[#allocation1 + $0x31] ss:$2 sm:$0xff] %v2878_v35  ;;  %v6584_v35 = vpop.f32.mrf.mxu1 }
 0x276   : > { %v6570_v29 = vld.sshfl [vmem:[#allocation1] sm:$0xff pattern:$0x75316420]  ;;  %7840 = vst [vmem:[#allocation94_spill] sm:$0xff] %v6572_v33 }
 0x277   : > { %3027 = vst [vmem:[#allocation1] ss:$2 sm:$0xff] %v2879_v25  ;;  %v2884_v25 = vld [vmem:[#allocation2 + $0xba] sm:$0xf]  ;;  %5168 = vmatmul.msk.f32.gmra.mxu1 %vm272_vm0, %v6449_v4  ;;  %v2923_v4 = vld [vmem:[#allocation3 + $0x12] sm:$0xff] }
 0x278   : > { %7841 = vst [vmem:[#allocation95_spill] sm:$0xff] %v6574_v13  ;;  %v6578_v52 = vld.sshfl [vmem:[#allocation1 + $0x10] sm:$0xff pattern:$0x75316420]  ;;  %5180 = vmatmul.msk.f32.gmra.mxu2 %vm272_vm0, %v3002_v38  ;;  %v2927_v38 = vld [vmem:[#allocation3 + $0x32] sm:$0xff]  ;;  %v6601_v13 = vpop.f32.mrf.mxu2  ;;  %5156 = vmatmul.msk.f32.gmra.mxu0 %vm272_vm0, %v6412_v45 }
 0x279   : > { %3028 = vst [vmem:[#allocation1 + $0x1] ss:$2 sm:$0xff] %v2919_v47 }
 0x27a   : > { %7842 = vst [vmem:[#allocation96_spill] sm:$0xff] %v6580_v7  ;;  %v6597_v7 = vpop.f32.mrf.mxu0 }
 0x27b   : > { %3041 = vst [vmem:[#allocation1 + $0x10] ss:$2 sm:$0xff] %v2922_v22  ;;  %v2972_v22 = vrot.slane %v2925_v16, 4 }
 0x27c   : > { %3042 = vst [vmem:[#allocation1 + $0x11] ss:$2 sm:$0xff] %v2886_v42  ;;  %v6587_v33 = vld.sshfl [vmem:[#allocation1 + $0x30] sm:$0xff pattern:$0x75316420]  ;;  %v6593_v42 = vpop.f32.mrf.mxu3 }
 0x27d   : > { %3032 = vst [vmem:[#allocation1 + $0x21] ss:$2 sm:$0xff] %v2882_v46 }
 0x27e   : > { %3033 = vst [vmem:[#allocation1 + $0x30] ss:$2 sm:$0xff] %v2883_v58 }
 0x27f   : > { %3034 = vst [vmem:[#allocation1 + $0x31] ss:$2 sm:$0xff] %v2921_v23  ;;  %v2973_v23 = vrot.slane %v2927_v38, 4  ;;  %5169 = vmatmul.msk.f32.gmra.mxu1 %vm272_vm0, %v6466_v27 }
 0x280   : > { %v6589_v47 = vld.sshfl [vmem:[#allocation1] sm:$0xff pattern:$0x75316420]  ;;  %7843 = vst [vmem:[#allocation97_spill] sm:$0xff] %v6593_v42  ;;  %5181 = vmatmul.msk.f32.gmra.mxu2 %vm272_vm0, %v6551_v0  ;;  %v2929_v42 = vld [vmem:[#allocation3 + $0x42] sm:$0xff]  ;;  %5157 = vmatmul.msk.f32.gmra.mxu0 %vm272_vm0, %v6410_v10  ;;  %v6623_v27 = vpop.f32.mrf.mxu2 }
 0x281   : > { %3039 = vst [vmem:[#allocation1] ss:$2 sm:$0xff] %v2884_v25 }
 0x282   : > { %3040 = vst [vmem:[#allocation1 + $0x1] ss:$2 sm:$0xff] %v2885_v56  ;;  %v2971_v56 = vrot.slane %v2923_v4, 4 }
 0x283   : > { %v6595_v46 = vld.sshfl [vmem:[#allocation1 + $0x10] sm:$0xff pattern:$0x75316420]  ;;  %7844 = vst [vmem:[#allocation98_spill] sm:$0xff] %v6597_v7  ;;  %v2974_v7 = vrot.slane %v2929_v42, 4 }
 0x284   : > { %3175 = vst [vmem:[#allocation1 + $0x10] ss:$2 sm:$0xff] %v2924_v6  ;;  %v6599_v58 = vld.sshfl [vmem:[#allocation1 + $0x20] sm:$0xff pattern:$0x75316420]  ;;  %v6609_v6 = vpop.f32.mrf.mxu1 }
 0x285   : > { %7845 = vst [vmem:[#allocation99_spill] sm:$0xff] %v6601_v13  ;;  %v2931_v13 = vld [vmem:[#allocation3 + $0x52] sm:$0xff] }
 0x286   : > { %3177 = vst [vmem:[#allocation1 + $0x11] ss:$2 sm:$0xff] %v2925_v16  ;;  %v6607_v25 = vld.sshfl [vmem:[#allocation1 + $0x30] sm:$0xff pattern:$0x75316420] }
 0x287   : > { %3179 = vst [vmem:[#allocation1 + $0x20] ss:$2 sm:$0xff] %v2972_v22  ;;  %v2930_v16 = vld [vmem:[#allocation3 + $0x4a] sm:$0xf]  ;;  %v6615_v22 = vpop.f32.mrf.mxu0  ;;  %5170 = vmatmul.msk.f32.gmra.mxu1 %vm272_vm0, %v6505_v49 }
 0x288   : > { %3181 = vst [vmem:[#allocation1 + $0x21] ss:$2 sm:$0xff] %v2926_v41  ;;  %v6617_v41 = vpop.f32.mrf.mxu3  ;;  %5182 = vmatmul.msk.f32.gmra.mxu2 %vm272_vm0, %v6538_v20  ;;  %5158 = vmatmul.msk.f32.gmra.mxu0 %vm272_vm0, %v6376_v51  ;;  %v2936_v51 = vld [vmem:[#allocation3 + $0x7a] sm:$0xf] }
 0x289   : > { %3183 = vst [vmem:[#allocation1 + $0x30] ss:$2 sm:$0xff] %v2927_v38  ;;  %v6613_v45 = vld.sshfl [vmem:[#allocation1] sm:$0xff pattern:$0x75316420] }
 0x28a   : > { %3185 = vst [vmem:[#allocation1 + $0x31] ss:$2 sm:$0xff] %v2973_v23  ;;  %v2928_v23 = vld [vmem:[#allocation3 + $0x3a] sm:$0xf] }
 0x28b   : > { %3171 = vst [vmem:[#allocation1] ss:$2 sm:$0xff] %v2923_v4  ;;  %v2975_v4 = vrot.slane %v2931_v13, 4 }
 0x28c   : > { %3173 = vst [vmem:[#allocation1 + $0x1] ss:$2 sm:$0xff] %v2971_v56  ;;  %v2935_v56 = vld [vmem:[#allocation3 + $0x72] sm:$0xff]  ;;  %v6631_v10 = vpop.f32.mrf.mxu1 }
 0x28d   : > { %7846 = vst [vmem:[#allocation100_spill] sm:$0xff] %v6615_v22  ;;  %v3187_v0 = vld.sshfl [vmem:[#allocation1 + $0x10] sm:$0xff pattern:$0x75316420] }
 0x28e   : > { %7847 = vst [vmem:[#allocation101_spill] sm:$0xff] %v6617_v41  ;;  %v2933_v41 = vld [vmem:[#allocation3 + $0x62] sm:$0xff] }
 0x28f   : > { %3192 = vst [vmem:[#allocation1 + $0x10] ss:$2 sm:$0xff] %v2974_v7  ;;  %v6621_v38 = vld.sshfl [vmem:[#allocation1 + $0x20] sm:$0xff pattern:$0x75316420]  ;;  %5171 = vmatmul.msk.f32.gmra.mxu1 %vm272_vm0, %v6495_v11 }
 0x290   : > { %3193 = vst [vmem:[#allocation1 + $0x11] ss:$2 sm:$0xff] %v2930_v16  ;;  %v2977_v16 = vrot.slane %v2935_v56, 4  ;;  %5183 = vmatmul.msk.f32.gmra.mxu2 %vm272_vm0, %v6544_v31  ;;  %v6642_v49 = vpop.f32.mrf.mxu3 }
 0x291   : > { %7848 = vst [vmem:[#allocation102_spill] sm:$0xff] %v6623_v27  ;;  %v6627_v22 = vld.sshfl [vmem:[#allocation1 + $0x30] sm:$0xff pattern:$0x75316420] }
 0x292   : > { %3194 = vst [vmem:[#allocation1 + $0x20] ss:$2 sm:$0xff] %v2931_v13  ;;  %v6638_v13 = vpop.f32.mrf.mxu0 }
 0x293   : > { %3195 = vst [vmem:[#allocation1 + $0x21] ss:$2 sm:$0xff] %v2975_v4  ;;  %v3186_v7 = vld.sshfl [vmem:[#allocation1] sm:$0xff pattern:$0x75316420]  ;;  %v2976_v4 = vrot.slane %v2933_v41, 4 }
 0x294   : > { %3197 = vst [vmem:[#allocation1 + $0x31] ss:$2 sm:$0xff] %v2933_v41  ;;  %5195 = vmatmul.msk.f32.vlgmr.msrb.gmra.mxu3 %vm272_vm0, %v3186_v7  ;;  %v2937_v7 = vld [vmem:[#allocation3 + $0x82] sm:$0xff]  ;;  %v6653_v41 = vpop.f32.mrf.mxu1 }
 0x295   : > { %3190 = vst [vmem:[#allocation1] ss:$2 sm:$0xff] %v2928_v23  ;;  %v6646_v23 = vpop.f32.mrf.mxu2  ;;  %v2978_v11 = vrot.slane %v2937_v7, 4 }
 0x296   : > { %3191 = vst [vmem:[#allocation1 + $0x1] ss:$2 sm:$0xff] %v2929_v42  ;;  %v2934_v42 = vld [vmem:[#allocation3 + $0x6a] sm:$0xf] }
 0x297   : > { %v6636_v20 = vld.sshfl [vmem:[#allocation1 + $0x10] sm:$0xff pattern:$0x75316420]  ;;  %7849 = vst [vmem:[#allocation103_spill] sm:$0xff] %v6638_v13  ;;  %5172 = vmatmul.msk.f32.gmra.mxu1 %vm272_vm0, %v6475_v37 }
 0x298   : > { %3204 = vst [vmem:[#allocation1 + $0x10] ss:$2 sm:$0xff] %v2935_v56  ;;  %v2940_v56 = vld [vmem:[#allocation3 + $0x9a] sm:$0xf]  ;;  %5184 = vmatmul.msk.f32.gmra.mxu2 %vm272_vm0, %v6567_v3  ;;  %v2945_v3 = vld [vmem:[#allocation3 + $0xc2] sm:$0xff] }
 0x299   : > { %7850 = vst [vmem:[#allocation104_spill] sm:$0xff] %v6642_v49 }
 0x29a   : > { %3205 = vst [vmem:[#allocation1 + $0x11] ss:$2 sm:$0xff] %v2977_v16  ;;  %v6644_v27 = vld.sshfl [vmem:[#allocation1 + $0x20] sm:$0xff pattern:$0x75316420]  ;;  %v2941_v16 = vld [vmem:[#allocation3 + $0xa2] sm:$0xff]  ;;  %v6659_v49 = vpop.f32.mrf.mxu0 }
 0x29b   : > { %7851 = vst [vmem:[#allocation105_spill] sm:$0xff] %v6646_v23 }
 0x29c   : > { %3207 = vst [vmem:[#allocation1 + $0x21] ss:$2 sm:$0xff] %v2937_v7  ;;  %5196 = vmatmul.msk.f32.gmra.mxu3 %vm272_vm0, %v3187_v0  ;;  %v6661_v0 = vpop.f32.mrf.mxu3  ;;  %v6675_v37 = vpop.f32.mrf.mxu1 }
 0x29d   : > { %3196 = vst [vmem:[#allocation1 + $0x30] ss:$2 sm:$0xff] %v2932_v62  ;;  %v6651_v31 = vld.sshfl [vmem:[#allocation1] sm:$0xff pattern:$0x75316420]  ;;  %v2980_v62 = vrot.slane %v2941_v16, 4 }
 0x29e   : > { %3206 = vst [vmem:[#allocation1 + $0x20] ss:$2 sm:$0xff] %v2936_v51  ;;  %v2939_v51 = vld [vmem:[#allocation3 + $0x92] sm:$0xff] }
 0x29f   : > { %7852 = vst [vmem:[#allocation106_spill] sm:$0xff] %v6653_v41  ;;  %v2979_v7 = vrot.slane %v2939_v51, 4  ;;  %5173 = vmatmul.msk.f32.gmra.mxu1 %vm272_vm0, %v6485_v32 }
 0x2a0   : > { %3202 = vst [vmem:[#allocation1] ss:$2 sm:$0xff] %v2976_v4  ;;  %5185 = vmatmul.msk.f32.gmra.mxu2 %vm272_vm0, %v6570_v29  ;;  %v2943_v29 = vld [vmem:[#allocation3 + $0xb2] sm:$0xff] }
 0x2a1   : > { %3203 = vst [vmem:[#allocation1 + $0x1] ss:$2 sm:$0xff] %v2934_v42  ;;  %v6655_v23 = vld.sshfl [vmem:[#allocation1 + $0x10] sm:$0xff pattern:$0x75316420]  ;;  %v6669_v42 = vpop.f32.mrf.mxu2  ;;  %v2981_v32 = vrot.slane %v2943_v29, 4 }
 0x2a2   : > { %3216 = vst [vmem:[#allocation1 + $0x10] ss:$2 sm:$0xff] %v2940_v56  ;;  %v2938_v56 = vld [vmem:[#allocation3 + $0x8a] sm:$0xf] }
 0x2a3   : > { %7853 = vst [vmem:[#allocation107_spill] sm:$0xff] %v6659_v49  ;;  %v2946_v49 = vld [vmem:[#allocation3 + $0xca] sm:$0xf] }
 0x2a4   : > { %3217 = vst [vmem:[#allocation1 + $0x11] ss:$2 sm:$0xff] %v2941_v16  ;;  %v6663_v13 = vld.sshfl [vmem:[#allocation1 + $0x30] sm:$0xff pattern:$0x75316420]  ;;  %5197 = vmatmul.msk.f32.gmra.mxu3 %vm272_vm0, %v6621_v38  ;;  %v2982_v16 = vrot.slane %v2945_v3, 4  ;;  %v6681_v38 = vpop.f32.mrf.mxu0 }
 0x2a5   : > { %7854 = vst [vmem:[#allocation108_spill] sm:$0xff] %v6661_v0  ;;  %v6667_v4 = vld.sshfl [vmem:[#allocation1 + $0x20] sm:$0xff pattern:$0x75316420] }
 0x2a6   : > { %3208 = vst [vmem:[#allocation1 + $0x30] ss:$2 sm:$0xff] %v2978_v11 }
 0x2a7   : > { %7855 = vst [vmem:[#allocation109_spill] sm:$0xff] %v6669_v42  ;;  %5174 = vmatmul.msk.f32.gmra.mxu1 %vm272_vm0, %v6523_v17 }
 0x2a8   : > { %3218 = vst [vmem:[#allocation1 + $0x20] ss:$2 sm:$0xff] %v2980_v62  ;;  %v6673_v0 = vld.sshfl [vmem:[#allocation1] sm:$0xff pattern:$0x75316420]  ;;  %v3360_v62 = vld [vmem:[#allocation2 + $0x30] sm:$0xff]  ;;  %5186 = vmatmul.msk.f32.gmra.mxu2 %vm272_vm0, %v6557_v50 }
 0x2a9   : > { %3219 = vst [vmem:[#allocation1 + $0x21] ss:$2 sm:$0xff] %v2942_v9  ;;  %v3407_v42 = vrot.slane %v3360_v62, 4  ;;  %v3361_v9 = vld [vmem:[#allocation2 + $0x38] sm:$0xf] }
 0x2aa   : > { %3209 = vst [vmem:[#allocation1 + $0x31] ss:$2 sm:$0xff] %v2938_v56  ;;  %v2944_v56 = vld [vmem:[#allocation3 + $0xba] sm:$0xf] }
 0x2ab   : > { %3214 = vst [vmem:[#allocation1] ss:$2 sm:$0xff] %v2939_v51  ;;  %v6679_v11 = vld.sshfl [vmem:[#allocation1 + $0x10] sm:$0xff pattern:$0x75316420]  ;;  %v6685_v51 = vpop.f32.mrf.mxu3 }
 0x2ac   : > { %7856 = vst [vmem:[#allocation110_spill] sm:$0xff] %v6675_v37  ;;  %5198 = vmatmul.msk.f32.gmra.mxu3 %vm272_vm0, %v6627_v22  ;;  %v6701_v22 = vpop.f32.mrf.mxu1 }
 0x2ad   : > { %3215 = vst [vmem:[#allocation1 + $0x1] ss:$2 sm:$0xff] %v2979_v7 }
 0x2ae   : > { %3228 = vst [vmem:[#allocation1 + $0x10] ss:$2 sm:$0xff] %v2982_v16  ;;  %v6693_v16 = vpop.f32.mrf.mxu2 }
 0x2af   : > { %3229 = vst [vmem:[#allocation1 + $0x11] ss:$2 sm:$0xff] %v2946_v49  ;;  %v3359_v49 = vld [vmem:[#allocation2 + $0x28] sm:$0xf]  ;;  %5175 = vmatmul.msk.f32.gmra.mxu1 %vm272_vm0, %v6517_v5  ;;  %v3370_v5 = vld [vmem:[#allocation2 + $0x80] sm:$0xff] }
 0x2b0   : > { %7857 = vst [vmem:[#allocation111_spill] sm:$0xff] %v6681_v38  ;;  %v6687_v37 = vld.sshfl [vmem:[#allocation1 + $0x20] sm:$0xff pattern:$0x75316420]  ;;  %5187 = vmatmul.msk.f32.gmra.mxu2 %vm272_vm0, %v6565_v21 }
 0x2b1   : > { %7858 = vst [vmem:[#allocation112_spill] sm:$0xff] %v6685_v51  ;;  %v6691_v7 = vld.sshfl [vmem:[#allocation1 + $0x30] sm:$0xff pattern:$0x75316420] }
 0x2b2   : > { %3488 = vst [vmem:[#allocation1 + $0x20] ss:$2 sm:$0xff] %v3407_v42  ;;  %v3358_v42 = vld [vmem:[#allocation2 + $0x20] sm:$0xff] }
 0x2b3   : > { %7859 = vst [vmem:[#allocation113_spill] sm:$0xff] %v6693_v16  ;;  %v6709_v50 = vpop.f32.mrf.mxu3 }
 0x2b4   : > { %3490 = vst [vmem:[#allocation1 + $0x21] ss:$2 sm:$0xff] %v3361_v9  ;;  %v6695_v38 = vld.sshfl [vmem:[#allocation1] sm:$0xff pattern:$0x75316420]  ;;  %5199 = vmatmul.msk.f32.gmra.mxu3 %vm272_vm0, %v6651_v31  ;;  %v6707_v9 = vpop.f32.mrf.mxu0  ;;  %v6717_v31 = vpop.f32.mrf.mxu1 }
 0x2b5   : > { %3220 = vst [vmem:[#allocation1 + $0x30] ss:$2 sm:$0xff] %v2943_v29  ;;  %v3364_v29 = vld [vmem:[#allocation2 + $0x50] sm:$0xff] }
 0x2b6   : > { %3226 = vst [vmem:[#allocation1] ss:$2 sm:$0xff] %v2944_v56  ;;  %v6699_v51 = vld.sshfl [vmem:[#allocation1 + $0x10] sm:$0xff pattern:$0x75316420]  ;;  %v3406_v56 = vrot.slane %v3358_v42, 4  ;;  %v6711_v61 = vpop.f32.mrf.mxu2 }
 0x2b7   : > { %3227 = vst [vmem:[#allocation1 + $0x1] ss:$2 sm:$0xff] %v2945_v3  ;;  %v3362_v3 = vld [vmem:[#allocation2 + $0x40] sm:$0xff]  ;;  %v3409_v16 = vrot.slane %v3364_v29, 4  ;;  %5176 = vmatmul.msk.f32.gmra.mxu1 %vm272_vm0, %v6499_v2  ;;  %v3372_v2 = vld [vmem:[#allocation2 + $0x90] sm:$0xff] }
 0x2b8   : > { %7860 = vst [vmem:[#allocation114_spill] sm:$0xff] %v6701_v22  ;;  %5188 = vmatmul.msk.f32.gmra.mxu2 %vm272_vm0, %v6587_v33 }
 0x2b9   : > { %3484 = vst [vmem:[#allocation1 + $0x10] ss:$2 sm:$0xff] %v3359_v49  ;;  %v3365_v49 = vld [vmem:[#allocation2 + $0x58] sm:$0xf] }
 0x2ba   : > { %3486 = vst [vmem:[#allocation1 + $0x11] ss:$2 sm:$0xff] %v3360_v62  ;;  %v3408_v62 = vrot.slane %v3362_v3, 4 }
 0x2bb   : > { %3221 = vst [vmem:[#allocation1 + $0x31] ss:$2 sm:$0xff] %v2981_v32 }
 0x2bc   : > { %7861 = vst [vmem:[#allocation115_spill] sm:$0xff] %v6707_v9  ;;  %v3366_v9 = vld [vmem:[#allocation2 + $0x60] sm:$0xff]  ;;  %5200 = vmatmul.msk.f32.gmra.mxu3 %vm272_vm0, %v6636_v20  ;;  %v6725_v22 = vpop.f32.mrf.mxu0  ;;  %v3368_v20 = vld [vmem:[#allocation2 + $0x70] sm:$0xff] }
 0x2bd   : > { %7862 = vst [vmem:[#allocation116_spill] sm:$0xff] %v6709_v50  ;;  %v3410_v21 = vrot.slane %v3366_v9, 4 }
 0x2be   : > { %v6715_v17 = vld.sshfl [vmem:[#allocation1] sm:$0xff pattern:$0x75316420]  ;;  %7863 = vst [vmem:[#allocation117_spill] sm:$0xff] %v6717_v31  ;;  %v6727_v31 = vpop.f32.mrf.mxu3 }
 0x2bf   : > { %3480 = vst [vmem:[#allocation1] ss:$2 sm:$0xff] %v3358_v42  ;;  %v3497_v42 = vld.sshfl [vmem:[#allocation1 + $0x20] sm:$0xff pattern:$0x75316420] }
 0x2c0   : > { %3482 = vst [vmem:[#allocation1 + $0x1] ss:$2 sm:$0xff] %v3406_v56  ;;  %v3363_v56 = vld [vmem:[#allocation2 + $0x48] sm:$0xf]  ;;  %5189 = vmatmul.msk.f32.gmra.mxu2 %vm272_vm0, %v6589_v47  ;;  %v3376_v47 = vld [vmem:[#allocation2 + $0xb0] sm:$0xff] }
 0x2c1   : > { %v3496_v32 = vld.sshfl [vmem:[#allocation1 + $0x10] sm:$0xff pattern:$0x75316420]  ;;  %7864 = vst [vmem:[#allocation118_spill] sm:$0xff] %v6725_v22  ;;  %v3369_v22 = vld [vmem:[#allocation2 + $0x78] sm:$0xf] }
 0x2c2   : > { %v6721_v50 = vld.sshfl [vmem:[#allocation1 + $0x30] sm:$0xff pattern:$0x75316420]  ;;  %3501 = vst [vmem:[#allocation1 + $0x10] ss:$2 sm:$0xff] %v3409_v16 }
 0x2c3   : > { %3492 = vst [vmem:[#allocation1 + $0x30] ss:$2 sm:$0xff] %v3362_v3  ;;  %v6731_v3 = vpop.f32.mrf.mxu2 }
 0x2c4   : > { %3494 = vst [vmem:[#allocation1 + $0x31] ss:$2 sm:$0xff] %v3408_v62  ;;  %v3412_v62 = vrot.slane %v3370_v5, 4  ;;  %5201 = vmatmul.msk.f32.gmra.mxu3 %vm272_vm0, %v6644_v27 }
 0x2c5   : > { %3502 = vst [vmem:[#allocation1 + $0x11] ss:$2 sm:$0xff] %v3365_v49 }
 0x2c6   : > { %3503 = vst [vmem:[#allocation1 + $0x20] ss:$2 sm:$0xff] %v3366_v9  ;;  %v6736_v9 = vpop.f32.mrf.mxu1  ;;  %v6751_v27 = vpop.f32.mrf.mxu3 }
 0x2c7   : > { %7865 = vst [vmem:[#allocation119_spill] sm:$0xff] %v6727_v31  ;;  %v3495_v16 = vld.sshfl [vmem:[#allocation1] sm:$0xff pattern:$0x75316420]  ;;  %v6748_v31 = vpop.f32.mrf.mxu0 }
 0x2c8   : > { %3504 = vst [vmem:[#allocation1 + $0x21] ss:$2 sm:$0xff] %v3410_v21  ;;  %5213 = vmatmul.msk.f32.vlgmr.msrb.gmra.mxu0 %vm272_vm0, %v3495_v16  ;;  %v3411_v21 = vrot.slane %v3368_v20, 4  ;;  %v3367_v16 = vld [vmem:[#allocation2 + $0x68] sm:$0xf]  ;;  %5190 = vmatmul.msk.f32.gmra.mxu2 %vm272_vm0, %v6578_v52 }
 0x2c9   : > { %3499 = vst [vmem:[#allocation1] ss:$2 sm:$0xff] %v3363_v56 }
 0x2ca   : > { %3500 = vst [vmem:[#allocation1 + $0x1] ss:$2 sm:$0xff] %v3364_v29  ;;  %v3371_v29 = vld [vmem:[#allocation2 + $0x88] sm:$0xf] }
 0x2cb   : > { %7866 = vst [vmem:[#allocation120_spill] sm:$0xff] %v6736_v9  ;;  %v6738_v49 = vld.sshfl [vmem:[#allocation1 + $0x30] sm:$0xff pattern:$0x75316420] }
 0x2cc   : > { %v6742_v33 = vld.sshfl [vmem:[#allocation1 + $0x10] sm:$0xff pattern:$0x75316420]  ;;  %3506 = vst [vmem:[#allocation1 + $0x31] ss:$2 sm:$0xff] %v3368_v20  ;;  %5202 = vmatmul.msk.f32.gmra.mxu3 %vm272_vm0, %v6663_v13 }
 0x2cd   : > { %3513 = vst [vmem:[#allocation1 + $0x10] ss:$2 sm:$0xff] %v3370_v5  ;;  %v6755_v5 = vpop.f32.mrf.mxu2 }
 0x2ce   : > { %3514 = vst [vmem:[#allocation1 + $0x11] ss:$2 sm:$0xff] %v3412_v62  ;;  %v3375_v62 = vld [vmem:[#allocation2 + $0xa8] sm:$0xf]  ;;  %v6780_v52 = vpop.f32.mrf.mxu3 }
 0x2cf   : > { %v6744_v56 = vld.sshfl [vmem:[#allocation1 + $0x20] sm:$0xff pattern:$0x75316420]  ;;  %3505 = vst [vmem:[#allocation1 + $0x30] ss:$2 sm:$0xff] %v3367_v16  ;;  %v3413_v16 = vrot.slane %v3372_v2, 4  ;;  %v6776_v41 = vpop.f32.mrf.mxu0 }
 0x2d0   : > { %7867 = vst [vmem:[#allocation121_spill] sm:$0xff] %v6748_v31  ;;  %5214 = vmatmul.msk.f32.gmra.mxu0 %vm272_vm0, %v3496_v32  ;;  %v6759_v31 = vpop.f32.mrf.mxu1  ;;  %v3415_v32 = vrot.slane %v3376_v47, 4  ;;  %5191 = vmatmul.msk.f32.gmra.mxu2 %vm272_vm0, %v6599_v58 }
 0x2d1   : > { %3515 = vst [vmem:[#allocation1 + $0x20] ss:$2 sm:$0xff] %v3371_v29  ;;  %v6753_v20 = vld.sshfl [vmem:[#allocation1] sm:$0xff pattern:$0x75316420]  ;;  %v3374_v29 = vld [vmem:[#allocation2 + $0xa0] sm:$0xff] }
 0x2d2   : > { %7868 = vst [vmem:[#allocation122_spill] sm:$0xff] %v6751_v27  ;;  %v3973_v27 = vld [vmem:[%s7741_s2 + $0x38] sm:$0xff] }
 0x2d3   : > { %3516 = vst [vmem:[#allocation1 + $0x21] ss:$2 sm:$0xff] %v3372_v2  ;;  %v3414_v2 = vrot.slane %v3374_v29, 4  ;;  %4086 = vmatpush.msra.mxu2 %v3973_v27 }
 0x2d4   : > { %3511 = vst [vmem:[#allocation1] ss:$2 sm:$0xff] %v3411_v21  ;;  %v3377_v21 = vld [vmem:[#allocation2 + $0xb8] sm:$0xf]  ;;  %5203 = vmatmul.msk.f32.gmra.mxu3 %vm272_vm0, %v6673_v0 }
 0x2d5   : > { %7869 = vst [vmem:[#allocation123_spill] sm:$0xff] %v6755_v5  ;;  %v6761_v9 = vld.sshfl [vmem:[#allocation1 + $0x10] sm:$0xff pattern:$0x75316420]  ;;  %v6784_v27 = vpop.f32.mrf.mxu2  ;;  %v4467_v0 = vld [vmem:[%s7741_s2 + $0x40] sm:$0xff] }
 0x2d6   : > { %3512 = vst [vmem:[#allocation1 + $0x1] ss:$2 sm:$0xff] %v3369_v22  ;;  %v4160_v22 = vld [vmem:[%s7742_s3 + $0x38] sm:$0xff]  ;;  %v6771_v13 = vld.sshfl [vmem:[#allocation1 + $0x30] sm:$0xff pattern:$0x75316420]  ;;  %4580 = vmatpush.msra.mxu0 %v4467_v0 }
 0x2d7   : > { %7870 = vst [vmem:[#allocation124_spill] sm:$0xff] %v6759_v31  ;;  %4273 = vmatpush.msra.mxu3 %v4160_v22 }
 0x2d8   : > { %3525 = vst [vmem:[#allocation1 + $0x10] ss:$2 sm:$0xff] %v3375_v62  ;;  %5215 = vmatmul.msk.f32.gmra.mxu0 %vm272_vm0, %v3497_v42  ;;  %v3380_v62 = vld [vmem:[#allocation2 + $0xd0] sm:$0xff]  ;;  %5192 = vmatmul.msk.f32.gmra.mxu2 %vm272_vm0, %v6607_v25 }
 0x2d9   : > { %3526 = vst [vmem:[#allocation1 + $0x11] ss:$2 sm:$0xff] %v3376_v47  ;;  %v3417_v47 = vrot.slane %v3380_v62, 4  ;;  %v3421_v42 = vld [vmem:[#allocation3 + $0x30] sm:$0xff] }
 0x2da   : > { %v6773_v31 = vld.sshfl [vmem:[#allocation1 + $0x20] sm:$0xff pattern:$0x75316420]  ;;  %3517 = vst [vmem:[#allocation1 + $0x30] ss:$2 sm:$0xff] %v3413_v16 }
 0x2db   : > { %3527 = vst [vmem:[#allocation1 + $0x20] ss:$2 sm:$0xff] %v3415_v32  ;;  %v3381_v16 = vld [vmem:[#allocation2 + $0xd8] sm:$0xf]  ;;  %v3468_v32 = vrot.slane %v3421_v42, 4 }
 0x2dc   : > { %7871 = vst [vmem:[#allocation125_spill] sm:$0xff] %v6776_v41  ;;  %v6788_v41 = vpop.f32.mrf.mxu1  ;;  %5204 = vmatmul.msk.f32.gmra.mxu3 %vm272_vm0, %v6655_v23 }
 0x2dd   : > { %v6778_v59 = vld.sshfl [vmem:[#allocation1] sm:$0xff pattern:$0x75316420]  ;;  %3528 = vst [vmem:[#allocation1 + $0x21] ss:$2 sm:$0xff] %v3377_v21  ;;  %v3378_v21 = vld [vmem:[#allocation2 + $0xc0] sm:$0xff]  ;;  %v6812_v0 = vpop.f32.mrf.mxu2 }
 0x2de   : > { %7872 = vst [vmem:[#allocation126_spill] sm:$0xff] %v6780_v52  ;;  %v3416_v58 = vrot.slane %v3378_v21, 4 }
 0x2df   : > { %3523 = vst [vmem:[#allocation1] ss:$2 sm:$0xff] %v3374_v29  ;;  %v3422_v29 = vld [vmem:[#allocation3 + $0x38] sm:$0xf] }
 0x2e0   : > { %3524 = vst [vmem:[#allocation1 + $0x1] ss:$2 sm:$0xff] %v3414_v2  ;;  %v6786_v22 = vld.sshfl [vmem:[#allocation1 + $0x10] sm:$0xff pattern:$0x75316420]  ;;  %5216 = vmatmul.msk.f32.gmra.mxu0 %vm272_vm0, %v6738_v49  ;;  %5193 = vmatmul.msk.f32.gmra.mxu2 %vm272_vm0, %v6613_v45  ;;  %v3431_v45 = vld [vmem:[#allocation3 + $0x80] sm:$0xff] }
 0x2e1   : > { %7873 = vst [vmem:[#allocation127_spill] sm:$0xff] %v6784_v27  ;;  %v3420_v49 = vld [vmem:[#allocation3 + $0x28] sm:$0xf] }
 0x2e2   : > { %3518 = vst [vmem:[#allocation1 + $0x31] ss:$2 sm:$0xff] %v3373_v19  ;;  %v3379_v19 = vld [vmem:[#allocation2 + $0xc8] sm:$0xf] }
 0x2e3   : > { %7874 = vst [vmem:[#allocation128_spill] sm:$0xff] %v6788_v41  ;;  %v6807_v41 = vpop.f32.mrf.mxu3 }
 0x2e4   : > { %3537 = vst [vmem:[#allocation1 + $0x10] ss:$2 sm:$0xff] %v3417_v47  ;;  %v6797_v2 = vld.sshfl [vmem:[#allocation1 + $0x20] sm:$0xff pattern:$0x75316420]  ;;  %v6801_v47 = vpop.f32.mrf.mxu0  ;;  %v6820_v23 = vpop.f32.mrf.mxu1  ;;  %5205 = vmatmul.msk.f32.gmra.mxu3 %vm272_vm0, %v6667_v4  ;;  %v3427_v4 = vld [vmem:[#allocation3 + $0x60] sm:$0xff] }
 0x2e5   : > { %3538 = vst [vmem:[#allocation1 + $0x11] ss:$2 sm:$0xff] %v3381_v16 }
 0x2e6   : > { %3675 = vst [vmem:[#allocation1 + $0x20] ss:$2 sm:$0xff] %v3468_v32  ;;  %v4654_v32 = vld [vmem:[%s7742_s3 + $0x40] sm:$0xff] }
 0x2e7   : > { %v6799_v52 = vld.sshfl [vmem:[#allocation1] sm:$0xff pattern:$0x75316420]  ;;  %3677 = vst [vmem:[#allocation1 + $0x21] ss:$2 sm:$0xff] %v3422_v29  ;;  %v3419_v29 = vld [vmem:[#allocation3 + $0x20] sm:$0xff]  ;;  %4767 = vmatpush.msra.mxu1 %v4654_v32 }
 0x2e8   : > { %7875 = vst [vmem:[#allocation129_spill] sm:$0xff] %v6801_v47  ;;  %5217 = vmatmul.msk.f32.gmra.mxu0 %vm272_vm0, %v6753_v20  ;;  %5194 = vmatmul.msk.f32.gmra.mxu2 %vm272_vm0, %v6595_v46 }
 0x2e9   : > { %3535 = vst [vmem:[#allocation1] ss:$2 sm:$0xff] %v3379_v19  ;;  %v6805_v16 = vld.sshfl [vmem:[#allocation1 + $0x30] sm:$0xff pattern:$0x75316420]  ;;  %v3467_v19 = vrot.slane %v3419_v29, 4 }
 0x2ea   : > { %3536 = vst [vmem:[#allocation1 + $0x1] ss:$2 sm:$0xff] %v3380_v62  ;;  %v3423_v62 = vld [vmem:[#allocation3 + $0x40] sm:$0xff] }
 0x2eb   : > { %3529 = vst [vmem:[#allocation1 + $0x30] ss:$2 sm:$0xff] %v3378_v21  ;;  %v3469_v25 = vrot.slane %v3423_v62, 4  ;;  %v6830_v20 = vpop.f32.mrf.mxu3 }
 0x2ec   : > { %7876 = vst [vmem:[#allocation130_spill] sm:$0xff] %v6812_v0  ;;  %v6816_v47 = vld.sshfl [vmem:[#allocation1 + $0x10] sm:$0xff pattern:$0x75316420]  ;;  %v3425_v0 = vld [vmem:[#allocation3 + $0x50] sm:$0xff]  ;;  %v6826_v32 = vpop.f32.mrf.mxu0  ;;  %5206 = vmatmul.msk.f32.gmra.mxu3 %vm272_vm0, %v6691_v7 }
 0x2ed   : > { %3530 = vst [vmem:[#allocation1 + $0x31] ss:$2 sm:$0xff] %v3416_v58  ;;  %v3470_v27 = vrot.slane %v3425_v0, 4 }
 0x2ee   : > { %3671 = vst [vmem:[#allocation1 + $0x10] ss:$2 sm:$0xff] %v3420_v49 }
 0x2ef   : > { %7877 = vst [vmem:[#allocation131_spill] sm:$0xff] %v6820_v23  ;;  %v6834_v23 = vpop.f32.mrf.mxu2 }
 0x2f0   : > { %3673 = vst [vmem:[#allocation1 + $0x11] ss:$2 sm:$0xff] %v3421_v42  ;;  %v3426_v42 = vld [vmem:[#allocation3 + $0x58] sm:$0xf]  ;;  %5218 = vmatmul.msk.f32.gmra.mxu0 %vm272_vm0, %v6742_v33 }
 0x2f1   : > { %v6824_v21 = vld.sshfl [vmem:[#allocation1] sm:$0xff pattern:$0x75316420]  ;;  %7878 = vst [vmem:[#allocation132_spill] sm:$0xff] %v6826_v32  ;;  %v6838_v32 = vpop.f32.mrf.mxu1 }
 0x2f2   : > { %3667 = vst [vmem:[#allocation1] ss:$2 sm:$0xff] %v3419_v29  ;;  %v3471_v29 = vrot.slane %v3427_v4, 4 }
 0x2f3   : > { %3669 = vst [vmem:[#allocation1 + $0x1] ss:$2 sm:$0xff] %v3467_v19  ;;  %v3684_v19 = vld.sshfl [vmem:[#allocation1 + $0x20] sm:$0xff pattern:$0x75316420] }
 0x2f4   : > { %v6828_v58 = vld.sshfl [vmem:[#allocation1 + $0x30] sm:$0xff pattern:$0x75316420]  ;;  %7879 = vst [vmem:[#allocation133_spill] sm:$0xff] %v6834_v23  ;;  %5207 = vmatmul.msk.f32.gmra.mxu3 %vm272_vm0, %v6695_v38  ;;  %v3430_v23 = vld [vmem:[#allocation3 + $0x78] sm:$0xf] }
 0x2f5   : > { %3679 = vst [vmem:[#allocation1 + $0x30] ss:$2 sm:$0xff] %v3423_v62 }
 0x2f6   : > { %3681 = vst [vmem:[#allocation1 + $0x31] ss:$2 sm:$0xff] %v3469_v25  ;;  %v3429_v25 = vld [vmem:[#allocation3 + $0x70] sm:$0xff] }
 0x2f7   : > { %v3683_v49 = vld.sshfl [vmem:[#allocation1 + $0x10] sm:$0xff pattern:$0x75316420]  ;;  %7880 = vst [vmem:[#allocation134_spill] sm:$0xff] %v6838_v32  ;;  %v6853_v7 = vpop.f32.mrf.mxu2 }
 0x2f8   : > { %3688 = vst [vmem:[#allocation1 + $0x10] ss:$2 sm:$0xff] %v3470_v27  ;;  %v3473_v27 = vrot.slane %v3431_v45, 4  ;;  %5219 = vmatmul.msk.f32.gmra.mxu0 %vm272_vm0, %v6744_v56 }
 0x2f9   : > { %3689 = vst [vmem:[#allocation1 + $0x11] ss:$2 sm:$0xff] %v3426_v42  ;;  %v6847_v42 = vpop.f32.mrf.mxu0  ;;  %v6861_v32 = vpop.f32.mrf.mxu1 }
 0x2fa   : > { %3690 = vst [vmem:[#allocation1 + $0x20] ss:$2 sm:$0xff] %v3427_v4  ;;  %v3682_v62 = vld.sshfl [vmem:[#allocation1] sm:$0xff pattern:$0x75316420]  ;;  %v6849_v4 = vpop.f32.mrf.mxu3 }
 0x2fb   : > { %3691 = vst [vmem:[#allocation1 + $0x21] ss:$2 sm:$0xff] %v3471_v29  ;;  %5231 = vmatmul.msk.f32.vlgmr.msrb.gmra.mxu1 %vm272_vm0, %v3682_v62  ;;  %v3428_v62 = vld [vmem:[#allocation3 + $0x68] sm:$0xf] }
 0x2fc   : > { %3686 = vst [vmem:[#allocation1] ss:$2 sm:$0xff] %v3424_v40  ;;  %v3472_v40 = vrot.slane %v3429_v25, 4  ;;  %5208 = vmatmul.msk.f32.gmra.mxu3 %vm272_vm0, %v6679_v11  ;;  %v3442_v11 = vld [vmem:[#allocation3 + $0xd8] sm:$0xf] }
 0x2fd   : > { %v6845_v33 = vld.sshfl [vmem:[#allocation1 + $0x30] sm:$0xff pattern:$0x75316420]  ;;  %3687 = vst [vmem:[#allocation1 + $0x1] ss:$2 sm:$0xff] %v3425_v0  ;;  %v3433_v0 = vld [vmem:[#allocation3 + $0x90] sm:$0xff] }
 0x2fe   : > { %7881 = vst [vmem:[#allocation135_spill] sm:$0xff] %v6847_v42  ;;  %v3432_v42 = vld [vmem:[#allocation3 + $0x88] sm:$0xf] }
 0x2ff   : > { %3693 = vst [vmem:[#allocation1 + $0x31] ss:$2 sm:$0xff] %v3429_v25  ;;  %v3437_v25 = vld [vmem:[#allocation3 + $0xb0] sm:$0xff] }
 0x300   : > { %7882 = vst [vmem:[#allocation136_spill] sm:$0xff] %v6849_v4  ;;  %v6855_v29 = vld.sshfl [vmem:[#allocation1 + $0x10] sm:$0xff pattern:$0x75316420]  ;;  %5220 = vmatmul.msk.f32.gmra.mxu0 %vm272_vm0, %v6771_v13  ;;  %v3438_v13 = vld [vmem:[#allocation3 + $0xb8] sm:$0xf] }
 0x301   : > { %7883 = vst [vmem:[#allocation137_spill] sm:$0xff] %v6853_v7  ;;  %v6868_v38 = vpop.f32.mrf.mxu0 }
 0x302   : > { %3700 = vst [vmem:[#allocation1 + $0x10] ss:$2 sm:$0xff] %v3431_v45  ;;  %v6857_v46 = vld.sshfl [vmem:[#allocation1 + $0x20] sm:$0xff pattern:$0x75316420] }
 0x303   : > { %3701 = vst [vmem:[#allocation1 + $0x11] ss:$2 sm:$0xff] %v3473_v27  ;;  %5232 = vmatmul.msk.f32.gmra.mxu1 %vm272_vm0, %v3683_v49  ;;  %v3436_v45 = vld [vmem:[#allocation3 + $0xa8] sm:$0xf]  ;;  %v3474_v27 = vrot.slane %v3433_v0, 4  ;;  %v6874_v49 = vpop.f32.mrf.mxu2 }
 0x304   : > { %3692 = vst [vmem:[#allocation1 + $0x30] ss:$2 sm:$0xff] %v3428_v62  ;;  %v6864_v56 = vld.sshfl [vmem:[#allocation1] sm:$0xff pattern:$0x75316420]  ;;  %v3435_v62 = vld [vmem:[#allocation3 + $0xa0] sm:$0xff]  ;;  %5209 = vmatmul.msk.f32.gmra.mxu3 %vm272_vm0, %v6687_v37 }
 0x305   : > { %7884 = vst [vmem:[#allocation138_spill] sm:$0xff] %v6861_v32  ;;  %v3476_v32 = vrot.slane %v3437_v25, 4 }
 0x306   : > { %3702 = vst [vmem:[#allocation1 + $0x20] ss:$2 sm:$0xff] %v3432_v42  ;;  %v6872_v42 = vpop.f32.mrf.mxu3 }
 0x307   : > { %3703 = vst [vmem:[#allocation1 + $0x21] ss:$2 sm:$0xff] %v3433_v0  ;;  %v3434_v0 = vld [vmem:[#allocation3 + $0x98] sm:$0xf] }
 0x308   : > { %3698 = vst [vmem:[#allocation1] ss:$2 sm:$0xff] %v3472_v40  ;;  %5221 = vmatmul.msk.f32.gmra.mxu0 %vm272_vm0, %v6778_v59  ;;  %v3439_v59 = vld [vmem:[#allocation3 + $0xc0] sm:$0xff] }
 0x309   : > { %3699 = vst [vmem:[#allocation1 + $0x1] ss:$2 sm:$0xff] %v3430_v23  ;;  %v3475_v23 = vrot.slane %v3435_v62, 4  ;;  %v3477_v54 = vrot.slane %v3439_v59, 4 }
 0x30a   : > { %7885 = vst [vmem:[#allocation139_spill] sm:$0xff] %v6868_v38  ;;  %v6870_v7 = vld.sshfl [vmem:[#allocation1 + $0x10] sm:$0xff pattern:$0x75316420]  ;;  %v6883_v38 = vpop.f32.mrf.mxu1 }
 0x30b   : > { %7886 = vst [vmem:[#allocation140_spill] sm:$0xff] %v6872_v42  ;;  %v6876_v15 = vld.sshfl [vmem:[#allocation1 + $0x30] sm:$0xff pattern:$0x75316420]  ;;  %5233 = vmatmul.msk.f32.gmra.mxu1 %vm272_vm0, %v3684_v19  ;;  %v3441_v42 = vld [vmem:[#allocation3 + $0xd0] sm:$0xff] }
 0x30c   : > { %7887 = vst [vmem:[#allocation141_spill] sm:$0xff] %v6874_v49  ;;  %5210 = vmatmul.msk.f32.gmra.mxu3 %vm272_vm0, %v6721_v50 }
 0x30d   : > { %3712 = vst [vmem:[#allocation1 + $0x10] ss:$2 sm:$0xff] %v3436_v45  ;;  %v3478_v45 = vrot.slane %v3441_v42, 4 }
 0x30e   : > { %3713 = vst [vmem:[#allocation1 + $0x11] ss:$2 sm:$0xff] %v3437_v25  ;;  %v6880_v40 = vld.sshfl [vmem:[#allocation1 + $0x20] sm:$0xff pattern:$0x75316420] }
 0x30f   : > { %3704 = vst [vmem:[#allocation1 + $0x30] ss:$2 sm:$0xff] %v3474_v27  ;;  %v3855_v25 = vld [vmem:[#allocation2 + $0x31] sm:$0xff] }
 0x310   : > { %3714 = vst [vmem:[#allocation1 + $0x20] ss:$2 sm:$0xff] %v3476_v32  ;;  %v6885_v49 = vld.sshfl [vmem:[#allocation1] sm:$0xff pattern:$0x75316420]  ;;  %v3902_v19 = vrot.slane %v3855_v25, 4  ;;  %v6891_v32 = vpop.f32.mrf.mxu0  ;;  %5222 = vmatmul.msk.f32.gmra.mxu0 %vm272_vm0, %v6761_v9 }
 0x311   : > { %7888 = vst [vmem:[#allocation142_spill] sm:$0xff] %v6883_v38  ;;  %v6895_v38 = vpop.f32.mrf.mxu3  ;;  %v3857_v9 = vld [vmem:[#allocation2 + $0x41] sm:$0xff] }
 0x312   : > { %3715 = vst [vmem:[#allocation1 + $0x21] ss:$2 sm:$0xff] %v3438_v13  ;;  %v6897_v13 = vpop.f32.mrf.mxu2  ;;  %v6905_v37 = vpop.f32.mrf.mxu1 }
 0x313   : > { %3710 = vst [vmem:[#allocation1] ss:$2 sm:$0xff] %v3435_v62  ;;  %v3856_v62 = vld [vmem:[#allocation2 + $0x39] sm:$0xf]  ;;  %5234 = vmatmul.msk.f32.gmra.mxu1 %vm272_vm0, %v6845_v33  ;;  %v3853_v33 = vld [vmem:[#allocation2 + $0x21] sm:$0xff] }
 0x314   : > { %3711 = vst [vmem:[#allocation1 + $0x1] ss:$2 sm:$0xff] %v3475_v23  ;;  %v3440_v23 = vld [vmem:[#allocation3 + $0xc8] sm:$0xf]  ;;  %5211 = vmatmul.msk.f32.gmra.mxu3 %vm272_vm0, %v6715_v17 }
 0x315   : > { %3705 = vst [vmem:[#allocation1 + $0x31] ss:$2 sm:$0xff] %v3434_v0  ;;  %v6889_v27 = vld.sshfl [vmem:[#allocation1 + $0x10] sm:$0xff pattern:$0x75316420] }
 0x316   : > { %3724 = vst [vmem:[#allocation1 + $0x10] ss:$2 sm:$0xff] %v3478_v45  ;;  %v3865_v17 = vld [vmem:[#allocation2 + $0x81] sm:$0xff] }
 0x317   : > { %7889 = vst [vmem:[#allocation143_spill] sm:$0xff] %v6895_v38 }
 0x318   : > { %7890 = vst [vmem:[#allocation144_spill] sm:$0xff] %v6897_v13  ;;  %5223 = vmatmul.msk.f32.gmra.mxu0 %vm272_vm0, %v6773_v31 }
 0x319   : > { %3725 = vst [vmem:[#allocation1 + $0x11] ss:$2 sm:$0xff] %v3442_v11  ;;  %v6901_v0 = vld.sshfl [vmem:[#allocation1 + $0x20] sm:$0xff pattern:$0x75316420] }
 0x31a   : > { %3982 = vst [vmem:[#allocation1 + $0x20] ss:$2 sm:$0xff] %v3902_v19  ;;  %v3854_v11 = vld [vmem:[#allocation2 + $0x29] sm:$0xf]  ;;  %v6927_v13 = vpop.f32.mrf.mxu1 }
 0x31b   : > { %v6903_v4 = vld.sshfl [vmem:[#allocation1] sm:$0xff pattern:$0x75316420]  ;;  %3984 = vst [vmem:[#allocation1 + $0x21] ss:$2 sm:$0xff] %v3856_v62  ;;  %v6915_v62 = vpop.f32.mrf.mxu0  ;;  %5235 = vmatmul.msk.f32.gmra.mxu1 %vm272_vm0, %v6864_v56 }
 0x31c   : > { %7891 = vst [vmem:[#allocation145_spill] sm:$0xff] %v6905_v37  ;;  %v6909_v45 = vld.sshfl [vmem:[#allocation1 + $0x30] sm:$0xff pattern:$0x75316420]  ;;  %v3903_v37 = vrot.slane %v3857_v9, 4  ;;  %5212 = vmatmul.msk.f32.gmra.mxu3 %vm272_vm0, %v6699_v51 }
 0x31d   : > { %3722 = vst [vmem:[#allocation1] ss:$2 sm:$0xff] %v3440_v23  ;;  %v6919_v23 = vpop.f32.mrf.mxu3 }
 0x31e   : > { %3723 = vst [vmem:[#allocation1 + $0x1] ss:$2 sm:$0xff] %v3441_v42  ;;  %v6921_v42 = vpop.f32.mrf.mxu2 }
 0x31f   : > { %3716 = vst [vmem:[#allocation1 + $0x30] ss:$2 sm:$0xff] %v3439_v59  ;;  %v3901_v59 = vrot.slane %v3853_v33, 4 }
 0x320   : > { %v6913_v19 = vld.sshfl [vmem:[#allocation1 + $0x10] sm:$0xff pattern:$0x75316420]  ;;  %3717 = vst [vmem:[#allocation1 + $0x31] ss:$2 sm:$0xff] %v3477_v54  ;;  %v3859_v54 = vld [vmem:[#allocation2 + $0x51] sm:$0xff]  ;;  %5224 = vmatmul.msk.f32.gmra.mxu0 %vm272_vm0, %v6805_v16 }
 0x321   : > { %3978 = vst [vmem:[#allocation1 + $0x10] ss:$2 sm:$0xff] %v3854_v11  ;;  %v3904_v11 = vrot.slane %v3859_v54, 4 }
 0x322   : > { %3980 = vst [vmem:[#allocation1 + $0x11] ss:$2 sm:$0xff] %v3855_v25  ;;  %v3860_v25 = vld [vmem:[#allocation2 + $0x59] sm:$0xf] }
 0x323   : > { %7892 = vst [vmem:[#allocation146_spill] sm:$0xff] %v6919_v23  ;;  %v3861_v23 = vld [vmem:[#allocation2 + $0x61] sm:$0xff]  ;;  %5236 = vmatmul.msk.f32.gmra.mxu1 %vm272_vm0, %v6855_v29  ;;  %v3991_v38 = vld.sshfl [vmem:[#allocation1 + $0x20] sm:$0xff pattern:$0x75316420] }
 0x324   : > { %7893 = vst [vmem:[#allocation147_spill] sm:$0xff] %v6921_v42  ;;  %v3905_v31 = vrot.slane %v3861_v23, 4 }
 0x325   : > { %v6925_v50 = vld.sshfl [vmem:[#allocation1] sm:$0xff pattern:$0x75316420]  ;;  %7894 = vst [vmem:[#allocation148_spill] sm:$0xff] %v6927_v13  ;;  %v3858_v13 = vld [vmem:[#allocation2 + $0x49] sm:$0xf] }
 0x326   : > { %3974 = vst [vmem:[#allocation1] ss:$2 sm:$0xff] %v3853_v33  ;;  %v6935_v33 = vpop.f32.mrf.mxu3  ;;  %v6939_v5 = vpop.f32.mrf.mxu2 }
 0x327   : > { %3976 = vst [vmem:[#allocation1 + $0x1] ss:$2 sm:$0xff] %v3901_v59  ;;  %v6929_v56 = vld.sshfl [vmem:[#allocation1 + $0x30] sm:$0xff pattern:$0x75316420]  ;;  %v6937_v59 = vpop.f32.mrf.mxu0 }
 0x328   : > { %3986 = vst [vmem:[#allocation1 + $0x30] ss:$2 sm:$0xff] %v3857_v9  ;;  %v3907_v9 = vrot.slane %v3865_v17, 4  ;;  %5225 = vmatmul.msk.f32.gmra.mxu0 %vm272_vm0, %v6799_v52 }
 0x329   : > { %v3990_v42 = vld.sshfl [vmem:[#allocation1 + $0x10] sm:$0xff pattern:$0x75316420]  ;;  %3988 = vst [vmem:[#allocation1 + $0x31] ss:$2 sm:$0xff] %v3903_v37 }
 0x32a   : > { %3995 = vst [vmem:[#allocation1 + $0x10] ss:$2 sm:$0xff] %v3904_v11  ;;  %v6948_v11 = vpop.f32.mrf.mxu1 }
 0x32b   : > { %7895 = vst [vmem:[#allocation149_spill] sm:$0xff] %v6935_v33  ;;  %5237 = vmatmul.msk.f32.gmra.mxu1 %vm272_vm0, %v6857_v46 }
 0x32c   : > { %3996 = vst [vmem:[#allocation1 + $0x11] ss:$2 sm:$0xff] %v3860_v25  ;;  %v3867_v25 = vld [vmem:[#allocation2 + $0x91] sm:$0xff] }
 0x32d   : > { %3997 = vst [vmem:[#allocation1 + $0x20] ss:$2 sm:$0xff] %v3861_v23  ;;  %v3908_v33 = vrot.slane %v3867_v25, 4 }
 0x32e   : > { %7896 = vst [vmem:[#allocation150_spill] sm:$0xff] %v6939_v5  ;;  %v3989_v37 = vld.sshfl [vmem:[#allocation1] sm:$0xff pattern:$0x75316420]  ;;  %v6955_v23 = vpop.f32.mrf.mxu3  ;;  %v6964_v46 = vpop.f32.mrf.mxu2 }
 0x32f   : > { %3998 = vst [vmem:[#allocation1 + $0x21] ss:$2 sm:$0xff] %v3905_v31  ;;  %5249 = vmatmul.msk.f32.vlgmr.msra.gmra.mxu2 %vm272_vm0, %v3989_v37  ;;  %v6961_v31 = vpop.f32.mrf.mxu0  ;;  %v3864_v37 = vld [vmem:[#allocation2 + $0x79] sm:$0xf]  ;;  %v3871_v5 = vld [vmem:[#allocation2 + $0xb1] sm:$0xff] }
 0x330   : > { %3993 = vst [vmem:[#allocation1] ss:$2 sm:$0xff] %v3858_v13  ;;  %v6946_v29 = vld.sshfl [vmem:[#allocation1 + $0x30] sm:$0xff pattern:$0x75316420]  ;;  %v3910_v52 = vrot.slane %v3871_v5, 4  ;;  %5226 = vmatmul.msk.f32.gmra.mxu0 %vm272_vm0, %v6786_v22 }
 0x331   : > { %3994 = vst [vmem:[#allocation1 + $0x1] ss:$2 sm:$0xff] %v3859_v54  ;;  %v3866_v13 = vld [vmem:[#allocation2 + $0x89] sm:$0xf]  ;;  %v3876_v22 = vld [vmem:[#allocation2 + $0xd9] sm:$0xf] }
 0x332   : > { %7897 = vst [vmem:[#allocation151_spill] sm:$0xff] %v6948_v11  ;;  %v3862_v54 = vld [vmem:[#allocation2 + $0x69] sm:$0xf] }
 0x333   : > { %4000 = vst [vmem:[#allocation1 + $0x31] ss:$2 sm:$0xff] %v5791_v12  ;;  %v6953_v16 = vld.sshfl [vmem:[#allocation1 + $0x10] sm:$0xff pattern:$0x75316420]  ;;  %5238 = vmatmul.msk.f32.gmra.mxu1 %vm272_vm0, %v6876_v15 }
 0x334   : > { %7898 = vst [vmem:[#allocation152_spill] sm:$0xff] %v6955_v23  ;;  %v3872_v15 = vld [vmem:[#allocation2 + $0xb9] sm:$0xf] }
 0x335   : > { %4007 = vst [vmem:[#allocation1 + $0x10] ss:$2 sm:$0xff] %v3865_v17  ;;  %v7901_v17 = vrot.slane %v5791_v12, 4 }
 0x336   : > { %4008 = vst [vmem:[#allocation1 + $0x11] ss:$2 sm:$0xff] %v3907_v9  ;;  %v6957_v51 = vld.sshfl [vmem:[#allocation1 + $0x20] sm:$0xff pattern:$0x75316420]  ;;  %v6974_v23 = vpop.f32.mrf.mxu3 }
 0x337   : > { %4009 = vst [vmem:[#allocation1 + $0x20] ss:$2 sm:$0xff] %v3866_v13  ;;  %5250 = vmatmul.msk.f32.gmra.mxu2 %vm272_vm0, %v3990_v42  ;;  %v3870_v9 = vld [vmem:[#allocation2 + $0xa9] sm:$0xf]  ;;  %v6972_v13 = vpop.f32.mrf.mxu1  ;;  %v3869_v42 = vld [vmem:[#allocation2 + $0xa1] sm:$0xff] }
 0x338   : > { %7899 = vst [vmem:[#allocation153_spill] sm:$0xff] %v6961_v31  ;;  %v6966_v11 = vld.sshfl [vmem:[#allocation1] sm:$0xff pattern:$0x75316420]  ;;  %v6989_v31 = vpop.f32.mrf.mxu2  ;;  %5227 = vmatmul.msk.f32.gmra.mxu0 %vm272_vm0, %v6797_v2 }
 0x339   : > { %4010 = vst [vmem:[#allocation1 + $0x21] ss:$2 sm:$0xff] %v3867_v25  ;;  %v6985_v25 = vpop.f32.mrf.mxu0 }
 0x33a   : > { %7900 = vst [vmem:[#allocation154_spill] sm:$0xff] %v6964_v46 }
 0x33b   : > { %3999 = vst [vmem:[#allocation1 + $0x30] ss:$2 sm:$0xff] %v3862_v54  ;;  %v3868_v54 = vld [vmem:[#allocation2 + $0x99] sm:$0xf]  ;;  %5239 = vmatmul.msk.f32.gmra.mxu1 %vm272_vm0, %v6885_v49  ;;  %v3874_v49 = vld [vmem:[#allocation2 + $0xc9] sm:$0xf] }
 0x33c   : > { %4005 = vst [vmem:[#allocation1] ss:$2 sm:$0xff] %v7901_v17 }
 0x33d   : > { %4006 = vst [vmem:[#allocation1 + $0x1] ss:$2 sm:$0xff] %v3864_v37  ;;  %v6976_v46 = vld.sshfl [vmem:[#allocation1 + $0x10] sm:$0xff pattern:$0x75316420]  ;;  %v3909_v37 = vrot.slane %v3869_v42, 4 }
 0x33e   : > { %7902 = vst [vmem:[#allocation155_spill] sm:$0xff] %v6972_v13  ;;  %v3875_v13 = vld [vmem:[#allocation2 + $0xd1] sm:$0xff] }
 0x33f   : > { %7903 = vst [vmem:[#allocation156_spill] sm:$0xff] %v6974_v23  ;;  %5251 = vmatmul.msk.f32.gmra.mxu2 %vm272_vm0, %v3991_v38 }
 0x340   : > { %4019 = vst [vmem:[#allocation1 + $0x10] ss:$2 sm:$0xff] %v3870_v9  ;;  %v6980_v12 = vld.sshfl [vmem:[#allocation1 + $0x20] sm:$0xff pattern:$0x75316420]  ;;  %v3912_v9 = vrot.slane %v3875_v13, 4  ;;  %5228 = vmatmul.msk.f32.gmra.mxu0 %vm272_vm0, %v6828_v58 }
 0x341   : > { %4020 = vst [vmem:[#allocation1 + $0x11] ss:$2 sm:$0xff] %v3871_v5  ;;  %v3873_v5 = vld [vmem:[#allocation2 + $0xc1] sm:$0xff] }
 0x342   : > { %v6982_v17 = vld.sshfl [vmem:[#allocation1 + $0x30] sm:$0xff pattern:$0x75316420]  ;;  %4021 = vst [vmem:[#allocation1 + $0x20] ss:$2 sm:$0xff] %v3910_v52  ;;  %v6993_v52 = vpop.f32.mrf.mxu3 }
 0x343   : > { %4011 = vst [vmem:[#allocation1 + $0x30] ss:$2 sm:$0xff] %v3908_v33  ;;  %v6997_v33 = vpop.f32.mrf.mxu1  ;;  %5240 = vmatmul.msk.f32.gmra.mxu1 %vm272_vm0, %v6870_v7 }
 0x344   : > { %7904 = vst [vmem:[#allocation157_spill] sm:$0xff] %v6985_v25  ;;  %v6987_v23 = vld.sshfl [vmem:[#allocation1] sm:$0xff pattern:$0x75316420]  ;;  %v7007_v25 = vpop.f32.mrf.mxu0 }
 0x345   : > { %4012 = vst [vmem:[#allocation1 + $0x31] ss:$2 sm:$0xff] %v3868_v54  ;;  %v3911_v54 = vrot.slane %v3873_v5, 4 }
 0x346   : > { %7905 = vst [vmem:[#allocation158_spill] sm:$0xff] %v6989_v31 }
 0x347   : > { %4017 = vst [vmem:[#allocation1] ss:$2 sm:$0xff] %v3869_v42  ;;  %5252 = vmatmul.msk.f32.gmra.mxu2 %vm272_vm0, %v6946_v29  ;;  %v3915_v42 = vld [vmem:[#allocation3 + $0x31] sm:$0xff] }
 0x348   : > { %4018 = vst [vmem:[#allocation1 + $0x1] ss:$2 sm:$0xff] %v3909_v37  ;;  %v6995_v38 = vld.sshfl [vmem:[#allocation1 + $0x10] sm:$0xff pattern:$0x75316420]  ;;  %v3962_v31 = vrot.slane %v3915_v42, 4  ;;  %5229 = vmatmul.msk.f32.gmra.mxu0 %vm272_vm0, %v6824_v21 }
 0x349   : > { %7906 = vst [vmem:[#allocation159_spill] sm:$0xff] %v6993_v52  ;;  %v3916_v52 = vld [vmem:[#allocation3 + $0x39] sm:$0xf] }
 0x34a   : > { %4022 = vst [vmem:[#allocation1 + $0x21] ss:$2 sm:$0xff] %v3872_v15  ;;  %v7015_v29 = vpop.f32.mrf.mxu3 }
 0x34b   : > { %7907 = vst [vmem:[#allocation160_spill] sm:$0xff] %v6995_v38  ;;  %v3917_v38 = vld [vmem:[#allocation3 + $0x41] sm:$0xff]  ;;  %5241 = vmatmul.msk.f32.gmra.mxu1 %vm272_vm0, %v6880_v40  ;;  %v3918_v40 = vld [vmem:[#allocation3 + $0x49] sm:$0xf] }
 0x34c   : > { %4031 = vst [vmem:[#allocation1 + $0x10] ss:$2 sm:$0xff] %v3912_v9  ;;  %v7003_v37 = vld.sshfl [vmem:[#allocation1 + $0x30] sm:$0xff pattern:$0x75316420]  ;;  %v7013_v9 = vpop.f32.mrf.mxu2  ;;  %v3963_v7 = vrot.slane %v3917_v38, 4 }
 0x34d   : > { %4032 = vst [vmem:[#allocation1 + $0x11] ss:$2 sm:$0xff] %v3876_v22  ;;  %v3914_v22 = vld [vmem:[#allocation3 + $0x29] sm:$0xf] }
 0x34e   : > { %4023 = vst [vmem:[#allocation1 + $0x30] ss:$2 sm:$0xff] %v3873_v5  ;;  %v3913_v5 = vld [vmem:[#allocation3 + $0x21] sm:$0xff] }
 0x34f   : > { %v7005_v15 = vld.sshfl [vmem:[#allocation1] sm:$0xff pattern:$0x75316420]  ;;  %4024 = vst [vmem:[#allocation1 + $0x31] ss:$2 sm:$0xff] %v3911_v54  ;;  %5253 = vmatmul.msk.f32.gmra.mxu2 %vm272_vm0, %v6966_v11 }
 0x350   : > { %7908 = vst [vmem:[#allocation161_spill] sm:$0xff] %v7007_v25  ;;  %5230 = vmatmul.msk.f32.gmra.mxu0 %vm272_vm0, %v6816_v47 }
 0x351   : > { %4029 = vst [vmem:[#allocation1] ss:$2 sm:$0xff] %v3874_v49  ;;  %v7011_v2 = vld.sshfl [vmem:[#allocation1 + $0x20] sm:$0xff pattern:$0x75316420]  ;;  %v7021_v49 = vpop.f32.mrf.mxu1 }
 0x352   : > { %7909 = vst [vmem:[#allocation162_spill] sm:$0xff] %v7013_v9 }
 0x353   : > { %4030 = vst [vmem:[#allocation1 + $0x1] ss:$2 sm:$0xff] %v3875_v13  ;;  %v3961_v13 = vrot.slane %v3913_v5, 4  ;;  %5242 = vmatmul.msk.f32.gmra.mxu1 %vm272_vm0, %v6909_v45 }
 0x354   : > { %7910 = vst [vmem:[#allocation163_spill] sm:$0xff] %v7015_v29  ;;  %v7019_v54 = vld.sshfl [vmem:[#allocation1 + $0x10] sm:$0xff pattern:$0x75316420]  ;;  %v7035_v11 = vpop.f32.mrf.mxu2 }
 0x355   : > { %4169 = vst [vmem:[#allocation1 + $0x20] ss:$2 sm:$0xff] %v3962_v31  ;;  %v7031_v31 = vpop.f32.mrf.mxu0 }
 0x356   : > { %7911 = vst [vmem:[#allocation164_spill] sm:$0xff] %v7019_v54  ;;  %v7025_v9 = vld.sshfl [vmem:[#allocation1 + $0x30] sm:$0xff pattern:$0x75316420] }
 0x357   : > { %4171 = vst [vmem:[#allocation1 + $0x21] ss:$2 sm:$0xff] %v3916_v52  ;;  %v3919_v52 = vld [vmem:[#allocation3 + $0x51] sm:$0xff]  ;;  %5254 = vmatmul.msk.f32.gmra.mxu2 %vm272_vm0, %v6953_v16 }
 0x358   : > { %4165 = vst [vmem:[#allocation1 + $0x10] ss:$2 sm:$0xff] %v3914_v22  ;;  %v7033_v22 = vpop.f32.mrf.mxu3  ;;  %v3964_v29 = vrot.slane %v3919_v52, 4 }
 0x359   : > { %4167 = vst [vmem:[#allocation1 + $0x11] ss:$2 sm:$0xff] %v3915_v42  ;;  %v7041_v54 = vpop.f32.mrf.mxu1 }
 0x35a   : > { %7912 = vst [vmem:[#allocation165_spill] sm:$0xff] %v7025_v9  ;;  %v7029_v58 = vld.sshfl [vmem:[#allocation1] sm:$0xff pattern:$0x75316420] }
 0x35b   : > { %4173 = vst [vmem:[#allocation1 + $0x30] ss:$2 sm:$0xff] %v3917_v38  ;;  %v3920_v38 = vld [vmem:[#allocation3 + $0x59] sm:$0xf]  ;;  %5243 = vmatmul.msk.f32.gmra.mxu1 %vm272_vm0, %v6903_v4  ;;  %v3931_v4 = vld [vmem:[#allocation3 + $0xb1] sm:$0xff] }
 0x35c   : > { %7913 = vst [vmem:[#allocation166_spill] sm:$0xff] %v7029_v58 }
 0x35d   : > { %7914 = vst [vmem:[#allocation167_spill] sm:$0xff] %v7031_v31  ;;  %v3921_v31 = vld [vmem:[#allocation3 + $0x61] sm:$0xff]  ;;  %v7047_v21 = vpop.f32.mrf.mxu0 }
 0x35e   : > { %4175 = vst [vmem:[#allocation1 + $0x31] ss:$2 sm:$0xff] %v3963_v7  ;;  %v4178_v7 = vld.sshfl [vmem:[#allocation1 + $0x20] sm:$0xff pattern:$0x75316420] }
 0x35f   : > { %4161 = vst [vmem:[#allocation1] ss:$2 sm:$0xff] %v3913_v5  ;;  %v3965_v5 = vrot.slane %v3921_v31, 4  ;;  %5255 = vmatmul.msk.f32.gmra.mxu2 %vm272_vm0, %v6957_v51  ;;  %v3924_v51 = vld [vmem:[#allocation3 + $0x79] sm:$0xf] }
 0x360   : > { %7915 = vst [vmem:[#allocation168_spill] sm:$0xff] %v7033_v22  ;;  %v4177_v42 = vld.sshfl [vmem:[#allocation1 + $0x10] sm:$0xff pattern:$0x75316420]  ;;  %v7049_v58 = vpop.f32.mrf.mxu3 }
 0x361   : > { %4163 = vst [vmem:[#allocation1 + $0x1] ss:$2 sm:$0xff] %v3961_v13  ;;  %v3923_v13 = vld [vmem:[#allocation3 + $0x71] sm:$0xff] }
 0x362   : > { %7916 = vst [vmem:[#allocation169_spill] sm:$0xff] %v7035_v11  ;;  %v3925_v11 = vld [vmem:[#allocation3 + $0x81] sm:$0xff] }
 0x363   : > { %4182 = vst [vmem:[#allocation1 + $0x10] ss:$2 sm:$0xff] %v3964_v29  ;;  %v3967_v29 = vrot.slane %v3925_v11, 4  ;;  %5244 = vmatmul.msk.f32.gmra.mxu1 %vm272_vm0, %v6889_v27 }
 0x364   : > { %4183 = vst [vmem:[#allocation1 + $0x11] ss:$2 sm:$0xff] %v3920_v38  ;;  %v3926_v38 = vld [vmem:[#allocation3 + $0x89] sm:$0xf] }
 0x365   : > { %v7043_v22 = vld.sshfl [vmem:[#allocation1 + $0x30] sm:$0xff pattern:$0x75316420]  ;;  %4184 = vst [vmem:[#allocation1 + $0x20] ss:$2 sm:$0xff] %v3921_v31  ;;  %v7054_v31 = vpop.f32.mrf.mxu2 }
 0x366   : > { %7917 = vst [vmem:[#allocation170_spill] sm:$0xff] %v7047_v21  ;;  %v3966_v21 = vrot.slane %v3923_v13, 4 }
 0x367   : > { %4187 = vst [vmem:[#allocation1 + $0x31] ss:$2 sm:$0xff] %v3923_v13  ;;  %v3930_v13 = vld [vmem:[#allocation3 + $0xa9] sm:$0xf]  ;;  %5256 = vmatmul.msk.f32.gmra.mxu2 %vm272_vm0, %v6982_v17 }
 0x368   : > { %v4176_v16 = vld.sshfl [vmem:[#allocation1] sm:$0xff pattern:$0x75316420]  ;;  %7918 = vst [vmem:[#allocation171_spill] sm:$0xff] %v7049_v58  ;;  %v3922_v58 = vld [vmem:[#allocation3 + $0x69] sm:$0xf] }
 0x369   : > { %4185 = vst [vmem:[#allocation1 + $0x21] ss:$2 sm:$0xff] %v3965_v5  ;;  %5267 = vmatmul.msk.f32.vlgmr.msra.gmra.mxu3 %vm272_vm0, %v4176_v16  ;;  %v3927_v5 = vld [vmem:[#allocation3 + $0x91] sm:$0xff]  ;;  %v7068_v16 = vpop.f32.mrf.mxu3 }
 0x36a   : > { %4180 = vst [vmem:[#allocation1] ss:$2 sm:$0xff] %v3918_v40  ;;  %v7062_v40 = vpop.f32.mrf.mxu0 }
 0x36b   : > { %4181 = vst [vmem:[#allocation1 + $0x1] ss:$2 sm:$0xff] %v3919_v52  ;;  %v7058_v45 = vld.sshfl [vmem:[#allocation1 + $0x10] sm:$0xff pattern:$0x75316420]  ;;  %v7066_v52 = vpop.f32.mrf.mxu1  ;;  %5245 = vmatmul.msk.f32.gmra.mxu1 %vm272_vm0, %v6901_v0  ;;  %v870_v0 = vadd.f32 %v5957_v48, %v5876_v55 }
 0x36c   : > { %7919 = vst [vmem:[#allocation172_spill] sm:$0xff] %v7054_v31  ;;  %v4347_v55 = vld [vmem:[#allocation2 + $0x22] sm:$0xff] }
 0x36d   : > { %4194 = vst [vmem:[#allocation1 + $0x10] ss:$2 sm:$0xff] %v3925_v11 }
 0x36e   : > { %4195 = vst [vmem:[#allocation1 + $0x11] ss:$2 sm:$0xff] %v3967_v29  ;;  %v3968_v29 = vrot.slane %v3927_v5, 4 }
 0x36f   : > { %7920 = vst [vmem:[#allocation173_spill] sm:$0xff] %v7062_v40  ;;  %v3970_v40 = vrot.slane %v3931_v4, 4  ;;  %5257 = vmatmul.msk.f32.gmra.mxu2 %vm272_vm0, %v6987_v23  ;;  %v4350_v23 = vld [vmem:[#allocation2 + $0x3a] sm:$0xf] }
 0x370   : > { %v7064_v47 = vld.sshfl [vmem:[#allocation1 + $0x20] sm:$0xff pattern:$0x75316420]  ;;  %4186 = vst [vmem:[#allocation1 + $0x30] ss:$2 sm:$0xff] %v3922_v58  ;;  %v3929_v58 = vld [vmem:[#allocation3 + $0xa1] sm:$0xff] }
 0x371   : > { %7921 = vst [vmem:[#allocation174_spill] sm:$0xff] %v7068_v16  ;;  %5268 = vmatmul.msk.f32.gmra.mxu3 %vm272_vm0, %v4177_v42  ;;  %v7077_v16 = vpop.f32.mrf.mxu2  ;;  %v7085_v17 = vpop.f32.mrf.mxu3 }
 0x372   : > { %4196 = vst [vmem:[#allocation1 + $0x20] ss:$2 sm:$0xff] %v3926_v38  ;;  %v7071_v11 = vld.sshfl [vmem:[#allocation1] sm:$0xff pattern:$0x75316420]  ;;  %v7081_v42 = vpop.f32.mrf.mxu0 }
 0x373   : > { %4197 = vst [vmem:[#allocation1 + $0x21] ss:$2 sm:$0xff] %v3927_v5  ;;  %v3932_v38 = vld [vmem:[#allocation3 + $0xb9] sm:$0xf]  ;;  %v7090_v25 = vpop.f32.mrf.mxu1  ;;  %5246 = vmatmul.msk.f32.gmra.mxu1 %vm272_vm0, %v6929_v56  ;;  %v873_v56 = vadd.f32 %v5982_v39, %v5895_v28 }
 0x374   : > { %4192 = vst [vmem:[#allocation1] ss:$2 sm:$0xff] %v3966_v21 }
 0x375   : > { %4193 = vst [vmem:[#allocation1 + $0x1] ss:$2 sm:$0xff] %v3924_v51  ;;  %v7075_v31 = vld.sshfl [vmem:[#allocation1 + $0x10] sm:$0xff pattern:$0x75316420]  ;;  %v3969_v51 = vrot.slane %v3929_v58, 4  ;;  %v1189_v28 = vadd.f32 %v6330_v1, %v873_v56 }
 0x376   : > { %7922 = vst [vmem:[#allocation175_spill] sm:$0xff] %v7077_v16  ;;  %v3928_v16 = vld [vmem:[#allocation3 + $0x99] sm:$0xf] }
 0x377   : > { %4206 = vst [vmem:[#allocation1 + $0x10] ss:$2 sm:$0xff] %v3930_v13  ;;  %v7083_v21 = vld.sshfl [vmem:[#allocation1 + $0x30] sm:$0xff pattern:$0x75316420]  ;;  %v3935_v13 = vld [vmem:[#allocation3 + $0xd1] sm:$0xff]  ;;  %5258 = vmatmul.msk.f32.gmra.mxu2 %vm272_vm0, %v6976_v46 }
 0x378   : > { %7923 = vst [vmem:[#allocation176_spill] sm:$0xff] %v7081_v42  ;;  %v3972_v27 = vrot.slane %v3935_v13, 4 }
 0x379   : > { %4207 = vst [vmem:[#allocation1 + $0x11] ss:$2 sm:$0xff] %v3931_v4  ;;  %5269 = vmatmul.msk.f32.gmra.mxu3 %vm272_vm0, %v4178_v7  ;;  %v3936_v4 = vld [vmem:[#allocation3 + $0xd9] sm:$0xf]  ;;  %v7102_v42 = vpop.f32.mrf.mxu2 }
 0x37a   : > { %7924 = vst [vmem:[#allocation177_spill] sm:$0xff] %v7085_v17  ;;  %v7087_v5 = vld.sshfl [vmem:[#allocation1 + $0x20] sm:$0xff pattern:$0x75316420] }
 0x37b   : > { %4198 = vst [vmem:[#allocation1 + $0x30] ss:$2 sm:$0xff] %v3968_v29  ;;  %v4349_v17 = vld [vmem:[#allocation2 + $0x32] sm:$0xff]  ;;  %5247 = vmatmul.msk.f32.gmra.mxu1 %vm272_vm0, %v6925_v50  ;;  %v876_v50 = vadd.f32 %v6010_v63, %v5911_v30 }
 0x37c   : > { %4208 = vst [vmem:[#allocation1 + $0x20] ss:$2 sm:$0xff] %v3970_v40  ;;  %v7092_v9 = vld.sshfl [vmem:[#allocation1] sm:$0xff pattern:$0x75316420]  ;;  %v4396_v7 = vrot.slane %v4349_v17, 4  ;;  %v7100_v40 = vpop.f32.mrf.mxu0 }
 0x37d   : > { %4209 = vst [vmem:[#allocation1 + $0x21] ss:$2 sm:$0xff] %v3932_v38  ;;  %v7104_v38 = vpop.f32.mrf.mxu3  ;;  %v1190_v30 = vadd.f32 %v6351_v18, %v876_v50 }
 0x37e   : > { %4204 = vst [vmem:[#allocation1] ss:$2 sm:$0xff] %v3929_v58  ;;  %v3933_v58 = vld [vmem:[#allocation3 + $0xc1] sm:$0xff] }
 0x37f   : > { %4205 = vst [vmem:[#allocation1 + $0x1] ss:$2 sm:$0xff] %v3969_v51  ;;  %v3934_v51 = vld [vmem:[#allocation3 + $0xc9] sm:$0xf]  ;;  %5259 = vmatmul.msk.f32.gmra.mxu2 %vm272_vm0, %v6980_v12  ;;  %v4354_v12 = vld [vmem:[#allocation2 + $0x5a] sm:$0xf] }
 0x380   : > { %4199 = vst [vmem:[#allocation1 + $0x31] ss:$2 sm:$0xff] %v3928_v16  ;;  %v7096_v29 = vld.sshfl [vmem:[#allocation1 + $0x10] sm:$0xff pattern:$0x75316420] }
 0x381   : > { %7925 = vst [vmem:[#allocation178_spill] sm:$0xff] %v7096_v29  ;;  %5270 = vmatmul.msk.f32.gmra.mxu3 %vm272_vm0, %v7043_v22  ;;  %v4348_v22 = vld [vmem:[#allocation2 + $0x2a] sm:$0xf] }
 0x382   : > { %4218 = vst [vmem:[#allocation1 + $0x10] ss:$2 sm:$0xff] %v3972_v27  ;;  %v3971_v27 = vrot.slane %v3933_v58, 4 }
 0x383   : > { %7926 = vst [vmem:[#allocation179_spill] sm:$0xff] %v7102_v42  ;;  %v7114_v42 = vpop.f32.mrf.mxu1  ;;  %5248 = vmatmul.msk.f32.gmra.mxu1 %vm272_vm0, %v6913_v19  ;;  %v4360_v19 = vld [vmem:[#allocation2 + $0x8a] sm:$0xf] }
 0x384   : > { %7927 = vst [vmem:[#allocation180_spill] sm:$0xff] %v7104_v38  ;;  %v7108_v16 = vld.sshfl [vmem:[#allocation1 + $0x20] sm:$0xff pattern:$0x75316420]  ;;  %v7123_v48 = vpop.f32.mrf.mxu0 }
 0x385   : > { %4219 = vst [vmem:[#allocation1 + $0x11] ss:$2 sm:$0xff] %v3936_v4  ;;  %v7127_v38 = vpop.f32.mrf.mxu3 }
 0x386   : > { %4476 = vst [vmem:[#allocation1 + $0x20] ss:$2 sm:$0xff] %v4396_v7  ;;  %v7112_v29 = vld.sshfl [vmem:[#allocation1] sm:$0xff pattern:$0x75316420]  ;;  %v1188_v7 = vadd.f32 %v6309_v26, %v870_v0  ;;  %v3134_v26 = vpop.f32.mrf.mxu2 }
 0x387   : > { %4478 = vst [vmem:[#allocation1 + $0x21] ss:$2 sm:$0xff] %v4350_v23  ;;  %v7118_v4 = vld.sshfl [vmem:[#allocation1 + $0x30] sm:$0xff pattern:$0x75316420]  ;;  %5260 = vmatmul.msk.f32.gmra.mxu2 %vm272_vm0, %v7003_v37 }
 0x388   : > { %4216 = vst [vmem:[#allocation1] ss:$2 sm:$0xff] %v3934_v51  ;;  %v1375_v46 = vadd.f32 %v6398_v14, %v1188_v7 }
 0x389   : > { %4217 = vst [vmem:[#allocation1 + $0x1] ss:$2 sm:$0xff] %v3935_v13  ;;  %5271 = vmatmul.msk.f32.gmra.mxu3 %vm272_vm0, %v7071_v11  ;;  %v4351_v13 = vld [vmem:[#allocation2 + $0x42] sm:$0xff] }
 0x38a   : > { %4210 = vst [vmem:[#allocation1 + $0x30] ss:$2 sm:$0xff] %v3933_v58  ;;  %v4395_v58 = vrot.slane %v4347_v55, 4  ;;  %v1682_v51 = vadd.f32 %v6487_v24, %v1375_v46  ;;  %v4397_v14 = vrot.slane %v4351_v13, 4 }
 0x38b   : > { %4211 = vst [vmem:[#allocation1 + $0x31] ss:$2 sm:$0xff] %v3971_v27  ;;  %v7139_v27 = vpop.f32.mrf.mxu1 }
 0x38c   : > { %v7125_v23 = vld.sshfl [vmem:[#allocation1 + $0x10] sm:$0xff pattern:$0x75316420]  ;;  %7928 = vst [vmem:[#allocation181_spill] sm:$0xff] %v7127_v38  ;;  %v1869_v11 = vadd.f32 %v6584_v35, %v1682_v51  ;;  %v7148_v24 = vpop.f32.mrf.mxu0 }
 0x38d   : > { %4472 = vst [vmem:[#allocation1 + $0x10] ss:$2 sm:$0xff] %v4348_v22  ;;  %v4353_v22 = vld [vmem:[#allocation2 + $0x52] sm:$0xff]  ;;  %v7150_v38 = vpop.f32.mrf.mxu3  ;;  %v4355_v35 = vld [vmem:[#allocation2 + $0x62] sm:$0xff]  ;;  %v4352_v51 = vld [vmem:[#allocation2 + $0x4a] sm:$0xf] }
 0x38e   : > { %4474 = vst [vmem:[#allocation1 + $0x11] ss:$2 sm:$0xff] %v4349_v17  ;;  %v4398_v17 = vrot.slane %v4353_v22, 4  ;;  %v2176_v39 = vadd.f32 %v6711_v61, %v1869_v11  ;;  %v4399_v1 = vrot.slane %v4355_v35, 4 }
 0x38f   : > { %v7156_v61 = vld.sshfl [vmem:[#allocation1 + $0x20] sm:$0xff pattern:$0x75316420]  ;;  %5261 = vmatmul.msk.f32.gmra.mxu2 %vm272_vm0, %v7005_v15 }
 0x390   : > { %v7137_v0 = vld.sshfl [vmem:[#allocation1] sm:$0xff pattern:$0x75316420]  ;;  %4491 = vst [vmem:[#allocation1 + $0x20] ss:$2 sm:$0xff] %v4355_v35 }
 0x391   : > { %4468 = vst [vmem:[#allocation1] ss:$2 sm:$0xff] %v4347_v55  ;;  %v1376_v55 = vadd.f32 %v6423_v34, %v1189_v28  ;;  %5272 = vmatmul.msk.f32.gmra.mxu3 %vm272_vm0, %v7058_v45  ;;  %v3137_v34 = vpop.f32.mrf.mxu2  ;;  %v4359_v45 = vld [vmem:[#allocation2 + $0x82] sm:$0xff]  ;;  %v1377_v28 = vadd.f32 %v6447_v43, %v1190_v30 }
 0x392   : > { %4470 = vst [vmem:[#allocation1 + $0x1] ss:$2 sm:$0xff] %v4395_v58  ;;  %v7142_v7 = vld.sshfl [vmem:[#allocation1 + $0x30] sm:$0xff pattern:$0x75316420]  ;;  %v2363_v58 = vadd.f32 %v6807_v41, %v2176_v39 }
 0x393   : > { %4480 = vst [vmem:[#allocation1 + $0x30] ss:$2 sm:$0xff] %v4351_v13  ;;  %v1683_v13 = vadd.f32 %v6509_v8, %v1376_v55  ;;  %v7164_v41 = vpop.f32.mrf.mxu1 }
 0x394   : > { %4482 = vst [vmem:[#allocation1 + $0x31] ss:$2 sm:$0xff] %v4397_v14  ;;  %v2670_v56 = vadd.f32 %v6891_v32, %v2363_v58  ;;  %v7173_v32 = vpop.f32.mrf.mxu0 }
 0x395   : > { %v4484_v46 = vld.sshfl [vmem:[#allocation1 + $0x10] sm:$0xff pattern:$0x75316420]  ;;  %4492 = vst [vmem:[#allocation1 + $0x21] ss:$2 sm:$0xff] %v4399_v1  ;;  %v1870_v14 = vadd.f32 %v6609_v6, %v1683_v13  ;;  %v4401_v6 = vrot.slane %v4359_v45, 4 }
 0x396   : > { %4489 = vst [vmem:[#allocation1 + $0x10] ss:$2 sm:$0xff] %v4398_v17  ;;  %v2857_v11 = vadd.f32 %v6997_v33, %v2670_v56  ;;  %v3321_v33 = vpop.f32.mrf.mxu3  ;;  %v4358_v1 = vld [vmem:[#allocation2 + $0x7a] sm:$0xf]  ;;  %v7930_v56 = vrot.slane %v5923_v36, 4 }
 0x397   : > { %4490 = vst [vmem:[#allocation1 + $0x11] ss:$2 sm:$0xff] %v4354_v12  ;;  %v2177_v63 = vadd.f32 %v6731_v3, %v1870_v14  ;;  %v1684_v12 = vadd.f32 %v6531_v53, %v1377_v28 }
 0x398   : > { %v3164_v8 = vadd.f32 %v3134_v26, %v2857_v11  ;;  %v4361_v26 = vld [vmem:[#allocation2 + $0x92] sm:$0xff] }
 0x399   : > { %v4483_v17 = vld.sshfl [vmem:[#allocation1] sm:$0xff pattern:$0x75316420]  ;;  %v2364_v39 = vadd.f32 %v6830_v20, %v2177_v63  ;;  %5273 = vmatmul.msk.f32.gmra.mxu3 %vm272_vm0, %v7064_v47  ;;  %v4356_v47 = vld [vmem:[#allocation2 + $0x6a] sm:$0xf]  ;;  %v1871_v55 = vadd.f32 %v6631_v10, %v1684_v12  ;;  %v7933_v63 = vld [vmem:[#allocation10_spill] sm:$0xff] }
 0x39a   : > { %5285 = vmatmul.msk.f32.vlgmr.msra.gmra.mxu0 %vm272_vm0, %v4483_v17  ;;  %4487 = vst [vmem:[#allocation1] ss:$2 sm:$0xff] %v4352_v51  ;;  %v7182_v18 = vadd.f32 %v3321_v33, %v3164_v8  ;;  %v4365_v51 = vld [vmem:[#allocation2 + $0xb2] sm:$0xff] }
 0x39b   : > { %v7175_v37 = vld.sshfl [vmem:[#allocation1 + $0x30] sm:$0xff pattern:$0x75316420]  ;;  %4488 = vst [vmem:[#allocation1 + $0x1] ss:$2 sm:$0xff] %v4353_v22  ;;  %v879_v22 = vadd.f32 %v6037_v44, %v5938_v60  ;;  %v2671_v35 = vadd.f32 %v6915_v62, %v2364_v39  ;;  %v7194_v20 = vpop.f32.mrf.mxu1  ;;  %v3140_v60 = vpop.f32.mrf.mxu2  ;;  %v7929_v62 = vld [vmem:[#allocation123_spill] sm:$0xff] }
 0x39c   : > { %4494 = vst [vmem:[#allocation1 + $0x31] ss:$2 sm:$0xff] %v5923_v36  ;;  %v7190_v43 = vld.sshfl [vmem:[#allocation1 + $0x20] sm:$0xff pattern:$0x75316420]  ;;  %v2178_v15 = vadd.f32 %v7929_v62, %v1871_v55  ;;  %v7203_v13 = vpop.f32.mrf.mxu0  ;;  %v4404_v17 = vrot.slane %v4365_v51, 4 }
 0x39d   : > { %4503 = vst [vmem:[#allocation1 + $0x20] ss:$2 sm:$0xff] %v4360_v19  ;;  %v2858_v58 = vadd.f32 %v7021_v49, %v2671_v35  ;;  %v1191_v53 = vadd.f32 %v6372_v57, %v879_v22  ;;  %v4364_v49 = vld [vmem:[#allocation2 + $0xaa] sm:$0xf]  ;;  %v7934_v36 = vld [vmem:[#allocation18_spill] sm:$0xff]  ;;  %v4402_v19 = vrot.slane %v4361_v26, 4 }
 0x39e   : > { %v7184_v3 = vld.sshfl [vmem:[#allocation1 + $0x10] sm:$0xff pattern:$0x75316420]  ;;  %4504 = vst [vmem:[#allocation1 + $0x21] ss:$2 sm:$0xff] %v4361_v26  ;;  %v3324_v10 = vpop.f32.mrf.mxu3  ;;  %v882_v8 = vadd.f32 %v7934_v36, %v7933_v63  ;;  %v7936_v22 = vld [vmem:[#allocation160_spill] sm:$0xff] }
 0x39f   : > { %4501 = vst [vmem:[#allocation1 + $0x10] ss:$2 sm:$0xff] %v4359_v45  ;;  %v3165_v50 = vadd.f32 %v3137_v34, %v2858_v58  ;;  %v7931_v45 = vld [vmem:[#allocation79_spill] sm:$0xff]  ;;  %v4363_v34 = vld [vmem:[#allocation2 + $0xa2] sm:$0xff]  ;;  %5262 = vmatmul.msk.f32.gmra.mxu2 %vm272_vm0, %v7936_v22  ;;  %v7937_v35 = vld [vmem:[#allocation106_spill] sm:$0xff] }
 0x3a0   : > { %4502 = vst [vmem:[#allocation1 + $0x11] ss:$2 sm:$0xff] %v4401_v6  ;;  %v1378_v14 = vadd.f32 %v7931_v45, %v1191_v53  ;;  %v7935_v6 = vld [vmem:[#allocation91_spill] sm:$0xff]  ;;  %v4403_v58 = vrot.slane %v4363_v34, 4  ;;  %v7938_v26 = vld [vmem:[#allocation69_spill] sm:$0xff] }
 0x3a1   : > { %4493 = vst [vmem:[#allocation1 + $0x30] ss:$2 sm:$0xff] %v4356_v47  ;;  %5274 = vmatmul.msk.f32.gmra.mxu3 %vm272_vm0, %v7083_v21  ;;  %v7211_v57 = vadd.f32 %v3324_v10, %v3165_v50  ;;  %v4366_v39 = vld [vmem:[#allocation2 + $0xba] sm:$0xf]  ;;  %v1192_v53 = vadd.f32 %v7938_v26, %v882_v8  ;;  %v4369_v50 = vld [vmem:[#allocation2 + $0xd2] sm:$0xff]  ;;  %v7942_v8 = vld [vmem:[#allocation12_spill] sm:$0xff] }
 0x3a2   : > { %5286 = vmatmul.msk.f32.gmra.mxu0 %vm272_vm0, %v4484_v46  ;;  %v7199_v44 = vld.sshfl [vmem:[#allocation1] sm:$0xff pattern:$0x75316420]  ;;  %v7932_v46 = vld [vmem:[#allocation136_spill] sm:$0xff]  ;;  %v1685_v33 = vadd.f32 %v7935_v6, %v1378_v14  ;;  %v7940_v14 = vld [vmem:[#allocation82_spill] sm:$0xff] }
 0x3a3   : > { %4499 = vst [vmem:[#allocation1] ss:$2 sm:$0xff] %v7930_v56  ;;  %v2365_v11 = vadd.f32 %v7932_v46, %v2178_v15  ;;  %v7221_v21 = vpop.f32.mrf.mxu1  ;;  %v7939_v62 = vld [vmem:[#allocation127_spill] sm:$0xff]  ;;  %v1379_v46 = vadd.f32 %v7940_v14, %v1192_v53  ;;  %v7943_v6 = vld [vmem:[#allocation21_spill] sm:$0xff] }
 0x3a4   : > { %4500 = vst [vmem:[#allocation1 + $0x1] ss:$2 sm:$0xff] %v4358_v1  ;;  %v1872_v47 = vadd.f32 %v7937_v35, %v1685_v33  ;;  %v4370_v63 = vld [vmem:[#allocation2 + $0xda] sm:$0xf]  ;;  %v885_v33 = vadd.f32 %v7943_v6, %v7942_v8  ;;  %v4367_v26 = vld [vmem:[#allocation2 + $0xc2] sm:$0xff] }
 0x3a5   : > { %v2672_v28 = vadd.f32 %v6937_v59, %v2365_v11  ;;  %v7223_v12 = vld.sshfl [vmem:[#allocation1 + $0x20] sm:$0xff pattern:$0x75316420]  ;;  %v4368_v53 = vld [vmem:[#allocation2 + $0xca] sm:$0xf] }
 0x3a6   : > { %4515 = vst [vmem:[#allocation1 + $0x20] ss:$2 sm:$0xff] %v4404_v17  ;;  %v4362_v59 = vld [vmem:[#allocation2 + $0x9a] sm:$0xf]  ;;  %v2179_v15 = vadd.f32 %v7939_v62, %v1872_v47  ;;  %v3327_v45 = vpop.f32.mrf.mxu3  ;;  %v7946_v47 = vld [vmem:[#allocation110_spill] sm:$0xff]  ;;  %v7947_v62 = vld [vmem:[#allocation72_spill] sm:$0xff] }
 0x3a7   : > { %v7213_v30 = vld.sshfl [vmem:[#allocation1 + $0x10] sm:$0xff pattern:$0x75316420]  ;;  %v2859_v55 = vadd.f32 %v7041_v54, %v2672_v28  ;;  %4516 = vst [vmem:[#allocation1 + $0x21] ss:$2 sm:$0xff] %v4366_v39  ;;  %v4406_v54 = vrot.slane %v4369_v50, 4  ;;  %5263 = vmatmul.msk.f32.gmra.mxu2 %vm272_vm0, %v7011_v2 }
 0x3a8   : > { %4513 = vst [vmem:[#allocation1 + $0x10] ss:$2 sm:$0xff] %v4364_v49  ;;  %v7227_v1 = vld.sshfl [vmem:[#allocation1 + $0x30] sm:$0xff pattern:$0x75316420]  ;;  %v7235_v49 = vpop.f32.mrf.mxu0  ;;  %v7944_v28 = vld [vmem:[#allocation95_spill] sm:$0xff] }
 0x3a9   : > { %4514 = vst [vmem:[#allocation1 + $0x11] ss:$2 sm:$0xff] %v4365_v51  ;;  %v3166_v56 = vadd.f32 %v3140_v60, %v2859_v55  ;;  %v3143_v51 = vpop.f32.mrf.mxu2  ;;  %5275 = vmatmul.msk.f32.gmra.mxu3 %vm272_vm0, %v7092_v9  ;;  %v4409_v60 = vld [vmem:[#allocation3 + $0x32] sm:$0xff]  ;;  %v7945_v39 = vld [vmem:[#allocation153_spill] sm:$0xff]  ;;  %v4410_v35 = vld [vmem:[#allocation3 + $0x3a] sm:$0xf] }
 0x3aa   : > { %5287 = vmatmul.msk.f32.gmra.mxu0 %vm272_vm0, %v7156_v61  ;;  %4505 = vst [vmem:[#allocation1 + $0x30] ss:$2 sm:$0xff] %v4402_v19  ;;  %v7941_v61 = vld [vmem:[#allocation140_spill] sm:$0xff]  ;;  %v4456_v36 = vrot.slane %v4409_v60, 4  ;;  %v7948_v2 = vld [vmem:[#allocation130_spill] sm:$0xff] }
 0x3ab   : > { %v7233_v10 = vld.sshfl [vmem:[#allocation1] sm:$0xff pattern:$0x75316420]  ;;  %v2366_v11 = vadd.f32 %v7941_v61, %v2179_v15  ;;  %v7241_v17 = vadd.f32 %v3327_v45, %v3166_v56  ;;  %4506 = vst [vmem:[#allocation1 + $0x31] ss:$2 sm:$0xff] %v4362_v59  ;;  %v7251_v9 = vpop.f32.mrf.mxu1  ;;  %v1193_v15 = vadd.f32 %v7947_v62, %v885_v33  ;;  %v7949_v61 = vld [vmem:[#allocation85_spill] sm:$0xff] }
 0x3ac   : > { %4511 = vst [vmem:[#allocation1] ss:$2 sm:$0xff] %v4363_v34  ;;  %v1686_v34 = vadd.f32 %v7944_v28, %v1379_v46  ;;  %v4405_v46 = vrot.slane %v4367_v26, 4  ;;  %v4408_v6 = vld [vmem:[#allocation3 + $0x2a] sm:$0xf]  ;;  %v7951_v33 = vld [vmem:[#allocation98_spill] sm:$0xff] }
 0x3ad   : > { %4512 = vst [vmem:[#allocation1 + $0x1] ss:$2 sm:$0xff] %v4403_v58  ;;  %v2673_v19 = vadd.f32 %v7945_v39, %v2366_v11  ;;  %v1380_v11 = vadd.f32 %v7949_v61, %v1193_v15 }
 0x3ae   : > { %v1873_v55 = vadd.f32 %v7946_v47, %v1686_v34  ;;  %v7255_v59 = vld.sshfl [vmem:[#allocation1 + $0x20] sm:$0xff pattern:$0x75316420]  ;;  %v7952_v34 = vld [vmem:[#allocation157_spill] sm:$0xff] }
 0x3af   : > { %v2860_v58 = vadd.f32 %v7066_v52, %v2673_v19  ;;  %4663 = vst [vmem:[#allocation1 + $0x20] ss:$2 sm:$0xff] %v4456_v36  ;;  %v3330_v52 = vpop.f32.mrf.mxu3  ;;  %v1687_v28 = vadd.f32 %v7951_v33, %v1380_v11  ;;  %v7953_v19 = vld [vmem:[#allocation165_spill] sm:$0xff]  ;;  %v4413_v33 = vld [vmem:[#allocation3 + $0x52] sm:$0xff] }
 0x3b0   : > { %v7247_v22 = vld.sshfl [vmem:[#allocation1 + $0x10] sm:$0xff pattern:$0x75316420]  ;;  %v2180_v56 = vadd.f32 %v7948_v2, %v1873_v55  ;;  %4665 = vst [vmem:[#allocation1 + $0x21] ss:$2 sm:$0xff] %v4410_v35  ;;  %5264 = vmatmul.msk.f32.gmra.mxu2 %vm272_vm0, %v7953_v19  ;;  %v7954_v55 = vld [vmem:[#allocation114_spill] sm:$0xff] }
 0x3b1   : > { %4525 = vst [vmem:[#allocation1 + $0x10] ss:$2 sm:$0xff] %v4406_v54  ;;  %v3167_v45 = vadd.f32 %v3143_v51, %v2860_v58  ;;  %v7261_v54 = vpop.f32.mrf.mxu0  ;;  %5276 = vmatmul.msk.f32.gmra.mxu3 %vm272_vm0, %v7075_v31  ;;  %v3146_v51 = vpop.f32.mrf.mxu2  ;;  %v4407_v35 = vld [vmem:[#allocation3 + $0x22] sm:$0xff]  ;;  %v1874_v58 = vadd.f32 %v7954_v55, %v1687_v28  ;;  %v4458_v28 = vrot.slane %v4413_v33, 4 }
 0x3b2   : > { %4526 = vst [vmem:[#allocation1 + $0x11] ss:$2 sm:$0xff] %v4370_v63  ;;  %5288 = vmatmul.msk.f32.gmra.mxu0 %vm272_vm0, %v7175_v37  ;;  %v7950_v63 = vld [vmem:[#allocation143_spill] sm:$0xff]  ;;  %v7271_v36 = vld.sshfl [vmem:[#allocation1 + $0x30] sm:$0xff pattern:$0x75316420] }
 0x3b3   : > { %v2367_v8 = vadd.f32 %v7950_v63, %v2180_v56  ;;  %v7269_v37 = vadd.f32 %v3330_v52, %v3167_v45  ;;  %4517 = vst [vmem:[#allocation1 + $0x30] ss:$2 sm:$0xff] %v4367_v26  ;;  %v7277_v47 = vpop.f32.mrf.mxu1  ;;  %v7955_v26 = vld [vmem:[#allocation133_spill] sm:$0xff]  ;;  %v4455_v2 = vrot.slane %v4407_v35, 4  ;;  %v7956_v52 = vld [vmem:[#allocation146_spill] sm:$0xff] }
 0x3b4   : > { %v7263_v14 = vld.sshfl [vmem:[#allocation1] sm:$0xff pattern:$0x75316420]  ;;  %4518 = vst [vmem:[#allocation1 + $0x31] ss:$2 sm:$0xff] %v4405_v46  ;;  %v2181_v62 = vadd.f32 %v7955_v26, %v1874_v58 }
 0x3b5   : > { %4523 = vst [vmem:[#allocation1] ss:$2 sm:$0xff] %v4368_v53  ;;  %v2674_v39 = vadd.f32 %v7952_v34, %v2367_v8  ;;  %v4412_v58 = vld [vmem:[#allocation3 + $0x4a] sm:$0xf] }
 0x3b6   : > { %4524 = vst [vmem:[#allocation1 + $0x1] ss:$2 sm:$0xff] %v4369_v50  ;;  %v4411_v50 = vld [vmem:[#allocation3 + $0x42] sm:$0xff]  ;;  %v2368_v61 = vadd.f32 %v7956_v52, %v2181_v62 }
 0x3b7   : > { %v2861_v53 = vadd.f32 %v7090_v25, %v2674_v39  ;;  %v3333_v45 = vpop.f32.mrf.mxu3  ;;  %v4457_v11 = vrot.slane %v4411_v50, 4  ;;  %v4672_v62 = vld.sshfl [vmem:[#allocation1 + $0x20] sm:$0xff pattern:$0x75316420] }
 0x3b9   : > { %v7279_v31 = vld.sshfl [vmem:[#allocation1 + $0x10] sm:$0xff pattern:$0x75316420]  ;;  %v3168_v15 = vadd.f32 %v3146_v51, %v2861_v53  ;;  %v7286_v56 = vpop.f32.mrf.mxu0  ;;  %5277 = vmatmul.msk.f32.gmra.mxu3 %vm272_vm0, %v7087_v5  ;;  %v3149_v8 = vpop.f32.mrf.mxu2  ;;  %v7958_v51 = vld [vmem:[#allocation166_spill] sm:$0xff] }
 0x3ba   : > { %4659 = vst [vmem:[#allocation1 + $0x10] ss:$2 sm:$0xff] %v4408_v6  ;;  %5289 = vmatmul.msk.f32.gmra.mxu0 %vm272_vm0, %v7199_v44  ;;  %v7957_v44 = vld [vmem:[#allocation161_spill] sm:$0xff]  ;;  %5265 = vmatmul.msk.f32.gmra.mxu2 %vm272_vm0, %v7958_v51  ;;  %v4418_v51 = vld [vmem:[#allocation3 + $0x7a] sm:$0xf] }
 0x3bb   : > { %4661 = vst [vmem:[#allocation1 + $0x11] ss:$2 sm:$0xff] %v4409_v60  ;;  %v7293_v25 = vadd.f32 %v3333_v45, %v3168_v15  ;;  %v2675_v60 = vadd.f32 %v7957_v44, %v2368_v61  ;;  %v7296_v63 = vld.sshfl [vmem:[#allocation1 + $0x30] sm:$0xff pattern:$0x75316420]  ;;  %v7300_v6 = vpop.f32.mrf.mxu1  ;;  %v7960_v61 = vld [vmem:[#allocation178_spill] sm:$0xff] }
 0x3bc   : > { %4667 = vst [vmem:[#allocation1 + $0x30] ss:$2 sm:$0xff] %v4411_v50  ;;  %v4414_v50 = vld [vmem:[#allocation3 + $0x5a] sm:$0xf]  ;;  %v4415_v15 = vld [vmem:[#allocation3 + $0x62] sm:$0xff]  ;;  %v4417_v44 = vld [vmem:[#allocation3 + $0x72] sm:$0xff] }
 0x3bd   : > { %v7291_v46 = vld.sshfl [vmem:[#allocation1] sm:$0xff pattern:$0x75316420]  ;;  %v2862_v5 = vadd.f32 %v7114_v42, %v2675_v60  ;;  %4669 = vst [vmem:[#allocation1 + $0x31] ss:$2 sm:$0xff] %v4457_v11  ;;  %v4460_v60 = vrot.slane %v4417_v44, 4 }
 0x3be   : > { %4655 = vst [vmem:[#allocation1] ss:$2 sm:$0xff] %v4407_v35  ;;  %v4416_v11 = vld [vmem:[#allocation3 + $0x6a] sm:$0xf] }
 0x3bf   : > { %4657 = vst [vmem:[#allocation1 + $0x1] ss:$2 sm:$0xff] %v4455_v2  ;;  %v3169_v34 = vadd.f32 %v3149_v8, %v2862_v5  ;;  %v3336_v55 = vpop.f32.mrf.mxu3  ;;  %v4459_v2 = vrot.slane %v4415_v15, 4 }
 0x3c0   : > { %4678 = vst [vmem:[#allocation1 + $0x20] ss:$2 sm:$0xff] %v4415_v15  ;;  %v4424_v15 = vld [vmem:[#allocation3 + $0xaa] sm:$0xf] }
 0x3c1   : > { %v3630_v19 = vpop.f32.mrf.mxu0  ;;  %5278 = vmatmul.msk.f32.gmra.mxu3 %vm272_vm0, %v7118_v4  ;;  %v3356_v53 = vadd.f32 %v3336_v55, %v3169_v34  ;;  %4679 = vst [vmem:[#allocation1 + $0x21] ss:$2 sm:$0xff] %v4459_v2  ;;  %v4419_v34 = vld [vmem:[#allocation3 + $0x82] sm:$0xff]  ;;  %v4421_v55 = vld [vmem:[#allocation3 + $0x92] sm:$0xff] }
 0x3c2   : > { %5290 = vmatmul.msk.f32.gmra.mxu0 %vm272_vm0, %v7184_v3  ;;  %v4671_v39 = vld.sshfl [vmem:[#allocation1 + $0x10] sm:$0xff pattern:$0x75316420]  ;;  %v7306_v35 = vadd.f32 %v3630_v19, %v7182_v18  ;;  %v7959_v3 = vld [vmem:[#allocation164_spill] sm:$0xff] }
 0x3c3   : > { %4676 = vst [vmem:[#allocation1 + $0x10] ss:$2 sm:$0xff] %v4458_v28  ;;  %5266 = vmatmul.msk.f32.gmra.mxu2 %vm272_vm0, %v7959_v3  ;;  %v7313_v26 = vpop.f32.mrf.mxu1  ;;  %v4420_v19 = vld [vmem:[#allocation3 + $0x8a] sm:$0xf]  ;;  %v4423_v3 = vld [vmem:[#allocation3 + $0xa2] sm:$0xff] }
 0x3c4   : > { %4677 = vst [vmem:[#allocation1 + $0x11] ss:$2 sm:$0xff] %v4414_v50 }
 0x3c6   : > { %v4670_v42 = vld.sshfl [vmem:[#allocation1] sm:$0xff pattern:$0x75316420] }
 0x3c7   : > { %5303 = vmatmul.msk.f32.vlgmr.msra.gmra.mxu1 %vm272_vm0, %v4670_v42  ;;  %4674 = vst [vmem:[#allocation1] ss:$2 sm:$0xff] %v4412_v58 }
 0x3c8   : > { %4675 = vst [vmem:[#allocation1 + $0x1] ss:$2 sm:$0xff] %v4413_v33 }
 0x3c9   : > { %v3633_v18 = vpop.f32.mrf.mxu0  ;;  %5279 = vmatmul.msk.f32.gmra.mxu3 %vm272_vm0, %v7112_v29 }
 0x3ca   : > { %5291 = vmatmul.msk.f32.gmra.mxu0 %vm272_vm0, %v7190_v43  ;;  %v3661_v4 = vadd.f32 %v3633_v18, %v7211_v57  ;;  %v4673_v57 = vld.sshfl [vmem:[#allocation1 + $0x30] sm:$0xff pattern:$0x75316420]  ;;  %v4463_v18 = vrot.slane %v4423_v3, 4 }
 0x3cb   : > { %v7321_v45 = vpop.f32.mrf.mxu1  ;;  %4680 = vst [vmem:[#allocation1 + $0x30] ss:$2 sm:$0xff] %v4416_v11 }
 0x3cc   : > { %4681 = vst [vmem:[#allocation1 + $0x31] ss:$2 sm:$0xff] %v4417_v44  ;;  %v4427_v44 = vld [vmem:[#allocation3 + $0xc2] sm:$0xff] }
 0x3cf   : > { %5304 = vmatmul.msk.f32.gmra.mxu1 %vm272_vm0, %v4671_v39 }
 0x3d1   : > { %v3636_v52 = vpop.f32.mrf.mxu0  ;;  %5280 = vmatmul.msk.f32.gmra.mxu3 %vm272_vm0, %v7960_v61 }
 0x3d2   : > { %5292 = vmatmul.msk.f32.gmra.mxu0 %vm272_vm0, %v7227_v1  ;;  %v3662_v43 = vadd.f32 %v3636_v52, %v7241_v17  ;;  %v4682_v1 = vld.sshfl [vmem:[#allocation1] sm:$0xff pattern:$0x75316420] }
 0x3d3   : > { %v7329_v29 = vpop.f32.mrf.mxu1  ;;  %4686 = vst [vmem:[#allocation1] ss:$2 sm:$0xff] %v4460_v60  ;;  %v4685_v42 = vld.sshfl [vmem:[#allocation1 + $0x30] sm:$0xff pattern:$0x75316420]  ;;  %v4465_v60 = vrot.slane %v4427_v44, 4 }
 0x3d4   : > { %4687 = vst [vmem:[#allocation1 + $0x1] ss:$2 sm:$0xff] %v4418_v51 }
 0x3d7   : > { %5305 = vmatmul.msk.f32.gmra.mxu1 %vm272_vm0, %v4672_v62 }
 0x3d9   : > { %v3639_v8 = vpop.f32.mrf.mxu0  ;;  %5281 = vmatmul.msk.f32.gmra.mxu3 %vm272_vm0, %v7108_v16 }
 0x3da   : > { %5293 = vmatmul.msk.f32.gmra.mxu0 %vm272_vm0, %v7233_v10  ;;  %v3663_v17 = vadd.f32 %v3639_v8, %v7269_v37  ;;  %v4683_v10 = vld.sshfl [vmem:[#allocation1 + $0x10] sm:$0xff pattern:$0x75316420]  ;;  %v4461_v37 = vrot.slane %v4419_v34, 4  ;;  %v7382_v8 = vpop.f32.mrf.mxu2 }
 0x3db   : > { %v7337_v5 = vpop.f32.mrf.mxu1  ;;  %4688 = vst [vmem:[#allocation1 + $0x10] ss:$2 sm:$0xff] %v4419_v34  ;;  %v7962_v34 = vld [vmem:[#allocation23_spill] sm:$0xff] }
 0x3dc   : > { %4689 = vst [vmem:[#allocation1 + $0x11] ss:$2 sm:$0xff] %v4461_v37 }
 0x3df   : > { %5306 = vmatmul.msk.f32.gmra.mxu1 %vm272_vm0, %v4673_v57 }
 0x3e1   : > { %v3642_v33 = vpop.f32.mrf.mxu0  ;;  %5282 = vmatmul.msk.f32.gmra.mxu3 %vm272_vm0, %v7142_v7 }
 0x3e2   : > { %5294 = vmatmul.msk.f32.gmra.mxu0 %vm272_vm0, %v7213_v30  ;;  %v3664_v28 = vadd.f32 %v3642_v33, %v7293_v25  ;;  %v4684_v25 = vld.sshfl [vmem:[#allocation1 + $0x20] sm:$0xff pattern:$0x75316420]  ;;  %v4428_v33 = vld [vmem:[#allocation3 + $0xca] sm:$0xf] }
 0x3e3   : > { %v7345_v16 = vpop.f32.mrf.mxu1  ;;  %4690 = vst [vmem:[#allocation1 + $0x20] ss:$2 sm:$0xff] %v4420_v19 }
 0x3e4   : > { %4691 = vst [vmem:[#allocation1 + $0x21] ss:$2 sm:$0xff] %v4421_v55 }
 0x3e7   : > { %5307 = vmatmul.msk.f32.gmra.mxu1 %vm272_vm0, %v4682_v1 }
 0x3e9   : > { %v3645_v39 = vpop.f32.mrf.mxu0  ;;  %5283 = vmatmul.msk.f32.gmra.mxu3 %vm272_vm0, %v7137_v0  ;;  %v4422_v0 = vld [vmem:[#allocation3 + $0x9a] sm:$0xf] }
 0x3ea   : > { %5295 = vmatmul.msk.f32.gmra.mxu0 %vm272_vm0, %v7223_v12  ;;  %v3665_v30 = vadd.f32 %v3645_v39, %v3356_v53  ;;  %v4462_v12 = vrot.slane %v4421_v55, 4  ;;  %4693 = vst [vmem:[#allocation1 + $0x31] ss:$2 sm:$0xff] %v4422_v0  ;;  %v7963_v39 = vld [vmem:[#allocation14_spill] sm:$0xff]  ;;  %v4430_v55 = vld [vmem:[#allocation3 + $0xda] sm:$0xf] }
 0x3eb   : > { %v3817_v7 = vpop.f32.mrf.mxu1  ;;  %v4696_v52 = vld.sshfl [vmem:[#allocation1 + $0x20] sm:$0xff pattern:$0x75316420]  ;;  %v7966_v0 = vld [vmem:[#allocation25_spill] sm:$0xff] }
 0x3ec   : > { %v7353_v58 = vadd.f32 %v3817_v7, %v7306_v35  ;;  %4692 = vst [vmem:[#allocation1 + $0x30] ss:$2 sm:$0xff] %v4462_v12  ;;  %v4694_v35 = vld.sshfl [vmem:[#allocation1] sm:$0xff pattern:$0x75316420]  ;;  %v7964_v7 = vld [vmem:[#allocation13_spill] sm:$0xff] }
 0x3ed   : > { %4698 = vst [vmem:[#allocation1] ss:$2 sm:$0xff] %v4423_v3  ;;  %v7965_v12 = vld [vmem:[#allocation27_spill] sm:$0xff] }
 0x3ee   : > { %4699 = vst [vmem:[#allocation1 + $0x1] ss:$2 sm:$0xff] %v4463_v18 }
 0x3ef   : > { %5308 = vmatmul.msk.f32.gmra.mxu1 %vm272_vm0, %v4683_v10  ;;  %v4429_v10 = vld [vmem:[#allocation3 + $0xd2] sm:$0xff] }
 0x3f1   : > { %5284 = vmatmul.msk.f32.gmra.mxu3 %vm272_vm0, %v7125_v23  ;;  %v4695_v23 = vld.sshfl [vmem:[#allocation1 + $0x10] sm:$0xff pattern:$0x75316420] }
 0x3f2   : > { %5296 = vmatmul.msk.f32.gmra.mxu0 %vm272_vm0, %v7271_v36  ;;  %4700 = vst [vmem:[#allocation1 + $0x10] ss:$2 sm:$0xff] %v4424_v15  ;;  %v7969_v15 = vld [vmem:[#allocation58_spill] sm:$0xff] }
 0x3f3   : > { %v3820_v53 = vpop.f32.mrf.mxu1  ;;  %v4697_v11 = vld.sshfl [vmem:[#allocation1 + $0x30] sm:$0xff pattern:$0x75316420] }
 0x3f4   : > { %v7360_v50 = vadd.f32 %v3820_v53, %v3661_v4  ;;  %v4425_v4 = vld [vmem:[#allocation3 + $0xb2] sm:$0xff]  ;;  %4704 = vst [vmem:[#allocation1 + $0x30] ss:$2 sm:$0xff] %v4427_v44 }
 0x3f5   : > { %v4464_v2 = vrot.slane %v4425_v4, 4  ;;  %4701 = vst [vmem:[#allocation1 + $0x11] ss:$2 sm:$0xff] %v4425_v4  ;;  %v7973_v44 = vld [vmem:[#allocation75_spill] sm:$0xff] }
 0x3f6   : > { %4705 = vst [vmem:[#allocation1 + $0x31] ss:$2 sm:$0xff] %v4465_v60 }
 0x3f7   : > { %5309 = vmatmul.msk.f32.gmra.mxu1 %vm272_vm0, %v4684_v25  ;;  %4702 = vst [vmem:[#allocation1 + $0x20] ss:$2 sm:$0xff] %v4464_v2  ;;  %v4466_v25 = vrot.slane %v4429_v10, 4  ;;  %v7970_v2 = vld [vmem:[#allocation15_spill] sm:$0xff] }
 0x3fa   : > { %5297 = vmatmul.msk.f32.gmra.mxu0 %vm272_vm0, %v7263_v14 }
 0x3fb   : > { %v3823_v36 = vpop.f32.mrf.mxu1 }
 0x3fc   : > { %v7365_v62 = vadd.f32 %v3823_v36, %v3662_v43  ;;  %v4426_v43 = vld [vmem:[#allocation3 + $0xba] sm:$0xf]  ;;  %v7968_v36 = vld [vmem:[#allocation40_spill] sm:$0xff] }
 0x3fd   : > { %4703 = vst [vmem:[#allocation1 + $0x21] ss:$2 sm:$0xff] %v4426_v43 }
 0x3ff   : > { %5310 = vmatmul.msk.f32.gmra.mxu1 %vm272_vm0, %v4685_v42  ;;  %v837_v42 = vadd.f32 %v7965_v12, %v7964_v7  ;;  %v7978_v7 = vld [vmem:[#allocation61_spill] sm:$0xff] }
 0x402   : > { %5298 = vmatmul.msk.f32.gmra.mxu0 %vm272_vm0, %v7247_v22 }
 0x403   : > { %v3826_v14 = vpop.f32.mrf.mxu1 }
 0x404   : > { %v7370_v61 = vadd.f32 %v3826_v14, %v3663_v17  ;;  %v7386_v17 = vpop.f32.mrf.mxu3 }
 0x407   : > { %5311 = vmatmul.msk.f32.gmra.mxu1 %vm272_vm0, %v4694_v35  ;;  %v4707_v35 = vld.sshfl [vmem:[#allocation1 + $0x10] sm:$0xff pattern:$0x75316420] }
 0x408   : > { %4712 = vst [vmem:[#allocation1 + $0x10] ss:$2 sm:$0xff] %v4466_v25 }
 0x409   : > { %4713 = vst [vmem:[#allocation1 + $0x11] ss:$2 sm:$0xff] %v4430_v55  ;;  %v4708_v55 = vld.sshfl [vmem:[#allocation1 + $0x20] sm:$0xff pattern:$0x75316420] }
 0x40a   : > { %5299 = vmatmul.msk.f32.gmra.mxu0 %vm272_vm0, %v7255_v59 }
 0x40b   : > { %v3829_v22 = vpop.f32.mrf.mxu1 }
 0x40c   : > { %v7375_v57 = vadd.f32 %v3829_v22, %v3664_v28  ;;  %v7961_v28 = vld [vmem:[#allocation11_spill] sm:$0xff]  ;;  %v7398_v19 = vpop.f32.mrf.mxu3  ;;  %v7972_v22 = vld [vmem:[#allocation29_spill] sm:$0xff] }
 0x40d   : > { %v834_v37 = vadd.f32 %v7962_v34, %v7961_v28  ;;  %v7975_v28 = vld [vmem:[#allocation19_spill] sm:$0xff] }
 0x40f   : > { %5312 = vmatmul.msk.f32.gmra.mxu1 %vm272_vm0, %v4695_v23 }
 0x412   : > { %5300 = vmatmul.msk.f32.gmra.mxu0 %vm272_vm0, %v7296_v63  ;;  %v4706_v63 = vld.sshfl [vmem:[#allocation1] sm:$0xff pattern:$0x75316420] }
 0x413   : > { %v3832_v1 = vpop.f32.mrf.mxu1  ;;  %4710 = vst [vmem:[#allocation1] ss:$2 sm:$0xff] %v4428_v33 }
 0x414   : > { %v7380_v59 = vadd.f32 %v3832_v1, %v3665_v30  ;;  %4711 = vst [vmem:[#allocation1 + $0x1] ss:$2 sm:$0xff] %v4429_v10  ;;  %v1176_v30 = vadd.f32 %v7963_v39, %v834_v37  ;;  %v7416_v1 = vpop.f32.mrf.mxu3  ;;  %v7976_v37 = vld [vmem:[#allocation44_spill] sm:$0xff] }
 0x416   : > { %v1363_v53 = vadd.f32 %v7966_v0, %v1176_v30  ;;  %v7977_v30 = vld [vmem:[#allocation100_spill] sm:$0xff] }
 0x417   : > { %5313 = vmatmul.msk.f32.gmra.mxu1 %vm272_vm0, %v4696_v52  ;;  %v7388_v51 = vpop.f32.mrf.mxu0  ;;  %v7971_v52 = vld [vmem:[#allocation31_spill] sm:$0xff] }
 0x418   : > { %v1670_v23 = vadd.f32 %v7968_v36, %v1363_v53  ;;  %v840_v43 = vadd.f32 %v7971_v52, %v7970_v2  ;;  %v7980_v53 = vld [vmem:[#allocation17_spill] sm:$0xff] }
 0x41a   : > { %5301 = vmatmul.msk.f32.gmra.mxu0 %vm272_vm0, %v7291_v46  ;;  %v7396_v46 = vpop.f32.mrf.mxu2  ;;  %v1857_v4 = vadd.f32 %v7969_v15, %v1670_v23  ;;  %v1178_v34 = vadd.f32 %v7975_v28, %v840_v43  ;;  %v7983_v23 = vld [vmem:[#allocation78_spill] sm:$0xff]  ;;  %v7988_v28 = vld [vmem:[#allocation48_spill] sm:$0xff] }
 0x41b   : > { %v7985_v43 = vld [vmem:[#allocation90_spill] sm:$0xff] }
 0x41c   : > { %v2164_v60 = vadd.f32 %v7973_v44, %v1857_v4  ;;  %v7984_v4 = vld [vmem:[#allocation137_spill] sm:$0xff] }
 0x41f   : > { %5314 = vmatmul.msk.f32.gmra.mxu1 %vm272_vm0, %v4697_v11  ;;  %v7404_v3 = vpop.f32.mrf.mxu0 }
 0x422   : > { %5302 = vmatmul.msk.f32.gmra.mxu0 %vm272_vm0, %v7279_v31  ;;  %v7967_v31 = vld [vmem:[#allocation16_spill] sm:$0xff]  ;;  %v7409_v14 = vpop.f32.mrf.mxu2 }
 0x423   : > { %v1177_v18 = vadd.f32 %v7967_v31, %v837_v42  ;;  %v7979_v42 = vld [vmem:[#allocation117_spill] sm:$0xff]  ;;  %v7981_v31 = vld [vmem:[#allocation35_spill] sm:$0xff] }
 0x425   : > { %v1364_v11 = vadd.f32 %v7972_v22, %v1177_v18  ;;  %v7982_v18 = vld [vmem:[#allocation33_spill] sm:$0xff] }
 0x426   : > { %v1365_v36 = vadd.f32 %v7982_v18, %v1178_v34  ;;  %v7993_v18 = vld [vmem:[#allocation20_spill] sm:$0xff] }
 0x427   : > { %5315 = vmatmul.msk.f32.gmra.mxu1 %vm272_vm0, %v4706_v63  ;;  %v7974_v63 = vld [vmem:[#allocation87_spill] sm:$0xff]  ;;  %v7419_v10 = vpop.f32.mrf.mxu0  ;;  %v1671_v39 = vadd.f32 %v7976_v37, %v1364_v11  ;;  %v7986_v11 = vld [vmem:[#allocation149_spill] sm:$0xff] }
 0x428   : > { %v2351_v33 = vadd.f32 %v7974_v63, %v2164_v60  ;;  %v7436_v60 = vpop.f32.mrf.mxu3  ;;  %v7987_v63 = vld [vmem:[#allocation22_spill] sm:$0xff]  ;;  %v1672_v37 = vadd.f32 %v7988_v28, %v1365_v36  ;;  %v7999_v28 = vld [vmem:[#allocation152_spill] sm:$0xff] }
 0x429   : > { %v1858_v12 = vadd.f32 %v7978_v7, %v1671_v39  ;;  %v7989_v39 = vld [vmem:[#allocation103_spill] sm:$0xff] }
 0x42a   : > { %v2658_v25 = vadd.f32 %v7977_v30, %v2351_v33  ;;  %v7432_v52 = vpop.f32.mrf.mxu2  ;;  %v7990_v30 = vld [vmem:[#allocation167_spill] sm:$0xff] }
 0x42b   : > { %v2165_v15 = vadd.f32 %v7983_v23, %v1858_v12  ;;  %v4709_v12 = vld.sshfl [vmem:[#allocation1 + $0x30] sm:$0xff pattern:$0x75316420]  ;;  %v7994_v23 = vld [vmem:[#allocation39_spill] sm:$0xff] }
 0x42c   : > { %v2845_v0 = vadd.f32 %v7979_v42, %v2658_v25 }
 0x42d   : > { %v2352_v22 = vadd.f32 %v7985_v43, %v2165_v15  ;;  %v846_v15 = vadd.f32 %v7994_v23, %v7993_v18  ;;  %v7997_v43 = vld [vmem:[#allocation141_spill] sm:$0xff]  ;;  %v4714_v18 = vld.sshfl [vmem:[#allocation1] sm:$0xff pattern:$0x75316420] }
 0x42e   : > { %v3152_v2 = vadd.f32 %v7984_v4, %v2845_v0  ;;  %v7992_v0 = vld [vmem:[#allocation120_spill] sm:$0xff]  ;;  %v7995_v4 = vld [vmem:[#allocation37_spill] sm:$0xff]  ;;  %v8004_v23 = vld [vmem:[#allocation67_spill] sm:$0xff] }
 0x42f   : > { %5316 = vmatmul.msk.f32.gmra.mxu1 %vm272_vm0, %v4707_v35  ;;  %v843_v35 = vadd.f32 %v7981_v31, %v7980_v53  ;;  %v2659_v34 = vadd.f32 %v7989_v39, %v2352_v22  ;;  %v7442_v7 = vpop.f32.mrf.mxu0 }
 0x430   : > { %v3339_v44 = vadd.f32 %v7986_v11, %v3152_v2  ;;  %v7996_v2 = vld [vmem:[#allocation81_spill] sm:$0xff] }
 0x431   : > { %v1179_v33 = vadd.f32 %v7987_v63, %v843_v35  ;;  %v2846_v53 = vadd.f32 %v7992_v0, %v2659_v34  ;;  %v8003_v0 = vld [vmem:[#allocation170_spill] sm:$0xff] }
 0x432   : > { %v3648_v25 = vadd.f32 %v7990_v30, %v3339_v44  ;;  %v7998_v44 = vld [vmem:[#allocation94_spill] sm:$0xff]  ;;  %v7458_v30 = vpop.f32.mrf.mxu2 }
 0x433   : > { %v1366_v35 = vadd.f32 %v7995_v4, %v1179_v33  ;;  %v3153_v22 = vadd.f32 %v7997_v43, %v2846_v53  ;;  %v8005_v4 = vld [vmem:[#allocation124_spill] sm:$0xff] }
 0x434   : > { %v3835_v31 = vadd.f32 %v7139_v27, %v3648_v25  ;;  %v8000_v27 = vld [vmem:[#allocation26_spill] sm:$0xff]  ;;  %v8001_v25 = vld [vmem:[#allocation52_spill] sm:$0xff] }
 0x435   : > { %v1180_v34 = vadd.f32 %v8000_v27, %v846_v15  ;;  %v1673_v33 = vadd.f32 %v8001_v25, %v1366_v35  ;;  %v8006_v43 = vld [vmem:[#allocation24_spill] sm:$0xff] }
 0x436   : > { %v4142_v11 = vadd.f32 %v7382_v8, %v3835_v31  ;;  %v7469_v31 = vpop.f32.mrf.mxu3  ;;  %v8010_v27 = vld [vmem:[#allocation144_spill] sm:$0xff] }
 0x437   : > { %5317 = vmatmul.msk.f32.gmra.mxu1 %vm272_vm0, %v4708_v55  ;;  %v7991_v55 = vld [vmem:[#allocation64_spill] sm:$0xff]  ;;  %v1860_v15 = vadd.f32 %v8004_v23, %v1673_v33 }
 0x438   : > { %v1859_v42 = vadd.f32 %v7991_v55, %v1672_v37  ;;  %v3340_v37 = vadd.f32 %v7999_v28, %v3153_v22  ;;  %v4329_v39 = vadd.f32 %v7386_v17, %v4142_v11  ;;  %v8002_v55 = vld [vmem:[#allocation107_spill] sm:$0xff]  ;;  %v7482_v28 = vpop.f32.mrf.mxu0 }
 0x439   : > { %v8007_v22 = vld [vmem:[#allocation43_spill] sm:$0xff] }
 0x43a   : > { %v2166_v36 = vadd.f32 %v7996_v2, %v1859_v42  ;;  %v3649_v53 = vadd.f32 %v8003_v0, %v3340_v37  ;;  %v4636_v8 = vadd.f32 %v7388_v51, %v4329_v39  ;;  %v7477_v51 = vld [vmem:[%s7744_s5] ss:$0 sm:$0xff]  ;;  %v849_v11 = vadd.f32 %v8007_v22, %v8006_v43  ;;  %v8009_v37 = vld [vmem:[#allocation84_spill] sm:$0xff]  ;;  %v7504_v43 = vpop.f32.mrf.mxu2 }
 0x43b   : > { %v2167_v39 = vadd.f32 %v8009_v37, %v1860_v15  ;;  %v8012_v0 = vld [vmem:[#allocation156_spill] sm:$0xff] }
 0x43c   : > { %v2353_v63 = vadd.f32 %v7998_v44, %v2166_v36  ;;  %v3836_v2 = vadd.f32 %v7164_v41, %v3649_v53  ;;  %v8008_v44 = vld [vmem:[#allocation41_spill] sm:$0xff]  ;;  %v8018_v37 = vld [vmem:[#allocation128_spill] sm:$0xff] }
 0x43e   : > { %v2660_v42 = vadd.f32 %v8002_v55, %v2353_v63  ;;  %v1367_v63 = vadd.f32 %v8008_v44, %v1180_v34  ;;  %v4143_v41 = vadd.f32 %v7396_v46, %v3836_v2  ;;  %v8011_v55 = vld [vmem:[#allocation97_spill] sm:$0xff]  ;;  %v8015_v46 = vld [vmem:[#allocation111_spill] sm:$0xff]  ;;  %v8017_v44 = vld [vmem:[#allocation70_spill] sm:$0xff] }
 0x43f   : > { %5318 = vmatmul.msk.f32.gmra.mxu1 %vm272_vm0, %v4709_v12  ;;  %v7467_v12 = vld [vmem:[%s7743_s4] ss:$0 sm:$0xff] }
 0x440   : > { %v2847_v35 = vadd.f32 %v8005_v4, %v2660_v42  ;;  %v2354_v42 = vadd.f32 %v8011_v55, %v2167_v39  ;;  %v8014_v4 = vld [vmem:[#allocation56_spill] sm:$0xff] }
 0x441   : > { %v1674_v15 = vadd.f32 %v8014_v4, %v1367_v63 }
 0x442   : > { %v3154_v25 = vadd.f32 %v8010_v27, %v2847_v35  ;;  %v8016_v35 = vld [vmem:[#allocation173_spill] sm:$0xff] }
 0x443   : > { %v1861_v63 = vadd.f32 %v8017_v44, %v1674_v15  ;;  %v8027_v44 = vld [vmem:[#allocation59_spill] sm:$0xff] }
 0x444   : > { %v4769_v17 = vpop.f32.mrf.mxu1  ;;  %v3341_v53 = vadd.f32 %v8012_v0, %v3154_v25 }
 0x445   : > { %v4823_v36 = vadd.f32 %v4769_v17, %v4636_v8  ;;  %v4330_v8 = vadd.f32 %v7398_v19, %v4143_v41  ;;  %v8013_v17 = vld [vmem:[#allocation30_spill] sm:$0xff]  ;;  %v8019_v41 = vld [vmem:[#allocation28_spill] sm:$0xff] }
 0x446   : > { %v1181_v23 = vadd.f32 %v8013_v17, %v849_v11  ;;  %v3650_v2 = vadd.f32 %v8016_v35, %v3341_v53  ;;  %v4715_v11 = vld.sshfl [vmem:[#allocation1 + $0x10] sm:$0xff pattern:$0x75316420]  ;;  %v8022_v53 = vld [vmem:[#allocation88_spill] sm:$0xff]  ;;  %v8025_v35 = vld [vmem:[#allocation159_spill] sm:$0xff] }
 0x447   : > { %v4845_v33 = vmul.f32 %v7467_v12, %v4823_v36  ;;  %5319 = vmatmul.msk.f32.gmra.mxu1 %vm272_vm0, %v4714_v18  ;;  %v2661_v18 = vadd.f32 %v8015_v46, %v2354_v42  ;;  %v4637_v36 = vadd.f32 %v7404_v3, %v4330_v8  ;;  %v8021_v42 = vld [vmem:[#allocation45_spill] sm:$0xff]  ;;  %v7514_v3 = vpop.f32.mrf.mxu3  ;;  %v2168_v8 = vadd.f32 %v8022_v53, %v1861_v63  ;;  %v8031_v53 = vld [vmem:[#allocation131_spill] sm:$0xff] }
 0x448   : > { %v3837_v27 = vadd.f32 %v7194_v20, %v3650_v2  ;;  %v1368_v0 = vadd.f32 %v8021_v42, %v1181_v23  ;;  %v7521_v20 = vpop.f32.mrf.mxu0  ;;  %v8024_v46 = vld [vmem:[#allocation101_spill] sm:$0xff] }
 0x449   : > { %v4867_v34 = vadd.f32 %v7477_v51, %v4845_v33  ;;  %v2848_v39 = vadd.f32 %v8018_v37, %v2661_v18  ;;  %v8020_v33 = vld [vmem:[#allocation47_spill] sm:$0xff]  ;;  %v2355_v18 = vadd.f32 %v8024_v46, %v2168_v8  ;;  %v7540_v46 = vpop.f32.mrf.mxu2 }
 0x44a   : > { %v852_v55 = vadd.f32 %v8020_v33, %v8019_v41  ;;  %v4144_v4 = vadd.f32 %v7409_v14, %v3837_v27  ;;  %v1675_v63 = vadd.f32 %v8027_v44, %v1368_v0  ;;  %v8028_v14 = vld [vmem:[#allocation115_spill] sm:$0xff]  ;;  %v8030_v33 = vld [vmem:[#allocation73_spill] sm:$0xff] }
 0x44b   : > { %v4885_v19 = vmax.f32 %v4867_v34, 0.0  ;;  %v8023_v34 = vld [vmem:[#allocation147_spill] sm:$0xff]  ;;  %v2662_v37 = vadd.f32 %v8028_v14, %v2355_v18  ;;  %v8035_v18 = vld [vmem:[#allocation92_spill] sm:$0xff] }
 0x44c   : > { %v4772_v22 = vpop.f32.mrf.mxu1  ;;  %v3155_v17 = vadd.f32 %v8023_v34, %v2848_v39  ;;  %v4331_v23 = vadd.f32 %v7416_v1, %v4144_v4  ;;  %v8029_v39 = vld [vmem:[#allocation176_spill] sm:$0xff]  ;;  %v1862_v42 = vadd.f32 %v8030_v33, %v1675_v63  ;;  %v8034_v4 = vld [vmem:[#allocation49_spill] sm:$0xff]  ;;  %v8038_v63 = vld [vmem:[#allocation163_spill] sm:$0xff] }
 0x44d   : > { %4904 = vst.msk [vmem:[%s7499_s28] sm:$0xff] %vm4903_vm3, %v4885_v19  ;;  %v4824_v25 = vadd.f32 %v4772_v22, %v4637_v36  ;;  %v8026_v19 = vld [vmem:[#allocation34_spill] sm:$0xff]  ;;  %v2849_v8 = vadd.f32 %v8031_v53, %v2662_v37 }
 0x44e   : > { %v3342_v2 = vadd.f32 %v8025_v35, %v3155_v17  ;;  %v1182_v22 = vadd.f32 %v8026_v19, %v852_v55  ;;  %v8032_v55 = vld [vmem:[#allocation32_spill] sm:$0xff]  ;;  %v8033_v17 = vld [vmem:[#allocation51_spill] sm:$0xff]  ;;  %v8036_v35 = vld [vmem:[#allocation150_spill] sm:$0xff] }
 0x44f   : > { %v4846_v15 = vmul.f32 %v7467_v12, %v4824_v25  ;;  %5320 = vmatmul.msk.f32.gmra.mxu1 %vm272_vm0, %v4715_v11  ;;  %v4638_v11 = vadd.f32 %v7419_v10, %v4331_v23  ;;  %v855_v0 = vadd.f32 %v8033_v17, %v8032_v55  ;;  %v2169_v10 = vadd.f32 %v8035_v18, %v1862_v42  ;;  %v7546_v19 = vpop.f32.mrf.mxu3  ;;  %v8043_v17 = vld [vmem:[#allocation134_spill] sm:$0xff]  ;;  %v8045_v18 = vld [vmem:[#allocation55_spill] sm:$0xff] }
 0x450   : > { %v3651_v27 = vadd.f32 %v8029_v39, %v3342_v2  ;;  %v3156_v2 = vadd.f32 %v8036_v35, %v2849_v8  ;;  %v8039_v39 = vld [vmem:[#allocation38_spill] sm:$0xff]  ;;  %v8046_v35 = vld [vmem:[#allocation53_spill] sm:$0xff] }
 0x451   : > { %v4868_v36 = vadd.f32 %v7477_v51, %v4846_v15  ;;  %v1369_v15 = vadd.f32 %v8034_v4, %v1182_v22 }
 0x452   : > { %v3838_v1 = vadd.f32 %v7221_v21, %v3651_v27  ;;  %v8037_v21 = vld [vmem:[#allocation104_spill] sm:$0xff]  ;;  %v3343_v14 = vadd.f32 %v8038_v63, %v3156_v2  ;;  %v1183_v27 = vadd.f32 %v8039_v39, %v855_v0  ;;  %v7571_v63 = vpop.f32.mrf.mxu2 }
 0x453   : > { %v4886_v25 = vmax.f32 %v4868_v36, 0.0  ;;  %v2356_v44 = vadd.f32 %v8037_v21, %v2169_v10 }
 0x454   : > { %v4775_v41 = vpop.f32.mrf.mxu1  ;;  %v4145_v23 = vadd.f32 %v7432_v52, %v3838_v1  ;;  %v8041_v52 = vld [vmem:[#allocation118_spill] sm:$0xff]  ;;  %v3652_v42 = vadd.f32 %v7100_v40, %v3343_v14  ;;  %v1370_v2 = vadd.f32 %v8046_v35, %v1183_v27  ;;  %v8049_v14 = vld [vmem:[#allocation108_spill] sm:$0xff] }
 0x455   : > { %4905 = vst.msk [vmem:[%s7499_s28 + $0x8] sm:$0xff] %vm4903_vm3, %v4886_v25  ;;  %v4825_v34 = vadd.f32 %v4775_v41, %v4638_v11  ;;  %v8040_v11 = vld [vmem:[#allocation62_spill] sm:$0xff]  ;;  %v7554_v41 = vpop.f32.mrf.mxu0  ;;  %v2663_v33 = vadd.f32 %v8041_v52, %v2356_v44  ;;  %v8052_v52 = vld [vmem:[#allocation65_spill] sm:$0xff] }
 0x456   : > { %v4332_v37 = vadd.f32 %v7436_v60, %v4145_v23  ;;  %v1676_v25 = vadd.f32 %v8040_v11, %v1369_v15  ;;  %v3839_v4 = vadd.f32 %v7251_v9, %v3652_v42  ;;  %v8044_v15 = vld [vmem:[#allocation36_spill] sm:$0xff]  ;;  %v8051_v27 = vld [vmem:[#allocation42_spill] sm:$0xff] }
 0x457   : > { %v4847_v36 = vmul.f32 %v7467_v12, %v4825_v34  ;;  %v8042_v34 = vld [vmem:[#allocation76_spill] sm:$0xff]  ;;  %v2850_v60 = vadd.f32 %v8043_v17, %v2663_v33  ;;  %v858_v10 = vadd.f32 %v8045_v18, %v8044_v15  ;;  %v1677_v33 = vadd.f32 %v8052_v52, %v1370_v2  ;;  %v7579_v42 = vpop.f32.mrf.mxu3  ;;  %v8057_v2 = vld [vmem:[#allocation99_spill] sm:$0xff]  ;;  %v8064_v52 = vld [vmem:[#allocation125_spill] sm:$0xff] }
 0x458   : > { %v4639_v53 = vadd.f32 %v7442_v7, %v4332_v37  ;;  %v1863_v55 = vadd.f32 %v8042_v34, %v1676_v25  ;;  %v8047_v23 = vld [vmem:[#allocation96_spill] sm:$0xff]  ;;  %v4146_v21 = vadd.f32 %v7458_v30, %v3839_v4  ;;  %v8053_v30 = vld [vmem:[#allocation121_spill] sm:$0xff]  ;;  %v8055_v4 = vld [vmem:[#allocation138_spill] sm:$0xff] }
 0x459   : > { %v4869_v22 = vadd.f32 %v7477_v51, %v4847_v36  ;;  %v8048_v36 = vld [vmem:[#allocation154_spill] sm:$0xff]  ;;  %v8050_v37 = vld [vmem:[#allocation168_spill] sm:$0xff]  ;;  %v1184_v25 = vadd.f32 %v8051_v27, %v858_v10  ;;  %v8056_v10 = vld [vmem:[#allocation57_spill] sm:$0xff] }
 0x45a   : > { %v2170_v40 = vadd.f32 %v8047_v23, %v1863_v55  ;;  %v3157_v7 = vadd.f32 %v8048_v36, %v2850_v60  ;;  %v4333_v39 = vadd.f32 %v7469_v31, %v4146_v21  ;;  %v8054_v60 = vld [vmem:[#allocation80_spill] sm:$0xff] }
 0x45b   : > { %v4887_v8 = vmax.f32 %v4869_v22, 0.0  ;;  %v1864_v31 = vadd.f32 %v8054_v60, %v1677_v33  ;;  %v1371_v35 = vadd.f32 %v8056_v10, %v1184_v25  ;;  %v7603_v25 = vpop.f32.mrf.mxu2 }
 0x45c   : > { %v4778_v1 = vpop.f32.mrf.mxu1  ;;  %v2357_v9 = vadd.f32 %v8049_v14, %v2170_v40  ;;  %v3344_v22 = vadd.f32 %v8050_v37, %v3157_v7  ;;  %v8059_v7 = vld [vmem:[#allocation112_spill] sm:$0xff] }
 0x45d   : > { %4906 = vst.msk [vmem:[%s7499_s28 + $0x10] sm:$0xff] %vm4903_vm3, %v4887_v8  ;;  %v4826_v0 = vadd.f32 %v4778_v1, %v4639_v53  ;;  %v4640_v1 = vadd.f32 %v7482_v28, %v4333_v39  ;;  %v7584_v55 = vpop.f32.mrf.mxu0  ;;  %v2171_v23 = vadd.f32 %v8057_v2, %v1864_v31  ;;  %v8061_v37 = vld [vmem:[#allocation4_spill] sm:$0xff] }
 0x45e   : > { %v2664_v53 = vadd.f32 %v8053_v30, %v2357_v9  ;;  %v3653_v8 = vadd.f32 %v7123_v48, %v3344_v22  ;;  %v8058_v48 = vld [vmem:[#allocation158_spill] sm:$0xff]  ;;  %v8062_v22 = vld [vmem:[#allocation7_spill] sm:$0xff] }
 0x45f   : > { %v4848_v44 = vmul.f32 %v7467_v12, %v4826_v0  ;;  %v2358_v21 = vadd.f32 %v8059_v7, %v2171_v23  ;;  %v861_v39 = vadd.f32 %v8062_v22, %v8061_v37  ;;  %v8075_v37 = vld [vmem:[#allocation71_spill] sm:$0xff] }
 0x460   : > { %v2851_v0 = vadd.f32 %v8055_v4, %v2664_v53  ;;  %v3840_v15 = vadd.f32 %v7277_v47, %v3653_v8  ;;  %v7608_v8 = vpop.f32.mrf.mxu3 }
 0x461   : > { %v4870_v11 = vadd.f32 %v7477_v51, %v4848_v44  ;;  %v8060_v44 = vld [vmem:[#allocation171_spill] sm:$0xff] }
 0x462   : > { %v3158_v40 = vadd.f32 %v8058_v48, %v2851_v0  ;;  %v4147_v28 = vadd.f32 %v7504_v43, %v3840_v15  ;;  %v2665_v43 = vadd.f32 %v8064_v52, %v2358_v21  ;;  %v8067_v0 = vld [vmem:[#allocation46_spill] sm:$0xff]  ;;  %v8070_v48 = vld [vmem:[#allocation60_spill] sm:$0xff] }
 0x463   : > { %v4888_v34 = vmax.f32 %v4870_v11, 0.0  ;;  %v8063_v11 = vld [vmem:[#allocation68_spill] sm:$0xff]  ;;  %v1185_v15 = vadd.f32 %v8067_v0, %v861_v39  ;;  %v8076_v39 = vld [vmem:[#allocation129_spill] sm:$0xff] }
 0x464   : > { %v4781_v17 = vpop.f32.mrf.mxu1  ;;  %v3345_v14 = vadd.f32 %v8060_v44, %v3158_v40  ;;  %v4334_v47 = vadd.f32 %v7514_v3, %v4147_v28  ;;  %v1678_v27 = vadd.f32 %v8063_v11, %v1371_v35  ;;  %v8065_v3 = vld [vmem:[#allocation83_spill] sm:$0xff]  ;;  %v8071_v28 = vld [vmem:[#allocation116_spill] sm:$0xff] }
 0x465   : > { %4907 = vst.msk [vmem:[%s7499_s28 + $0x18] sm:$0xff] %vm4903_vm3, %v4888_v34  ;;  %v4827_v18 = vadd.f32 %v4781_v17, %v4640_v1  ;;  %v8066_v17 = vld [vmem:[#allocation142_spill] sm:$0xff]  ;;  %v1372_v40 = vadd.f32 %v8070_v48, %v1185_v15 }
 0x466   : > { %v3654_v33 = vadd.f32 %v7148_v24, %v3345_v14  ;;  %v4641_v30 = vadd.f32 %v7521_v20, %v4334_v47  ;;  %v1865_v34 = vadd.f32 %v8065_v3, %v1678_v27  ;;  %v2852_v60 = vadd.f32 %v8066_v17, %v2665_v43  ;;  %v8068_v24 = vld [vmem:[#allocation102_spill] sm:$0xff]  ;;  %v8073_v14 = vld [vmem:[#allocation5_spill] sm:$0xff]  ;;  %v8074_v47 = vld [vmem:[#allocation8_spill] sm:$0xff]  ;;  %v4115_v43 = vpop.f32.mrf.mxu2 }
 0x467   : > { %v4849_v36 = vmul.f32 %v7467_v12, %v4827_v18  ;;  %v7616_v18 = vpop.f32.mrf.mxu0  ;;  %v8069_v20 = vld [vmem:[#allocation162_spill] sm:$0xff]  ;;  %v1679_v22 = vadd.f32 %v8075_v37, %v1372_v40 }
 0x468   : > { %v3841_v31 = vadd.f32 %v7300_v6, %v3654_v33  ;;  %v2172_v10 = vadd.f32 %v8068_v24, %v1865_v34  ;;  %v3159_v35 = vadd.f32 %v8069_v20, %v2852_v60  ;;  %v8079_v17 = vld [vmem:[#allocation50_spill] sm:$0xff] }
 0x469   : > { %v4871_v9 = vadd.f32 %v7477_v51, %v4849_v36  ;;  %v8072_v36 = vld [vmem:[#allocation174_spill] sm:$0xff] }
 0x46a   : > { %v4148_v2 = vadd.f32 %v7540_v46, %v3841_v31  ;;  %v2359_v6 = vadd.f32 %v8071_v28, %v2172_v10  ;;  %v3346_v7 = vadd.f32 %v8072_v36, %v3159_v35  ;;  %v4302_v31 = vpop.f32.mrf.mxu3  ;;  %v8082_v10 = vld [vmem:[#allocation63_spill] sm:$0xff]  ;;  %v8086_v36 = vld [vmem:[#allocation9_spill] sm:$0xff] }
 0x46b   : > { %v4889_v53 = vmax.f32 %v4871_v9, 0.0  ;;  %v864_v9 = vadd.f32 %v8074_v47, %v8073_v14 }
 0x46c   : > { %v4784_v1 = vpop.f32.mrf.mxu1  ;;  %v4335_v21 = vadd.f32 %v7546_v19, %v4148_v2  ;;  %v2666_v46 = vadd.f32 %v8076_v39, %v2359_v6  ;;  %v3655_v11 = vadd.f32 %v7173_v32, %v3346_v7  ;;  %v8081_v32 = vld [vmem:[#allocation169_spill] sm:$0xff]  ;;  %v8083_v2 = vld [vmem:[#allocation119_spill] sm:$0xff]  ;;  %v8085_v6 = vld [vmem:[#allocation6_spill] sm:$0xff] }
 0x46d   : > { %4908 = vst.msk [vmem:[%s7499_s28 + $0x20] sm:$0xff] %vm4903_vm3, %v4889_v53  ;;  %v4828_v4 = vadd.f32 %v4784_v1, %v4641_v30  ;;  %v8077_v30 = vld [vmem:[#allocation86_spill] sm:$0xff]  ;;  %v8078_v1 = vld [vmem:[#allocation145_spill] sm:$0xff]  ;;  %v1186_v60 = vadd.f32 %v8079_v17, %v864_v9  ;;  %v867_v7 = vadd.f32 %v8086_v36, %v8085_v6 }
 0x46e   : > { %v4642_v27 = vadd.f32 %v7554_v41, %v4335_v21  ;;  %v1866_v53 = vadd.f32 %v8077_v30, %v1679_v22  ;;  %v2853_v19 = vadd.f32 %v8078_v1, %v2666_v46  ;;  %v3842_v3 = vadd.f32 %v7313_v26, %v3655_v11  ;;  %v8087_v21 = vld [vmem:[#allocation74_spill] sm:$0xff]  ;;  %v8089_v39 = vld [vmem:[#allocation89_spill] sm:$0xff]  ;;  %v8090_v11 = vld [vmem:[#allocation148_spill] sm:$0xff] }
 0x46f   : > { %v4850_v23 = vmul.f32 %v7467_v12, %v4828_v4  ;;  %v8080_v4 = vld [vmem:[#allocation105_spill] sm:$0xff]  ;;  %v1373_v20 = vadd.f32 %v8082_v10, %v1186_v60  ;;  %v4609_v35 = vpop.f32.mrf.mxu0  ;;  %v8094_v17 = vld [vmem:[#allocation66_spill] sm:$0xff] }
 0x470   : > { %v2173_v0 = vadd.f32 %v8080_v4, %v1866_v53  ;;  %v3160_v15 = vadd.f32 %v8081_v32, %v2853_v19  ;;  %v4149_v41 = vadd.f32 %v7571_v63, %v3842_v3  ;;  %v8088_v63 = vld [vmem:[#allocation132_spill] sm:$0xff]  ;;  %v4118_v53 = vpop.f32.mrf.mxu2  ;;  %v8092_v1 = vld [vmem:[#allocation109_spill] sm:$0xff] }
 0x471   : > { %v4872_v44 = vadd.f32 %v7477_v51, %v4850_v23  ;;  %v8084_v23 = vld [vmem:[#allocation177_spill] sm:$0xff]  ;;  %v8093_v3 = vld [vmem:[#allocation172_spill] sm:$0xff] }
 0x472   : > { %v2360_v26 = vadd.f32 %v8083_v2, %v2173_v0  ;;  %v3347_v48 = vadd.f32 %v8084_v23, %v3160_v15  ;;  %v4336_v40 = vadd.f32 %v7579_v42, %v4149_v41  ;;  %v4305_v4 = vpop.f32.mrf.mxu3  ;;  %v8095_v0 = vld [vmem:[#allocation122_spill] sm:$0xff]  ;;  %v8096_v32 = vld [vmem:[#allocation180_spill] sm:$0xff]  ;;  %v8097_v10 = vld [vmem:[#allocation77_spill] sm:$0xff] }
 0x473   : > { %v4890_v52 = vmax.f32 %v4872_v44, 0.0  ;;  %v1680_v44 = vadd.f32 %v8087_v21, %v1373_v20  ;;  %v8099_v6 = vld [vmem:[#allocation93_spill] sm:$0xff] }
 0x474   : > { %v4787_v33 = vpop.f32.mrf.mxu1  ;;  %v2667_v14 = vadd.f32 %v8088_v63, %v2360_v26  ;;  %v3656_v47 = vadd.f32 %v7203_v13, %v3347_v48  ;;  %v4643_v9 = vadd.f32 %v7584_v55, %v4336_v40  ;;  %v8098_v26 = vld [vmem:[#allocation135_spill] sm:$0xff]  ;;  %v8101_v63 = vld [vmem:[#allocation113_spill] sm:$0xff] }
 0x475   : > { %4909 = vst.msk [vmem:[%s7499_s28 + $0x28] sm:$0xff] %vm4903_vm3, %v4890_v52  ;;  %v4829_v34 = vadd.f32 %v4787_v33, %v4642_v27  ;;  %v1867_v46 = vadd.f32 %v8089_v39, %v1680_v44  ;;  %v8091_v33 = vld [vmem:[#allocation54_spill] sm:$0xff] }
 0x476   : > { %v2854_v27 = vadd.f32 %v8090_v11, %v2667_v14  ;;  %v3843_v42 = vadd.f32 %v7321_v45, %v3656_v47  ;;  %v1187_v30 = vadd.f32 %v8091_v33, %v867_v7  ;;  %v8100_v7 = vld [vmem:[#allocation151_spill] sm:$0xff] }
 0x477   : > { %v4851_v24 = vmul.f32 %v7467_v12, %v4829_v34  ;;  %v2174_v19 = vadd.f32 %v8092_v1, %v1867_v46  ;;  %v4612_v2 = vpop.f32.mrf.mxu0  ;;  %v8102_v47 = vld [vmem:[#allocation175_spill] sm:$0xff]  ;;  %v8104_v46 = vld [vmem:[#allocation181_spill] sm:$0xff] }
 0x478   : > { %v3161_v13 = vadd.f32 %v8093_v3, %v2854_v27  ;;  %v4150_v55 = vadd.f32 %v7603_v25, %v3843_v42  ;;  %v1374_v60 = vadd.f32 %v8094_v17, %v1187_v30 }
 0x479   : > { %v4873_v28 = vadd.f32 %v7477_v51, %v4851_v24  ;;  %v2361_v45 = vadd.f32 %v8095_v0, %v2174_v19 }
 0x47a   : > { %v3348_v15 = vadd.f32 %v8096_v32, %v3161_v13  ;;  %v4337_v41 = vadd.f32 %v7608_v8, %v4150_v55  ;;  %v1681_v20 = vadd.f32 %v8097_v10, %v1374_v60  ;;  %v8106_v13 = vld [vmem:[#allocation155_spill] sm:$0xff] }
 0x47b   : > { %v4891_v37 = vmax.f32 %v4873_v28, 0.0  ;;  %v2668_v23 = vadd.f32 %v8098_v26, %v2361_v45 }
 0x47c   : > { %v4790_v22 = vpop.f32.mrf.mxu1  ;;  %v3657_v25 = vadd.f32 %v7235_v49, %v3348_v15  ;;  %v4644_v48 = vadd.f32 %v7616_v18, %v4337_v41  ;;  %v1868_v36 = vadd.f32 %v8099_v6, %v1681_v20  ;;  %v4121_v18 = vpop.f32.mrf.mxu2 }
 0x47d   : > { %4910 = vst.msk [vmem:[%s7499_s28 + $0x30] sm:$0xff] %vm4903_vm3, %v4891_v37  ;;  %v4830_v52 = vadd.f32 %v4790_v22, %v4643_v9  ;;  %v2855_v21 = vadd.f32 %v8100_v7, %v2668_v23  ;;  %v8103_v22 = vld [vmem:[#allocation126_spill] sm:$0xff] }
 0x47e   : > { %v3844_v44 = vadd.f32 %v7329_v29, %v3657_v25  ;;  %v2175_v14 = vadd.f32 %v8101_v63, %v1868_v36  ;;  %v4308_v29 = vpop.f32.mrf.mxu3 }
 0x47f   : > { %v4852_v34 = vmul.f32 %v7467_v12, %v4830_v52  ;;  %v3162_v9 = vadd.f32 %v8102_v47, %v2855_v21  ;;  %v8105_v52 = vld [vmem:[#allocation139_spill] sm:$0xff]  ;;  %v4615_v3 = vpop.f32.mrf.mxu0 }
 0x480   : > { %v4151_v37 = vadd.f32 %v4115_v43, %v3844_v44  ;;  %v2362_v39 = vadd.f32 %v8103_v22, %v2175_v14 }
 0x481   : > { %v4874_v24 = vadd.f32 %v7477_v51, %v4852_v34  ;;  %v3349_v11 = vadd.f32 %v8104_v46, %v3162_v9 }
 0x482   : > { %v4338_v27 = vadd.f32 %v4302_v31, %v4151_v37  ;;  %v2669_v33 = vadd.f32 %v8105_v52, %v2362_v39  ;;  %v8107_v31 = vld [vmem:[#allocation179_spill] sm:$0xff] }
 0x483   : > { %v4892_v40 = vmax.f32 %v4874_v24, 0.0  ;;  %v3658_v30 = vadd.f32 %v7261_v54, %v3349_v11 }
 0x484   : > { %v4793_v28 = vpop.f32.mrf.mxu1  ;;  %v4645_v1 = vadd.f32 %v4609_v35, %v4338_v27  ;;  %v2856_v55 = vadd.f32 %v8106_v13, %v2669_v33  ;;  %v4124_v15 = vpop.f32.mrf.mxu2 }
 0x485   : > { %4911 = vst.msk [vmem:[%s7499_s28 + $0x38] sm:$0xff] %vm4903_vm3, %v4892_v40  ;;  %v4831_v8 = vadd.f32 %v4793_v28, %v4644_v48  ;;  %v3845_v34 = vadd.f32 %v7337_v5, %v3658_v30 }
 0x486   : > { %v3163_v60 = vadd.f32 %v8107_v31, %v2856_v55  ;;  %v4311_v10 = vpop.f32.mrf.mxu3 }
 0x487   : > { %v4853_v49 = vmul.f32 %v7467_v12, %v4831_v8  ;;  %v4152_v0 = vadd.f32 %v4118_v53, %v3845_v34  ;;  %v4618_v23 = vpop.f32.mrf.mxu0 }
 0x488   : > { %v3350_v32 = vadd.f32 %v7150_v38, %v3163_v60 }
 0x489   : > { %v4875_v42 = vadd.f32 %v7477_v51, %v4853_v49  ;;  %v4339_v54 = vadd.f32 %v4305_v4, %v4152_v0 }
 0x48a   : > { %v3659_v41 = vadd.f32 %v7286_v56, %v3350_v32 }
 0x48b   : > { %v4893_v19 = vmax.f32 %v4875_v42, 0.0  ;;  %v4646_v24 = vadd.f32 %v4612_v2, %v4339_v54 }
 0x48c   : > { %v4796_v43 = vpop.f32.mrf.mxu1  ;;  %v3846_v26 = vadd.f32 %v7345_v16, %v3659_v41  ;;  %v4127_v2 = vpop.f32.mrf.mxu2  ;;  %v4154_v16 = vadd.f32 %v4124_v15, %v7353_v58 }
 0x48d   : > { %4912 = vst.msk [vmem:[%s7499_s28 + $0x40] sm:$0xff] %vm4903_vm3, %v4893_v19  ;;  %v4832_v17 = vadd.f32 %v4796_v43, %v4645_v1  ;;  %v4155_v49 = vadd.f32 %v4127_v2, %v7360_v50 }
 0x48e   : > { %v4153_v25 = vadd.f32 %v4121_v18, %v3846_v26  ;;  %v4314_v36 = vpop.f32.mrf.mxu3  ;;  %v4341_v44 = vadd.f32 %v4311_v10, %v4154_v16 }
 0x48f   : > { %v4854_v45 = vmul.f32 %v7467_v12, %v4832_v17  ;;  %v4621_v21 = vpop.f32.mrf.mxu0  ;;  %v4342_v58 = vadd.f32 %v4314_v36, %v4155_v49 }
 0x490   : > { %v4340_v4 = vadd.f32 %v4308_v29, %v4153_v25  ;;  %v4648_v63 = vadd.f32 %v4618_v23, %v4341_v44 }
 0x491   : > { %v4876_v35 = vadd.f32 %v7477_v51, %v4854_v45  ;;  %v4649_v11 = vadd.f32 %v4621_v21, %v4342_v58 }
 0x492   : > { %v4647_v40 = vadd.f32 %v4615_v3, %v4340_v4 }
 0x493   : > { %v4894_v5 = vmax.f32 %v4876_v35, 0.0 }
 0x494   : > { %v4799_v20 = vpop.f32.mrf.mxu1  ;;  %v4130_v37 = vpop.f32.mrf.mxu2 }
 0x495   : > { %4913 = vst.msk [vmem:[%s7499_s28 + $0x48] sm:$0xff] %vm4903_vm3, %v4894_v5  ;;  %v4833_v53 = vadd.f32 %v4799_v20, %v4646_v24  ;;  %v4156_v52 = vadd.f32 %v4130_v37, %v7365_v62 }
 0x496   : > { %v4317_v22 = vpop.f32.mrf.mxu3 }
 0x497   : > { %v4855_v38 = vmul.f32 %v7467_v12, %v4833_v53  ;;  %v4624_v46 = vpop.f32.mrf.mxu0  ;;  %v4343_v50 = vadd.f32 %v4317_v22, %v4156_v52 }
 0x499   : > { %v4877_v48 = vadd.f32 %v7477_v51, %v4855_v38  ;;  %v4650_v3 = vadd.f32 %v4624_v46, %v4343_v50 }
 0x49b   : > { %v4895_v56 = vmax.f32 %v4877_v48, 0.0 }
 0x49c   : > { %v4802_v28 = vpop.f32.mrf.mxu1  ;;  %v4133_v30 = vpop.f32.mrf.mxu2 }
 0x49d   : > { %4914 = vst.msk [vmem:[%s7499_s28 + $0x50] sm:$0xff] %vm4903_vm3, %v4895_v56  ;;  %v4834_v6 = vadd.f32 %v4802_v28, %v4647_v40  ;;  %v4157_v17 = vadd.f32 %v4133_v30, %v7370_v61 }
 0x49e   : > { %v4320_v19 = vpop.f32.mrf.mxu3 }
 0x49f   : > { %v4856_v7 = vmul.f32 %v7467_v12, %v4834_v6  ;;  %v4627_v13 = vpop.f32.mrf.mxu0  ;;  %v4344_v62 = vadd.f32 %v4320_v19, %v4157_v17 }
 0x4a1   : > { %v4878_v8 = vadd.f32 %v7477_v51, %v4856_v7  ;;  %v4651_v45 = vadd.f32 %v4627_v13, %v4344_v62 }
 0x4a3   : > { %v4896_v14 = vmax.f32 %v4878_v8, 0.0 }
 0x4a4   : > { %v4805_v47 = vpop.f32.mrf.mxu1  ;;  %v4136_v0 = vpop.f32.mrf.mxu2 }
 0x4a5   : > { %4915 = vst.msk [vmem:[%s7499_s28 + $0x58] sm:$0xff] %vm4903_vm3, %v4896_v14  ;;  %v4835_v9 = vadd.f32 %v4805_v47, %v4648_v63  ;;  %v4158_v24 = vadd.f32 %v4136_v0, %v7375_v57 }
 0x4a6   : > { %v4323_v54 = vpop.f32.mrf.mxu3 }
 0x4a7   : > { %v4857_v18 = vmul.f32 %v7467_v12, %v4835_v9  ;;  %v4630_v41 = vpop.f32.mrf.mxu0  ;;  %v4345_v61 = vadd.f32 %v4323_v54, %v4158_v24 }
 0x4a9   : > { %v4879_v39 = vadd.f32 %v7477_v51, %v4857_v18  ;;  %v4652_v20 = vadd.f32 %v4630_v41, %v4345_v61 }
 0x4ab   : > { %v4897_v27 = vmax.f32 %v4879_v39, 0.0 }
 0x4ac   : > { %v4808_v42 = vpop.f32.mrf.mxu1  ;;  %v4139_v53 = vpop.f32.mrf.mxu2 }
 0x4ad   : > { %4916 = vst.msk [vmem:[%s7499_s28 + $0x60] sm:$0xff] %vm4903_vm3, %v4897_v27  ;;  %v4836_v29 = vadd.f32 %v4808_v42, %v4649_v11  ;;  %v4159_v4 = vadd.f32 %v4139_v53, %v7380_v59 }
 0x4ae   : > { %v4326_v38 = vpop.f32.mrf.mxu3 }
 0x4af   : > { %v4858_v33 = vmul.f32 %v7467_v12, %v4836_v29  ;;  %v4633_v57 = vpop.f32.mrf.mxu0  ;;  %v4346_v40 = vadd.f32 %v4326_v38, %v4159_v4 }
 0x4b1   : > { %v4880_v1 = vadd.f32 %v7477_v51, %v4858_v33  ;;  %v4653_v2 = vadd.f32 %v4633_v57, %v4346_v40 }
 0x4b3   : > { %v4898_v43 = vmax.f32 %v4880_v1, 0.0 }
 0x4b4   : > { %v4811_v55 = vpop.f32.mrf.mxu1 }
 0x4b5   : > { %4917 = vst.msk [vmem:[%s7499_s28 + $0x68] sm:$0xff] %vm4903_vm3, %v4898_v43  ;;  %v4837_v34 = vadd.f32 %v4811_v55, %v4650_v3 }
 0x4b7   : > { %v4859_v31 = vmul.f32 %v7467_v12, %v4837_v34 }
 0x4b9   : > { %v4881_v60 = vadd.f32 %v7477_v51, %v4859_v31 }
 0x4bb   : > { %v4899_v32 = vmax.f32 %v4881_v60, 0.0 }
 0x4bc   : > { %v4814_v35 = vpop.f32.mrf.mxu1 }
 0x4bd   : > { %4918 = vst.msk [vmem:[%s7499_s28 + $0x70] sm:$0xff] %vm4903_vm3, %v4899_v32  ;;  %v4838_v15 = vadd.f32 %v4814_v35, %v4651_v45 }
 0x4bf   : > { %v4860_v5 = vmul.f32 %v7467_v12, %v4838_v15 }
 0x4c1   : > { %v4882_v10 = vadd.f32 %v7477_v51, %v4860_v5 }
 0x4c3   : > { %v4900_v26 = vmax.f32 %v4882_v10, 0.0 }
 0x4c4   : > { %v4817_v23 = vpop.f32.mrf.mxu1 }
 0x4c5   : > { %4919 = vst.msk [vmem:[%s7499_s28 + $0x78] sm:$0xff] %vm4903_vm3, %v4900_v26  ;;  %v4839_v25 = vadd.f32 %v4817_v23, %v4652_v20 }
 0x4c7   : > { %v4861_v48 = vmul.f32 %v7467_v12, %v4839_v25 }
 0x4c9   : > { %v4883_v56 = vadd.f32 %v7477_v51, %v4861_v48 }
 0x4cb   : > { %v4901_v28 = vmax.f32 %v4883_v56, 0.0 }
 0x4cc   : > { %v4820_v6 = vpop.f32.mrf.mxu1 }
 0x4cd   : > { %4920 = vst.msk [vmem:[%s7499_s28 + $0x80] sm:$0xff] %vm4903_vm3, %v4901_v28  ;;  %v4840_v36 = vadd.f32 %v4820_v6, %v4653_v2 }
 0x4cf   : > { %v4862_v16 = vmul.f32 %v7467_v12, %v4840_v36 }
 0x4d1   : > { %v4884_v7 = vadd.f32 %v7477_v51, %v4862_v16 }
 0x4d3   : > { %v4902_v21 = vmax.f32 %v4884_v7, 0.0 }
 0x4d5   : > { %4921 = vst.msk [vmem:[%s7499_s28 + $0x88] sm:$0xff] %vm4903_vm3, %v4902_v21 }
 0x4d6 PF: > { %s16_s21 = sadd.s32 1, %s5344_s21  }
 0x4d7   : > { %p13_p4 = scmp.ge.s32.totalorder %s16_s21, 4  }
 0x4d9   :  { %15 = sbr.rel (!%p13_p4) target bundleno = 1 (0x1), region = 207 }

</bundles_post_ra>
